<compile_context>
chip_gen: v5e
topology: v5e:2x2
jax: 0.10.0
libtpu: 0.0.40
codegen_flags: <defaults>
</compile_context>

<pallas_src>
import functools

import jax
import jax.numpy as jnp
from jax.experimental import pallas as pl
from jax.experimental.pallas import tpu as pltpu


# ----------------------------------------------------------------------------
# Fused kernel: 3x (im2col conv + maxpool + bias + ReLU) + MLP head.
# One grid step processes a tile of TB images entirely in VMEM.
# ----------------------------------------------------------------------------
def _fused_cnn_kernel(
    x_ref, w1_ref, b1_ref, w2_ref, b2_ref, w3_ref, b3_ref,
    fw1_ref, fb1_ref, fw2_ref, fb2_ref,
    o_ref,
    pad0, col1, pad1, col2, pad2, col3,
    *, H, W,
):
    TB = x_ref.shape[0]
    H2, W2 = H // 2, W // 2
    H4, W4 = H // 4, W // 4
    H8, W8 = H // 8, W // 8

    def conv_stage(xp, w_ref, b_ref, col_ref, h, w):
        """3x3 'same' conv as ONE im2col matmul, then 2x2 maxpool, bias, ReLU."""
        cin = xp.shape[-1]
        cout = w_ref.shape[1]
        m = TB * h * w
        # Build the (m, 9*cin) patch matrix once in VMEM scratch.
        t = 0
        for dy in range(3):
            for dx in range(3):
                col_ref[:, t * cin:(t + 1) * cin] = (
                    xp[:, dy:dy + h, dx:dx + w, :].reshape(m, cin))
                t += 1
        acc = jnp.dot(col_ref[...], w_ref[...],
                      preferred_element_type=jnp.float32)          # (m, cout)
        # 2x2 max-pool, stride 2.  Pool first: bias is per-channel and ReLU is
        # monotone, so relu(maxpool(acc) + b) == maxpool(relu(acc + b)).
        y = acc.reshape(TB * (h // 2), 2, w // 2, 2, cout)
        y = jnp.max(y, axis=3)
        y = jnp.max(y, axis=1)                                      # (TB*h/2, w/2, cout)
        y = jnp.maximum(y + b_ref[...], 0.0)                        # bias + ReLU
        return y.reshape(TB, h // 2, w // 2, cout)

    # ---- stage 1: Conv(1 -> 32).  The input is embedded into a zeroed buffer,
    # which provides both the spatial 'same' padding and the channel pad 1 -> 8.
    pad0[...] = jnp.zeros_like(pad0)
    pad0[:, 1:H + 1, 1:W + 1, 0:1] = x_ref[...]
    y1 = conv_stage(pad0[...], w1_ref, b1_ref, col1, H, W)          # (TB, H2, W2, 32)

    # ---- stage 2: Conv(32 -> 64)
    pad1[...] = jnp.zeros_like(pad1)
    pad1[:, 1:H2 + 1, 1:W2 + 1, :] = y1
    y2 = conv_stage(pad1[...], w2_ref, b2_ref, col2, H2, W2)        # (TB, H4, W4, 64)

    # ---- stage 3: Conv(64 -> 128)
    pad2[...] = jnp.zeros_like(pad2)
    pad2[:, 1:H4 + 1, 1:W4 + 1, :] = y2
    y3 = conv_stage(pad2[...], w3_ref, b3_ref, col3, H4, W4)        # (TB, H8, W8, 128)

    # ---- classifier: Linear(F,128) + ReLU + Linear(128,2).
    # fw1 rows were pre-permuted to NHWC order, so the NCHW flatten of the PyTorch
    # model costs nothing here; contract position-by-position (K=128 per step).
    C3 = 128
    h = jnp.zeros((TB, 128), jnp.float32)
    pos = 0
    for ph in range(H8):
        for pw in range(W8):
            v = y3[:, ph, pw, :]                                    # (TB, 128)
            h = h + jnp.dot(v, fw1_ref[pos * C3:(pos + 1) * C3, :],
                            preferred_element_type=jnp.float32)
            pos += 1
    h = jnp.maximum(h + fb1_ref[...], 0.0)
    logits = jnp.dot(h, fw2_ref[...],
                     preferred_element_type=jnp.float32) + fb2_ref[...]
    o_ref[0] = logits.astype(o_ref.dtype)


def _pick_batch_tile(n, cap=16):
    """Largest tile that divides N while keeping >= 2 grid steps (v7x megacore)."""
    if n <= 1:
        return 1
    best = 1
    for tb in range(1, min(n, cap) + 1):
        if n % tb == 0 and n // tb >= 2:
            best = tb
    return best


# ----------------------------------------------------------------------------
# Public forward pass (NCHW input, like the PyTorch module).
# ----------------------------------------------------------------------------
def cnn_forward(x_nchw, p, *, batch_tile=None):
    N, Cin, H, W = x_nchw.shape
    assert Cin == 1, "module is Conv2d(1, 32, ...)"
    assert H % 8 == 0 and W % 8 == 0, "three 2x2 max-pools require /8 spatial dims"
    # TODO(synk): non-multiple-of-8 spatial sizes would need PyTorch's floor-mode pooling.

    TB = batch_tile if batch_tile is not None else _pick_batch_tile(N)
    assert N % TB == 0
    G = N // TB

    H2, W2, H4, W4, H8, W8 = H // 2, W // 2, H // 4, W // 4, H // 8, W // 8
    F = 128 * H8 * W8

    # NCHW -> NHWC (Cin == 1, so this is effectively a free reshape at the boundary).
    x = jnp.transpose(x_nchw, (0, 2, 3, 1)).astype(jnp.float32)

    # --- weight prep: pure layout transforms, done once outside the kernel ---
    # conv weights (3,3,Cin,Cout) -> im2col form (9*Cin, Cout); layer-1 Cin padded 1->8.
    w1f = jnp.pad(p["w1"], ((0, 0), (0, 0), (0, 8 - p["w1"].shape[2]), (0, 0))
                  ).reshape(9 * 8, 32)
    w2f = p["w2"].reshape(9 * 32, 64)
    w3f = p["w3"].reshape(9 * 64, 128)
    # fc1 rows are in torch NCHW-flatten order (c, h, w); permute to NHWC order (h, w, c).
    fw1p = (p["fw1"].reshape(128, H8, W8, 128)
            .transpose(1, 2, 0, 3).reshape(F, 128))
    b1 = p["b1"].reshape(1, 32)
    b2 = p["b2"].reshape(1, 64)
    b3 = p["b3"].reshape(1, 128)
    fb1 = p["fb1"].reshape(1, 128)
    fw2 = p["fw2"]
    fb2 = p["fb2"].reshape(1, 2)

    kernel = functools.partial(_fused_cnn_kernel, H=H, W=W)

    def full(shape):  # whole-array VMEM block, same block for every grid step
        return pl.BlockSpec(shape, lambda n: (0,) * len(shape))

    out = pl.pallas_call(
        kernel,
        out_shape=jax.ShapeDtypeStruct((G, TB, 2), jnp.float32),
        grid=(G,),
        in_specs=[
            pl.BlockSpec((TB, H, W, 1), lambda n: (n, 0, 0, 0)),   # input batch tile
            full((9 * 8, 32)),   full((1, 32)),                    # conv1
            full((9 * 32, 64)),  full((1, 64)),                    # conv2
            full((9 * 64, 128)), full((1, 128)),                   # conv3
            full((F, 128)),      full((1, 128)),                   # fc1 (pre-permuted)
            full((128, 2)),      full((1, 2)),                     # fc2
        ],
        out_specs=pl.BlockSpec((1, TB, 2), lambda n: (n, 0, 0)),
        scratch_shapes=[
            pltpu.VMEM((TB, H + 2, W + 2, 8), jnp.float32),        # padded input (Cin->8)
            pltpu.VMEM((TB * H * W, 9 * 8), jnp.float32),          # im2col, layer 1
            pltpu.VMEM((TB, H2 + 2, W2 + 2, 32), jnp.float32),     # padded act 1
            pltpu.VMEM((TB * H2 * W2, 9 * 32), jnp.float32),       # im2col, layer 2
            pltpu.VMEM((TB, H4 + 2, W4 + 2, 64), jnp.float32),     # padded act 2
            pltpu.VMEM((TB * H4 * W4, 9 * 64), jnp.float32),       # im2col, layer 3
        ],
        compiler_params=pltpu.CompilerParams(
            dimension_semantics=("parallel",)),
    )(x, w1f, b1, w2f, b2, w3f, b3, fw1p, fb1, fw2, fb2)

    return out.reshape(N, 2)


# ----------------------------------------------------------------------------
# Pure-JAX reference for correctness checking.
# ----------------------------------------------------------------------------
def ref_forward(x_nchw, p):
    x = jnp.transpose(x_nchw, (0, 2, 3, 1))
    for w, b in [(p["w1"], p["b1"]), (p["w2"], p["b2"]), (p["w3"], p["b3"])]:
        x = jax.lax.conv_general_dilated(
            x, w, (1, 1), "SAME", dimension_numbers=("NHWC", "HWIO", "NHWC")
        ) + b
        x = jnp.maximum(x, 0.0)
        x = jax.lax.reduce_window(
            x, -jnp.inf, jax.lax.max, (1, 2, 2, 1), (1, 2, 2, 1), "VALID"
        )
    x = jnp.transpose(x, (0, 3, 1, 2)).reshape(x.shape[0], -1)   # NCHW flatten
    h = jnp.maximum(x @ p["fw1"] + p["fb1"], 0.0)
    return h @ p["fw2"] + p["fb2"]


def init_params(key, input_size=(16, 16)):
    ks = jax.random.split(key, 10)
    H, W = input_size
    flat = 128 * (H // 8) * (W // 8)
    return {
        "w1": jax.random.normal(ks[0], (3, 3, 1, 32), jnp.float32) * 0.2,
        "b1": jax.random.normal(ks[1], (32,), jnp.float32) * 0.05,
        "w2": jax.random.normal(ks[2], (3, 3, 32, 64), jnp.float32) * 0.05,
        "b2": jax.random.normal(ks[3], (64,), jnp.float32) * 0.05,
        "w3": jax.random.normal(ks[4], (3, 3, 64, 128), jnp.float32) * 0.05,
        "b3": jax.random.normal(ks[5], (128,), jnp.float32) * 0.05,
        "fw1": jax.random.normal(ks[6], (flat, 128), jnp.float32) * 0.03,
        "fb1": jax.random.normal(ks[7], (128,), jnp.float32) * 0.05,
        "fw2": jax.random.normal(ks[8], (128, 2), jnp.float32) * 0.05,
        "fb2": jax.random.normal(ks[9], (2,), jnp.float32) * 0.05,
    }


if __name__ == "__main__":
    key = jax.random.PRNGKey(0)
    k_param, k_x = jax.random.split(key)

    # Small shapes consistent with the module: input_size=(16,16), batch=2, 1 channel.
    x = jax.random.normal(k_x, (2, 1, 16, 16), jnp.float32)   # NCHW, like PyTorch
    params = init_params(k_param, input_size=(16, 16))

    out = jax.block_until_ready(cnn_forward(x, params))
    assert out.shape == (2, 2), out.shape

    ref = jax.block_until_ready(ref_forward(x, params))
    assert jnp.allclose(out, ref, atol=2e-3, rtol=2e-3), (out, ref)

    print("KERNEL_OK")
</pallas_src>

<mosaic_0001>
module attributes {stable_mosaic.version = 11 : i64} {
  func.func @_fused_cnn_kernel(%arg0: i32, %arg1: memref<1x16x16x1xf32, #tpu.memory_space<vmem>>, %arg2: memref<72x32xf32, #tpu.memory_space<vmem>>, %arg3: memref<1x32xf32, #tpu.memory_space<vmem>>, %arg4: memref<288x64xf32, #tpu.memory_space<vmem>>, %arg5: memref<1x64xf32, #tpu.memory_space<vmem>>, %arg6: memref<576x128xf32, #tpu.memory_space<vmem>>, %arg7: memref<1x128xf32, #tpu.memory_space<vmem>>, %arg8: memref<512x128xf32, #tpu.memory_space<vmem>>, %arg9: memref<1x128xf32, #tpu.memory_space<vmem>>, %arg10: memref<128x2xf32, #tpu.memory_space<vmem>>, %arg11: memref<1x2xf32, #tpu.memory_space<vmem>>, %arg12: memref<1x1x2xf32, #tpu.memory_space<vmem>>, %arg13: memref<1x18x18x8xf32, #tpu.memory_space<vmem>>, %arg14: memref<256x72xf32, #tpu.memory_space<vmem>>, %arg15: memref<1x10x10x32xf32, #tpu.memory_space<vmem>>, %arg16: memref<64x288xf32, #tpu.memory_space<vmem>>, %arg17: memref<1x6x6x64xf32, #tpu.memory_space<vmem>>, %arg18: memref<16x576xf32, #tpu.memory_space<vmem>>) attributes {dimension_semantics = [#tpu.dimension_semantics<parallel>], iteration_bounds = array<i64: 2>, scalar_prefetch = 0 : i64, scratch_operands = 6 : i64, tpu.core_type = #tpu.core_type<tc>, window_params = [{transform_indices = @transform_0, window_bounds = array<i64: 1, 16, 16, 1>}, {pipeline_mode = #tpu.pipeline_mode<synchronous>, transform_indices = @transform_1, window_bounds = array<i64: 72, 32>}, {pipeline_mode = #tpu.pipeline_mode<synchronous>, transform_indices = @transform_2, window_bounds = array<i64: 1, 32>}, {pipeline_mode = #tpu.pipeline_mode<synchronous>, transform_indices = @transform_3, window_bounds = array<i64: 288, 64>}, {pipeline_mode = #tpu.pipeline_mode<synchronous>, transform_indices = @transform_4, window_bounds = array<i64: 1, 64>}, {pipeline_mode = #tpu.pipeline_mode<synchronous>, transform_indices = @transform_5, window_bounds = array<i64: 576, 128>}, {pipeline_mode = #tpu.pipeline_mode<synchronous>, transform_indices = @transform_6, window_bounds = array<i64: 1, 128>}, {pipeline_mode = #tpu.pipeline_mode<synchronous>, transform_indices = @transform_7, window_bounds = array<i64: 512, 128>}, {pipeline_mode = #tpu.pipeline_mode<synchronous>, transform_indices = @transform_8, window_bounds = array<i64: 1, 128>}, {pipeline_mode = #tpu.pipeline_mode<synchronous>, transform_indices = @transform_9, window_bounds = array<i64: 128, 2>}, {pipeline_mode = #tpu.pipeline_mode<synchronous>, transform_indices = @transform_10, window_bounds = array<i64: 1, 2>}, {transform_indices = @transform_11, window_bounds = array<i64: 1, 1, 2>}]} {
    %cst = arith.constant 0.000000e+00 : f32
    %0 = vector.broadcast %cst : f32 to vector<1x18x18x8xf32>
    %c0 = arith.constant 0 : index
    %c0_0 = arith.constant 0 : index
    %c0_1 = arith.constant 0 : index
    %c0_2 = arith.constant 0 : index
    %1 = vector.load %arg13[%c0, %c0_0, %c0_1, %c0_2] : memref<1x18x18x8xf32, #tpu.memory_space<vmem>>, vector<1x18x18x8xf32>
    tpu.vector_store %arg13[%c0, %c0_0, %c0_1, %c0_2], %0 {strides = array<i32>} : memref<1x18x18x8xf32, #tpu.memory_space<vmem>>, vector<1x18x18x8xf32>,
    %c0_3 = arith.constant 0 : index
    %c0_4 = arith.constant 0 : index
    %c0_5 = arith.constant 0 : index
    %c0_6 = arith.constant 0 : index
    %2 = vector.load %arg1[%c0_3, %c0_4, %c0_5, %c0_6] : memref<1x16x16x1xf32, #tpu.memory_space<vmem>>, vector<1x16x16x1xf32>
    %c0_7 = arith.constant 0 : index
    %c1 = arith.constant 1 : index
    %c1_8 = arith.constant 1 : index
    %c0_9 = arith.constant 0 : index
    %3 = vector.load %arg13[%c0_7, %c1, %c1_8, %c0_9] : memref<1x18x18x8xf32, #tpu.memory_space<vmem>>, vector<1x16x16x1xf32>
    tpu.vector_store %arg13[%c0_7, %c1, %c1_8, %c0_9], %2 {strides = array<i32>} : memref<1x18x18x8xf32, #tpu.memory_space<vmem>>, vector<1x16x16x1xf32>,
    %c0_10 = arith.constant 0 : index
    %c0_11 = arith.constant 0 : index
    %c0_12 = arith.constant 0 : index
    %c0_13 = arith.constant 0 : index
    %4 = vector.load %arg13[%c0_10, %c0_11, %c0_12, %c0_13] : memref<1x18x18x8xf32, #tpu.memory_space<vmem>>, vector<1x18x18x8xf32>
    %5 = vector.extract_strided_slice %4 {offsets = [0, 0, 0, 0], sizes = [1, 16, 16, 8], strides = [1, 1, 1, 1]} : vector<1x18x18x8xf32> to vector<1x16x16x8xf32>
    %6 = vector.shape_cast %5 : vector<1x16x16x8xf32> to vector<256x8xf32>
    %c0_14 = arith.constant 0 : index
    %c0_15 = arith.constant 0 : index
    %7 = vector.load %arg14[%c0_14, %c0_15] : memref<256x72xf32, #tpu.memory_space<vmem>>, vector<256x8xf32>
    tpu.vector_store %arg14[%c0_14, %c0_15], %6 {strides = array<i32>} : memref<256x72xf32, #tpu.memory_space<vmem>>, vector<256x8xf32>,
    %8 = vector.extract_strided_slice %4 {offsets = [0, 0, 1, 0], sizes = [1, 16, 16, 8], strides = [1, 1, 1, 1]} : vector<1x18x18x8xf32> to vector<1x16x16x8xf32>
    %9 = vector.shape_cast %8 : vector<1x16x16x8xf32> to vector<256x8xf32>
    %c0_16 = arith.constant 0 : index
    %c8 = arith.constant 8 : index
    %10 = vector.load %arg14[%c0_16, %c8] : memref<256x72xf32, #tpu.memory_space<vmem>>, vector<256x8xf32>
    tpu.vector_store %arg14[%c0_16, %c8], %9 {strides = array<i32>} : memref<256x72xf32, #tpu.memory_space<vmem>>, vector<256x8xf32>,
    %11 = vector.extract_strided_slice %4 {offsets = [0, 0, 2, 0], sizes = [1, 16, 16, 8], strides = [1, 1, 1, 1]} : vector<1x18x18x8xf32> to vector<1x16x16x8xf32>
    %12 = vector.shape_cast %11 : vector<1x16x16x8xf32> to vector<256x8xf32>
    %c0_17 = arith.constant 0 : index
    %c16 = arith.constant 16 : index
    %13 = vector.load %arg14[%c0_17, %c16] : memref<256x72xf32, #tpu.memory_space<vmem>>, vector<256x8xf32>
    tpu.vector_store %arg14[%c0_17, %c16], %12 {strides = array<i32>} : memref<256x72xf32, #tpu.memory_space<vmem>>, vector<256x8xf32>,
    %14 = vector.extract_strided_slice %4 {offsets = [0, 1, 0, 0], sizes = [1, 16, 16, 8], strides = [1, 1, 1, 1]} : vector<1x18x18x8xf32> to vector<1x16x16x8xf32>
    %15 = vector.shape_cast %14 : vector<1x16x16x8xf32> to vector<256x8xf32>
    %c0_18 = arith.constant 0 : index
    %c24 = arith.constant 24 : index
    %16 = vector.load %arg14[%c0_18, %c24] : memref<256x72xf32, #tpu.memory_space<vmem>>, vector<256x8xf32>
    tpu.vector_store %arg14[%c0_18, %c24], %15 {strides = array<i32>} : memref<256x72xf32, #tpu.memory_space<vmem>>, vector<256x8xf32>,
    %17 = vector.extract_strided_slice %4 {offsets = [0, 1, 1, 0], sizes = [1, 16, 16, 8], strides = [1, 1, 1, 1]} : vector<1x18x18x8xf32> to vector<1x16x16x8xf32>
    %18 = vector.shape_cast %17 : vector<1x16x16x8xf32> to vector<256x8xf32>
    %c0_19 = arith.constant 0 : index
    %c32 = arith.constant 32 : index
    %19 = vector.load %arg14[%c0_19, %c32] : memref<256x72xf32, #tpu.memory_space<vmem>>, vector<256x8xf32>
    tpu.vector_store %arg14[%c0_19, %c32], %18 {strides = array<i32>} : memref<256x72xf32, #tpu.memory_space<vmem>>, vector<256x8xf32>,
    %20 = vector.extract_strided_slice %4 {offsets = [0, 1, 2, 0], sizes = [1, 16, 16, 8], strides = [1, 1, 1, 1]} : vector<1x18x18x8xf32> to vector<1x16x16x8xf32>
    %21 = vector.shape_cast %20 : vector<1x16x16x8xf32> to vector<256x8xf32>
    %c0_20 = arith.constant 0 : index
    %c40 = arith.constant 40 : index
    %22 = vector.load %arg14[%c0_20, %c40] : memref<256x72xf32, #tpu.memory_space<vmem>>, vector<256x8xf32>
    tpu.vector_store %arg14[%c0_20, %c40], %21 {strides = array<i32>} : memref<256x72xf32, #tpu.memory_space<vmem>>, vector<256x8xf32>,
    %23 = vector.extract_strided_slice %4 {offsets = [0, 2, 0, 0], sizes = [1, 16, 16, 8], strides = [1, 1, 1, 1]} : vector<1x18x18x8xf32> to vector<1x16x16x8xf32>
    %24 = vector.shape_cast %23 : vector<1x16x16x8xf32> to vector<256x8xf32>
    %c0_21 = arith.constant 0 : index
    %c48 = arith.constant 48 : index
    %25 = vector.load %arg14[%c0_21, %c48] : memref<256x72xf32, #tpu.memory_space<vmem>>, vector<256x8xf32>
    tpu.vector_store %arg14[%c0_21, %c48], %24 {strides = array<i32>} : memref<256x72xf32, #tpu.memory_space<vmem>>, vector<256x8xf32>,
    %26 = vector.extract_strided_slice %4 {offsets = [0, 2, 1, 0], sizes = [1, 16, 16, 8], strides = [1, 1, 1, 1]} : vector<1x18x18x8xf32> to vector<1x16x16x8xf32>
    %27 = vector.shape_cast %26 : vector<1x16x16x8xf32> to vector<256x8xf32>
    %c0_22 = arith.constant 0 : index
    %c56 = arith.constant 56 : index
    %28 = vector.load %arg14[%c0_22, %c56] : memref<256x72xf32, #tpu.memory_space<vmem>>, vector<256x8xf32>
    tpu.vector_store %arg14[%c0_22, %c56], %27 {strides = array<i32>} : memref<256x72xf32, #tpu.memory_space<vmem>>, vector<256x8xf32>,
    %29 = vector.extract_strided_slice %4 {offsets = [0, 2, 2, 0], sizes = [1, 16, 16, 8], strides = [1, 1, 1, 1]} : vector<1x18x18x8xf32> to vector<1x16x16x8xf32>
    %30 = vector.shape_cast %29 : vector<1x16x16x8xf32> to vector<256x8xf32>
    %c0_23 = arith.constant 0 : index
    %c64 = arith.constant 64 : index
    %31 = vector.load %arg14[%c0_23, %c64] : memref<256x72xf32, #tpu.memory_space<vmem>>, vector<256x8xf32>
    tpu.vector_store %arg14[%c0_23, %c64], %30 {strides = array<i32>} : memref<256x72xf32, #tpu.memory_space<vmem>>, vector<256x8xf32>,
    %c0_24 = arith.constant 0 : index
    %c0_25 = arith.constant 0 : index
    %32 = vector.load %arg14[%c0_24, %c0_25] : memref<256x72xf32, #tpu.memory_space<vmem>>, vector<256x72xf32>
    %c0_26 = arith.constant 0 : index
    %c0_27 = arith.constant 0 : index
    %33 = vector.load %arg2[%c0_26, %c0_27] : memref<72x32xf32, #tpu.memory_space<vmem>>, vector<72x32xf32>
    %cst_28 = arith.constant dense<0.000000e+00> : vector<256x32xf32>
    %34 = tpu.matmul %32, %33, %cst_28 {dimension_numbers = #tpu.dot_dimension_numbers<[1], [0], [0], [1], [0, 0, 1, 1], [], []>} : vector<256x72xf32>, vector<72x32xf32>, vector<256x32xf32> -> vector<256x32xf32>
    %35 = vector.shape_cast %34 : vector<256x32xf32> to vector<8x2x8x2x32xf32>
    %cst_29 = arith.constant dense<0xFF800000> : vector<8x2x8x32xf32>
    %36 = vector.multi_reduction <maximumf>, %35, %cst_29 [3] : vector<8x2x8x2x32xf32> to vector<8x2x8x32xf32>
    %cst_30 = arith.constant dense<0xFF800000> : vector<8x8x32xf32>
    %37 = vector.multi_reduction <maximumf>, %36, %cst_30 [1] : vector<8x2x8x32xf32> to vector<8x8x32xf32>
    %c0_31 = arith.constant 0 : index
    %c0_32 = arith.constant 0 : index
    %38 = vector.load %arg3[%c0_31, %c0_32] : memref<1x32xf32, #tpu.memory_space<vmem>>, vector<1x32xf32>
    %39 = vector.shape_cast %38 : vector<1x32xf32> to vector<1x1x32xf32>
    %40 = vector.broadcast %39 : vector<1x1x32xf32> to vector<8x8x32xf32>
    %41 = arith.addf %37, %40 : vector<8x8x32xf32>
    %cst_33 = arith.constant 0.000000e+00 : f32
    %42 = vector.broadcast %cst_33 : f32 to vector<8x8x32xf32>
    %43 = arith.maximumf %41, %42 : vector<8x8x32xf32>
    %44 = vector.shape_cast %43 : vector<8x8x32xf32> to vector<1x8x8x32xf32>
    %cst_34 = arith.constant 0.000000e+00 : f32
    %45 = vector.broadcast %cst_34 : f32 to vector<1x10x10x32xf32>
    %c0_35 = arith.constant 0 : index
    %c0_36 = arith.constant 0 : index
    %c0_37 = arith.constant 0 : index
    %c0_38 = arith.constant 0 : index
    %46 = vector.load %arg15[%c0_35, %c0_36, %c0_37, %c0_38] : memref<1x10x10x32xf32, #tpu.memory_space<vmem>>, vector<1x10x10x32xf32>
    tpu.vector_store %arg15[%c0_35, %c0_36, %c0_37, %c0_38], %45 {strides = array<i32>} : memref<1x10x10x32xf32, #tpu.memory_space<vmem>>, vector<1x10x10x32xf32>,
    %c0_39 = arith.constant 0 : index
    %c1_40 = arith.constant 1 : index
    %c1_41 = arith.constant 1 : index
    %c0_42 = arith.constant 0 : index
    %47 = vector.load %arg15[%c0_39, %c1_40, %c1_41, %c0_42] : memref<1x10x10x32xf32, #tpu.memory_space<vmem>>, vector<1x8x8x32xf32>
    tpu.vector_store %arg15[%c0_39, %c1_40, %c1_41, %c0_42], %44 {strides = array<i32>} : memref<1x10x10x32xf32, #tpu.memory_space<vmem>>, vector<1x8x8x32xf32>,
    %c0_43 = arith.constant 0 : index
    %c0_44 = arith.constant 0 : index
    %c0_45 = arith.constant 0 : index
    %c0_46 = arith.constant 0 : index
    %48 = vector.load %arg15[%c0_43, %c0_44, %c0_45, %c0_46] : memref<1x10x10x32xf32, #tpu.memory_space<vmem>>, vector<1x10x10x32xf32>
    %49 = vector.extract_strided_slice %48 {offsets = [0, 0, 0, 0], sizes = [1, 8, 8, 32], strides = [1, 1, 1, 1]} : vector<1x10x10x32xf32> to vector<1x8x8x32xf32>
    %50 = vector.shape_cast %49 : vector<1x8x8x32xf32> to vector<64x32xf32>
    %c0_47 = arith.constant 0 : index
    %c0_48 = arith.constant 0 : index
    %51 = vector.load %arg16[%c0_47, %c0_48] : memref<64x288xf32, #tpu.memory_space<vmem>>, vector<64x32xf32>
    tpu.vector_store %arg16[%c0_47, %c0_48], %50 {strides = array<i32>} : memref<64x288xf32, #tpu.memory_space<vmem>>, vector<64x32xf32>,
    %52 = vector.extract_strided_slice %48 {offsets = [0, 0, 1, 0], sizes = [1, 8, 8, 32], strides = [1, 1, 1, 1]} : vector<1x10x10x32xf32> to vector<1x8x8x32xf32>
    %53 = vector.shape_cast %52 : vector<1x8x8x32xf32> to vector<64x32xf32>
    %c0_49 = arith.constant 0 : index
    %c32_50 = arith.constant 32 : index
    %54 = vector.load %arg16[%c0_49, %c32_50] : memref<64x288xf32, #tpu.memory_space<vmem>>, vector<64x32xf32>
    tpu.vector_store %arg16[%c0_49, %c32_50], %53 {strides = array<i32>} : memref<64x288xf32, #tpu.memory_space<vmem>>, vector<64x32xf32>,
    %55 = vector.extract_strided_slice %48 {offsets = [0, 0, 2, 0], sizes = [1, 8, 8, 32], strides = [1, 1, 1, 1]} : vector<1x10x10x32xf32> to vector<1x8x8x32xf32>
    %56 = vector.shape_cast %55 : vector<1x8x8x32xf32> to vector<64x32xf32>
    %c0_51 = arith.constant 0 : index
    %c64_52 = arith.constant 64 : index
    %57 = vector.load %arg16[%c0_51, %c64_52] : memref<64x288xf32, #tpu.memory_space<vmem>>, vector<64x32xf32>
    tpu.vector_store %arg16[%c0_51, %c64_52], %56 {strides = array<i32>} : memref<64x288xf32, #tpu.memory_space<vmem>>, vector<64x32xf32>,
    %58 = vector.extract_strided_slice %48 {offsets = [0, 1, 0, 0], sizes = [1, 8, 8, 32], strides = [1, 1, 1, 1]} : vector<1x10x10x32xf32> to vector<1x8x8x32xf32>
    %59 = vector.shape_cast %58 : vector<1x8x8x32xf32> to vector<64x32xf32>
    %c0_53 = arith.constant 0 : index
    %c96 = arith.constant 96 : index
    %60 = vector.load %arg16[%c0_53, %c96] : memref<64x288xf32, #tpu.memory_space<vmem>>, vector<64x32xf32>
    tpu.vector_store %arg16[%c0_53, %c96], %59 {strides = array<i32>} : memref<64x288xf32, #tpu.memory_space<vmem>>, vector<64x32xf32>,
    %61 = vector.extract_strided_slice %48 {offsets = [0, 1, 1, 0], sizes = [1, 8, 8, 32], strides = [1, 1, 1, 1]} : vector<1x10x10x32xf32> to vector<1x8x8x32xf32>
    %62 = vector.shape_cast %61 : vector<1x8x8x32xf32> to vector<64x32xf32>
    %c0_54 = arith.constant 0 : index
    %c128 = arith.constant 128 : index
    %63 = vector.load %arg16[%c0_54, %c128] : memref<64x288xf32, #tpu.memory_space<vmem>>, vector<64x32xf32>
    tpu.vector_store %arg16[%c0_54, %c128], %62 {strides = array<i32>} : memref<64x288xf32, #tpu.memory_space<vmem>>, vector<64x32xf32>,
    %64 = vector.extract_strided_slice %48 {offsets = [0, 1, 2, 0], sizes = [1, 8, 8, 32], strides = [1, 1, 1, 1]} : vector<1x10x10x32xf32> to vector<1x8x8x32xf32>
    %65 = vector.shape_cast %64 : vector<1x8x8x32xf32> to vector<64x32xf32>
    %c0_55 = arith.constant 0 : index
    %c160 = arith.constant 160 : index
    %66 = vector.load %arg16[%c0_55, %c160] : memref<64x288xf32, #tpu.memory_space<vmem>>, vector<64x32xf32>
    tpu.vector_store %arg16[%c0_55, %c160], %65 {strides = array<i32>} : memref<64x288xf32, #tpu.memory_space<vmem>>, vector<64x32xf32>,
    %67 = vector.extract_strided_slice %48 {offsets = [0, 2, 0, 0], sizes = [1, 8, 8, 32], strides = [1, 1, 1, 1]} : vector<1x10x10x32xf32> to vector<1x8x8x32xf32>
    %68 = vector.shape_cast %67 : vector<1x8x8x32xf32> to vector<64x32xf32>
    %c0_56 = arith.constant 0 : index
    %c192 = arith.constant 192 : index
    %69 = vector.load %arg16[%c0_56, %c192] : memref<64x288xf32, #tpu.memory_space<vmem>>, vector<64x32xf32>
    tpu.vector_store %arg16[%c0_56, %c192], %68 {strides = array<i32>} : memref<64x288xf32, #tpu.memory_space<vmem>>, vector<64x32xf32>,
    %70 = vector.extract_strided_slice %48 {offsets = [0, 2, 1, 0], sizes = [1, 8, 8, 32], strides = [1, 1, 1, 1]} : vector<1x10x10x32xf32> to vector<1x8x8x32xf32>
    %71 = vector.shape_cast %70 : vector<1x8x8x32xf32> to vector<64x32xf32>
    %c0_57 = arith.constant 0 : index
    %c224 = arith.constant 224 : index
    %72 = vector.load %arg16[%c0_57, %c224] : memref<64x288xf32, #tpu.memory_space<vmem>>, vector<64x32xf32>
    tpu.vector_store %arg16[%c0_57, %c224], %71 {strides = array<i32>} : memref<64x288xf32, #tpu.memory_space<vmem>>, vector<64x32xf32>,
    %73 = vector.extract_strided_slice %48 {offsets = [0, 2, 2, 0], sizes = [1, 8, 8, 32], strides = [1, 1, 1, 1]} : vector<1x10x10x32xf32> to vector<1x8x8x32xf32>
    %74 = vector.shape_cast %73 : vector<1x8x8x32xf32> to vector<64x32xf32>
    %c0_58 = arith.constant 0 : index
    %c256 = arith.constant 256 : index
    %75 = vector.load %arg16[%c0_58, %c256] : memref<64x288xf32, #tpu.memory_space<vmem>>, vector<64x32xf32>
    tpu.vector_store %arg16[%c0_58, %c256], %74 {strides = array<i32>} : memref<64x288xf32, #tpu.memory_space<vmem>>, vector<64x32xf32>,
    %c0_59 = arith.constant 0 : index
    %c0_60 = arith.constant 0 : index
    %76 = vector.load %arg16[%c0_59, %c0_60] : memref<64x288xf32, #tpu.memory_space<vmem>>, vector<64x288xf32>
    %c0_61 = arith.constant 0 : index
    %c0_62 = arith.constant 0 : index
    %77 = vector.load %arg4[%c0_61, %c0_62] : memref<288x64xf32, #tpu.memory_space<vmem>>, vector<288x64xf32>
    %cst_63 = arith.constant dense<0.000000e+00> : vector<64x64xf32>
    %78 = tpu.matmul %76, %77, %cst_63 {dimension_numbers = #tpu.dot_dimension_numbers<[1], [0], [0], [1], [0, 0, 1, 1], [], []>} : vector<64x288xf32>, vector<288x64xf32>, vector<64x64xf32> -> vector<64x64xf32>
    %79 = vector.shape_cast %78 : vector<64x64xf32> to vector<4x2x4x2x64xf32>
    %cst_64 = arith.constant dense<0xFF800000> : vector<4x2x4x64xf32>
    %80 = vector.multi_reduction <maximumf>, %79, %cst_64 [3] : vector<4x2x4x2x64xf32> to vector<4x2x4x64xf32>
    %cst_65 = arith.constant dense<0xFF800000> : vector<4x4x64xf32>
    %81 = vector.multi_reduction <maximumf>, %80, %cst_65 [1] : vector<4x2x4x64xf32> to vector<4x4x64xf32>
    %c0_66 = arith.constant 0 : index
    %c0_67 = arith.constant 0 : index
    %82 = vector.load %arg5[%c0_66, %c0_67] : memref<1x64xf32, #tpu.memory_space<vmem>>, vector<1x64xf32>
    %83 = vector.shape_cast %82 : vector<1x64xf32> to vector<1x1x64xf32>
    %84 = vector.broadcast %83 : vector<1x1x64xf32> to vector<4x4x64xf32>
    %85 = arith.addf %81, %84 : vector<4x4x64xf32>
    %cst_68 = arith.constant 0.000000e+00 : f32
    %86 = vector.broadcast %cst_68 : f32 to vector<4x4x64xf32>
    %87 = arith.maximumf %85, %86 : vector<4x4x64xf32>
    %88 = vector.shape_cast %87 : vector<4x4x64xf32> to vector<1x4x4x64xf32>
    %cst_69 = arith.constant 0.000000e+00 : f32
    %89 = vector.broadcast %cst_69 : f32 to vector<1x6x6x64xf32>
    %c0_70 = arith.constant 0 : index
    %c0_71 = arith.constant 0 : index
    %c0_72 = arith.constant 0 : index
    %c0_73 = arith.constant 0 : index
    %90 = vector.load %arg17[%c0_70, %c0_71, %c0_72, %c0_73] : memref<1x6x6x64xf32, #tpu.memory_space<vmem>>, vector<1x6x6x64xf32>
    tpu.vector_store %arg17[%c0_70, %c0_71, %c0_72, %c0_73], %89 {strides = array<i32>} : memref<1x6x6x64xf32, #tpu.memory_space<vmem>>, vector<1x6x6x64xf32>,
    %c0_74 = arith.constant 0 : index
    %c1_75 = arith.constant 1 : index
    %c1_76 = arith.constant 1 : index
    %c0_77 = arith.constant 0 : index
    %91 = vector.load %arg17[%c0_74, %c1_75, %c1_76, %c0_77] : memref<1x6x6x64xf32, #tpu.memory_space<vmem>>, vector<1x4x4x64xf32>
    tpu.vector_store %arg17[%c0_74, %c1_75, %c1_76, %c0_77], %88 {strides = array<i32>} : memref<1x6x6x64xf32, #tpu.memory_space<vmem>>, vector<1x4x4x64xf32>,
    %c0_78 = arith.constant 0 : index
    %c0_79 = arith.constant 0 : index
    %c0_80 = arith.constant 0 : index
    %c0_81 = arith.constant 0 : index
    %92 = vector.load %arg17[%c0_78, %c0_79, %c0_80, %c0_81] : memref<1x6x6x64xf32, #tpu.memory_space<vmem>>, vector<1x6x6x64xf32>
    %93 = vector.extract_strided_slice %92 {offsets = [0, 0, 0, 0], sizes = [1, 4, 4, 64], strides = [1, 1, 1, 1]} : vector<1x6x6x64xf32> to vector<1x4x4x64xf32>
    %94 = vector.shape_cast %93 : vector<1x4x4x64xf32> to vector<16x64xf32>
    %c0_82 = arith.constant 0 : index
    %c0_83 = arith.constant 0 : index
    %95 = vector.load %arg18[%c0_82, %c0_83] : memref<16x576xf32, #tpu.memory_space<vmem>>, vector<16x64xf32>
    tpu.vector_store %arg18[%c0_82, %c0_83], %94 {strides = array<i32>} : memref<16x576xf32, #tpu.memory_space<vmem>>, vector<16x64xf32>,
    %96 = vector.extract_strided_slice %92 {offsets = [0, 0, 1, 0], sizes = [1, 4, 4, 64], strides = [1, 1, 1, 1]} : vector<1x6x6x64xf32> to vector<1x4x4x64xf32>
    %97 = vector.shape_cast %96 : vector<1x4x4x64xf32> to vector<16x64xf32>
    %c0_84 = arith.constant 0 : index
    %c64_85 = arith.constant 64 : index
    %98 = vector.load %arg18[%c0_84, %c64_85] : memref<16x576xf32, #tpu.memory_space<vmem>>, vector<16x64xf32>
    tpu.vector_store %arg18[%c0_84, %c64_85], %97 {strides = array<i32>} : memref<16x576xf32, #tpu.memory_space<vmem>>, vector<16x64xf32>,
    %99 = vector.extract_strided_slice %92 {offsets = [0, 0, 2, 0], sizes = [1, 4, 4, 64], strides = [1, 1, 1, 1]} : vector<1x6x6x64xf32> to vector<1x4x4x64xf32>
    %100 = vector.shape_cast %99 : vector<1x4x4x64xf32> to vector<16x64xf32>
    %c0_86 = arith.constant 0 : index
    %c128_87 = arith.constant 128 : index
    %101 = vector.load %arg18[%c0_86, %c128_87] : memref<16x576xf32, #tpu.memory_space<vmem>>, vector<16x64xf32>
    tpu.vector_store %arg18[%c0_86, %c128_87], %100 {strides = array<i32>} : memref<16x576xf32, #tpu.memory_space<vmem>>, vector<16x64xf32>,
    %102 = vector.extract_strided_slice %92 {offsets = [0, 1, 0, 0], sizes = [1, 4, 4, 64], strides = [1, 1, 1, 1]} : vector<1x6x6x64xf32> to vector<1x4x4x64xf32>
    %103 = vector.shape_cast %102 : vector<1x4x4x64xf32> to vector<16x64xf32>
    %c0_88 = arith.constant 0 : index
    %c192_89 = arith.constant 192 : index
    %104 = vector.load %arg18[%c0_88, %c192_89] : memref<16x576xf32, #tpu.memory_space<vmem>>, vector<16x64xf32>
    tpu.vector_store %arg18[%c0_88, %c192_89], %103 {strides = array<i32>} : memref<16x576xf32, #tpu.memory_space<vmem>>, vector<16x64xf32>,
    %105 = vector.extract_strided_slice %92 {offsets = [0, 1, 1, 0], sizes = [1, 4, 4, 64], strides = [1, 1, 1, 1]} : vector<1x6x6x64xf32> to vector<1x4x4x64xf32>
    %106 = vector.shape_cast %105 : vector<1x4x4x64xf32> to vector<16x64xf32>
    %c0_90 = arith.constant 0 : index
    %c256_91 = arith.constant 256 : index
    %107 = vector.load %arg18[%c0_90, %c256_91] : memref<16x576xf32, #tpu.memory_space<vmem>>, vector<16x64xf32>
    tpu.vector_store %arg18[%c0_90, %c256_91], %106 {strides = array<i32>} : memref<16x576xf32, #tpu.memory_space<vmem>>, vector<16x64xf32>,
    %108 = vector.extract_strided_slice %92 {offsets = [0, 1, 2, 0], sizes = [1, 4, 4, 64], strides = [1, 1, 1, 1]} : vector<1x6x6x64xf32> to vector<1x4x4x64xf32>
    %109 = vector.shape_cast %108 : vector<1x4x4x64xf32> to vector<16x64xf32>
    %c0_92 = arith.constant 0 : index
    %c320 = arith.constant 320 : index
    %110 = vector.load %arg18[%c0_92, %c320] : memref<16x576xf32, #tpu.memory_space<vmem>>, vector<16x64xf32>
    tpu.vector_store %arg18[%c0_92, %c320], %109 {strides = array<i32>} : memref<16x576xf32, #tpu.memory_space<vmem>>, vector<16x64xf32>,
    %111 = vector.extract_strided_slice %92 {offsets = [0, 2, 0, 0], sizes = [1, 4, 4, 64], strides = [1, 1, 1, 1]} : vector<1x6x6x64xf32> to vector<1x4x4x64xf32>
    %112 = vector.shape_cast %111 : vector<1x4x4x64xf32> to vector<16x64xf32>
    %c0_93 = arith.constant 0 : index
    %c384 = arith.constant 384 : index
    %113 = vector.load %arg18[%c0_93, %c384] : memref<16x576xf32, #tpu.memory_space<vmem>>, vector<16x64xf32>
    tpu.vector_store %arg18[%c0_93, %c384], %112 {strides = array<i32>} : memref<16x576xf32, #tpu.memory_space<vmem>>, vector<16x64xf32>,
    %114 = vector.extract_strided_slice %92 {offsets = [0, 2, 1, 0], sizes = [1, 4, 4, 64], strides = [1, 1, 1, 1]} : vector<1x6x6x64xf32> to vector<1x4x4x64xf32>
    %115 = vector.shape_cast %114 : vector<1x4x4x64xf32> to vector<16x64xf32>
    %c0_94 = arith.constant 0 : index
    %c448 = arith.constant 448 : index
    %116 = vector.load %arg18[%c0_94, %c448] : memref<16x576xf32, #tpu.memory_space<vmem>>, vector<16x64xf32>
    tpu.vector_store %arg18[%c0_94, %c448], %115 {strides = array<i32>} : memref<16x576xf32, #tpu.memory_space<vmem>>, vector<16x64xf32>,
    %117 = vector.extract_strided_slice %92 {offsets = [0, 2, 2, 0], sizes = [1, 4, 4, 64], strides = [1, 1, 1, 1]} : vector<1x6x6x64xf32> to vector<1x4x4x64xf32>
    %118 = vector.shape_cast %117 : vector<1x4x4x64xf32> to vector<16x64xf32>
    %c0_95 = arith.constant 0 : index
    %c512 = arith.constant 512 : index
    %119 = vector.load %arg18[%c0_95, %c512] : memref<16x576xf32, #tpu.memory_space<vmem>>, vector<16x64xf32>
    tpu.vector_store %arg18[%c0_95, %c512], %118 {strides = array<i32>} : memref<16x576xf32, #tpu.memory_space<vmem>>, vector<16x64xf32>,
    %c0_96 = arith.constant 0 : index
    %c0_97 = arith.constant 0 : index
    %120 = vector.load %arg18[%c0_96, %c0_97] : memref<16x576xf32, #tpu.memory_space<vmem>>, vector<16x576xf32>
    %c0_98 = arith.constant 0 : index
    %c0_99 = arith.constant 0 : index
    %121 = vector.load %arg6[%c0_98, %c0_99] : memref<576x128xf32, #tpu.memory_space<vmem>>, vector<576x128xf32>
    %cst_100 = arith.constant dense<0.000000e+00> : vector<16x128xf32>
    %122 = tpu.matmul %120, %121, %cst_100 {dimension_numbers = #tpu.dot_dimension_numbers<[1], [0], [0], [1], [0, 0, 1, 1], [], []>} : vector<16x576xf32>, vector<576x128xf32>, vector<16x128xf32> -> vector<16x128xf32>
    %123 = vector.shape_cast %122 : vector<16x128xf32> to vector<2x2x2x2x128xf32>
    %cst_101 = arith.constant dense<0xFF800000> : vector<2x2x2x128xf32>
    %124 = vector.multi_reduction <maximumf>, %123, %cst_101 [3] : vector<2x2x2x2x128xf32> to vector<2x2x2x128xf32>
    %cst_102 = arith.constant dense<0xFF800000> : vector<2x2x128xf32>
    %125 = vector.multi_reduction <maximumf>, %124, %cst_102 [1] : vector<2x2x2x128xf32> to vector<2x2x128xf32>
    %c0_103 = arith.constant 0 : index
    %c0_104 = arith.constant 0 : index
    %126 = vector.load %arg7[%c0_103, %c0_104] : memref<1x128xf32, #tpu.memory_space<vmem>>, vector<1x128xf32>
    %127 = vector.shape_cast %126 : vector<1x128xf32> to vector<1x1x128xf32>
    %128 = vector.broadcast %127 : vector<1x1x128xf32> to vector<2x2x128xf32>
    %129 = arith.addf %125, %128 : vector<2x2x128xf32>
    %cst_105 = arith.constant 0.000000e+00 : f32
    %130 = vector.broadcast %cst_105 : f32 to vector<2x2x128xf32>
    %131 = arith.maximumf %129, %130 : vector<2x2x128xf32>
    %132 = vector.shape_cast %131 : vector<2x2x128xf32> to vector<1x2x2x128xf32>
    %cst_106 = arith.constant 0.000000e+00 : f32
    %133 = vector.broadcast %cst_106 : f32 to vector<1x128xf32>
    %134 = vector.extract_strided_slice %132 {offsets = [0, 0, 0, 0], sizes = [1, 1, 1, 128], strides = [1, 1, 1, 1]} : vector<1x2x2x128xf32> to vector<1x1x1x128xf32>
    %135 = vector.shape_cast %134 : vector<1x1x1x128xf32> to vector<1x128xf32>
    %c0_107 = arith.constant 0 : index
    %c0_108 = arith.constant 0 : index
    %136 = vector.load %arg8[%c0_107, %c0_108] : memref<512x128xf32, #tpu.memory_space<vmem>>, vector<128x128xf32>
    %cst_109 = arith.constant dense<0.000000e+00> : vector<1x128xf32>
    %137 = tpu.matmul %135, %136, %cst_109 {dimension_numbers = #tpu.dot_dimension_numbers<[1], [0], [0], [1], [0, 0, 1, 1], [], []>} : vector<1x128xf32>, vector<128x128xf32>, vector<1x128xf32> -> vector<1x128xf32>
    %138 = arith.addf %133, %137 : vector<1x128xf32>
    %139 = vector.extract_strided_slice %132 {offsets = [0, 0, 1, 0], sizes = [1, 1, 1, 128], strides = [1, 1, 1, 1]} : vector<1x2x2x128xf32> to vector<1x1x1x128xf32>
    %140 = vector.shape_cast %139 : vector<1x1x1x128xf32> to vector<1x128xf32>
    %c128_110 = arith.constant 128 : index
    %c0_111 = arith.constant 0 : index
    %141 = vector.load %arg8[%c128_110, %c0_111] : memref<512x128xf32, #tpu.memory_space<vmem>>, vector<128x128xf32>
    %cst_112 = arith.constant dense<0.000000e+00> : vector<1x128xf32>
    %142 = tpu.matmul %140, %141, %cst_112 {dimension_numbers = #tpu.dot_dimension_numbers<[1], [0], [0], [1], [0, 0, 1, 1], [], []>} : vector<1x128xf32>, vector<128x128xf32>, vector<1x128xf32> -> vector<1x128xf32>
    %143 = arith.addf %138, %142 : vector<1x128xf32>
    %144 = vector.extract_strided_slice %132 {offsets = [0, 1, 0, 0], sizes = [1, 1, 1, 128], strides = [1, 1, 1, 1]} : vector<1x2x2x128xf32> to vector<1x1x1x128xf32>
    %145 = vector.shape_cast %144 : vector<1x1x1x128xf32> to vector<1x128xf32>
    %c256_113 = arith.constant 256 : index
    %c0_114 = arith.constant 0 : index
    %146 = vector.load %arg8[%c256_113, %c0_114] : memref<512x128xf32, #tpu.memory_space<vmem>>, vector<128x128xf32>
    %cst_115 = arith.constant dense<0.000000e+00> : vector<1x128xf32>
    %147 = tpu.matmul %145, %146, %cst_115 {dimension_numbers = #tpu.dot_dimension_numbers<[1], [0], [0], [1], [0, 0, 1, 1], [], []>} : vector<1x128xf32>, vector<128x128xf32>, vector<1x128xf32> -> vector<1x128xf32>
    %148 = arith.addf %143, %147 : vector<1x128xf32>
    %149 = vector.extract_strided_slice %132 {offsets = [0, 1, 1, 0], sizes = [1, 1, 1, 128], strides = [1, 1, 1, 1]} : vector<1x2x2x128xf32> to vector<1x1x1x128xf32>
    %150 = vector.shape_cast %149 : vector<1x1x1x128xf32> to vector<1x128xf32>
    %c384_116 = arith.constant 384 : index
    %c0_117 = arith.constant 0 : index
    %151 = vector.load %arg8[%c384_116, %c0_117] : memref<512x128xf32, #tpu.memory_space<vmem>>, vector<128x128xf32>
    %cst_118 = arith.constant dense<0.000000e+00> : vector<1x128xf32>
    %152 = tpu.matmul %150, %151, %cst_118 {dimension_numbers = #tpu.dot_dimension_numbers<[1], [0], [0], [1], [0, 0, 1, 1], [], []>} : vector<1x128xf32>, vector<128x128xf32>, vector<1x128xf32> -> vector<1x128xf32>
    %153 = arith.addf %148, %152 : vector<1x128xf32>
    %c0_119 = arith.constant 0 : index
    %c0_120 = arith.constant 0 : index
    %154 = vector.load %arg9[%c0_119, %c0_120] : memref<1x128xf32, #tpu.memory_space<vmem>>, vector<1x128xf32>
    %155 = arith.addf %153, %154 : vector<1x128xf32>
    %cst_121 = arith.constant 0.000000e+00 : f32
    %156 = vector.broadcast %cst_121 : f32 to vector<1x128xf32>
    %157 = arith.maximumf %155, %156 : vector<1x128xf32>
    %c0_122 = arith.constant 0 : index
    %c0_123 = arith.constant 0 : index
    %158 = vector.load %arg10[%c0_122, %c0_123] : memref<128x2xf32, #tpu.memory_space<vmem>>, vector<128x2xf32>
    %cst_124 = arith.constant dense<0.000000e+00> : vector<1x2xf32>
    %159 = tpu.matmul %157, %158, %cst_124 {dimension_numbers = #tpu.dot_dimension_numbers<[1], [0], [0], [1], [0, 0, 1, 1], [], []>} : vector<1x128xf32>, vector<128x2xf32>, vector<1x2xf32> -> vector<1x2xf32>
    %c0_125 = arith.constant 0 : index
    %c0_126 = arith.constant 0 : index
    %160 = vector.load %arg11[%c0_125, %c0_126] : memref<1x2xf32, #tpu.memory_space<vmem>>, vector<1x2xf32>
    %161 = arith.addf %159, %160 : vector<1x2xf32>
    %c0_127 = arith.constant 0 : index
    %c0_128 = arith.constant 0 : index
    %c0_129 = arith.constant 0 : index
    %162 = vector.load %arg12[%c0_127, %c0_128, %c0_129] : memref<1x1x2xf32, #tpu.memory_space<vmem>>, vector<1x1x2xf32>
    %163 = vector.shape_cast %162 : vector<1x1x2xf32> to vector<1x2xf32>
    %164 = vector.shape_cast %161 : vector<1x2xf32> to vector<1x1x2xf32>
    tpu.vector_store %arg12[%c0_127, %c0_128, %c0_129], %164 {strides = array<i32>} : memref<1x1x2xf32, #tpu.memory_space<vmem>>, vector<1x1x2xf32>,
    return
  }
  func.func @transform_0(%arg0: i32) -> (i32, i32, i32, i32) {
    %c0_i32 = arith.constant 0 : i32
    %c0_i32_0 = arith.constant 0 : i32
    %c0_i32_1 = arith.constant 0 : i32
    %c0_i32_2 = arith.constant 0 : i32
    return %arg0, %c0_i32, %c0_i32_0, %c0_i32_1 : i32, i32, i32, i32
  }
  func.func @transform_1(%arg0: i32) -> (i32, i32) {
    %c0_i32 = arith.constant 0 : i32
    %c0_i32_0 = arith.constant 0 : i32
    %c0_i32_1 = arith.constant 0 : i32
    return %c0_i32, %c0_i32_0 : i32, i32
  }
  func.func @transform_2(%arg0: i32) -> (i32, i32) {
    %c0_i32 = arith.constant 0 : i32
    %c0_i32_0 = arith.constant 0 : i32
    %c0_i32_1 = arith.constant 0 : i32
    return %c0_i32, %c0_i32_0 : i32, i32
  }
  func.func @transform_3(%arg0: i32) -> (i32, i32) {
    %c0_i32 = arith.constant 0 : i32
    %c0_i32_0 = arith.constant 0 : i32
    %c0_i32_1 = arith.constant 0 : i32
    return %c0_i32, %c0_i32_0 : i32, i32
  }
  func.func @transform_4(%arg0: i32) -> (i32, i32) {
    %c0_i32 = arith.constant 0 : i32
    %c0_i32_0 = arith.constant 0 : i32
    %c0_i32_1 = arith.constant 0 : i32
    return %c0_i32, %c0_i32_0 : i32, i32
  }
  func.func @transform_5(%arg0: i32) -> (i32, i32) {
    %c0_i32 = arith.constant 0 : i32
    %c0_i32_0 = arith.constant 0 : i32
    %c0_i32_1 = arith.constant 0 : i32
    return %c0_i32, %c0_i32_0 : i32, i32
  }
  func.func @transform_6(%arg0: i32) -> (i32, i32) {
    %c0_i32 = arith.constant 0 : i32
    %c0_i32_0 = arith.constant 0 : i32
    %c0_i32_1 = arith.constant 0 : i32
    return %c0_i32, %c0_i32_0 : i32, i32
  }
  func.func @transform_7(%arg0: i32) -> (i32, i32) {
    %c0_i32 = arith.constant 0 : i32
    %c0_i32_0 = arith.constant 0 : i32
    %c0_i32_1 = arith.constant 0 : i32
    return %c0_i32, %c0_i32_0 : i32, i32
  }
  func.func @transform_8(%arg0: i32) -> (i32, i32) {
    %c0_i32 = arith.constant 0 : i32
    %c0_i32_0 = arith.constant 0 : i32
    %c0_i32_1 = arith.constant 0 : i32
    return %c0_i32, %c0_i32_0 : i32, i32
  }
  func.func @transform_9(%arg0: i32) -> (i32, i32) {
    %c0_i32 = arith.constant 0 : i32
    %c0_i32_0 = arith.constant 0 : i32
    %c0_i32_1 = arith.constant 0 : i32
    return %c0_i32, %c0_i32_0 : i32, i32
  }
  func.func @transform_10(%arg0: i32) -> (i32, i32) {
    %c0_i32 = arith.constant 0 : i32
    %c0_i32_0 = arith.constant 0 : i32
    %c0_i32_1 = arith.constant 0 : i32
    return %c0_i32, %c0_i32_0 : i32, i32
  }
  func.func @transform_11(%arg0: i32) -> (i32, i32, i32) {
    %c0_i32 = arith.constant 0 : i32
    %c0_i32_0 = arith.constant 0 : i32
    %c0_i32_1 = arith.constant 0 : i32
    return %arg0, %c0_i32, %c0_i32_0 : i32, i32, i32
  }
}

</mosaic_0001>

<bundles_post_ra>
// kernel: tpu_custom_call.1
= control target key start
LH: loop header
LB: loop body
LE: loop exit
PB: predicated region body
PF: predicated region fallthrough
CT: control target
= control target key end

     0   :  { %s9017_s0 = inlined_call_operand.vmem [shape: f32[2,16,16,1], index: 0, kind: input, shape index: {}]   ;;  %s9018_s1 = inlined_call_operand.vmem [shape: f32[72,32], index: 1, kind: input, shape index: {}]   ;;  %s9019_s2 = inlined_call_operand.vmem [shape: f32[1,32], index: 2, kind: input, shape index: {}]   ;;  %s9020_s3 = inlined_call_operand.vmem [shape: f32[288,64], index: 3, kind: input, shape index: {}]   ;;  %s9021_s4 = inlined_call_operand.vmem [shape: f32[1,64], index: 4, kind: input, shape index: {}]   ;;  %s9022_s5 = inlined_call_operand.vmem [shape: f32[576,128], index: 5, kind: input, shape index: {}]   ;;  %s9023_s6 = inlined_call_operand.vmem [shape: f32[1,128], index: 6, kind: input, shape index: {}]   ;;  %s9024_s7 = inlined_call_operand.hbm [shape: f32[512,128], index: 7, kind: input, shape index: {}]   ;;  %s9025_s8 = inlined_call_operand.vmem [shape: f32[1,128], index: 8, kind: input, shape index: {}]   ;;  %s9026_s9 = inlined_call_operand.vmem [shape: f32[128,2], index: 9, kind: input, shape index: {}]   ;;  %s9027_s10 = inlined_call_operand.vmem [shape: f32[1,2], index: 10, kind: input, shape index: {}]   ;;  %s9028_s11 = inlined_call_operand.hbm [shape: f32[2,1,2], index: 11, kind: output, shape index: {}]  }
   0x1   :  { %9077 = sst [smem:[#allocation21_spill]] %s9017_s0 }
   0x2   :  { %9078 = sst [smem:[#allocation22_spill]] %s9018_s1 }
   0x3   :  { %16 = vsyncpa [#allocation9], 0 }
   0x4   :  { %17 = vsyncpa [#allocation10], 0 }
   0x5   :  { %19 = vsyncpa [#allocation10 + $0x1], 0  ;;  %s5846_s17 = smov 0   ;;  %s5848_s18 = smov 0  }
   0x6   :  { %s5850_s19 = smov 0   ;;  %s5852_s20 = smov 0  }
   0x7 LB: > { %s5867_s21 = sadd.s32 4294967295, %s5771_s20   ;;  %s5522_s22 = sadd.s32 4294967294, %s5771_s20   ;;  %s5771_s20 = sphi %s5852_s20, %s9350_s20   ;;  %s5767_s19 = sphi %s5850_s19, %s9349_s19   ;;  %s5763_s18 = sphi %s5848_s18, %s9348_s18   ;;  %s5759_s17 = sphi %s5846_s17, %s9347_s17  }
   0x8   : > { %s5871_s23 = sadd.s32 1, %s5771_s20   ;;  %s268_s24 = sadd.s32 1, %s5767_s19 }
   0x9   : > { %s265_s25 = ssub.s32 %s5771_s20, %s5871_s23  ;;  %p278_p0 = scmp.ne.s32.totalorder %s5767_s19, %s5763_s18 }
   0xa   : > { %p266_p1 = scmp.eq.s32.totalorder %s265_s25, 0  ;;  %p279_p2 = scmp.eq.s32.totalorder %s5867_s21, 1 }
   0xb   : > { %p284_p3 = scmp.ne.s32.totalorder %s5763_s18, %s5759_s17  ;;  %p285_p4 = scmp.eq.s32.totalorder %s5522_s22, 1 }
   0xc   : > { %s5882_s26 = scalar_select %p266_p1, %s5767_s19, %s268_s24  }
   0xd   : > { %p5884_p5 = por %p279_p2, %p278_p0  ;;  %p5888_p6 = por %p285_p4, %p284_p3 }
   0xe   : > { %p5523_p7 = scmp.ge.s32.totalorder %s5771_s20, 1  ;;  %p292_p8 = scmp.lt.s32.totalorder %s5771_s20, 3 }
   0xf   : > { %p5619_p9 = scmp.eq.s32.totalorder %s5867_s21, 0  ;;  %s321_s12 = sshll.u32 %s9024_s7, 4  ;;  %s322_s12 = int_to_ptr.hbm [resolvable:$true] %s321_s12 }
  0x10   : > { %p293_p10 = pnand %p5523_p7, %p292_p8  ;;  %s5773_s13 = smov [#allocation8]  }
  0x11   : > { %s323_s14 = sshll.u32 %s5773_s13, 4  ;;  %s5774_s15 = smov 128   ;;  %s324_s14 = int_to_ptr.vmem [resolvable:$true] %s323_s14 }
  0x12   : > { %p5611_p11 = pneg %p293_p10  ;;  %s5775_s16 = smov 8  }
  0x13   : > { %356 = sbr.rel (%p293_p10) target bundleno = 1957 (0x7a5), region = 64 }
  0x14   : > { %p5612_p12 = pnand %p5619_p9, %p5611_p11 }
  0x16   : > { %5614 = dma.hbm_to_vmem [thread:$0]  (!%p5612_p12), %s322_s12, 8192, %s324_s14, [#allocation9], %s5774_s15, %s5774_s15, %s5775_s16  }
  0x18   : > { %5750 = dma.done.wait (%p5619_p9), [#allocation9], 8192  }
  0x19   : > { %5752 = vsyncadd (%p5619_p9), [#allocation9], 4294959104  ;;  %vm9050_vm0 = vcmask 64512   ;;  %vm404_vm1 = vcmask 58368   ;;  %v9056_v0 = vmov 0.0   ;;  %vm657_vm2 = vcmask 1046528  }
  0x1a   : > { %403 = vst.msk [vmem:[#allocation2 + $0x8] sm:$0xff] %vm9050_vm0, %v9056_v0  ;;  %s9033_s22 = smov 8   ;;  %vm867_vm3 = vcmask 1045504   ;;  %s9039_s24 = smov 16   ;;  %vm9055_vm4 = vcmask 7168   ;;  %vm834_vm5 = vcmask 130112  }
  0x1b   : > { %405 = vst.msk [vmem:[#allocation2 + $0x10] sm:$0x3] %vm404_vm1, %v9056_v0  ;;  %p396_p13 = scmp.lt.s32.totalorder %s5867_s21, 1  ;;  %s9081_s0 = sld [smem:[#allocation21_spill]]  ;;  %vm1044_vm6 = vcmask 195712   ;;  %vm9047_vm7 = vcmask 261312  }
  0x1c   : > { %402 = vst.msk [vmem:[#allocation2] sm:$0xff] %vm9050_vm0, %v9056_v0  ;;  %s9037_s14 = smov 24   ;;  %s9041_s15 = smov 48   ;;  %vm1310_vm8 = vcmask 326912   ;;  %vm1444_vm9 = vcmask 392512   ;;  %vm1575_vm10 = vcmask 458112  }
  0x1d   : > { %406 = vst.msk [vmem:[#allocation2 + $0x18] sm:$0xff] %vm9050_vm0, %v9056_v0  ;;  %s397_s25 = scalar_select %p396_p13, %s5867_s21, 1  ;;  %vm1710_vm11 = vcmask 523712   ;;  %vm9044_vm12 = vcmask 589312   ;;  %vm9048_vm13 = vcmask 588800   ;;  %vm9043_vm14 = vcmask 254976  }
  0x1e   : > { %407 = vst.msk [vmem:[#allocation2 + $0x20] sm:$0xff] %vm9050_vm0, %v9056_v0  ;;  %s9035_s16 = smov 56   ;;  %s9065_s30 = smov 64   ;;  %vm3249_vm15 = vcmask 261120  }
  0x1f   : > { %408 = vst.msk [vmem:[#allocation2 + $0x28] sm:$0x3] %vm404_vm1, %v9056_v0  ;;  %s5586_s29 = sshll.u32 %s397_s25, 8  ;;  %s9029_s25 = smov 32  }
  0x20   : > { %409 = vst.msk [vmem:[#allocation2 + $0x30] sm:$0xff] %vm9050_vm0, %v9056_v0  ;;  %s9082_s1 = sld [smem:[#allocation22_spill]]  ;;  %s9085_s12 = smov 40  }
  0x21   : > { %v5918_v1 = vld [vmem:[#allocation2 + $0x8] sm:$0xff]  ;;  %410 = vst.msk [vmem:[#allocation2 + $0x38] sm:$0xff] %vm9050_vm0, %v9056_v0  ;;  %s6030_s13 = scalar_lea.vmem %s9081_s0, %s5586_s29  ;;  %s9031_s29 = smov 40  }
  0x22   : > { %v5922_v2 = vld [vmem:[#allocation2 + $0x10] sm:$0x3]  ;;  %v659_v3 = vrot.slane %v5918_v1, 1  ;;  %411 = vst.msk [vmem:[#allocation2 + $0x40] sm:$0x3] %vm404_vm1, %v9056_v0  ;;  %v869_v10 = vrot.slane %v5918_v1, 2 }
  0x23   : > { %v661_v4 = vrot.slane %v5922_v2, 1  ;;  %412 = vst.msk [vmem:[#allocation2 + $0x48] sm:$0xff] %vm9050_vm0, %v9056_v0  ;;  %v5930_v5 = vld [vmem:[#allocation2] sm:$0xff]  ;;  %v457_v12 = vld [vmem:[%s6030_s13] sm:$0xff]  ;;  %v459_v13 = vld [vmem:[%s6030_s13 + $0x10] sm:$0xff]  ;;  %v871_v30 = vrot.slane %v5922_v2, 2 }
  0x24   : > { %413 = vst.msk [vmem:[#allocation2 + $0x50] sm:$0xff] %vm9050_vm0, %v9056_v0  ;;  %v658_v6 = vrot.slane %v5930_v5, 1  ;;  %v868_v9 = vrot.slane %v5930_v5, 2  ;;  %v458_v14 = vld [vmem:[%s6030_s13 + $0x8] sm:$0xff]  ;;  %v460_v15 = vld [vmem:[%s6030_s13 + $0x18] sm:$0xff]  ;;  %v461_v31 = vld [vmem:[%s6030_s13 + $0x20] sm:$0xff] }
  0x25   : > { %v662_v7 = vsel %vm657_vm2, %v659_v3, %v661_v4  ;;  %414 = vst.msk [vmem:[#allocation2 + $0x58] sm:$0x3] %vm404_vm1, %v9056_v0  ;;  %v462_v32 = vld [vmem:[%s6030_s13 + $0x28] sm:$0xff]  ;;  %v872_v36 = vsel %vm867_vm3, %v869_v10, %v871_v30  ;;  %v463_v51 = vld [vmem:[%s6030_s13 + $0x30] sm:$0xff]  ;;  %v464_v52 = vld [vmem:[%s6030_s13 + $0x38] sm:$0xff]  ;;  %s5725_s0 = scalar_lea.hbm %s9028_s11, 2 }
  0x26   : > { %740 = vrot.lane.b32.xlu2 %v662_v7, %s9033_s22  ;;  %415 = vst.msk [vmem:[#allocation2 + $0x60] sm:$0xff] %vm9050_vm0, %v9056_v0  ;;  %v660_v8 = vsel %vm657_vm2, %v658_v6, %v659_v3  ;;  %v870_v11 = vsel %vm867_vm3, %v868_v9, %v869_v10 }
  0x27   : > { %416 = vst.msk [vmem:[#allocation2 + $0x68] sm:$0xff] %vm9050_vm0, %v9056_v0  ;;  %738 = vrot.lane.b32.xlu0 %v660_v8, %s9033_s22  ;;  %v1917_v8 = vld [vmem:[%s9082_s1 + $0x40] sm:$0xff] }
  0x28   : > { %417 = vst.msk [vmem:[#allocation2 + $0x70] sm:$0x3] %vm404_vm1, %v9056_v0  ;;  %2022 = vmatpush.msra.mxu0 %v1917_v8  ;;  %5587 = vmatpush.msra.mxu1 %v1917_v8 }
  0x29   : > { %418 = vst.msk [vmem:[#allocation2 + $0x78] sm:$0xff] %vm9050_vm0, %v9056_v0  ;;  %5588 = vmatpush.msra.mxu2 %v1917_v8 }
  0x2a   : > { %419 = vst.msk [vmem:[#allocation2 + $0x80] sm:$0xff] %vm9050_vm0, %v9056_v0 }
  0x2b   : > { %420 = vst.msk [vmem:[#allocation2 + $0x88] sm:$0x3] %vm404_vm1, %v9056_v0 }
  0x2c   : > { %421 = vst.msk [vmem:[#allocation2 + $0x90] sm:$0xff] %vm9050_vm0, %v9056_v0 }
  0x2d   : > { %422 = vst.msk [vmem:[#allocation2 + $0x98] sm:$0xff] %vm9050_vm0, %v9056_v0 }
  0x2e   : > { %423 = vst.msk [vmem:[#allocation2 + $0xa0] sm:$0x3] %vm404_vm1, %v9056_v0 }
  0x2f   : > { %424 = vst.msk [vmem:[#allocation2 + $0xa8] sm:$0xff] %vm9050_vm0, %v9056_v0  ;;  %948 = vrot.lane.b32.xlu0 %v870_v11, %s9039_s24  ;;  %v1916_v11 = vld [vmem:[%s9082_s1 + $0x38] sm:$0xff] }
  0x30   : > { %425 = vst.msk [vmem:[#allocation2 + $0xb0] sm:$0xff] %vm9050_vm0, %v9056_v0  ;;  %2023 = vmatpush.msra.mxu0 %v1916_v11  ;;  %5589 = vmatpush.msra.mxu1 %v1916_v11 }
  0x31   : > { %426 = vst.msk [vmem:[#allocation2 + $0xb8] sm:$0x3] %vm404_vm1, %v9056_v0  ;;  %5590 = vmatpush.msra.mxu2 %v1916_v11  ;;  %v469_v11 = vld [vmem:[%s6030_s13 + $0x60] sm:$0xff] }
  0x32   : > { %427 = vst.msk [vmem:[#allocation2 + $0xc0] sm:$0xff] %vm9050_vm0, %v9056_v0 }
  0x33   : > { %428 = vst.msk [vmem:[#allocation2 + $0xc8] sm:$0xff] %vm9050_vm0, %v9056_v0 }
  0x34   : > { %429 = vst.msk [vmem:[#allocation2 + $0xd0] sm:$0x3] %vm404_vm1, %v9056_v0 }
  0x35   : > { %430 = vst.msk [vmem:[#allocation2 + $0xd8] sm:$0xff] %vm9050_vm0, %v9056_v0 }
  0x36   : > { %431 = vst.msk [vmem:[#allocation2 + $0xe0] sm:$0xff] %vm9050_vm0, %v9056_v0 }
  0x37   : > { %432 = vst.msk [vmem:[#allocation2 + $0xe8] sm:$0x3] %vm404_vm1, %v9056_v0 }
  0x38   : > { %433 = vst.msk [vmem:[#allocation2 + $0xf0] sm:$0xff] %vm9050_vm0, %v9056_v0 }
  0x39   : > { %434 = vst.msk [vmem:[#allocation2 + $0xf8] sm:$0xff] %vm9050_vm0, %v9056_v0 }
  0x3a   : > { %435 = vst.msk [vmem:[#allocation2 + $0x100] sm:$0x3] %vm404_vm1, %v9056_v0 }
  0x3b   : > { %436 = vst.msk [vmem:[#allocation2 + $0x108] sm:$0xff] %vm9050_vm0, %v9056_v0 }
  0x3c   : > { %437 = vst.msk [vmem:[#allocation2 + $0x110] sm:$0xff] %vm9050_vm0, %v9056_v0 }
  0x3d   : > { %438 = vst.msk [vmem:[#allocation2 + $0x118] sm:$0x3] %vm404_vm1, %v9056_v0 }
  0x3e   : > { %439 = vst.msk [vmem:[#allocation2 + $0x120] sm:$0xff] %vm9050_vm0, %v9056_v0 }
  0x3f   : > { %440 = vst.msk [vmem:[#allocation2 + $0x128] sm:$0xff] %vm9050_vm0, %v9056_v0 }
  0x40   : > { %441 = vst.msk [vmem:[#allocation2 + $0x130] sm:$0x3] %vm404_vm1, %v9056_v0 }
  0x41   : > { %442 = vst.msk [vmem:[#allocation2 + $0x138] sm:$0xff] %vm9050_vm0, %v9056_v0 }
  0x42   : > { %443 = vst.msk [vmem:[#allocation2 + $0x140] sm:$0xff] %vm9050_vm0, %v9056_v0 }
  0x43   : > { %444 = vst.msk [vmem:[#allocation2 + $0x148] sm:$0x3] %vm404_vm1, %v9056_v0 }
  0x44   : > { %445 = vst.msk [vmem:[#allocation2 + $0x150] sm:$0xff] %vm9050_vm0, %v9056_v0 }
  0x45   : > { %446 = vst.msk [vmem:[#allocation2 + $0x158] sm:$0xff] %vm9050_vm0, %v9056_v0 }
  0x46   : > { %447 = vst.msk [vmem:[#allocation2 + $0x160] sm:$0x3] %vm404_vm1, %v9056_v0 }
  0x47   : > { %448 = vst.msk [vmem:[#allocation2 + $0x168] sm:$0xff] %vm9050_vm0, %v9056_v0 }
  0x48   : > { %449 = vst.msk [vmem:[#allocation2 + $0x170] sm:$0xff] %vm9050_vm0, %v9056_v0 }
  0x49   : > { %450 = vst.msk [vmem:[#allocation2 + $0x178] sm:$0x3] %vm404_vm1, %v9056_v0 }
  0x4a   : > { %451 = vst.msk [vmem:[#allocation2 + $0x180] sm:$0xff] %vm9050_vm0, %v9056_v0 }
  0x4b   : > { %452 = vst.msk [vmem:[#allocation2 + $0x188] sm:$0xff] %vm9050_vm0, %v9056_v0 }
  0x4c   : > { %453 = vst.msk [vmem:[#allocation2 + $0x190] sm:$0x3] %vm404_vm1, %v9056_v0 }
  0x4d   : > { %454 = vst.msk [vmem:[#allocation2 + $0x198] sm:$0xff] %vm9050_vm0, %v9056_v0 }
  0x4e   : > { %455 = vst.msk [vmem:[#allocation2 + $0x1a0] sm:$0xff] %vm9050_vm0, %v9056_v0 }
  0x4f   : > { %456 = vst.msk [vmem:[#allocation2 + $0x1a8] sm:$0x3] %vm404_vm1, %v9056_v0  ;;  %vm9045_vm1 = vcmask 1041409  }
  0x50   : > { %578 = vst.msk [vmem:[#allocation3 + $0x8] sm:$0xff] %vm9050_vm0, %v5918_v1 }
  0x51   : > { %577 = vst.msk [vmem:[#allocation3] sm:$0xff] %vm9050_vm0, %v5930_v5 }
  0x52   : > { %491 = vst.msk [vmem:[#allocation2 + $0x19] sm:$0xff] %vm9055_vm4, %v457_v12  ;;  %v465_v12 = vld [vmem:[%s6030_s13 + $0x40] sm:$0xff] }
  0x53   : > { %493 = vst.msk [vmem:[#allocation2 + $0x31] sm:$0xff] %vm9055_vm4, %v459_v13  ;;  %v1915_v13 = vld [vmem:[%s9082_s1 + $0x30] sm:$0xff] }
  0x54   : > { %492 = vst.msk [vmem:[#allocation2 + $0x21] sm:$0xff] %vm9055_vm4, %v458_v14  ;;  %2024 = vmatpush.msra.mxu0 %v1915_v13  ;;  %v1914_v14 = vld [vmem:[%s9082_s1 + $0x28] sm:$0xff]  ;;  %5591 = vmatpush.msra.mxu1 %v1915_v13 }
  0x55   : > { %494 = vst.msk [vmem:[#allocation2 + $0x39] sm:$0xff] %vm9055_vm4, %v460_v15  ;;  %5592 = vmatpush.msra.mxu2 %v1915_v13  ;;  %v1913_v15 = vld [vmem:[%s9082_s1 + $0x20] sm:$0xff] }
  0x56   : > { %495 = vst.msk [vmem:[#allocation2 + $0x49] sm:$0xff] %vm9055_vm4, %v461_v31  ;;  %2025 = vmatpush.msra.mxu0 %v1914_v14  ;;  %5593 = vmatpush.msra.mxu1 %v1914_v14 }
  0x57   : > { %496 = vst.msk [vmem:[#allocation2 + $0x51] sm:$0xff] %vm9055_vm4, %v462_v32  ;;  %5594 = vmatpush.msra.mxu2 %v1914_v14 }
  0x58   : > { %497 = vst.msk [vmem:[#allocation2 + $0x61] sm:$0xff] %vm9055_vm4, %v463_v51  ;;  %2026 = vmatpush.msra.mxu0 %v1913_v15  ;;  %5595 = vmatpush.msra.mxu1 %v1913_v15 }
  0x59   : > { %v526_v16 = vld [vmem:[#allocation2 + $0x18] sm:$0xff]  ;;  %498 = vst.msk [vmem:[#allocation2 + $0x69] sm:$0xff] %vm9055_vm4, %v464_v52  ;;  %5596 = vmatpush.msra.mxu2 %v1913_v15 }
  0x5a   : > { %1079 = vrot.lane.b32.xlu1 %v526_v16, %s9037_s14  ;;  %579 = vst.msk [vmem:[#allocation3 + $0x10] sm:$0xff] %vm9050_vm0, %v526_v16  ;;  %v529_v17 = vld [vmem:[#allocation2 + $0x30] sm:$0xff]  ;;  %v663_v19 = vrot.slane %v526_v16, 1  ;;  %v873_v22 = vrot.slane %v526_v16, 2  ;;  %v466_v16 = vld [vmem:[%s6030_s13 + $0x48] sm:$0xff] }
  0x5b   : > { %1479 = vrot.lane.b32.xlu2 %v529_v17, %s9041_s15  ;;  %581 = vst.msk [vmem:[#allocation3 + $0x20] sm:$0xff] %vm9050_vm0, %v529_v17  ;;  %v527_v18 = vld [vmem:[#allocation2 + $0x20] sm:$0xff]  ;;  %v668_v20 = vrot.slane %v529_v17, 1  ;;  %v528_v29 = vld [vmem:[#allocation2 + $0x28] sm:$0x3]  ;;  %v878_v33 = vrot.slane %v529_v17, 2 }
  0x5c   : > { %v664_v21 = vrot.slane %v527_v18, 1  ;;  %580 = vst.msk [vmem:[#allocation3 + $0x18] sm:$0xff] %vm9050_vm0, %v527_v18  ;;  %v874_v23 = vrot.slane %v527_v18, 2  ;;  %v6055_v24 = vld [vmem:[#allocation2 + $0x38] sm:$0xff]  ;;  %v666_v35 = vrot.slane %v528_v29, 1  ;;  %v876_v40 = vrot.slane %v528_v29, 2 }
  0x5d   : > { %v669_v25 = vrot.slane %v6055_v24, 1  ;;  %582 = vst.msk [vmem:[#allocation3 + $0x28] sm:$0xff] %vm9050_vm0, %v6055_v24  ;;  %v879_v34 = vrot.slane %v6055_v24, 2  ;;  %v531_v39 = vld [vmem:[#allocation2 + $0x40] sm:$0x3]  ;;  %v6085_v41 = vld [vmem:[#allocation2 + $0x48] sm:$0xff] }
  0x5e   : > { %v665_v26 = vsel %vm657_vm2, %v663_v19, %v664_v21  ;;  %v875_v28 = vsel %vm867_vm3, %v873_v22, %v874_v23  ;;  %v667_v38 = vsel %vm657_vm2, %v664_v21, %v666_v35  ;;  %v6088_v42 = vld [vmem:[#allocation2 + $0x50] sm:$0xff]  ;;  %583 = vst.msk [vmem:[#allocation3 + $0x30] sm:$0xff] %vm9050_vm0, %v6085_v41  ;;  %v671_v43 = vrot.slane %v531_v39, 1  ;;  %v534_v59 = vld [vmem:[#allocation2 + $0x58] sm:$0x3]  ;;  %v1910_v21 = vld [vmem:[%s9082_s1 + $0x8] sm:$0xff] }
  0x5f   : > { %v6062_v27 = vsel %vm657_vm2, %v668_v20, %v669_v25  ;;  %v6079_v37 = vsel %vm867_vm3, %v878_v33, %v879_v34  ;;  %584 = vst.msk [vmem:[#allocation3 + $0x38] sm:$0xff] %vm9050_vm0, %v6088_v42  ;;  %v877_v44 = vsel %vm867_vm3, %v874_v23, %v876_v40  ;;  %v881_v46 = vrot.slane %v531_v39, 2  ;;  %v6138_v57 = vld [vmem:[#allocation2 + $0x60] sm:$0xff]  ;;  %v1911_v20 = vld [vmem:[%s9082_s1 + $0x10] sm:$0xff]  ;;  %v1909_v23 = vld [vmem:[%s9082_s1] sm:$0xff] }
  0x60   : > { %1614 = vrot.lane.b32.xlu0 %v6062_v27, %s9035_s16  ;;  %v6096_v45 = vsel %vm657_vm2, %v669_v25, %v671_v43  ;;  %v883_v48 = vrot.slane %v6085_v41, 2  ;;  %v884_v49 = vrot.slane %v6088_v42, 2  ;;  %v673_v53 = vrot.slane %v6085_v41, 1  ;;  %585 = vst.msk [vmem:[#allocation3 + $0x40] sm:$0xff] %vm9050_vm0, %v6138_v57  ;;  %v6144_v58 = vld [vmem:[#allocation2 + $0x68] sm:$0xff]  ;;  %v468_v43 = vld [vmem:[%s6030_s13 + $0x58] sm:$0xff] }
  0x61   : > { %v6103_v47 = vsel %vm867_vm3, %v879_v34, %v881_v46  ;;  %v674_v54 = vrot.slane %v6088_v42, 1  ;;  %586 = vst.msk [vmem:[#allocation3 + $0x48] sm:$0xff] %vm9050_vm0, %v6144_v58  ;;  %v676_v60 = vrot.slane %v534_v59, 1  ;;  %v886_v62 = vrot.slane %v534_v59, 2  ;;  %v537_v22 = vld [vmem:[#allocation2 + $0x70] sm:$0x3] }
  0x62   : > { %1214 = vrot.lane.b32.xlu1 %v665_v26, %s9029_s25  ;;  %v6117_v50 = vsel %vm867_vm3, %v883_v48, %v884_v49  ;;  %v678_v2 = vrot.slane %v6138_v57, 1  ;;  %v679_v3 = vrot.slane %v6144_v58, 1  ;;  %v888_v6 = vrot.slane %v6138_v57, 2  ;;  %499 = vst.msk [vmem:[#allocation2 + $0x79] sm:$0xff] %vm9055_vm4, %v465_v12  ;;  %v470_v12 = vld [vmem:[%s6030_s13 + $0x68] sm:$0xff] }
  0x63   : > { %1348 = vrot.lane.b32.xlu2 %v875_v28, %s9031_s29  ;;  %v6133_v56 = vsel %vm657_vm2, %v673_v53, %v674_v54  ;;  %v6154_v61 = vsel %vm657_vm2, %v674_v54, %v676_v60  ;;  %v6164_v1 = vsel %vm867_vm3, %v884_v49, %v886_v62  ;;  %v889_v7 = vrot.slane %v6144_v58, 2  ;;  %500 = vst.msk [vmem:[#allocation2 + $0x81] sm:$0xff] %vm9055_vm4, %v466_v16 }
  0x64   : > { %v6177_v4 = vsel %vm657_vm2, %v678_v2, %v679_v3  ;;  %v891_v25 = vrot.slane %v537_v22, 2  ;;  %502 = vst.msk [vmem:[#allocation2 + $0x99] sm:$0xff] %vm9055_vm4, %v468_v43 }
  0x65   : > { %v6194_v10 = vsel %vm867_vm3, %v888_v6, %v889_v7  ;;  %503 = vst.msk [vmem:[#allocation2 + $0xa9] sm:$0xff] %vm9055_vm4, %v469_v11 }
  0x66   : > { %504 = vst.msk [vmem:[#allocation2 + $0xb1] sm:$0xff] %vm9055_vm4, %v470_v12 }
  0x67   : > { %3575 = vst.msk [vmem:[#allocation4 + $0x8] sm:$0x3] %vm9043_vm14, %v9056_v0 }
  0x68   : > { %950 = vrot.lane.b32.xlu0 %v872_v36, %s9039_s24  ;;  %3577 = vst.msk [vmem:[#allocation4 + $0x18] sm:$0x3] %vm9043_vm14, %v9056_v0 }
  0x69   : > { %v6221_v19 = vld [vmem:[#allocation2 + $0x78] sm:$0xff]  ;;  %3579 = vst.msk [vmem:[#allocation4 + $0x28] sm:$0x3] %vm9043_vm14, %v9056_v0 }
  0x6a   : > { %1748 = vrot.lane.b32.xlu1 %v6079_v37, %s9065_s30  ;;  %587 = vst.msk [vmem:[#allocation3 + $0x50] sm:$0xff] %vm9050_vm0, %v6221_v19  ;;  %v683_v35 = vrot.slane %v6221_v19, 1 }
  0x6b   : > { %1216 = vrot.lane.b32.xlu2 %v667_v38, %s9029_s25  ;;  %3581 = vst.msk [vmem:[#allocation4 + $0x38] sm:$0x3] %vm9043_vm14, %v9056_v0 }
  0x6c   : > { %3583 = vst.msk [vmem:[#allocation4 + $0x48] sm:$0x3] %vm9043_vm14, %v9056_v0 }
  0x6d   : > { %3585 = vst.msk [vmem:[#allocation4 + $0x58] sm:$0x3] %vm9043_vm14, %v9056_v0 }
  0x6e   : > { %3587 = vst.msk [vmem:[#allocation4 + $0x68] sm:$0x3] %vm9043_vm14, %v9056_v0 }
  0x6f   : > { %3574 = vst.msk [vmem:[#allocation4] sm:$0xff] %vm3249_vm15, %v9056_v0 }
  0x70   : > { %1350 = vrot.lane.b32.xlu0 %v877_v44, %s9031_s29  ;;  %3576 = vst.msk [vmem:[#allocation4 + $0x10] sm:$0xff] %vm3249_vm15, %v9056_v0 }
  0x71   : > { %3578 = vst.msk [vmem:[#allocation4 + $0x20] sm:$0xff] %vm3249_vm15, %v9056_v0 }
  0x72   : > { %1081 = vrot.lane.b32.xlu1 %v527_v18, %s9037_s14  ;;  %v1912_v18 = vld [vmem:[%s9082_s1 + $0x18] sm:$0xff]  ;;  %3580 = vst.msk [vmem:[#allocation4 + $0x30] sm:$0xff] %vm3249_vm15, %v9056_v0  ;;  %s5451_s1 = scalar_lea.hbm %s9028_s11, %s5867_s21 }
  0x73   : > { %1616 = vrot.lane.b32.xlu2 %v6096_v45, %s9035_s16  ;;  %2027 = vmatpush.msra.mxu0 %v1912_v18  ;;  %3582 = vst.msk [vmem:[#allocation4 + $0x40] sm:$0xff] %vm3249_vm15, %v9056_v0 }
  0x74   : > { %5597 = vmatpush.msra.mxu1 %v1912_v18  ;;  %5598 = vmatpush.msra.mxu2 %v1912_v18  ;;  %3584 = vst.msk [vmem:[#allocation4 + $0x50] sm:$0xff] %vm3249_vm15, %v9056_v0 }
  0x75   : > { %2028 = vmatpush.msra.mxu0 %v1911_v20  ;;  %3586 = vst.msk [vmem:[#allocation4 + $0x60] sm:$0xff] %vm3249_vm15, %v9056_v0 }
  0x76   : > { %5599 = vmatpush.msra.mxu1 %v1911_v20  ;;  %5600 = vmatpush.msra.mxu2 %v1911_v20  ;;  %v6382_v20 = vld [vmem:[#allocation2 + $0xa8] sm:$0xff]  ;;  %3588 = vst.msk [vmem:[#allocation4 + $0x70] sm:$0xff] %vm3249_vm15, %v9056_v0 }
  0x77   : > { %2029 = vmatpush.msra.mxu0 %v1910_v21  ;;  %591 = vst.msk [vmem:[#allocation3 + $0x70] sm:$0xff] %vm9050_vm0, %v6382_v20 }
  0x78   : > { %1750 = vrot.lane.b32.xlu0 %v6103_v47, %s9065_s30  ;;  %5601 = vmatpush.msra.mxu1 %v1910_v21  ;;  %3589 = vst.msk [vmem:[#allocation4 + $0x78] sm:$0x3] %vm9043_vm14, %v9056_v0 }
  0x79   : > { %2030 = vmatpush.msra.mxu0 %v1909_v23  ;;  %5602 = vmatpush.msra.mxu2 %v1910_v21  ;;  %v6386_v21 = vld [vmem:[#allocation2 + $0xb0] sm:$0xff]  ;;  %3590 = vst.msk [vmem:[#allocation4 + $0x80] sm:$0xff] %vm3249_vm15, %v9056_v0 }
  0x7a   : > { %1481 = vrot.lane.b32.xlu1 %v6055_v24, %s9041_s15  ;;  %5603 = vmatpush.msra.mxu1 %v1909_v23  ;;  %592 = vst.msk [vmem:[#allocation3 + $0x78] sm:$0xff] %vm9050_vm0, %v6386_v21  ;;  %v904_v43 = vrot.slane %v6386_v21, 2 }
  0x7b   : > { %952 = vrot.lane.b32.xlu2 %v875_v28, %s9039_s24  ;;  %5604 = vmatpush.msra.mxu2 %v1909_v23  ;;  %v681_v28 = vrot.slane %v537_v22, 1  ;;  %3591 = vst.msk [vmem:[#allocation4 + $0x88] sm:$0x3] %vm9043_vm14, %v9056_v0 }
  0x7c   : > { %3592 = vst.msk [vmem:[#allocation4 + $0x90] sm:$0xff] %vm3249_vm15, %v9056_v0 }
  0x7d   : > { %v6257_v31 = vsel %vm657_vm2, %v679_v3, %v681_v28  ;;  %3593 = vst.msk [vmem:[#allocation4 + $0x98] sm:$0x3] %vm9043_vm14, %v9056_v0 }
  0x80   : > { %1083 = vrot.lane.b32.xlu0 %v529_v17, %s9037_s14  ;;  %v741_v55 = vpop.permute.xlu2 %740 }
  0x81   : > { %836 = vst.msk [vmem:[#allocation3 + $0x8] sm:$0xff] %vm834_vm5, %v741_v55 }
  0x82   : > { %742 = vrot.lane.b32.xlu1 %v665_v26, %s9033_s22 }
  0x83   : > { %1352 = vrot.lane.b32.xlu2 %v6079_v37, %s9031_s29 }
  0x88   : > { %1483 = vrot.lane.b32.xlu0 %v6085_v41, %s9041_s15 }
  0x8a   : > { %1218 = vrot.lane.b32.xlu1 %v6062_v27, %s9029_s25 }
  0x8b   : > { %1752 = vrot.lane.b32.xlu2 %v6117_v50, %s9065_s30 }
  0x90   : > { %744 = vrot.lane.b32.xlu0 %v667_v38, %s9033_s22 }
  0x92   : > { %1618 = vrot.lane.b32.xlu1 %v6133_v56, %s9035_s16 }
  0x93   : > { %1085 = vrot.lane.b32.xlu2 %v6055_v24, %s9037_s14  ;;  %v6238_v24 = vld [vmem:[#allocation2 + $0x80] sm:$0xff] }
  0x94   : > { %588 = vst.msk [vmem:[#allocation3 + $0x58] sm:$0xff] %vm9050_vm0, %v6238_v24  ;;  %v684_v36 = vrot.slane %v6238_v24, 1 }
  0x96   : > { %v6281_v40 = vsel %vm657_vm2, %v683_v35, %v684_v36 }
  0x98   : > { %1220 = vrot.lane.b32.xlu0 %v6096_v45, %s9029_s25 }
  0x99   : > { %v739_v63 = vpop.permute.xlu0 %738 }
  0x9a   : > { %954 = vrot.lane.b32.xlu1 %v877_v44, %s9039_s24  ;;  %835 = vst.msk [vmem:[#allocation3] sm:$0xff] %vm834_vm5, %v739_v63  ;;  %v893_v44 = vrot.slane %v6221_v19, 2 }
  0x9b   : > { %1485 = vrot.lane.b32.xlu2 %v6088_v42, %s9041_s15 }
  0xa0   : > { %1620 = vrot.lane.b32.xlu0 %v6154_v61, %s9035_s16 }
  0xa1   : > { %v949_v5 = vpop.permute.xlu0 %948 }
  0xa2   : > { %1354 = vrot.lane.b32.xlu1 %v6103_v47, %s9031_s29  ;;  %1045 = vst.msk [vmem:[#allocation3] sm:$0xff] %vm1044_vm6, %v949_v5 }
  0xa3   : > { %746 = vrot.lane.b32.xlu2 %v6062_v27, %s9033_s22  ;;  %v6245_v27 = vsel %vm867_vm3, %v889_v7, %v891_v25  ;;  %s9086_s22 = smov 32   ;;  %v543_v25 = vld [vmem:[#allocation2 + $0xa0] sm:$0x3] }
  0xa8   : > { %956 = vrot.lane.b32.xlu0 %v6079_v37, %s9039_s24 }
  0xaa   : > { %1754 = vrot.lane.b32.xlu1 %v6164_v1, %s9065_s30 }
  0xab   : > { %1222 = vrot.lane.b32.xlu2 %v6133_v56, %s9029_s25 }
  0xb0   : > { %1356 = vrot.lane.b32.xlu0 %v6117_v50, %s9031_s29  ;;  %s9087_s29 = smov 56  }
  0xb2   : > { %1087 = vrot.lane.b32.xlu1 %v6085_v41, %s9037_s14  ;;  %s9084_s14 = smov 8  }
  0xb3   : > { %1622 = vrot.lane.b32.xlu2 %v6177_v4, %s9035_s16  ;;  %s9088_s16 = smov 16  }
  0xb5   : > { %v6191_v9 = vpop.permute.xlu2 %1479 }
  0xb8   : > { %1756 = vrot.lane.b32.xlu0 %v6194_v10, %s9065_s30 }
  0xba   : > { %1487 = vrot.lane.b32.xlu1 %v6138_v57, %s9041_s15 }
  0xbb   : > { %958 = vrot.lane.b32.xlu2 %v6103_v47, %s9039_s24  ;;  %s9083_s24 = smov 24  }
  0xbd   : > { %v1349_v17 = vpop.permute.xlu2 %1348 }
  0xc0   : > { %1089 = vrot.lane.b32.xlu0 %v6088_v42, %s9083_s24  ;;  %v467_v42 = vld [vmem:[%s6030_s13 + $0x50] sm:$0xff] }
  0xc1   : > { %501 = vst.msk [vmem:[#allocation2 + $0x91] sm:$0xff] %vm9055_vm4, %v467_v42  ;;  %v903_v42 = vrot.slane %v6382_v20, 2 }
  0xc2   : > { %748 = vrot.lane.b32.xlu1 %v6096_v45, %s9084_s14  ;;  %v894_v45 = vrot.slane %v6238_v24, 2 }
  0xc3   : > { %1358 = vrot.lane.b32.xlu2 %v6164_v1, %s9085_s12 }
  0xc4   : > { %v6300_v49 = vsel %vm867_vm3, %v893_v44, %v894_v45 }
  0xc5   : > { %v1217_v26 = vpop.permute.xlu2 %1216 }
  0xc8   : > { %1489 = vrot.lane.b32.xlu0 %v6144_v58, %s9041_s15  ;;  %v6306_v52 = vld [vmem:[#allocation2 + $0x90] sm:$0xff]  ;;  %v6310_v53 = vld [vmem:[#allocation2 + $0x98] sm:$0xff] }
  0xc9   : > { %589 = vst.msk [vmem:[#allocation3 + $0x60] sm:$0xff] %vm9050_vm0, %v6306_v52  ;;  %v898_v7 = vrot.slane %v6306_v52, 2  ;;  %v899_v8 = vrot.slane %v6310_v53, 2  ;;  %v688_v13 = vrot.slane %v6306_v52, 1  ;;  %v689_v14 = vrot.slane %v6310_v53, 1 }
  0xca   : > { %1224 = vrot.lane.b32.xlu1 %v6154_v61, %s9086_s22  ;;  %590 = vst.msk [vmem:[#allocation3 + $0x68] sm:$0xff] %vm9050_vm0, %v6310_v53 }
  0xcb   : > { %1758 = vrot.lane.b32.xlu2 %v6245_v27, %s9065_s30  ;;  %v6376_v18 = vsel %vm657_vm2, %v688_v13, %v689_v14 }
  0xcc   : > { %v1080_v29 = vpop.permute.xlu1 %1079 }
  0xcd   : > { %v1617_v30 = vpop.permute.xlu2 %1616  ;;  %1176 = vst.msk [vmem:[#allocation3] sm:$0xff] %vm9047_vm7, %v1080_v29 }
  0xd0   : > { %750 = vrot.lane.b32.xlu0 %v6133_v56, %s9084_s14 }
  0xd2   : > { %1624 = vrot.lane.b32.xlu1 %v6257_v31, %s9087_s29  ;;  %v1615_v32 = vpop.permute.xlu0 %1614 }
  0xd3   : > { %1091 = vrot.lane.b32.xlu2 %v6138_v57, %s9083_s24 }
  0xd4   : > { %v1215_v33 = vpop.permute.xlu1 %1214 }
  0xd5   : > { %1311 = vst.msk [vmem:[#allocation3] sm:$0xff] %vm1310_vm8, %v1215_v33  ;;  %v953_v34 = vpop.permute.xlu2 %952 }
  0xd6   : > { %1445 = vst.msk [vmem:[#allocation3] sm:$0xff] %vm1444_vm9, %v1349_v17 }
  0xd7   : > { %1576 = vst.msk [vmem:[#allocation3] sm:$0xff] %vm1575_vm10, %v6191_v9 }
  0xd8   : > { %1711 = vst.msk [vmem:[#allocation3] sm:$0xff] %vm1710_vm11, %v1615_v32  ;;  %1226 = vrot.lane.b32.xlu0 %v6177_v4, %s9086_s22 }
  0xda   : > { %960 = vrot.lane.b32.xlu1 %v6117_v50, %s9088_s16  ;;  %v951_v37 = vpop.permute.xlu0 %950  ;;  %v540_v50 = vld [vmem:[#allocation2 + $0x88] sm:$0x3] }
  0xdb   : > { %1491 = vrot.lane.b32.xlu2 %v6221_v19, %s9041_s15  ;;  %1046 = vst.msk [vmem:[#allocation3 + $0x8] sm:$0xff] %vm1044_vm6, %v951_v37  ;;  %v686_v55 = vrot.slane %v540_v50, 1  ;;  %v896_v59 = vrot.slane %v540_v50, 2 }
  0xdc   : > { %v1749_v38 = vpop.permute.xlu1 %1748 }
  0xdd   : > { %1845 = vst.msk [vmem:[#allocation3] sm:$0xff] %vm9044_vm12, %v1749_v38  ;;  %v1353_v39 = vpop.permute.xlu2 %1352  ;;  %v6320_v57 = vsel %vm657_vm2, %v684_v36, %v686_v55  ;;  %v6330_v63 = vsel %vm867_vm3, %v894_v45, %v896_v59  ;;  %v693_v38 = vrot.slane %v6382_v20, 1 }
  0xe0   : > { %1626 = vrot.lane.b32.xlu0 %v6281_v40, %s9087_s29 }
  0xe2   : > { %1360 = vrot.lane.b32.xlu1 %v6194_v10, %s9085_s12  ;;  %v1351_v41 = vpop.permute.xlu0 %1350 }
  0xe3   : > { %752 = vrot.lane.b32.xlu2 %v6154_v61, %s9084_s14 }
  0xe4   : > { %v1082_v46 = vpop.permute.xlu1 %1081  ;;  %v1877_v47 = vld [vmem:[#allocation3] sm:$0xff] }
  0xe5   : > { %1177 = vst.msk [vmem:[#allocation3 + $0x8] sm:$0xff] %vm9047_vm7, %v1082_v46  ;;  %5530 = vmatmul.msk.f32.vlgmr.msra.gmra.mxu0 %vm9048_vm13, %v1877_v47  ;;  %v1753_v48 = vpop.permute.xlu2 %1752  ;;  %v6449_v47 = vsel %vm867_vm3, %v903_v42, %v904_v43 }
  0xe6   : > { %1312 = vst.msk [vmem:[#allocation3 + $0x8] sm:$0xff] %vm1310_vm8, %v1217_v26 }
  0xe7   : > { %1446 = vst.msk [vmem:[#allocation3 + $0x8] sm:$0xff] %vm1444_vm9, %v1351_v41 }
  0xe8   : > { %962 = vrot.lane.b32.xlu0 %v6164_v1, %s9088_s16 }
  0xea   : > { %1760 = vrot.lane.b32.xlu1 %v6300_v49, %s9065_s30  ;;  %v1751_v51 = vpop.permute.xlu0 %1750 }
  0xeb   : > { %1228 = vrot.lane.b32.xlu2 %v6257_v31, %s9086_s22 }
  0xec   : > { %v1482_v54 = vpop.permute.xlu1 %1481 }
  0xed   : > { %1577 = vst.msk [vmem:[#allocation3 + $0x8] sm:$0xff] %vm1575_vm10, %v1482_v54  ;;  %v1086_v56 = vpop.permute.xlu2 %1085 }
  0xee   : > { %1712 = vst.msk [vmem:[#allocation3 + $0x8] sm:$0xff] %vm1710_vm11, %v1617_v30 }
  0xef   : > { %1846 = vst.msk [vmem:[#allocation3 + $0x8] sm:$0xff] %vm9044_vm12, %v1751_v51  ;;  %v472_v51 = vld [vmem:[%s6030_s13 + $0x78] sm:$0xff] }
  0xf0   : > { %1362 = vrot.lane.b32.xlu0 %v6245_v27, %s9085_s12  ;;  %506 = vst.msk [vmem:[#allocation2 + $0xc9] sm:$0xff] %vm9055_vm4, %v472_v51 }
  0xf2   : > { %1093 = vrot.lane.b32.xlu1 %v6144_v58, %s9083_s24  ;;  %v1084_v60 = vpop.permute.xlu0 %1083 }
  0xf3   : > { %1628 = vrot.lane.b32.xlu2 %v6320_v57, %s9087_s29 }
  0xf4   : > { %v743_v61 = vpop.permute.xlu1 %742 }
  0xf5   : > { %837 = vst.msk [vmem:[#allocation3 + $0x10] sm:$0xff] %vm834_vm5, %v743_v61  ;;  %v1486_v62 = vpop.permute.xlu2 %1485 }
  0xf6   : > { %1047 = vst.msk [vmem:[#allocation3 + $0x10] sm:$0xff] %vm1044_vm6, %v953_v34  ;;  %v1878_v1 = vld [vmem:[#allocation3 + $0x8] sm:$0xff] }
  0xf7   : > { %1178 = vst.msk [vmem:[#allocation3 + $0x10] sm:$0xff] %vm9047_vm7, %v1084_v60  ;;  %5531 = vmatmul.msk.f32.gmra.mxu0 %vm9048_vm13, %v1878_v1 }
  0xf8   : > { %1762 = vrot.lane.b32.xlu0 %v6330_v63, %s9065_s30 }
  0xfa   : > { %1493 = vrot.lane.b32.xlu1 %v6238_v24, %s9041_s15  ;;  %v1484_v58 = vpop.permute.xlu0 %1483 }
  0xfb   : > { %964 = vrot.lane.b32.xlu2 %v6194_v10, %s9088_s16  ;;  %v6357_v10 = vsel %vm867_vm3, %v898_v7, %v899_v8 }
  0xfc   : > { %v1219_v2 = vpop.permute.xlu1 %1218 }
  0xfd   : > { %1313 = vst.msk [vmem:[#allocation3 + $0x10] sm:$0xff] %vm1310_vm8, %v1219_v2  ;;  %v747_v3 = vpop.permute.xlu2 %746 }
  0xfe   : > { %1447 = vst.msk [vmem:[#allocation3 + $0x10] sm:$0xff] %vm1444_vm9, %v1353_v39  ;;  %v694_v39 = vrot.slane %v6386_v21, 1 }
  0xff   : > { %839 = vst.msk [vmem:[#allocation3 + $0x20] sm:$0xff] %vm834_vm5, %v747_v3 }
 0x100   : > { %1578 = vst.msk [vmem:[#allocation3 + $0x10] sm:$0xff] %vm1575_vm10, %v1484_v58  ;;  %1095 = vrot.lane.b32.xlu0 %v6221_v19, %s9083_s24  ;;  %v6435_v41 = vsel %vm657_vm2, %v693_v38, %v694_v39 }
 0x102   : > { %754 = vrot.lane.b32.xlu1 %v6177_v4, %s9084_s14  ;;  %v745_v5 = vpop.permute.xlu0 %744 }
 0x103   : > { %1364 = vrot.lane.b32.xlu2 %v6300_v49, %s9085_s12  ;;  %838 = vst.msk [vmem:[#allocation3 + $0x18] sm:$0xff] %vm834_vm5, %v745_v5 }
 0x104   : > { %v1619_v6 = vpop.permute.xlu1 %1618 }
 0x105   : > { %1713 = vst.msk [vmem:[#allocation3 + $0x10] sm:$0xff] %vm1710_vm11, %v1619_v6  ;;  %v1223_v9 = vpop.permute.xlu2 %1222 }
 0x106   : > { %1847 = vst.msk [vmem:[#allocation3 + $0x10] sm:$0xff] %vm9044_vm12, %v1753_v48  ;;  %v471_v48 = vld [vmem:[%s6030_s13 + $0x70] sm:$0xff] }
 0x107   : > { %505 = vst.msk [vmem:[#allocation2 + $0xc1] sm:$0xff] %vm9055_vm4, %v471_v48 }
 0x108   : > { %1495 = vrot.lane.b32.xlu0 %v6306_v52, %s9041_s15 }
 0x10a   : > { %1230 = vrot.lane.b32.xlu1 %v6281_v40, %s9086_s22  ;;  %v1221_v4 = vpop.permute.xlu0 %1220 }
 0x10b   : > { %1764 = vrot.lane.b32.xlu2 %v6357_v10, %s9065_s30 }
 0x10c   : > { %v955_v15 = vpop.permute.xlu1 %954 }
 0x10d   : > { %1048 = vst.msk [vmem:[#allocation3 + $0x18] sm:$0xff] %vm1044_vm6, %v955_v15  ;;  %v1879_v16 = vld [vmem:[#allocation3 + $0x10] sm:$0xff]  ;;  %v1623_v17 = vpop.permute.xlu2 %1622  ;;  %v473_v15 = vld [vmem:[%s6030_s13 + $0x80] sm:$0xff] }
 0x10e   : > { %1179 = vst.msk [vmem:[#allocation3 + $0x18] sm:$0xff] %vm9047_vm7, %v1086_v56  ;;  %5532 = vmatmul.msk.f32.gmra.mxu0 %vm9048_vm13, %v1879_v16  ;;  %v6470_v55 = vld [vmem:[#allocation2 + $0xc0] sm:$0xff]  ;;  %v546_v56 = vld [vmem:[#allocation2 + $0xb8] sm:$0x3] }
 0x10f   : > { %1314 = vst.msk [vmem:[#allocation3 + $0x18] sm:$0xff] %vm1310_vm8, %v1221_v4  ;;  %v906_v61 = vrot.slane %v546_v56, 2  ;;  %v474_v16 = vld [vmem:[%s6030_s13 + $0x88] sm:$0xff] }
 0x110   : > { %756 = vrot.lane.b32.xlu0 %v6257_v31, %s9084_s14  ;;  %v901_v31 = vrot.slane %v543_v25, 2  ;;  %593 = vst.msk [vmem:[#allocation3 + $0x80] sm:$0xff] %vm9050_vm0, %v6470_v55 }
 0x111   : > { %507 = vst.msk [vmem:[#allocation2 + $0xd9] sm:$0xff] %vm9055_vm4, %v473_v15 }
 0x112   : > { %1630 = vrot.lane.b32.xlu1 %v6376_v18, %s9087_s29  ;;  %v1621_v19 = vpop.permute.xlu0 %1620  ;;  %v6417_v35 = vsel %vm867_vm3, %v899_v8, %v901_v31  ;;  %v6539_v8 = vld [vmem:[#allocation2 + $0xc8] sm:$0xff]  ;;  %508 = vst.msk [vmem:[#allocation2 + $0xe1] sm:$0xff] %vm9055_vm4, %v474_v16 }
 0x113   : > { %1097 = vrot.lane.b32.xlu2 %v6238_v24, %s9083_s24  ;;  %v691_v24 = vrot.slane %v543_v25, 1  ;;  %v699_v4 = vrot.slane %v6539_v8, 1  ;;  %594 = vst.msk [vmem:[#allocation3 + $0x88] sm:$0xff] %vm9050_vm0, %v6539_v8  ;;  %v549_v25 = vld [vmem:[#allocation2 + $0xd0] sm:$0x3] }
 0x114   : > { %v1355_v22 = vpop.permute.xlu1 %1354 }
 0x115   : > { %1448 = vst.msk [vmem:[#allocation3 + $0x18] sm:$0xff] %vm1444_vm9, %v1355_v22  ;;  %v959_v23 = vpop.permute.xlu2 %958  ;;  %v6404_v30 = vsel %vm657_vm2, %v689_v14, %v691_v24 }
 0x116   : > { %1579 = vst.msk [vmem:[#allocation3 + $0x18] sm:$0xff] %vm1575_vm10, %v1486_v62 }
 0x117   : > { %1714 = vst.msk [vmem:[#allocation3 + $0x18] sm:$0xff] %vm1710_vm11, %v1621_v19 }
 0x118   : > { %1232 = vrot.lane.b32.xlu0 %v6320_v57, %s9086_s22 }
 0x11a   : > { %966 = vrot.lane.b32.xlu1 %v6245_v27, %s9088_s16  ;;  %v957_v26 = vpop.permute.xlu0 %956 }
 0x11b   : > { %1497 = vrot.lane.b32.xlu2 %v6310_v53, %s9041_s15  ;;  %1049 = vst.msk [vmem:[#allocation3 + $0x20] sm:$0xff] %vm1044_vm6, %v957_v26  ;;  %v6601_v26 = vld [vmem:[#allocation2 + $0xd8] sm:$0xff] }
 0x11c   : > { %v1755_v28 = vpop.permute.xlu1 %1754  ;;  %595 = vst.msk [vmem:[#allocation3 + $0x90] sm:$0xff] %vm9050_vm0, %v6601_v26 }
 0x11d   : > { %1848 = vst.msk [vmem:[#allocation3 + $0x18] sm:$0xff] %vm9044_vm12, %v1755_v28  ;;  %v1359_v29 = vpop.permute.xlu2 %1358  ;;  %v6605_v28 = vld [vmem:[#allocation2 + $0xe0] sm:$0xff] }
 0x11e   : > { %596 = vst.msk [vmem:[#allocation3 + $0x98] sm:$0xff] %vm9050_vm0, %v6605_v28 }
 0x120   : > { %1632 = vrot.lane.b32.xlu0 %v6404_v30, %s9087_s29 }
 0x122   : > { %1366 = vrot.lane.b32.xlu1 %v6330_v63, %s9085_s12  ;;  %v1357_v27 = vpop.permute.xlu0 %1356 }
 0x123   : > { %758 = vrot.lane.b32.xlu2 %v6281_v40, %s9084_s14 }
 0x124   : > { %v1088_v32 = vpop.permute.xlu1 %1087  ;;  %v1880_v33 = vld [vmem:[#allocation3 + $0x18] sm:$0xff] }
 0x125   : > { %1180 = vst.msk [vmem:[#allocation3 + $0x20] sm:$0xff] %vm9047_vm7, %v1088_v32  ;;  %5533 = vmatmul.msk.f32.gmra.mxu0 %vm9048_vm13, %v1880_v33  ;;  %v1759_v34 = vpop.permute.xlu2 %1758  ;;  %v911_v32 = vrot.slane %v549_v25, 2 }
 0x126   : > { %1315 = vst.msk [vmem:[#allocation3 + $0x20] sm:$0xff] %vm1310_vm8, %v1223_v9  ;;  %v698_v9 = vrot.slane %v6470_v55, 1 }
 0x127   : > { %1449 = vst.msk [vmem:[#allocation3 + $0x20] sm:$0xff] %vm1444_vm9, %v1357_v27 }
 0x128   : > { %968 = vrot.lane.b32.xlu0 %v6300_v49, %s9088_s16 }
 0x12a   : > { %1766 = vrot.lane.b32.xlu1 %v6417_v35, %s9065_s30  ;;  %v1757_v36 = vpop.permute.xlu0 %1756 }
 0x12b   : > { %1234 = vrot.lane.b32.xlu2 %v6376_v18, %s9086_s22 }
 0x12c   : > { %v1488_v37 = vpop.permute.xlu1 %1487 }
 0x12d   : > { %1580 = vst.msk [vmem:[#allocation3 + $0x20] sm:$0xff] %vm1575_vm10, %v1488_v37  ;;  %v6428_v40 = vpop.permute.xlu2 %1091 }
 0x12e   : > { %1715 = vst.msk [vmem:[#allocation3 + $0x20] sm:$0xff] %vm1710_vm11, %v1623_v17  ;;  %v908_v17 = vrot.slane %v6470_v55, 2 }
 0x12f   : > { %1849 = vst.msk [vmem:[#allocation3 + $0x20] sm:$0xff] %vm9044_vm12, %v1757_v36 }
 0x130   : > { %1368 = vrot.lane.b32.xlu0 %v6357_v10, %s9085_s12 }
 0x132   : > { %1099 = vrot.lane.b32.xlu1 %v6306_v52, %s9083_s24  ;;  %v1090_v44 = vpop.permute.xlu0 %1089 }
 0x133   : > { %1634 = vrot.lane.b32.xlu2 %v6435_v41, %s9087_s29 }
 0x134   : > { %v749_v45 = vpop.permute.xlu1 %748 }
 0x135   : > { %840 = vst.msk [vmem:[#allocation3 + $0x28] sm:$0xff] %vm834_vm5, %v749_v45  ;;  %v6446_v46 = vpop.permute.xlu2 %1491 }
 0x136   : > { %1050 = vst.msk [vmem:[#allocation3 + $0x28] sm:$0xff] %vm1044_vm6, %v959_v23  ;;  %v1881_v49 = vld [vmem:[#allocation3 + $0x20] sm:$0xff] }
 0x137   : > { %1181 = vst.msk [vmem:[#allocation3 + $0x28] sm:$0xff] %vm9047_vm7, %v1090_v44  ;;  %5534 = vmatmul.msk.f32.gmra.mxu0 %vm9048_vm13, %v1881_v49 }
 0x138   : > { %1768 = vrot.lane.b32.xlu0 %v6449_v47, %s9065_s30 }
 0x13a   : > { %1499 = vrot.lane.b32.xlu1 %v6382_v20, %s9041_s15  ;;  %v1490_v50 = vpop.permute.xlu0 %1489 }
 0x13b   : > { %970 = vrot.lane.b32.xlu2 %v6330_v63, %s9088_s16  ;;  %v696_v63 = vrot.slane %v546_v56, 1 }
 0x13c   : > { %v1225_v52 = vpop.permute.xlu1 %1224 }
 0x13d   : > { %1316 = vst.msk [vmem:[#allocation3 + $0x28] sm:$0xff] %vm1310_vm8, %v1225_v52  ;;  %v753_v54 = vpop.permute.xlu2 %752  ;;  %v6516_v3 = vsel %vm657_vm2, %v694_v39, %v696_v63 }
 0x13e   : > { %1450 = vst.msk [vmem:[#allocation3 + $0x28] sm:$0xff] %vm1444_vm9, %v1359_v29 }
 0x13f   : > { %842 = vst.msk [vmem:[#allocation3 + $0x38] sm:$0xff] %vm834_vm5, %v753_v54 }
 0x140   : > { %1581 = vst.msk [vmem:[#allocation3 + $0x28] sm:$0xff] %vm1575_vm10, %v1490_v50  ;;  %1101 = vrot.lane.b32.xlu0 %v6310_v53, %s9083_s24 }
 0x142   : > { %760 = vrot.lane.b32.xlu1 %v6320_v57, %s9084_s14  ;;  %v751_v59 = vpop.permute.xlu0 %750  ;;  %v6488_v57 = vsel %vm867_vm3, %v904_v43, %v906_v61 }
 0x143   : > { %1370 = vrot.lane.b32.xlu2 %v6417_v35, %s9085_s12  ;;  %841 = vst.msk [vmem:[#allocation3 + $0x30] sm:$0xff] %vm834_vm5, %v751_v59  ;;  %v914_v59 = vrot.slane %v6605_v28, 2 }
 0x144   : > { %v1625_v60 = vpop.permute.xlu1 %1624 }
 0x145   : > { %1716 = vst.msk [vmem:[#allocation3 + $0x28] sm:$0xff] %vm1710_vm11, %v1625_v60  ;;  %v6482_v53 = vpop.permute.xlu2 %1228 }
 0x146   : > { %1850 = vst.msk [vmem:[#allocation3 + $0x28] sm:$0xff] %vm9044_vm12, %v1759_v34 }
 0x148   : > { %1501 = vrot.lane.b32.xlu0 %v6386_v21, %s9041_s15 }
 0x14a   : > { %1236 = vrot.lane.b32.xlu1 %v6404_v30, %s9086_s22  ;;  %v1227_v62 = vpop.permute.xlu0 %1226 }
 0x14b   : > { %1770 = vrot.lane.b32.xlu2 %v6488_v57, %s9065_s30 }
 0x14c   : > { %v961_v1 = vpop.permute.xlu1 %960 }
 0x14d   : > { %1051 = vst.msk [vmem:[#allocation3 + $0x30] sm:$0xff] %vm1044_vm6, %v961_v1  ;;  %v1882_v58 = vld [vmem:[#allocation3 + $0x28] sm:$0xff]  ;;  %v6507_v2 = vpop.permute.xlu2 %1628 }
 0x14e   : > { %1182 = vst.msk [vmem:[#allocation3 + $0x30] sm:$0xff] %vm9047_vm7, %v6428_v40  ;;  %5535 = vmatmul.msk.f32.gmra.mxu0 %vm9048_vm13, %v1882_v58 }
 0x14f   : > { %1317 = vst.msk [vmem:[#allocation3 + $0x30] sm:$0xff] %vm1310_vm8, %v1227_v62 }
 0x150   : > { %762 = vrot.lane.b32.xlu0 %v6376_v18, %s9084_s14  ;;  %v909_v18 = vrot.slane %v6539_v8, 2 }
 0x152   : > { %1636 = vrot.lane.b32.xlu1 %v6516_v3, %s9087_s29  ;;  %v1627_v5 = vpop.permute.xlu0 %1626  ;;  %v6595_v23 = vsel %vm867_vm3, %v908_v17, %v909_v18  ;;  %v6630_v36 = vsel %vm867_vm3, %v909_v18, %v911_v32  ;;  %v704_v18 = vrot.slane %v6605_v28, 1 }
 0x153   : > { %1103 = vrot.lane.b32.xlu2 %v6382_v20, %s9083_s24 }
 0x154   : > { %v1361_v6 = vpop.permute.xlu1 %1360 }
 0x155   : > { %1451 = vst.msk [vmem:[#allocation3 + $0x30] sm:$0xff] %vm1444_vm9, %v1361_v6  ;;  %v6535_v7 = vpop.permute.xlu2 %964 }
 0x156   : > { %1582 = vst.msk [vmem:[#allocation3 + $0x30] sm:$0xff] %vm1575_vm10, %v6446_v46 }
 0x157   : > { %1717 = vst.msk [vmem:[#allocation3 + $0x30] sm:$0xff] %vm1710_vm11, %v1627_v5 }
 0x158   : > { %1238 = vrot.lane.b32.xlu0 %v6435_v41, %s9086_s22 }
 0x15a   : > { %972 = vrot.lane.b32.xlu1 %v6357_v10, %s9088_s16  ;;  %v963_v11 = vpop.permute.xlu0 %962  ;;  %v6563_v10 = vsel %vm657_vm2, %v698_v9, %v699_v4 }
 0x15b   : > { %1503 = vrot.lane.b32.xlu2 %v6470_v55, %s9041_s15  ;;  %1052 = vst.msk [vmem:[#allocation3 + $0x38] sm:$0xff] %vm1044_vm6, %v963_v11 }
 0x15c   : > { %v1761_v12 = vpop.permute.xlu1 %1760 }
 0x15d   : > { %1851 = vst.msk [vmem:[#allocation3 + $0x30] sm:$0xff] %vm9044_vm12, %v1761_v12  ;;  %v6560_v13 = vpop.permute.xlu2 %1364 }
 0x160   : > { %1638 = vrot.lane.b32.xlu0 %v6563_v10, %s9087_s29 }
 0x162   : > { %1372 = vrot.lane.b32.xlu1 %v6449_v47, %s9085_s12  ;;  %v1363_v14 = vpop.permute.xlu0 %1362 }
 0x163   : > { %764 = vrot.lane.b32.xlu2 %v6404_v30, %s9084_s14  ;;  %v701_v30 = vrot.slane %v549_v25, 1 }
 0x164   : > { %v1094_v19 = vpop.permute.xlu1 %1093  ;;  %v1883_v20 = vld [vmem:[#allocation3 + $0x30] sm:$0xff] }
 0x165   : > { %1183 = vst.msk [vmem:[#allocation3 + $0x38] sm:$0xff] %vm9047_vm7, %v1094_v19  ;;  %5536 = vmatmul.msk.f32.gmra.mxu0 %vm9048_vm13, %v1883_v20  ;;  %v6589_v22 = vpop.permute.xlu2 %1764  ;;  %v6618_v31 = vsel %vm657_vm2, %v699_v4, %v701_v30  ;;  %v475_v19 = vld [vmem:[%s6030_s13 + $0x90] sm:$0xff] }
 0x166   : > { %1318 = vst.msk [vmem:[#allocation3 + $0x38] sm:$0xff] %vm1310_vm8, %v6482_v53 }
 0x167   : > { %1452 = vst.msk [vmem:[#allocation3 + $0x38] sm:$0xff] %vm1444_vm9, %v1363_v14 }
 0x168   : > { %974 = vrot.lane.b32.xlu0 %v6417_v35, %s9088_s16  ;;  %509 = vst.msk [vmem:[#allocation2 + $0xf1] sm:$0xff] %vm9055_vm4, %v475_v19 }
 0x16a   : > { %1772 = vrot.lane.b32.xlu1 %v6595_v23, %s9065_s30  ;;  %v1763_v24 = vpop.permute.xlu0 %1762 }
 0x16b   : > { %1240 = vrot.lane.b32.xlu2 %v6516_v3, %s9086_s22 }
 0x16c   : > { %v1494_v29 = vpop.permute.xlu1 %1493 }
 0x16d   : > { %1583 = vst.msk [vmem:[#allocation3 + $0x38] sm:$0xff] %vm1575_vm10, %v1494_v29  ;;  %v6612_v27 = vpop.permute.xlu2 %1097 }
 0x16e   : > { %1718 = vst.msk [vmem:[#allocation3 + $0x38] sm:$0xff] %vm1710_vm11, %v6507_v2 }
 0x16f   : > { %1852 = vst.msk [vmem:[#allocation3 + $0x38] sm:$0xff] %vm9044_vm12, %v1763_v24 }
 0x170   : > { %1374 = vrot.lane.b32.xlu0 %v6488_v57, %s9085_s12 }
 0x172   : > { %1105 = vrot.lane.b32.xlu1 %v6386_v21, %s9083_s24  ;;  %v1096_v33 = vpop.permute.xlu0 %1095  ;;  %v2032_v21 = vpop.f32.mrf.mxu0 }
 0x173   : > { %1640 = vrot.lane.b32.xlu2 %v6618_v31, %s9087_s29  ;;  %v2160_v39 = vrot.slane %v2032_v21, 2  ;;  %v2161_v43 = vrot.slane %v2032_v21, 4  ;;  %v2353_v44 = vsel %vm9043_vm14, %v2032_v21, -inf  ;;  %v2162_v45 = vrot.slane %v2032_v21, 6  ;;  %v476_v21 = vld [vmem:[%s6030_s13 + $0x98] sm:$0xff] }
 0x174   : > { %v755_v34 = vpop.permute.xlu1 %754  ;;  %510 = vst.msk [vmem:[#allocation2 + $0xf9] sm:$0xff] %vm9055_vm4, %v476_v21 }
 0x175   : > { %843 = vst.msk [vmem:[#allocation3 + $0x40] sm:$0xff] %vm834_vm5, %v755_v34  ;;  %v6627_v35 = vpop.permute.xlu2 %1497  ;;  %v2360_v46 = vsel %vm9043_vm14, %v2160_v39, -inf  ;;  %v2367_v50 = vsel %vm9043_vm14, %v2161_v43, -inf  ;;  %v2374_v52 = vsel %vm9043_vm14, %v2162_v45, -inf }
 0x176   : > { %1053 = vst.msk [vmem:[#allocation3 + $0x40] sm:$0xff] %vm1044_vm6, %v6535_v7  ;;  %v1884_v37 = vld [vmem:[#allocation3 + $0x38] sm:$0xff]  ;;  %v2361_v49 = vrot.slane %v2360_v46, 4  ;;  %v2368_v61 = vrot.slane %v2367_v50, 4  ;;  %v2375_v62 = vrot.slane %v2374_v52, 4 }
 0x177   : > { %1184 = vst.msk [vmem:[#allocation3 + $0x40] sm:$0xff] %vm9047_vm7, %v1096_v33  ;;  %5537 = vmatmul.msk.f32.gmra.mxu0 %vm9048_vm13, %v1884_v37 }
 0x178   : > { %1774 = vrot.lane.b32.xlu0 %v6630_v36, %s9065_s30  ;;  %v2362_v53 = vmax.f32 %v2360_v46, %v2361_v49  ;;  %v2369_v7 = vmax.f32 %v2367_v50, %v2368_v61  ;;  %v2376_v4 = vmax.f32 %v2374_v52, %v2375_v62 }
 0x17a   : > { %1505 = vrot.lane.b32.xlu1 %v6539_v8, %s9041_s15  ;;  %v1496_v38 = vpop.permute.xlu0 %1495  ;;  %v2035_v48 = vpop.f32.mrf.mxu0  ;;  %v2363_v9 = vrot.slane %v2362_v53, 2  ;;  %v2370_v30 = vrot.slane %v2369_v7, 2 }
 0x17b   : > { %976 = vrot.lane.b32.xlu2 %v6449_v47, %s9088_s16  ;;  %v2354_v47 = vrot.slane %v2353_v44, 4  ;;  %v2163_v54 = vrot.slane %v2035_v48, 2  ;;  %v2164_v63 = vrot.slane %v2035_v48, 4  ;;  %v2165_v1 = vrot.slane %v2035_v48, 6 }
 0x17c   : > { %v1231_v40 = vpop.permute.xlu1 %1230  ;;  %v2381_v58 = vsel %vm9043_vm14, %v2035_v48, -inf  ;;  %v2364_v62 = vmax.f32 %v2362_v53, %v2363_v9 }
 0x17d   : > { %1319 = vst.msk [vmem:[#allocation3 + $0x40] sm:$0xff] %vm1310_vm8, %v1231_v40  ;;  %v759_v42 = vpop.permute.xlu2 %758  ;;  %v6660_v60 = vmax.f32 %v2353_v44, %v2354_v47  ;;  %v2388_v2 = vsel %vm9043_vm14, %v2163_v54, -inf  ;;  %v2395_v11 = vsel %vm9043_vm14, %v2164_v63, -inf  ;;  %v2382_v14 = vrot.slane %v2381_v58, 4 }
 0x17e   : > { %1453 = vst.msk [vmem:[#allocation3 + $0x40] sm:$0xff] %vm1444_vm9, %v6560_v13  ;;  %v703_v13 = vrot.slane %v6601_v26, 1  ;;  %v2389_v15 = vrot.slane %v2388_v2, 4  ;;  %v2402_v16 = vsel %vm9043_vm14, %v2165_v1, -inf  ;;  %v2396_v32 = vrot.slane %v2395_v11, 4 }
 0x17f   : > { %845 = vst.msk [vmem:[#allocation3 + $0x50] sm:$0xff] %vm834_vm5, %v759_v42  ;;  %v2356_v6 = vrot.slane %v6660_v60, 2  ;;  %v2377_v47 = vrot.slane %v2376_v4, 2  ;;  %v2383_v48 = vmax.f32 %v2381_v58, %v2382_v14  ;;  %v2371_v58 = vmax.f32 %v2369_v7, %v2370_v30  ;;  %v6721_v7 = vld [vmem:[#allocation2 + $0xe8] sm:$0x3] }
 0x180   : > { %1584 = vst.msk [vmem:[#allocation3 + $0x40] sm:$0xff] %vm1575_vm10, %v1496_v38  ;;  %1107 = vrot.lane.b32.xlu0 %v6470_v55, %s9083_s24  ;;  %v913_v55 = vrot.slane %v6601_v26, 2  ;;  %v2403_v38 = vrot.slane %v2402_v16, 4  ;;  %v6702_v46 = vsel %vm657_vm2, %v703_v13, %v704_v18  ;;  %v2390_v49 = vmax.f32 %v2388_v2, %v2389_v15 }
 0x181   : > { %v2357_v61 = vmax.f32 %v6660_v60, %v2356_v6  ;;  %v2384_v2 = vrot.slane %v2383_v48, 2  ;;  %v2378_v14 = vmax.f32 %v2376_v4, %v2377_v47  ;;  %v2365_v19 = vrot.slane %v2364_v62, 1  ;;  %v6725_v4 = vld [vmem:[#allocation2 + $0xf8] sm:$0xff] }
 0x182   : > { %766 = vrot.lane.b32.xlu1 %v6435_v41, %s9084_s14  ;;  %v757_v51 = vpop.permute.xlu0 %756  ;;  %v6672_v5 = vsel %vm867_vm3, %v913_v55, %v914_v59  ;;  %v2391_v60 = vrot.slane %v2390_v49, 2  ;;  %598 = vst.msk [vmem:[#allocation3 + $0xa8] sm:$0xff] %vm9050_vm0, %v6725_v4 }
 0x183   : > { %1376 = vrot.lane.b32.xlu2 %v6595_v23, %s9085_s12  ;;  %844 = vst.msk [vmem:[#allocation3 + $0x48] sm:$0xff] %vm834_vm5, %v757_v51 }
 0x184   : > { %v1631_v56 = vpop.permute.xlu1 %1630 }
 0x185   : > { %1719 = vst.msk [vmem:[#allocation3 + $0x40] sm:$0xff] %vm1710_vm11, %v1631_v56  ;;  %v6663_v41 = vpop.permute.xlu2 %1234  ;;  %v2404_v56 = vmax.f32 %v2402_v16, %v2403_v38  ;;  %v477_v16 = vld [vmem:[%s6030_s13 + $0xa0] sm:$0xff] }
 0x186   : > { %1853 = vst.msk [vmem:[#allocation3 + $0x40] sm:$0xff] %vm9044_vm12, %v6589_v22 }
 0x187   : > { %511 = vst.msk [vmem:[#allocation2 + $0x109] sm:$0xff] %vm9055_vm4, %v477_v16 }
 0x188   : > { %1507 = vrot.lane.b32.xlu0 %v6601_v26, %s9041_s15 }
 0x18a   : > { %1242 = vrot.lane.b32.xlu1 %v6563_v10, %s9086_s22  ;;  %v1233_v12 = vpop.permute.xlu0 %1232 }
 0x18b   : > { %v2038_v17 = vpop.f32.mrf.mxu0  ;;  %1776 = vrot.lane.b32.xlu2 %v6672_v5, %s9065_s30 }
 0x18c   : > { %v2166_v20 = vrot.slane %v2038_v17, 2  ;;  %v2167_v22 = vrot.slane %v2038_v17, 4  ;;  %v2168_v25 = vrot.slane %v2038_v17, 6  ;;  %v2409_v24 = vsel %vm9043_vm14, %v2038_v17, -inf  ;;  %v967_v29 = vpop.permute.xlu1 %966 }
 0x18d   : > { %v2410_v33 = vrot.slane %v2409_v24, 4  ;;  %1054 = vst.msk [vmem:[#allocation3 + $0x48] sm:$0xff] %vm1044_vm6, %v967_v29  ;;  %v1885_v34 = vld [vmem:[#allocation3 + $0x40] sm:$0xff]  ;;  %v6689_v37 = vpop.permute.xlu2 %1634  ;;  %v2358_v17 = vrot.slane %v2357_v61, 1 }
 0x18e   : > { %v2416_v39 = vsel %vm9043_vm14, %v2166_v20, -inf  ;;  %v2423_v40 = vsel %vm9043_vm14, %v2167_v22, -inf  ;;  %v2430_v42 = vsel %vm9043_vm14, %v2168_v25, -inf  ;;  %1185 = vst.msk [vmem:[#allocation3 + $0x48] sm:$0xff] %vm9047_vm7, %v6612_v27  ;;  %5538 = vmatmul.msk.f32.gmra.mxu0 %vm9048_vm13, %v1885_v34  ;;  %v2397_v27 = vmax.f32 %v2395_v11, %v2396_v32  ;;  %v478_v22 = vld [vmem:[%s6030_s13 + $0xa8] sm:$0xff] }
 0x18f   : > { %v2417_v43 = vrot.slane %v2416_v39, 4  ;;  %v2424_v44 = vrot.slane %v2423_v40, 4  ;;  %v2431_v45 = vrot.slane %v2430_v42, 4  ;;  %1320 = vst.msk [vmem:[#allocation3 + $0x48] sm:$0xff] %vm1310_vm8, %v1233_v12  ;;  %v2411_v50 = vmax.f32 %v2409_v24, %v2410_v33 }
 0x190   : > { %768 = vrot.lane.b32.xlu0 %v6516_v3, %s9084_s14  ;;  %v6712_v3 = vld [vmem:[#allocation2 + $0xf0] sm:$0xff]  ;;  %v2398_v53 = vrot.slane %v2397_v27, 2  ;;  %v2372_v25 = vrot.slane %v2371_v58, 1  ;;  %v2385_v24 = vmax.f32 %v2383_v48, %v2384_v2  ;;  %v2392_v32 = vmax.f32 %v2390_v49, %v2391_v60  ;;  %512 = vst.msk [vmem:[#allocation2 + $0x111] sm:$0xff] %vm9055_vm4, %v478_v22  ;;  %v6755_v2 = vld [vmem:[#allocation2 + $0x108] sm:$0xff] }
 0x191   : > { %v2418_v51 = vmax.f32 %v2416_v39, %v2417_v43  ;;  %v2425_v52 = vmax.f32 %v2423_v40, %v2424_v44  ;;  %v2432_v54 = vmax.f32 %v2430_v42, %v2431_v45  ;;  %v2412_v11 = vrot.slane %v2411_v50, 2  ;;  %597 = vst.msk [vmem:[#allocation3 + $0xa0] sm:$0xff] %vm9050_vm0, %v6712_v3 }
 0x192   : > { %1642 = vrot.lane.b32.xlu1 %v6702_v46, %s9087_s29  ;;  %v1633_v55 = vpop.permute.xlu0 %1632  ;;  %v2399_v33 = vmax.f32 %v2397_v27, %v2398_v53  ;;  %v706_v34 = vrot.slane %v6721_v7, 1  ;;  %v2359_v40 = vmax.f32 %v2357_v61, %v2358_v17  ;;  %v2366_v42 = vmax.f32 %v2364_v62, %v2365_v19  ;;  %599 = vst.msk [vmem:[#allocation3 + $0xb0] sm:$0xff] %vm9050_vm0, %v6755_v2 }
 0x193   : > { %v2419_v63 = vrot.slane %v2418_v51, 2  ;;  %v2426_v1 = vrot.slane %v2425_v52, 2  ;;  %1109 = vrot.lane.b32.xlu2 %v6539_v8, %s9083_s24  ;;  %v2433_v12 = vrot.slane %v2432_v54, 2  ;;  %v2405_v8 = vrot.slane %v2404_v56, 2 }
 0x194   : > { %v1367_v13 = vpop.permute.xlu1 %1366  ;;  %v2413_v29 = vmax.f32 %v2411_v50, %v2412_v11  ;;  %v2373_v44 = vmax.f32 %v2371_v58, %v2372_v25  ;;  %v2386_v45 = vrot.slane %v2385_v24, 1  ;;  %v2393_v27 = vrot.slane %v2392_v32, 1 }
 0x195   : > { %v2420_v6 = vmax.f32 %v2418_v51, %v2419_v63  ;;  %1454 = vst.msk [vmem:[#allocation3 + $0x48] sm:$0xff] %vm1444_vm9, %v1367_v13  ;;  %v6717_v9 = vpop.permute.xlu2 %970  ;;  %v2427_v15 = vmax.f32 %v2425_v52, %v2426_v1  ;;  %v2434_v30 = vmax.f32 %v2432_v54, %v2433_v12  ;;  %v2406_v21 = vmax.f32 %v2404_v56, %v2405_v8  ;;  %v6769_v8 = vld [vmem:[%s9019_s2] ss:$0 sm:$0xff] }
 0x196   : > { %1585 = vst.msk [vmem:[#allocation3 + $0x48] sm:$0xff] %vm1575_vm10, %v6627_v35  ;;  %v2379_v35 = vrot.slane %v2378_v14, 1  ;;  %v2414_v47 = vrot.slane %v2413_v29, 1  ;;  %v2400_v51 = vrot.slane %v2399_v33, 1  ;;  %v6746_v52 = vsel %vm657_vm2, %v704_v18, %v706_v34 }
 0x197   : > { %v2421_v20 = vrot.slane %v2420_v6, 1  ;;  %1720 = vst.msk [vmem:[#allocation3 + $0x48] sm:$0xff] %vm1710_vm11, %v1633_v55  ;;  %v2428_v38 = vrot.slane %v2427_v15, 1  ;;  %v2435_v48 = vrot.slane %v2434_v30, 1  ;;  %v2407_v54 = vrot.slane %v2406_v21, 1 }
 0x198   : > { %1244 = vrot.lane.b32.xlu0 %v6618_v31, %s9086_s22  ;;  %v2380_v50 = vmax.f32 %v2378_v14, %v2379_v35  ;;  %v6749_v55 = vsel %vm3249_vm15, %v2359_v40, -inf  ;;  %v3253_v62 = vsel %vm3249_vm15, %v2366_v42, -inf  ;;  %v2387_v63 = vmax.f32 %v2385_v24, %v2386_v45  ;;  %v6761_v14 = vld [vmem:[#allocation2 + $0x110] sm:$0xff]  ;;  %v479_v24 = vld [vmem:[%s6030_s13 + $0xb0] sm:$0xff] }
 0x199   : > { %v2422_v43 = vmax.f32 %v2420_v6, %v2421_v20  ;;  %v2429_v56 = vmax.f32 %v2427_v15, %v2428_v38  ;;  %v2415_v1 = vmax.f32 %v2413_v29, %v2414_v47  ;;  %v2436_v58 = vmax.f32 %v2434_v30, %v2435_v48  ;;  %600 = vst.msk [vmem:[#allocation3 + $0xb8] sm:$0xff] %vm9050_vm0, %v6761_v14  ;;  %v480_v40 = vld [vmem:[%s6030_s13 + $0xb8] sm:$0xff] }
 0x19a   : > { %978 = vrot.lane.b32.xlu1 %v6488_v57, %s9088_s16  ;;  %v969_v39 = vpop.permute.xlu0 %968  ;;  %v3256_v18 = vsel %vm3249_vm15, %v2373_v44, -inf  ;;  %v6759_v11 = vsel %vm3249_vm15, %v2380_v50, -inf  ;;  %v2394_v12 = vmax.f32 %v2392_v32, %v2393_v27  ;;  %v2401_v13 = vmax.f32 %v2399_v33, %v2400_v51  ;;  %513 = vst.msk [vmem:[#allocation2 + $0x121] sm:$0xff] %vm9055_vm4, %v479_v24 }
 0x19b   : > { %1509 = vrot.lane.b32.xlu2 %v6605_v28, %s9041_s15  ;;  %1055 = vst.msk [vmem:[#allocation3 + $0x50] sm:$0xff] %vm1044_vm6, %v969_v39  ;;  %v3254_v61 = vsel %vm3249_vm15, %v2422_v43, -inf  ;;  %v2408_v60 = vmax.f32 %v2406_v21, %v2407_v54  ;;  %v3257_v6 = vsel %vm3249_vm15, %v2429_v56, -inf  ;;  %v916_v17 = vrot.slane %v6721_v7, 2  ;;  %s9090_s15 = smov 48  }
 0x19c   : > { %v1767_v49 = vpop.permute.xlu1 %1766  ;;  %v3255_v53 = vmax.f32 %v3253_v62, %v3254_v61  ;;  %v6781_v29 = vsel %vm3249_vm15, %v2387_v63, -inf  ;;  %v3251_v30 = vsel %vm3249_vm15, %v2415_v1, -inf  ;;  %v3260_v7 = vsel %vm3249_vm15, %v2436_v58, -inf  ;;  %514 = vst.msk [vmem:[#allocation2 + $0x129] sm:$0xff] %vm9055_vm4, %v480_v40 }
 0x19d   : > { %1854 = vst.msk [vmem:[#allocation3 + $0x48] sm:$0xff] %vm9044_vm12, %v1767_v49  ;;  %v6741_v57 = vpop.permute.xlu2 %1370  ;;  %v3258_v34 = vmax.f32 %v3256_v18, %v3257_v6  ;;  %v6798_v47 = vsel %vm3249_vm15, %v2394_v12, -inf  ;;  %v6804_v49 = vsel %vm867_vm3, %v914_v59, %v916_v17  ;;  %v3252_v50 = vmax.f32 %v6749_v55, %v3251_v30 }
 0x19e   : > { %v3447_v42 = vadd.f32 %v6769_v8, %v3255_v53  ;;  %v3261_v56 = vmax.f32 %v6759_v11, %v3260_v7  ;;  %v708_v11 = vrot.slane %v6712_v3, 1  ;;  %v709_v12 = vrot.slane %v6725_v4, 1 }
 0x19f   : > { %v3448_v61 = vadd.f32 %v6769_v8, %v3258_v34  ;;  %v3446_v53 = vadd.f32 %v6769_v8, %v3252_v50  ;;  %v919_v34 = vrot.slane %v6725_v4, 2 }
 0x1a0   : > { %1644 = vrot.lane.b32.xlu0 %v6746_v52, %s9087_s29  ;;  %v3511_v59 = vmax.f32 %v3447_v42, 0.0 }
 0x1a2   : > { %1378 = vrot.lane.b32.xlu1 %v6630_v36, %s9085_s12  ;;  %v2041_v15 = vpop.f32.mrf.mxu0  ;;  %v1369_v16 = vpop.permute.xlu0 %1368 }
 0x1a3   : > { %v2169_v19 = vrot.slane %v2041_v15, 2  ;;  %v2170_v20 = vrot.slane %v2041_v15, 4  ;;  %v2171_v22 = vrot.slane %v2041_v15, 6  ;;  %v2437_v25 = vsel %vm9043_vm14, %v2041_v15, -inf  ;;  %770 = vrot.lane.b32.xlu2 %v6563_v10, %s9084_s14 }
 0x1a4   : > { %v2438_v35 = vrot.slane %v2437_v25, 4  ;;  %v1100_v32 = vpop.permute.xlu1 %1099  ;;  %v1886_v33 = vld [vmem:[#allocation3 + $0x48] sm:$0xff] }
 0x1a5   : > { %v2444_v21 = vsel %vm9043_vm14, %v2169_v19, -inf  ;;  %v2451_v38 = vsel %vm9043_vm14, %v2170_v20, -inf  ;;  %v2458_v10 = vsel %vm9043_vm14, %v2171_v22, -inf  ;;  %1186 = vst.msk [vmem:[#allocation3 + $0x50] sm:$0xff] %vm9047_vm7, %v1100_v32  ;;  %5539 = vmatmul.msk.f32.gmra.mxu0 %vm9048_vm13, %v1886_v33  ;;  %v6791_v39 = vpop.permute.xlu2 %1770  ;;  %v3512_v19 = vmax.f32 %v3448_v61, 0.0 }
 0x1a6   : > { %v2439_v43 = vmax.f32 %v2437_v25, %v2438_v35  ;;  %v2445_v44 = vrot.slane %v2444_v21, 4  ;;  %v2452_v45 = vrot.slane %v2451_v38, 4  ;;  %1321 = vst.msk [vmem:[#allocation3 + $0x50] sm:$0xff] %vm1310_vm8, %v6663_v41  ;;  %v2459_v48 = vrot.slane %v2458_v10, 4 }
 0x1a7   : > { %1455 = vst.msk [vmem:[#allocation3 + $0x50] sm:$0xff] %vm1444_vm9, %v1369_v16  ;;  %v6811_v41 = vsel %vm3249_vm15, %v2401_v13, -inf  ;;  %v6824_v13 = vld [vmem:[#allocation2 + $0x120] sm:$0xff]  ;;  %vm9046_vm14 = vcmask 1042434   ;;  %v3658_v25 = vrot.slane %v3511_v59, 7  ;;  %v6839_v32 = vsel %vm657_vm2, %v708_v11, %v709_v12 }
 0x1a8   : > { %v2440_v27 = vrot.slane %v2439_v43, 2  ;;  %v2446_v51 = vmax.f32 %v2444_v21, %v2445_v44  ;;  %v2453_v54 = vmax.f32 %v2451_v38, %v2452_v45  ;;  %980 = vrot.lane.b32.xlu0 %v6595_v23, %s9088_s16  ;;  %v2460_v62 = vmax.f32 %v2458_v10, %v2459_v48  ;;  %601 = vst.msk [vmem:[#allocation3 + $0xc0] sm:$0xff] %vm9050_vm0, %v6824_v13  ;;  %v6843_v21 = vld [vmem:[#allocation2 + $0x128] sm:$0xff]  ;;  %v482_v11 = vld [vmem:[%s6030_s13 + $0xc8] sm:$0xff] }
 0x1a9   : > { %v6818_v23 = vsel %vm3249_vm15, %v2408_v60, -inf  ;;  %v3449_v60 = vadd.f32 %v6769_v8, %v3261_v56  ;;  %v918_v33 = vrot.slane %v6712_v3, 2  ;;  %9089 = vst [vmem:[#allocation14_spill] sm:$0xff] %v6843_v21  ;;  %v3510_v38 = vmax.f32 %v3446_v53, 0.0 }
 0x1aa   : > { %v2441_v63 = vmax.f32 %v2439_v43, %v2440_v27  ;;  %v2447_v1 = vrot.slane %v2446_v51, 2  ;;  %v2454_v55 = vrot.slane %v2453_v54, 2  ;;  %1778 = vrot.lane.b32.xlu1 %v6804_v49, %s9065_s30  ;;  %v1769_v58 = vpop.permute.xlu0 %1768  ;;  %v2461_v18 = vrot.slane %v2460_v62, 2  ;;  %602 = vst.msk [vmem:[#allocation3 + $0xc8] sm:$0xff] %vm9050_vm0, %v6843_v21 }
 0x1ab   : > { %1246 = vrot.lane.b32.xlu2 %v6702_v46, %s9086_s22  ;;  %v3513_v45 = vmax.f32 %v3449_v60, 0.0  ;;  %v3660_v48 = vsel %vm9045_vm1, %v3658_v25, %v3510_v38  ;;  %vm9053_vm1 = vcmask 1044484   ;;  %516 = vst.msk [vmem:[#allocation2 + $0x141] sm:$0xff] %vm9055_vm4, %v482_v11 }
 0x1ac   : > { %v2442_v6 = vrot.slane %v2441_v63, 1  ;;  %v2448_v15 = vmax.f32 %v2446_v51, %v2447_v1  ;;  %v2455_v16 = vmax.f32 %v2453_v54, %v2454_v55  ;;  %v1500_v17 = vpop.permute.xlu1 %1499  ;;  %v2462_v20 = vmax.f32 %v2460_v62, %v2461_v18  ;;  %v481_v62 = vld [vmem:[%s6030_s13 + $0xc0] sm:$0xff] }
 0x1ad   : > { %1586 = vst.msk [vmem:[#allocation3 + $0x50] sm:$0xff] %vm1575_vm10, %v1500_v17  ;;  %v6831_v22 = vpop.permute.xlu2 %1103  ;;  %v713_v1 = vrot.slane %v6755_v2, 1  ;;  %v3664_v53 = vrot.slane %v3513_v45, 5 }
 0x1ae   : > { %v2443_v24 = vmax.f32 %v2441_v63, %v2442_v6  ;;  %v2449_v30 = vrot.slane %v2448_v15, 1  ;;  %v2456_v7 = vrot.slane %v2455_v16, 1  ;;  %1721 = vst.msk [vmem:[#allocation3 + $0x50] sm:$0xff] %vm1710_vm11, %v6689_v37  ;;  %v2463_v35 = vrot.slane %v2462_v20, 1 }
 0x1af   : > { %1855 = vst.msk [vmem:[#allocation3 + $0x50] sm:$0xff] %vm9044_vm12, %v1769_v58  ;;  %v3661_v37 = vrot.slane %v3512_v19, 6  ;;  %vm9054_vm12 = vcmask 1043459  }
 0x1b0   : > { %v2450_v10 = vmax.f32 %v2448_v15, %v2449_v30  ;;  %v2457_v40 = vmax.f32 %v2455_v16, %v2456_v7  ;;  %v3263_v42 = vsel %vm3249_vm15, %v2443_v24, -inf  ;;  %1380 = vrot.lane.b32.xlu0 %v6672_v5, %s9085_s12  ;;  %v2464_v43 = vmax.f32 %v2462_v20, %v2463_v35  ;;  %515 = vst.msk [vmem:[#allocation2 + $0x139] sm:$0xff] %vm9055_vm4, %v481_v62 }
 0x1b1   : > { %v3264_v44 = vmax.f32 %v6781_v29, %v3263_v42  ;;  %vm9108_vm4 = vcmask 261312  }
 0x1b2   : > { %v3266_v50 = vsel %vm3249_vm15, %v2450_v10, -inf  ;;  %v3269_v27 = vsel %vm3249_vm15, %v2457_v40, -inf  ;;  %1111 = vrot.lane.b32.xlu1 %v6601_v26, %s9083_s24  ;;  %v1102_v51 = vpop.permute.xlu0 %1101  ;;  %v3272_v61 = vsel %vm3249_vm15, %v2464_v43, -inf  ;;  %v714_v26 = vrot.slane %v6761_v14, 1 }
 0x1b3   : > { %v3267_v54 = vmax.f32 %v6798_v47, %v3266_v50  ;;  %v3270_v56 = vmax.f32 %v6811_v41, %v3269_v27  ;;  %v3450_v29 = vadd.f32 %v6769_v8, %v3264_v44  ;;  %1646 = vrot.lane.b32.xlu2 %v6839_v32, %s9087_s29  ;;  %v3273_v59 = vmax.f32 %v6818_v23, %v3272_v61 }
 0x1b4   : > { %v761_v63 = vpop.permute.xlu1 %760  ;;  %v6869_v47 = vsel %vm867_vm3, %v918_v33, %v919_v34  ;;  %v3663_v41 = vsel %vm9046_vm14, %v3661_v37, %v3660_v48  ;;  %vm9052_vm14 = vcmask 1045509   ;;  %v6888_v25 = vsel %vm657_vm2, %v713_v1, %v714_v26  ;;  %v2044_v62 = vpop.f32.mrf.mxu0 }
 0x1b5   : > { %v3451_v55 = vadd.f32 %v6769_v8, %v3267_v54  ;;  %v3452_v58 = vadd.f32 %v6769_v8, %v3270_v56  ;;  %v3514_v18 = vmax.f32 %v3450_v29, 0.0  ;;  %846 = vst.msk [vmem:[#allocation3 + $0x58] sm:$0xff] %vm834_vm5, %v761_v63  ;;  %v6876_v23 = vpop.permute.xlu2 %1503  ;;  %v3453_v6 = vadd.f32 %v6769_v8, %v3273_v59 }
 0x1b6   : > { %1056 = vst.msk [vmem:[#allocation3 + $0x58] sm:$0xff] %vm1044_vm6, %v6717_v9  ;;  %v1887_v15 = vld [vmem:[#allocation3 + $0x50] sm:$0xff]  ;;  %v3666_v19 = vsel %vm9054_vm12, %v3664_v53, %v3663_v41  ;;  %v718_v48 = vrot.slane %v6824_v13, 1  ;;  %v9061_v50 = vrot.slane %v6843_v21, 1  ;;  %v2172_v41 = vrot.slane %v2044_v62, 2 }
 0x1b7   : > { %v3515_v16 = vmax.f32 %v3451_v55, 0.0  ;;  %v3516_v17 = vmax.f32 %v3452_v58, 0.0  ;;  %v3667_v60 = vrot.slane %v3514_v18, 4  ;;  %1187 = vst.msk [vmem:[#allocation3 + $0x58] sm:$0xff] %vm9047_vm7, %v1102_v51  ;;  %5540 = vmatmul.msk.f32.gmra.mxu0 %vm9048_vm13, %v1887_v15  ;;  %v3517_v20 = vmax.f32 %v3453_v6, 0.0  ;;  %v6899_v38 = vld [vmem:[#allocation2 + $0x138] sm:$0xff] }
 0x1b8   : > { %1780 = vrot.lane.b32.xlu0 %v6869_v47, %s9065_s30  ;;  %vm9051_vm7 = vcmask 1046534   ;;  %vm9049_vm13 = vcmask 1047559   ;;  %603 = vst.msk [vmem:[#allocation3 + $0xd0] sm:$0xff] %vm9050_vm0, %v6899_v38  ;;  %v6913_v43 = vld [vmem:[#allocation2 + $0x140] sm:$0xff]  ;;  %v6944_v61 = vsel %vm657_vm2, %v718_v48, %v9061_v50  ;;  %v2173_v55 = vrot.slane %v2044_v62, 4 }
 0x1b9   : > { %v3669_v9 = vsel %vm9053_vm1, %v3667_v60, %v3666_v19  ;;  %v3670_v24 = vrot.slane %v3515_v16, 3  ;;  %v3673_v30 = vrot.slane %v3516_v17, 2  ;;  %v3676_v33 = vrot.slane %v3517_v20, 1  ;;  %604 = vst.msk [vmem:[#allocation3 + $0xd8] sm:$0xff] %vm9050_vm0, %v6913_v43 }
 0x1ba   : > { %1511 = vrot.lane.b32.xlu1 %v6712_v3, %s9090_s15  ;;  %v1502_v7 = vpop.permute.xlu0 %1501  ;;  %vm9095_vm0 = vcmask 588800   ;;  %v2174_v58 = vrot.slane %v2044_v62, 6  ;;  %v928_v15 = vrot.slane %v6824_v13, 2  ;;  %v9060_v16 = vrot.slane %v6843_v21, 2 }
 0x1bb   : > { %v3672_v35 = vsel %vm9052_vm14, %v3670_v24, %v3669_v9  ;;  %782 = vrot.lane.b32.xlu2 %v6888_v25, %s9084_s14  ;;  %v723_v19 = vrot.slane %v6899_v38, 1  ;;  %v9059_v20 = vrot.slane %v6913_v43, 1 }
 0x1bc   : > { %v3675_v10 = vsel %vm9051_vm7, %v3673_v30, %v3672_v35  ;;  %v1237_v40 = vpop.permute.xlu1 %1236  ;;  %vm9096_vm7 = vcmask 254976   ;;  %v6987_v35 = vsel %vm867_vm3, %v928_v15, %v9060_v16 }
 0x1bd   : > { %v3678_v42 = vsel %vm9049_vm13, %v3676_v33, %v3675_v10  ;;  %1322 = vst.msk [vmem:[#allocation3 + $0x58] sm:$0xff] %vm1310_vm8, %v1237_v40  ;;  %v765_v37 = vpop.permute.xlu2 %764  ;;  %vm9092_vm13 = vcmask 589312   ;;  %v2465_v18 = vsel %vm9096_vm7, %v2044_v62, -inf  ;;  %vm9097_vm14 = vmmov %vm9096_vm7  ;;  %v6992_v10 = vsel %vm657_vm2, %v723_v19, %v9059_v20  ;;  %v555_v40 = vld [vmem:[#allocation2 + $0x100] sm:$0x3] }
 0x1be   : > { %3786 = vst.msk [vmem:[#allocation4 + $0x11] sm:$0xff] %vm3249_vm15, %v3678_v42  ;;  %v2472_v11 = vsel %vm9097_vm14, %v2172_v41, -inf  ;;  %vm9098_vm1 = vmmov %vm9096_vm7  ;;  %v2466_v17 = vrot.slane %v2465_v18, 4  ;;  %v711_v48 = vrot.slane %v555_v40, 1 }
 0x1bf   : > { %1456 = vst.msk [vmem:[#allocation3 + $0x58] sm:$0xff] %vm1444_vm9, %v6741_v57  ;;  %v923_v57 = vrot.slane %v6755_v2, 2  ;;  %v2479_v53 = vsel %vm9098_vm1, %v2173_v55, -inf  ;;  %vm9099_vm12 = vmmov %vm9098_vm1  ;;  %v2473_v9 = vrot.slane %v2472_v11, 4  ;;  %v933_v55 = vrot.slane %v6899_v38, 2 }
 0x1c0   : > { %848 = vst.msk [vmem:[#allocation3 + $0x68] sm:$0xff] %vm834_vm5, %v765_v37  ;;  %982 = vrot.lane.b32.xlu0 %v6630_v36, %s9088_s16  ;;  %v924_v36 = vrot.slane %v6761_v14, 2  ;;  %v2480_v24 = vrot.slane %v2479_v53, 4  ;;  %v2467_v33 = vmax.f32 %v2465_v18, %v2466_v17  ;;  %v558_v18 = vld [vmem:[#allocation2 + $0x118] sm:$0x3]  ;;  %vm9101_vm7 = vmmov %vm9098_vm1 }
 0x1c1   : > { %1587 = vst.msk [vmem:[#allocation3 + $0x58] sm:$0xff] %vm1575_vm10, %v1502_v7  ;;  %v2474_v42 = vmax.f32 %v2472_v11, %v2473_v9  ;;  %v716_v19 = vrot.slane %v558_v18, 1  ;;  %vm9103_vm14 = vmmov %vm9098_vm1 }
 0x1c2   : > { %772 = vrot.lane.b32.xlu1 %v6618_v31, %s9084_s14  ;;  %v763_v44 = vpop.permute.xlu0 %762  ;;  %v2481_v37 = vmax.f32 %v2479_v53, %v2480_v24  ;;  %v7015_v53 = vsel %vm657_vm2, %v709_v12, %v711_v48 }
 0x1c3   : > { %1113 = vrot.lane.b32.xlu2 %v6605_v28, %s9083_s24  ;;  %847 = vst.msk [vmem:[#allocation3 + $0x60] sm:$0xff] %vm834_vm5, %v763_v44  ;;  %v6936_v28 = vsel %vm867_vm3, %v923_v57, %v924_v36 }
 0x1c4   : > { %v1637_v45 = vpop.permute.xlu1 %1636 }
 0x1c5   : > { %1722 = vst.msk [vmem:[#allocation3 + $0x58] sm:$0xff] %vm1710_vm11, %v1637_v45  ;;  %v6927_v31 = vpop.permute.xlu2 %1240  ;;  %v6929_v27 = vld [vmem:[#allocation4 + $0x10] sm:$0xff]  ;;  %v3797_v51 = vld [vmem:[#allocation4 + $0x18] sm:$0x3] }
 0x1c6   : > { %9091 = vst [vmem:[#allocation15_spill] sm:$0xff] %v6929_v27  ;;  %v3841_v54 = vrot.slane %v6929_v27, 1  ;;  %v3842_v56 = vrot.slane %v3797_v51, 1  ;;  %v2468_v51 = vrot.slane %v2467_v33, 2 }
 0x1c7   : > { %1856 = vst.msk [vmem:[#allocation3 + $0x58] sm:$0xff] %vm9092_vm13, %v6791_v39  ;;  %vm9094_vm13 = vcmask 261312  }
 0x1c8   : > { %3815 = vst.msk [vmem:[#allocation5 + $0x18] sm:$0xff] %vm3249_vm15, %v6929_v27  ;;  %1123 = vrot.lane.b32.xlu0 %v6824_v13, %s9083_s24  ;;  %v6949_v39 = vsel %vm657_vm2, %v3841_v54, %v3842_v56  ;;  %v2475_v56 = vrot.slane %v2474_v42, 2 }
 0x1c9   : > { %9093 = vst [vmem:[#allocation16_spill] sm:$0xff] %v6949_v39 }
 0x1ca   : > { %992 = vrot.lane.b32.xlu1 %v6936_v28, %s9088_s16  ;;  %v1239_v29 = vpop.permute.xlu0 %1238  ;;  %3998 = vst.msk [vmem:[#allocation5 + $0x8] sm:$0xff] %vm3249_vm15, %v6949_v39 }
 0x1cb   : > { %1258 = vrot.lane.b32.xlu2 %v6944_v61, %s9086_s22  ;;  %v2047_v57 = vpop.f32.mrf.mxu0 }
 0x1cc   : > { %v973_v59 = vpop.permute.xlu1 %972  ;;  %v2175_v62 = vrot.slane %v2047_v57, 2  ;;  %v2493_v11 = vsel %vm9101_vm7, %v2047_v57, -inf  ;;  %v2177_v15 = vrot.slane %v2047_v57, 6 }
 0x1cd   : > { %1057 = vst.msk [vmem:[#allocation3 + $0x60] sm:$0xff] %vm1044_vm6, %v973_v59  ;;  %v6958_v1 = vpop.permute.xlu2 %1640  ;;  %v2494_v24 = vrot.slane %v2493_v11, 4 }
 0x1ce   : > { %v1888_v63 = vld [vmem:[#allocation3 + $0x58] sm:$0xff]  ;;  %1188 = vst.msk [vmem:[#allocation3 + $0x60] sm:$0xff] %vm9094_vm13, %v6831_v22  ;;  %v2486_v22 = vsel %vm9099_vm12, %v2174_v58, -inf  ;;  %v9058_v58 = vrot.slane %v6913_v43, 2  ;;  %vm9102_vm12 = vmmov %vm9098_vm1 }
 0x1cf   : > { %5541 = vmatmul.msk.f32.gmra.mxu0 %vm9095_vm0, %v1888_v63  ;;  %1323 = vst.msk [vmem:[#allocation3 + $0x60] sm:$0xff] %vm1310_vm8, %v1239_v29  ;;  %v2487_v7 = vrot.slane %v2486_v22, 4  ;;  %v2482_v29 = vrot.slane %v2481_v37, 2  ;;  %vm9100_vm0 = vcmask 589312   ;;  %vm9104_vm13 = vmmov %vm9098_vm1 }
 0x1d0   : > { %1382 = vrot.lane.b32.xlu0 %v6804_v49, %s9085_s12  ;;  %v2514_v48 = vsel %vm9104_vm13, %v2177_v15, -inf  ;;  %vm9114_vm13 = vcmask 261312  }
 0x1d1   : > { %v2488_v44 = vmax.f32 %v2486_v22, %v2487_v7  ;;  %v2176_v22 = vrot.slane %v2047_v57, 4  ;;  %v7023_v17 = vmax.f32 %v2481_v37, %v2482_v29 }
 0x1d2   : > { %1248 = vrot.lane.b32.xlu1 %v6746_v52, %s9086_s22  ;;  %v1639_v6 = vpop.permute.xlu0 %1638 }
 0x1d3   : > { %1513 = vrot.lane.b32.xlu2 %v6725_v4, %s9090_s15  ;;  %v2489_v41 = vrot.slane %v2488_v44, 2 }
 0x1d4   : > { %v1373_v60 = vpop.permute.xlu1 %1372 }
 0x1d5   : > { %1457 = vst.msk [vmem:[#allocation3 + $0x60] sm:$0xff] %vm1444_vm9, %v1373_v60  ;;  %v6979_v30 = vpop.permute.xlu2 %976  ;;  %v2500_v60 = vsel %vm9102_vm12, %v2175_v62, -inf  ;;  %v7026_v9 = vmax.f32 %v2488_v44, %v2489_v41 }
 0x1d6   : > { %1588 = vst.msk [vmem:[#allocation3 + $0x60] sm:$0xff] %vm1575_vm10, %v6876_v23  ;;  %v921_v23 = vrot.slane %v555_v40, 2  ;;  %v926_v40 = vrot.slane %v558_v18, 2  ;;  %v2501_v44 = vrot.slane %v2500_v60, 4 }
 0x1d7   : > { %1723 = vst.msk [vmem:[#allocation3 + $0x60] sm:$0xff] %vm1710_vm11, %v1639_v6  ;;  %v7017_v6 = vmax.f32 %v2467_v33, %v2468_v51  ;;  %v7033_v33 = vsel %vm867_vm3, %v933_v55, %v9058_v58 }
 0x1d8   : > { %1523 = vrot.lane.b32.xlu0 %v6899_v38, %s9090_s15  ;;  %v7007_v63 = vsel %vm867_vm3, %v919_v34, %v921_v23  ;;  %v7021_v34 = vmax.f32 %v2474_v42, %v2475_v56 }
 0x1da   : > { %1392 = vrot.lane.b32.xlu1 %v6987_v35, %s9085_s12  ;;  %v975_v45 = vpop.permute.xlu0 %974 }
 0x1db   : > { %1658 = vrot.lane.b32.xlu2 %v6992_v10, %s9087_s29  ;;  %1058 = vst.msk [vmem:[#allocation3 + $0x68] sm:$0xff] %vm1044_vm6, %v975_v45  ;;  %v2507_v45 = vsel %vm9098_vm1, %v2176_v22, -inf }
 0x1dc   : > { %v1773_v54 = vpop.permute.xlu1 %1772 }
 0x1dd   : > { %1857 = vst.msk [vmem:[#allocation3 + $0x60] sm:$0xff] %vm9100_vm0, %v1773_v54  ;;  %v7002_v59 = vpop.permute.xlu2 %1376  ;;  %vm9105_vm0 = vmmov %vm9098_vm1 }
 0x1de   : > { %vm9106_vm7 = vmmov %vm9105_vm0 }
 0x1df   : > { %vm9107_vm12 = vmmov %vm9105_vm0 }
 0x1e0   : > { %1782 = vrot.lane.b32.xlu0 %v7007_v63, %s9065_s30  ;;  %vm9113_vm1 = vmmov %vm9105_vm0 }
 0x1e2   : > { %1648 = vrot.lane.b32.xlu1 %v7015_v53, %s9087_s29  ;;  %v2050_v12 = vpop.f32.mrf.mxu0  ;;  %v1375_v7 = vpop.permute.xlu0 %1374 }
 0x1e3   : > { %v2178_v42 = vrot.slane %v2050_v12, 2  ;;  %v2179_v37 = vrot.slane %v2050_v12, 4  ;;  %v2180_v23 = vrot.slane %v2050_v12, 6  ;;  %v2521_v57 = vsel %vm9103_vm14, %v2050_v12, -inf  ;;  %774 = vrot.lane.b32.xlu2 %v6702_v46, %s9084_s14 }
 0x1e4   : > { %v2522_v51 = vrot.slane %v2521_v57, 4  ;;  %v1106_v54 = vpop.permute.xlu1 %1105  ;;  %v1889_v56 = vld [vmem:[#allocation3 + $0x60] sm:$0xff]  ;;  %vm9109_vm14 = vcmask 588800   ;;  %v7050_v46 = vsel %vm657_vm2, %v714_v26, %v716_v19 }
 0x1e5   : > { %v2528_v29 = vsel %vm9105_vm0, %v2178_v42, -inf  ;;  %v2535_v62 = vsel %vm9106_vm7, %v2179_v37, -inf  ;;  %v2542_v41 = vsel %vm9107_vm12, %v2180_v23, -inf  ;;  %1189 = vst.msk [vmem:[#allocation3 + $0x68] sm:$0xff] %vm9108_vm4, %v1106_v54  ;;  %5542 = vmatmul.msk.f32.gmra.mxu0 %vm9109_vm14, %v1889_v56  ;;  %v7045_v55 = vpop.permute.xlu2 %1776  ;;  %v2495_v42 = vmax.f32 %v2493_v11, %v2494_v24  ;;  %vm9115_vm0 = vmmov %vm9109_vm14 }
 0x1e6   : > { %v2523_v18 = vmax.f32 %v2521_v57, %v2522_v51  ;;  %v2529_v22 = vrot.slane %v2528_v29, 4  ;;  %v2536_v15 = vrot.slane %v2535_v62, 4  ;;  %v2543_v12 = vrot.slane %v2542_v41, 4  ;;  %1324 = vst.msk [vmem:[#allocation3 + $0x68] sm:$0xff] %vm1310_vm8, %v6927_v31  ;;  %vm9117_vm7 = vmmov %vm9113_vm1 }
 0x1e7   : > { %v2508_v37 = vrot.slane %v2507_v45, 4  ;;  %v2515_v23 = vrot.slane %v2514_v48, 4  ;;  %1458 = vst.msk [vmem:[#allocation3 + $0x68] sm:$0xff] %vm1444_vm9, %v1375_v7  ;;  %v7058_v54 = vsel %vm867_vm3, %v924_v36, %v926_v40  ;;  %v2470_v51 = vrot.slane %v7017_v6, 1  ;;  %vm9118_vm12 = vmmov %vm9113_vm1 }
 0x1e8   : > { %v2524_v56 = vrot.slane %v2523_v18, 2  ;;  %v2530_v26 = vmax.f32 %v2528_v29, %v2529_v22  ;;  %v2537_v19 = vmax.f32 %v2535_v62, %v2536_v15  ;;  %v2544_v57 = vmax.f32 %v2542_v41, %v2543_v12  ;;  %784 = vrot.lane.b32.xlu0 %v7050_v46, %s9084_s14  ;;  %vm9119_vm14 = vmmov %vm9113_vm1 }
 0x1e9   : > { %v2502_v31 = vmax.f32 %v2500_v60, %v2501_v44  ;;  %v2477_v11 = vrot.slane %v7021_v34, 1  ;;  %v2484_v40 = vrot.slane %v7023_v17, 1  ;;  %v2491_v29 = vrot.slane %v7026_v9, 1 }
 0x1ea   : > { %v2531_v24 = vrot.slane %v2530_v26, 2  ;;  %v2538_v0 = vrot.slane %v2537_v19, 2  ;;  %v2545_v7 = vrot.slane %v2544_v57, 2  ;;  %1792 = vrot.lane.b32.xlu1 %v7033_v33, %s9065_s30  ;;  %v1775_v36 = vpop.permute.xlu0 %1774  ;;  %v2496_v62 = vrot.slane %v2495_v42, 2  ;;  %s9127_s30 = smov 64  }
 0x1eb   : > { %v2509_v41 = vmax.f32 %v2507_v45, %v2508_v37  ;;  %994 = vrot.lane.b32.xlu2 %v7058_v54, %s9088_s16  ;;  %v2516_v22 = vmax.f32 %v2514_v48, %v2515_v23  ;;  %v2525_v60 = vmax.f32 %v2523_v18, %v2524_v56  ;;  %v2503_v58 = vrot.slane %v2502_v31, 2  ;;  %v561_v48 = vld [vmem:[#allocation2 + $0x130] sm:$0x3] }
 0x1ec   : > { %v2532_v44 = vmax.f32 %v2530_v26, %v2531_v24  ;;  %v2539_v15 = vmax.f32 %v2537_v19, %v2538_v0  ;;  %v1506_v12 = vpop.permute.xlu1 %1505  ;;  %v2546_v20 = vmax.f32 %v2544_v57, %v2545_v7  ;;  %v2471_v50 = vmax.f32 %v7017_v6, %v2470_v51 }
 0x1ed   : > { %1589 = vst.msk [vmem:[#allocation3 + $0x68] sm:$0xff] %vm1575_vm10, %v1506_v12  ;;  %v7071_v16 = vpop.permute.xlu2 %1109  ;;  %v2478_v39 = vmax.f32 %v7021_v34, %v2477_v11  ;;  %v2485_v18 = vmax.f32 %v7023_v17, %v2484_v40  ;;  %v2492_v0 = vmax.f32 %v7026_v9, %v2491_v29  ;;  %v2497_v37 = vmax.f32 %v2495_v42, %v2496_v62 }
 0x1ee   : > { %v2533_v27 = vrot.slane %v2532_v44, 1  ;;  %v2540_v45 = vrot.slane %v2539_v15, 1  ;;  %1724 = vst.msk [vmem:[#allocation3 + $0x68] sm:$0xff] %vm1710_vm11, %v6958_v1  ;;  %v2510_v23 = vrot.slane %v2509_v41, 2  ;;  %vm9110_vm4 = vcmask 589312  }
 0x1ef   : > { %1858 = vst.msk [vmem:[#allocation3 + $0x68] sm:$0xff] %vm9110_vm4, %v1775_v36  ;;  %v2517_v56 = vrot.slane %v2516_v22, 2  ;;  %v2526_v26 = vrot.slane %v2525_v60, 1  ;;  %v2504_v34 = vmax.f32 %v2502_v31, %v2503_v58  ;;  %v2547_v57 = vrot.slane %v2546_v20, 1 }
 0x1f0   : > { %v2534_v19 = vmax.f32 %v2532_v44, %v2533_v27  ;;  %v2541_v6 = vmax.f32 %v2539_v15, %v2540_v45  ;;  %1115 = vrot.lane.b32.xlu0 %v6712_v3, %s9083_s24  ;;  %v721_v51 = vrot.slane %v561_v48, 1  ;;  %v7083_v1 = vsel %vm3249_vm15, %v2471_v50, -inf }
 0x1f1   : > { %v3277_v17 = vsel %vm3249_vm15, %v2478_v39, -inf  ;;  %v3280_v27 = vsel %vm3249_vm15, %v2485_v18, -inf  ;;  %v7091_v11 = vsel %vm3249_vm15, %v2492_v0, -inf  ;;  %v2511_v3 = vmax.f32 %v2509_v41, %v2510_v23 }
 0x1f2   : > { %v3278_v9 = vsel %vm3249_vm15, %v2534_v19, -inf  ;;  %984 = vrot.lane.b32.xlu1 %v6672_v5, %s9088_s16  ;;  %v1108_v42 = vpop.permute.xlu0 %1107  ;;  %v931_v58 = vrot.slane %v561_v48, 2  ;;  %v2498_v50 = vrot.slane %v2497_v37, 1  ;;  %v2518_v31 = vmax.f32 %v2516_v22, %v2517_v56 }
 0x1f3   : > { %1250 = vrot.lane.b32.xlu2 %v6839_v32, %s9086_s22  ;;  %v2527_v24 = vmax.f32 %v2525_v60, %v2526_v26  ;;  %v3281_v39 = vsel %vm3249_vm15, %v2541_v6, -inf  ;;  %v2505_v40 = vrot.slane %v2504_v34, 1  ;;  %v2548_v5 = vmax.f32 %v2546_v20, %v2547_v57 }
 0x1f4   : > { %v767_v7 = vpop.permute.xlu1 %766  ;;  %v2053_v36 = vpop.f32.mrf.mxu0  ;;  %v3279_v29 = vmax.f32 %v3277_v17, %v3278_v9  ;;  %v9111_v41 = vrot.slane %v6843_v21, 1  ;;  %v2512_v20 = vrot.slane %v2511_v3, 1  ;;  %v3282_v48 = vmax.f32 %v3280_v27, %v3281_v39 }
 0x1f5   : > { %849 = vst.msk [vmem:[#allocation3 + $0x70] sm:$0xff] %vm834_vm5, %v767_v7  ;;  %v7097_v62 = vpop.permute.xlu2 %1509  ;;  %v2181_v22 = vrot.slane %v2053_v36, 2  ;;  %v2182_v60 = vrot.slane %v2053_v36, 4  ;;  %v2183_v15 = vrot.slane %v2053_v36, 6  ;;  %v2549_v12 = vsel %vm9113_vm1, %v2053_v36, -inf }
 0x1f6   : > { %v7102_v44 = vsel %vm657_vm2, %v9111_v41, %v721_v51  ;;  %1059 = vst.msk [vmem:[#allocation3 + $0x70] sm:$0xff] %vm1044_vm6, %v6979_v30  ;;  %v1890_v45 = vld [vmem:[#allocation3 + $0x68] sm:$0xff]  ;;  %v2550_v18 = vrot.slane %v2549_v12, 4  ;;  %v9116_v0 = vrot.slane %v6843_v21, 2  ;;  %v3275_v30 = vsel %vm3249_vm15, %v2527_v24, -inf }
 0x1f7   : > { %9112 = vst [vmem:[#allocation17_spill] sm:$0xff] %v7102_v44  ;;  %5543 = vmatmul.msk.f32.gmra.mxu0 %vm9115_vm0, %v1890_v45  ;;  %v2556_v56 = vsel %vm9117_vm7, %v2181_v22, -inf  ;;  %v2563_v26 = vsel %vm9118_vm12, %v2182_v60, -inf  ;;  %v2570_v19 = vsel %vm9119_vm14, %v2183_v15, -inf  ;;  %v2499_v6 = vmax.f32 %v2497_v37, %v2498_v50 }
 0x1f8   : > { %1190 = vst.msk [vmem:[#allocation3 + $0x70] sm:$0xff] %vm9114_vm13, %v1108_v42  ;;  %v7112_v23 = vsel %vm867_vm3, %v9116_v0, %v931_v58  ;;  %1260 = vrot.lane.b32.xlu0 %v7102_v44, %s9086_s22  ;;  %v2519_v57 = vrot.slane %v2518_v31, 1  ;;  %v3455_v51 = vadd.f32 %v6769_v8, %v3279_v29  ;;  %v2551_v17 = vmax.f32 %v2549_v12, %v2550_v18 }
 0x1f9   : > { %v3284_v9 = vsel %vm3249_vm15, %v2548_v5, -inf  ;;  %v2557_v42 = vrot.slane %v2556_v56, 4  ;;  %v2564_v27 = vrot.slane %v2563_v26, 4  ;;  %v2571_v58 = vrot.slane %v2570_v19, 4 }
 0x1fa   : > { %1125 = vrot.lane.b32.xlu1 %v6843_v21, %s9083_s24  ;;  %v1508_v24 = vpop.permute.xlu0 %1507  ;;  %v2506_v39 = vmax.f32 %v2504_v34, %v2505_v40  ;;  %v3276_v7 = vmax.f32 %v7083_v1, %v3275_v30  ;;  %v3456_v36 = vadd.f32 %v6769_v8, %v3282_v48  ;;  %v2552_v41 = vrot.slane %v2551_v17, 2  ;;  %v4188_v1 = vld [vmem:[%s9020_s3 + $0x118] sm:$0xff] }
 0x1fb   : > { %1394 = vrot.lane.b32.xlu2 %v7112_v23, %s9085_s12  ;;  %v2513_v37 = vmax.f32 %v2511_v3, %v2512_v20  ;;  %v2558_v50 = vmax.f32 %v2556_v56, %v2557_v42  ;;  %v2565_v29 = vmax.f32 %v2563_v26, %v2564_v27  ;;  %v2572_v5 = vmax.f32 %v2570_v19, %v2571_v58  ;;  %v4187_v3 = vld [vmem:[%s9020_s3 + $0x110] sm:$0xff] }
 0x1fc   : > { %v1243_v22 = vpop.permute.xlu1 %1242  ;;  %v3286_v60 = vsel %vm3249_vm15, %v2499_v6, -inf  ;;  %v3285_v15 = vmax.f32 %v7091_v11, %v3284_v9  ;;  %v3519_v12 = vmax.f32 %v3455_v51, 0.0  ;;  %v2553_v45 = vmax.f32 %v2551_v17, %v2552_v41  ;;  %v564_v11 = vld [vmem:[#allocation2 + $0x148] sm:$0x3]  ;;  %4307 = vmatpush.msra.mxu3 %v4188_v1 }
 0x1fd   : > { %1325 = vst.msk [vmem:[#allocation3 + $0x70] sm:$0xff] %vm1310_vm8, %v1243_v22  ;;  %v771_v34 = vpop.permute.xlu2 %770  ;;  %v2520_v40 = vmax.f32 %v2518_v31, %v2519_v57  ;;  %v2559_v20 = vrot.slane %v2558_v50, 2  ;;  %v2566_v48 = vrot.slane %v2565_v29, 2  ;;  %v2573_v18 = vrot.slane %v2572_v5, 2  ;;  %v4186_v31 = vld [vmem:[%s9020_s3 + $0x108] sm:$0xff] }
 0x1fe   : > { %1459 = vst.msk [vmem:[#allocation3 + $0x70] sm:$0xff] %vm1444_vm9, %v7002_v59  ;;  %v3289_v0 = vsel %vm3249_vm15, %v2506_v39, -inf  ;;  %v3454_v30 = vadd.f32 %v6769_v8, %v3276_v7  ;;  %v3520_v56 = vmax.f32 %v3456_v36, 0.0  ;;  %v2554_v26 = vrot.slane %v2553_v45, 1  ;;  %4308 = vmatpush.msra.mxu3 %v4187_v3 }
 0x1ff   : > { %851 = vst.msk [vmem:[#allocation3 + $0x80] sm:$0xff] %vm834_vm5, %v771_v34  ;;  %v2560_v19 = vmax.f32 %v2558_v50, %v2559_v20  ;;  %v2567_v6 = vmax.f32 %v2565_v29, %v2566_v48  ;;  %v2574_v57 = vmax.f32 %v2572_v5, %v2573_v18  ;;  %v3457_v59 = vadd.f32 %v6769_v8, %v3285_v15 }
 0x200   : > { %1590 = vst.msk [vmem:[#allocation3 + $0x70] sm:$0xff] %vm1575_vm10, %v1508_v24  ;;  %1515 = vrot.lane.b32.xlu0 %v6755_v2, %s9090_s15  ;;  %v3679_v51 = vrot.slane %v3519_v12, 7  ;;  %v2555_v17 = vmax.f32 %v2553_v45, %v2554_v26  ;;  %v726_v9 = vrot.slane %v564_v11, 1  ;;  %v3292_v42 = vsel %vm3249_vm15, %v2513_v37, -inf  ;;  %4309 = vmatpush.msra.mxu3 %v4186_v31  ;;  %v4185_v12 = vld [vmem:[%s9020_s3 + $0x100] sm:$0xff] }
 0x201   : > { %v2561_v27 = vrot.slane %v2560_v19, 1  ;;  %v2568_v58 = vrot.slane %v2567_v6, 1  ;;  %v2575_v39 = vrot.slane %v2574_v57, 1  ;;  %v3518_v24 = vmax.f32 %v3454_v30, 0.0  ;;  %v483_v30 = vld [vmem:[%s6030_s13 + $0xd0] sm:$0xff] }
 0x202   : > { %1384 = vrot.lane.b32.xlu1 %v6869_v47, %s9085_s12  ;;  %v769_v7 = vpop.permute.xlu0 %768  ;;  %v3681_v36 = vrot.slane %v3520_v56, 6  ;;  %v3287_v41 = vsel %vm3249_vm15, %v2555_v17, -inf  ;;  %v936_v50 = vrot.slane %v564_v11, 2  ;;  %v3295_v45 = vsel %vm3249_vm15, %v2520_v40, -inf  ;;  %4310 = vmatpush.msra.mxu3 %v4185_v12 }
 0x203   : > { %1650 = vrot.lane.b32.xlu2 %v6888_v25, %s9087_s29  ;;  %850 = vst.msk [vmem:[#allocation3 + $0x78] sm:$0xff] %vm834_vm5, %v769_v7  ;;  %v2562_v29 = vmax.f32 %v2560_v19, %v2561_v27  ;;  %v2569_v37 = vmax.f32 %v2567_v6, %v2568_v58  ;;  %v2576_v5 = vmax.f32 %v2574_v57, %v2575_v39  ;;  %v3521_v34 = vmax.f32 %v3457_v59, 0.0 }
 0x204   : > { %v3288_v22 = vmax.f32 %v3286_v60, %v3287_v41  ;;  %v1643_v15 = vpop.permute.xlu1 %1642  ;;  %vm9120_vm4 = vcmask 1041409   ;;  %v9121_v20 = vrot.slane %v6913_v43, 1  ;;  %vm9122_vm1 = vcmask 589312  }
 0x205   : > { %v3680_v1 = vsel %vm9120_vm4, %v3679_v51, %v3518_v24  ;;  %1725 = vst.msk [vmem:[#allocation3 + $0x70] sm:$0xff] %vm1710_vm11, %v1643_v15  ;;  %v7162_v3 = vpop.permute.xlu2 %1246  ;;  %v3290_v60 = vsel %vm3249_vm15, %v2562_v29, -inf  ;;  %v3293_v18 = vsel %vm3249_vm15, %v2569_v37, -inf  ;;  %v3296_v11 = vsel %vm3249_vm15, %v2576_v5, -inf  ;;  %v484_v15 = vld [vmem:[%s6030_s13 + $0xd8] sm:$0xff] }
 0x206   : > { %v7167_v48 = vsel %vm657_vm2, %v9121_v20, %v726_v9  ;;  %v3458_v40 = vadd.f32 %v6769_v8, %v3288_v22  ;;  %1859 = vst.msk [vmem:[#allocation3 + $0x70] sm:$0xff] %vm9122_vm1, %v7045_v55  ;;  %v3291_v56 = vmax.f32 %v3289_v0, %v3290_v60  ;;  %v3294_v26 = vmax.f32 %v3292_v42, %v3293_v18 }
 0x207   : > { %v3297_v31 = vmax.f32 %v3295_v45, %v3296_v11  ;;  %vm9123_vm13 = vcmask 7168   ;;  %vm9124_vm0 = vcmask 1042434   ;;  %v9125_v57 = vrot.slane %v6913_v43, 2 }
 0x208   : > { %517 = vst.msk [vmem:[#allocation2 + $0x151] sm:$0xff] %vm9123_vm13, %v483_v30  ;;  %v3682_v19 = vsel %vm9124_vm0, %v3681_v36, %v3680_v1  ;;  %v3522_v6 = vmax.f32 %v3458_v40, 0.0  ;;  %1660 = vrot.lane.b32.xlu0 %v7167_v48, %s9087_s29  ;;  %v3683_v51 = vrot.slane %v3521_v34, 5  ;;  %v3459_v55 = vadd.f32 %v6769_v8, %v3291_v56 }
 0x209   : > { %v7181_v59 = vsel %vm867_vm3, %v9125_v57, %v936_v50  ;;  %v3460_v0 = vadd.f32 %v6769_v8, %v3294_v26  ;;  %v3461_v17 = vadd.f32 %v6769_v8, %v3297_v31  ;;  %vm9126_vm7 = vcmask 1043459  }
 0x20a   : > { %v3685_v9 = vrot.slane %v3522_v6, 4  ;;  %1525 = vrot.lane.b32.xlu1 %v6913_v43, %s9090_s15  ;;  %v1245_v42 = vpop.permute.xlu0 %1244  ;;  %v3684_v27 = vsel %vm9126_vm7, %v3683_v51, %v3682_v19  ;;  %v3523_v58 = vmax.f32 %v3459_v55, 0.0  ;;  %vm9128_vm12 = vcmask 1044484  }
 0x20b   : > { %v3524_v39 = vmax.f32 %v3460_v0, 0.0  ;;  %v3525_v7 = vmax.f32 %v3461_v17, 0.0  ;;  %1794 = vrot.lane.b32.xlu2 %v7181_v59, %s9127_s30  ;;  %vm9129_vm14 = vcmask 261312   ;;  %vm9130_vm4 = vcmask 588800  }
 0x20c   : > { %v3686_v24 = vsel %vm9128_vm12, %v3685_v9, %v3684_v27  ;;  %v979_v36 = vpop.permute.xlu1 %978  ;;  %v3687_v41 = vrot.slane %v3523_v58, 3  ;;  %vm9131_vm1 = vcmask 1045509   ;;  %vm9132_vm13 = vcmask 1046534  }
 0x20d   : > { %v3689_v50 = vrot.slane %v3524_v39, 2  ;;  %1060 = vst.msk [vmem:[#allocation3 + $0x78] sm:$0xff] %vm1044_vm6, %v979_v36  ;;  %v1891_v8 = vld [vmem:[#allocation3 + $0x70] sm:$0xff]  ;;  %v7195_v29 = vpop.permute.xlu2 %1646  ;;  %v3691_v5 = vrot.slane %v3525_v7, 1  ;;  %vm9133_vm0 = vcmask 64512   ;;  %vm9134_vm7 = vcmask 1047559  }
 0x20e   : > { %1191 = vst.msk [vmem:[#allocation3 + $0x78] sm:$0xff] %vm9129_vm14, %v7071_v16  ;;  %5544 = vmatmul.msk.f32.gmra.mxu0 %vm9130_vm4, %v1891_v8  ;;  %v3688_v37 = vsel %vm9131_vm1, %v3687_v41, %v3686_v24  ;;  %vm9135_vm12 = vcmask 7168   ;;  %vm9137_vm14 = vmmov %vm9133_vm0  ;;  %vm9139_vm4 = vcmask 589312   ;;  %vm9141_vm1 = vcmask 261312  }
 0x20f   : > { %1326 = vst.msk [vmem:[#allocation3 + $0x78] sm:$0xff] %vm1310_vm8, %v1245_v42  ;;  %v7202_v22 = vld [vmem:[#allocation2 + $0x150] sm:$0xff]  ;;  %v3690_v12 = vsel %vm9132_vm13, %v3689_v50, %v3688_v37  ;;  %vm9142_vm13 = vcmask 588800   ;;  %v485_v50 = vld [vmem:[%s6030_s13 + $0xe0] sm:$0xff] }
 0x210   : > { %776 = vrot.lane.b32.xlu0 %v6746_v52, %s9084_s14  ;;  %605 = vst.msk [vmem:[#allocation3 + $0xe0] sm:$0xff] %vm9133_vm0, %v7202_v22  ;;  %v3692_v16 = vsel %vm9134_vm7, %v3691_v5, %v3690_v12  ;;  %vm9143_vm0 = vcmask 254976   ;;  %v938_v12 = vrot.slane %v7202_v22, 2 }
 0x211   : > { %518 = vst.msk [vmem:[#allocation2 + $0x159] sm:$0xff] %vm9135_vm12, %v484_v15  ;;  %vm9144_vm7 = vmmov %vm9143_vm0 }
 0x212   : > { %3787 = vst.msk [vmem:[#allocation4 + $0x21] sm:$0xff] %vm3249_vm15, %v3692_v16  ;;  %1784 = vrot.lane.b32.xlu1 %v6936_v28, %s9127_s30  ;;  %v1645_v45 = vpop.permute.xlu0 %1644  ;;  %vm9145_vm12 = vmmov %vm9143_vm0 }
 0x213   : > { %986 = vrot.lane.b32.xlu2 %v6804_v49, %s9088_s16 }
 0x214   : > { %v1379_v34 = vpop.permute.xlu1 %1378 }
 0x215   : > { %1460 = vst.msk [vmem:[#allocation3 + $0x78] sm:$0xff] %vm1444_vm9, %v1379_v34  ;;  %v783_v52 = vpop.permute.xlu2 %782  ;;  %v728_v34 = vrot.slane %v7202_v22, 1 }
 0x216   : > { %1591 = vst.msk [vmem:[#allocation3 + $0x78] sm:$0xff] %vm1575_vm10, %v7097_v62 }
 0x217   : > { %857 = vst.msk [vmem:[#allocation3 + $0xb0] sm:$0xff] %vm834_vm5, %v783_v52 }
 0x218   : > { %1726 = vst.msk [vmem:[#allocation3 + $0x78] sm:$0xff] %vm1710_vm11, %v1645_v45  ;;  %996 = vrot.lane.b32.xlu0 %v6987_v35, %s9088_s16  ;;  %v7224_v1 = vld [vmem:[#allocation2 + $0x158] sm:$0xff] }
 0x219   : > { %v7226_v20 = vld [vmem:[#allocation4 + $0x20] sm:$0xff]  ;;  %v3799_v60 = vld [vmem:[#allocation4 + $0x28] sm:$0x3]  ;;  %606 = vst.msk [vmem:[#allocation3 + $0xe8] sm:$0xff] %vm9137_vm14, %v7224_v1  ;;  %vm9146_vm14 = vmmov %vm9143_vm0  ;;  %v9067_v16 = vrot.slane %v7224_v1, 2  ;;  %v9068_v52 = vrot.slane %v7224_v1, 1 }
 0x21a   : > { %9136 = vst [vmem:[#allocation18_spill] sm:$0xff] %v7226_v20  ;;  %786 = vrot.lane.b32.xlu1 %v6944_v61, %s9084_s14  ;;  %v981_v49 = vpop.permute.xlu0 %980  ;;  %v3901_v62 = vrot.slane %v7226_v20, 2  ;;  %v3902_v18 = vrot.slane %v3799_v60, 2  ;;  %v3844_v11 = vrot.slane %v7226_v20, 1  ;;  %v3845_v56 = vrot.slane %v3799_v60, 1 }
 0x21b   : > { %3816 = vst.msk [vmem:[#allocation5 + $0x30] sm:$0xff] %vm3249_vm15, %v7226_v20  ;;  %1127 = vrot.lane.b32.xlu2 %v6899_v38, %s9083_s24  ;;  %v2056_v38 = vpop.f32.mrf.mxu0 }
 0x21c   : > { %1061 = vst.msk [vmem:[#allocation3 + $0x80] sm:$0xff] %vm1044_vm6, %v981_v49  ;;  %v1779_v40 = vpop.permute.xlu1 %1778  ;;  %v7240_v30 = vsel %vm867_vm3, %v3901_v62, %v3902_v18  ;;  %v7248_v31 = vsel %vm657_vm2, %v3844_v11, %v3845_v56  ;;  %v2184_v51 = vrot.slane %v2056_v38, 2  ;;  %v2186_v17 = vrot.slane %v2056_v38, 6  ;;  %v486_v18 = vld [vmem:[%s6030_s13 + $0xe8] sm:$0xff] }
 0x21d   : > { %9138 = vst [vmem:[#allocation19_spill] sm:$0xff] %v7240_v30  ;;  %v7243_v26 = vpop.permute.xlu2 %1113  ;;  %v2577_v9 = vsel %vm9143_vm0, %v2056_v38, -inf }
 0x21e   : > { %1860 = vst.msk [vmem:[#allocation3 + $0x78] sm:$0xff] %vm9139_vm4, %v1779_v40  ;;  %v2584_v42 = vsel %vm9144_vm7, %v2184_v51, -inf  ;;  %v2598_v7 = vsel %vm9146_vm14, %v2186_v17, -inf  ;;  %vm9149_vm7 = vmmov %vm9143_vm0 }
 0x21f   : > { %4121 = vst.msk [vmem:[#allocation5 + $0x10] sm:$0xff] %vm3249_vm15, %v7240_v30  ;;  %v2585_v58 = vrot.slane %v2584_v42, 4  ;;  %v2599_v37 = vrot.slane %v2598_v7, 4  ;;  %vm9151_vm14 = vmmov %vm9143_vm0 }
 0x220   : > { %9140 = vst [vmem:[#allocation20_spill] sm:$0xff] %v7248_v31  ;;  %1252 = vrot.lane.b32.xlu0 %v7015_v53, %s9086_s22 }
 0x221   : > { %3999 = vst.msk [vmem:[#allocation5 + $0x20] sm:$0xff] %vm3249_vm15, %v7248_v31  ;;  %v7283_v15 = vmax.f32 %v2584_v42, %v2585_v58  ;;  %v2600_v49 = vmax.f32 %v2598_v7, %v2599_v37  ;;  %v7314_v58 = vsel %vm657_vm2, %v728_v34, %v9068_v52 }
 0x222   : > { %1117 = vrot.lane.b32.xlu1 %v6725_v4, %s9083_s24  ;;  %v1381_v19 = vpop.permute.xlu0 %1380  ;;  %v2185_v4 = vrot.slane %v2056_v38, 4 }
 0x223   : > { %1386 = vrot.lane.b32.xlu2 %v7007_v63, %s9085_s12  ;;  %v2059_v24 = vpop.f32.mrf.mxu0  ;;  %v2587_v40 = vrot.slane %v7283_v15, 2  ;;  %v2601_v34 = vrot.slane %v2600_v49, 2 }
 0x224   : > { %v1112_v6 = vpop.permute.xlu1 %1111  ;;  %v2591_v39 = vsel %vm9145_vm12, %v2185_v4, -inf  ;;  %v2187_v45 = vrot.slane %v2059_v24, 2  ;;  %v2188_v62 = vrot.slane %v2059_v24, 4  ;;  %v2189_v56 = vrot.slane %v2059_v24, 6  ;;  %vm9150_vm12 = vmmov %vm9143_vm0 }
 0x225   : > { %v1892_v57 = vld [vmem:[#allocation3 + $0x78] sm:$0xff]  ;;  %1192 = vst.msk [vmem:[#allocation3 + $0x80] sm:$0xff] %vm9141_vm1, %v1112_v6  ;;  %v7260_v0 = vpop.permute.xlu2 %1258  ;;  %v2592_v8 = vrot.slane %v2591_v39, 4  ;;  %vm9147_vm1 = vcmask 7168   ;;  %v7301_v6 = vsel %vm867_vm3, %v938_v12, %v9067_v16 }
 0x226   : > { %5545 = vmatmul.msk.f32.gmra.mxu0 %vm9142_vm13, %v1892_v57  ;;  %v4131_v55 = vld [vmem:[#allocation5 + $0x10] sm:$0xff]  ;;  %1327 = vst.msk [vmem:[#allocation3 + $0x80] sm:$0xff] %vm1310_vm8, %v7162_v3  ;;  %v2578_v3 = vrot.slane %v2577_v9, 4  ;;  %vm9148_vm13 = vmmov %vm9147_vm1  ;;  %v2612_v42 = vsel %vm9150_vm12, %v2187_v45, -inf }
 0x227   : > { %5562 = vmatmul.msk.f32.vlgmr.msra.gmra.mxu3 %vm3249_vm15, %v4131_v55  ;;  %1461 = vst.msk [vmem:[#allocation3 + $0x80] sm:$0xff] %vm1444_vm9, %v1381_v19  ;;  %v2593_v60 = vmax.f32 %v2591_v39, %v2592_v8  ;;  %v2619_v39 = vsel %vm9151_vm14, %v2188_v62, -inf  ;;  %vm9158_vm14 = vcmask 64512  }
 0x228   : > { %1396 = vrot.lane.b32.xlu0 %v7033_v33, %s9085_s12  ;;  %v2579_v5 = vmax.f32 %v2577_v9, %v2578_v3  ;;  %519 = vst.msk [vmem:[#allocation2 + $0x169] sm:$0xff] %vm9147_vm1, %v485_v50  ;;  %v2605_v9 = vsel %vm9149_vm7, %v2059_v24, -inf  ;;  %vm9153_vm1 = vmmov %vm9143_vm0  ;;  %vm9156_vm7 = vcmask 588800  }
 0x229   : > { %520 = vst.msk [vmem:[#allocation2 + $0x171] sm:$0xff] %vm9148_vm13, %v486_v18  ;;  %vm9154_vm13 = vmmov %vm9143_vm0  ;;  %v2606_v62 = vrot.slane %v2605_v9, 4 }
 0x22a   : > { %1262 = vrot.lane.b32.xlu1 %v6992_v10, %s9086_s22  ;;  %v1781_v27 = vpop.permute.xlu0 %1780  ;;  %v2580_v11 = vrot.slane %v2579_v5, 2  ;;  %vm9157_vm12 = vmmov %vm9153_vm1 }
 0x22b   : > { %1527 = vrot.lane.b32.xlu2 %v7202_v22, %s9090_s15  ;;  %v2626_v8 = vsel %vm9157_vm12, %v2189_v56, -inf }
 0x22c   : > { %v1512_v36 = vpop.permute.xlu1 %1511  ;;  %v2581_v16 = vmax.f32 %v2579_v5, %v2580_v11 }
 0x22d   : > { %1592 = vst.msk [vmem:[#allocation3 + $0x80] sm:$0xff] %vm1575_vm10, %v1512_v36  ;;  %v7277_v41 = vpop.permute.xlu2 %1513 }
 0x22e   : > { %1727 = vst.msk [vmem:[#allocation3 + $0x80] sm:$0xff] %vm1710_vm11, %v7195_v29 }
 0x22f   : > { %1861 = vst.msk [vmem:[#allocation3 + $0x80] sm:$0xff] %vm9139_vm4, %v1781_v27  ;;  %vm9152_vm4 = vmmov %vm9143_vm0  ;;  %v7323_v24 = vld [vmem:[#allocation2 + $0x168] sm:$0xff] }
 0x230   : > { %1652 = vrot.lane.b32.xlu0 %v7050_v46, %s9087_s29  ;;  %607 = vst.msk [vmem:[#allocation3 + $0xf0] sm:$0xff] %vm9158_vm14, %v7323_v24 }
 0x232   : > { %1517 = vrot.lane.b32.xlu1 %v6761_v14, %s9090_s15  ;;  %v983_v29 = vpop.permute.xlu0 %982 }
 0x233   : > { %1786 = vrot.lane.b32.xlu2 %v7058_v54, %s9127_s30 }
 0x234   : > { %v773_v38 = vpop.permute.xlu1 %772  ;;  %v2062_v19 = vpop.f32.mrf.mxu0 }
 0x235   : > { %852 = vst.msk [vmem:[#allocation3 + $0x88] sm:$0xff] %vm834_vm5, %v773_v38  ;;  %v2190_v57 = vrot.slane %v2062_v19, 2  ;;  %v2191_v51 = vrot.slane %v2062_v19, 4  ;;  %v2192_v55 = vrot.slane %v2062_v19, 6  ;;  %v2633_v4 = vsel %vm9143_vm0, %v2062_v19, -inf  ;;  %v7306_v17 = vpop.permute.xlu2 %1658 }
 0x236   : > { %v2634_v27 = vrot.slane %v2633_v4, 4  ;;  %1062 = vst.msk [vmem:[#allocation3 + $0x88] sm:$0xff] %vm1044_vm6, %v983_v29  ;;  %v1893_v3 = vld [vmem:[#allocation3 + $0x80] sm:$0xff]  ;;  %vm9155_vm0 = vcmask 261312   ;;  %v2594_v29 = vrot.slane %v2593_v60, 2 }
 0x237   : > { %v2640_v7 = vsel %vm9152_vm4, %v2190_v57, -inf  ;;  %v2647_v36 = vsel %vm9153_vm1, %v2191_v51, -inf  ;;  %v2654_v50 = vsel %vm9154_vm13, %v2192_v55, -inf  ;;  %1193 = vst.msk [vmem:[#allocation3 + $0x88] sm:$0xff] %vm9155_vm0, %v7243_v26  ;;  %5546 = vmatmul.msk.f32.gmra.mxu0 %vm9156_vm7, %v1893_v3  ;;  %v2613_v26 = vrot.slane %v2612_v42, 4  ;;  %v7334_v3 = vld [vmem:[#allocation2 + $0x170] sm:$0xff]  ;;  %vm9159_vm4 = vmmov %vm9158_vm14 }
 0x238   : > { %v2641_v37 = vrot.slane %v2640_v7, 4  ;;  %v2648_v12 = vrot.slane %v2647_v36, 4  ;;  %v2655_v45 = vrot.slane %v2654_v50, 4  ;;  %1796 = vrot.lane.b32.xlu0 %v7301_v6, %s9127_s30  ;;  %v2635_v18 = vmax.f32 %v2633_v4, %v2634_v27  ;;  %608 = vst.msk [vmem:[#allocation3 + $0xf8] sm:$0xff] %vm9159_vm4, %v7334_v3  ;;  %vm9160_vm1 = vmmov %vm9155_vm0 }
 0x239   : > { %v2620_v51 = vrot.slane %v2619_v39, 4  ;;  %v2627_v55 = vrot.slane %v2626_v8, 4  ;;  %v2588_v4 = vmax.f32 %v7283_v15, %v2587_v40  ;;  %v2607_v27 = vmax.f32 %v2605_v9, %v2606_v62  ;;  %vm9162_vm0 = vmmov %vm9157_vm12 }
 0x23a   : > { %v2642_v38 = vmax.f32 %v2640_v7, %v2641_v37  ;;  %v2649_v19 = vmax.f32 %v2647_v36, %v2648_v12  ;;  %v2656_v57 = vmax.f32 %v2654_v50, %v2655_v45  ;;  %1662 = vrot.lane.b32.xlu1 %v7314_v58, %s9087_s29  ;;  %v1124_v56 = vpop.permute.xlu0 %1123  ;;  %v2636_v7 = vrot.slane %v2635_v18, 2  ;;  %vm9163_vm7 = vmmov %vm9162_vm0 }
 0x23b   : > { %788 = vrot.lane.b32.xlu2 %v7102_v44, %s9084_s14  ;;  %v2595_v37 = vmax.f32 %v2593_v60, %v2594_v29  ;;  %v2602_v12 = vmax.f32 %v2600_v49, %v2601_v34  ;;  %v2614_v45 = vmax.f32 %v2612_v42, %v2613_v26  ;;  %v2621_v5 = vmax.f32 %v2619_v39, %v2620_v51  ;;  %v487_v51 = vld [vmem:[%s6030_s13 + $0xf0] sm:$0xff]  ;;  %vm9164_vm12 = vmmov %vm9162_vm0 }
 0x23c   : > { %v2643_v52 = vrot.slane %v2642_v38, 2  ;;  %v2650_v30 = vrot.slane %v2649_v19, 2  ;;  %v993_v31 = vpop.permute.xlu1 %992  ;;  %v2657_v36 = vrot.slane %v2656_v57, 2  ;;  %v2628_v11 = vmax.f32 %v2626_v8, %v2627_v55  ;;  %vm9165_vm14 = vmmov %vm9162_vm0 }
 0x23d   : > { %1067 = vst.msk [vmem:[#allocation3 + $0xb0] sm:$0xff] %vm1044_vm6, %v993_v31  ;;  %v775_v50 = vpop.permute.xlu2 %774  ;;  %v2582_v31 = vrot.slane %v2581_v16, 1  ;;  %v2608_v15 = vrot.slane %v2607_v27, 2  ;;  %v2637_v60 = vmax.f32 %v2635_v18, %v2636_v7  ;;  %v2589_v40 = vrot.slane %v2588_v4, 1 }
 0x23e   : > { %v2644_v20 = vmax.f32 %v2642_v38, %v2643_v52  ;;  %853 = vst.msk [vmem:[#allocation3 + $0x90] sm:$0xff] %vm834_vm5, %v775_v50  ;;  %v2651_v44 = vmax.f32 %v2649_v19, %v2650_v30  ;;  %v2658_v49 = vmax.f32 %v2656_v57, %v2657_v36  ;;  %v2596_v52 = vrot.slane %v2595_v37, 1 }
 0x23f   : > { %1198 = vst.msk [vmem:[#allocation3 + $0xb0] sm:$0xff] %vm9160_vm1, %v1124_v56  ;;  %v2603_v9 = vrot.slane %v2602_v12, 1  ;;  %v2615_v42 = vrot.slane %v2614_v45, 2  ;;  %v2622_v39 = vrot.slane %v2621_v5, 2  ;;  %v2629_v8 = vrot.slane %v2628_v11, 2 }
 0x240   : > { %v2645_v21 = vrot.slane %v2644_v20, 1  ;;  %1333 = vst.msk [vmem:[#allocation3 + $0xb0] sm:$0xff] %vm1310_vm8, %v7260_v0  ;;  %988 = vrot.lane.b32.xlu0 %v6869_v47, %s9088_s16  ;;  %v2652_v29 = vrot.slane %v2651_v44, 1  ;;  %v2583_v34 = vmax.f32 %v2581_v16, %v2582_v31  ;;  %v2609_v62 = vmax.f32 %v2607_v27, %v2608_v15 }
 0x241   : > { %v2638_v18 = vrot.slane %v2637_v60, 1  ;;  %v2659_v26 = vrot.slane %v2658_v49, 1  ;;  %v2590_v19 = vmax.f32 %v2588_v4, %v2589_v40  ;;  %v2604_v57 = vmax.f32 %v2602_v12, %v2603_v9 }
 0x242   : > { %778 = vrot.lane.b32.xlu1 %v6839_v32, %s9084_s14  ;;  %v1383_v30 = vpop.permute.xlu0 %1382  ;;  %v2646_v47 = vmax.f32 %v2644_v20, %v2645_v21  ;;  %v2597_v32 = vmax.f32 %v2595_v37, %v2596_v52  ;;  %v2616_v56 = vmax.f32 %v2614_v45, %v2615_v42  ;;  %v2623_v55 = vmax.f32 %v2621_v5, %v2622_v39 }
 0x243   : > { %794 = vrot.lane.b32.xlu2 %v7314_v58, %s9084_s14  ;;  %v2630_v7 = vmax.f32 %v2628_v11, %v2629_v8  ;;  %v2653_v36 = vmax.f32 %v2651_v44, %v2652_v29  ;;  %vm9161_vm13 = vcmask 7168   ;;  %v7362_v20 = vsel %vm3249_vm15, %v2583_v34, -inf }
 0x244   : > { %v1249_v0 = vpop.permute.xlu1 %1248  ;;  %v3302_v21 = vsel %vm3249_vm15, %v2646_v47, -inf  ;;  %521 = vst.msk [vmem:[#allocation2 + $0x181] sm:$0xff] %vm9161_vm13, %v487_v51  ;;  %v2610_v16 = vrot.slane %v2609_v62, 1  ;;  %v2639_v4 = vmax.f32 %v2637_v60, %v2638_v18  ;;  %v2660_v27 = vmax.f32 %v2658_v49, %v2659_v26  ;;  %vm9167_vm1 = vmmov %vm9161_vm13 }
 0x245   : > { %1328 = vst.msk [vmem:[#allocation3 + $0x88] sm:$0xff] %vm1310_vm8, %v1249_v0  ;;  %v7351_v38 = vpop.permute.xlu2 %994  ;;  %v3301_v50 = vsel %vm3249_vm15, %v2590_v19, -inf  ;;  %v3304_v44 = vsel %vm3249_vm15, %v2597_v32, -inf  ;;  %v7367_v37 = vsel %vm3249_vm15, %v2604_v57, -inf  ;;  %v2624_v12 = vrot.slane %v2623_v55, 1 }
 0x246   : > { %1462 = vst.msk [vmem:[#allocation3 + $0x88] sm:$0xff] %vm1444_vm9, %v1383_v30  ;;  %v2631_v45 = vrot.slane %v2630_v7, 1  ;;  %v3303_v5 = vmax.f32 %v3301_v50, %v3302_v21  ;;  %v3305_v11 = vsel %vm3249_vm15, %v2653_v36, -inf  ;;  %v2611_v9 = vmax.f32 %v2609_v62, %v2610_v16  ;;  %v7387_v62 = vld [vmem:[%s9019_s2] ss:$0 sm:$0xff] }
 0x247   : > { %1593 = vst.msk [vmem:[#allocation3 + $0x88] sm:$0xff] %vm1575_vm10, %v7277_v41  ;;  %v2617_v41 = vrot.slane %v2616_v56, 1  ;;  %v3299_v42 = vsel %vm3249_vm15, %v2639_v4, -inf  ;;  %v3308_v30 = vsel %vm3249_vm15, %v2660_v27, -inf  ;;  %v3306_v29 = vmax.f32 %v3304_v44, %v3305_v11 }
 0x248   : > { %1119 = vrot.lane.b32.xlu0 %v6755_v2, %s9083_s24  ;;  %v3463_v18 = vadd.f32 %v7387_v62, %v3303_v5  ;;  %v2625_v51 = vmax.f32 %v2623_v55, %v2624_v12  ;;  %v2632_v36 = vmax.f32 %v2630_v7, %v2631_v45  ;;  %v3300_v16 = vmax.f32 %v7362_v20, %v3299_v42 }
 0x249   : > { %v2618_v57 = vmax.f32 %v2616_v56, %v2617_v41  ;;  %v3310_v44 = vsel %vm3249_vm15, %v2611_v9, -inf  ;;  %v3464_v5 = vadd.f32 %v7387_v62, %v3306_v29  ;;  %v734_v45 = vrot.slane %v7334_v3, 1 }
 0x24a   : > { %998 = vrot.lane.b32.xlu1 %v7112_v23, %s9088_s16  ;;  %v1524_v2 = vpop.permute.xlu0 %1523  ;;  %v3527_v56 = vmax.f32 %v3463_v18, 0.0  ;;  %vm9166_vm4 = vcmask 589312   ;;  %vm9168_vm13 = vcmask 1041409  }
 0x24b   : > { %1004 = vrot.lane.b32.xlu2 %v7301_v6, %s9088_s16  ;;  %v3313_v20 = vsel %vm3249_vm15, %v2618_v57, -inf  ;;  %v3528_v9 = vmax.f32 %v3464_v5, 0.0 }
 0x24c   : > { %v2065_v31 = vpop.f32.mrf.mxu0  ;;  %v1393_v52 = vpop.permute.xlu1 %1392 }
 0x24d   : > { %v2193_v15 = vrot.slane %v2065_v31, 2  ;;  %v2194_v60 = vrot.slane %v2065_v31, 4  ;;  %v2195_v49 = vrot.slane %v2065_v31, 6  ;;  %v2661_v40 = vsel %vm9162_vm0, %v2065_v31, -inf  ;;  %1467 = vst.msk [vmem:[#allocation3 + $0xb0] sm:$0xff] %vm1444_vm9, %v1393_v52  ;;  %v7378_v8 = vpop.permute.xlu2 %1250  ;;  %vm9169_vm0 = vmmov %vm9166_vm4 }
 0x24e   : > { %v2662_v39 = vrot.slane %v2661_v40, 4  ;;  %1598 = vst.msk [vmem:[#allocation3 + $0xb0] sm:$0xff] %vm1575_vm10, %v1524_v2  ;;  %v3309_v2 = vmax.f32 %v7367_v37, %v3308_v30  ;;  %v733_v37 = vrot.slane %v7323_v24, 1  ;;  %v3462_v31 = vadd.f32 %v7387_v62, %v3300_v16 }
 0x24f   : > { %v2668_v47 = vsel %vm9163_vm7, %v2193_v15, -inf  ;;  %v2675_v0 = vsel %vm9164_vm12, %v2194_v60, -inf  ;;  %v2682_v34 = vsel %vm9165_vm14, %v2195_v49, -inf  ;;  %1733 = vst.msk [vmem:[#allocation3 + $0xb0] sm:$0xff] %vm1710_vm11, %v7306_v17  ;;  %v3693_v30 = vrot.slane %v3527_v56, 7 }
 0x250   : > { %v2663_v26 = vmax.f32 %v2661_v40, %v2662_v39  ;;  %v2669_v19 = vrot.slane %v2668_v47, 4  ;;  %v2676_v32 = vrot.slane %v2675_v0, 4  ;;  %v2683_v21 = vrot.slane %v2682_v34, 4  ;;  %1254 = vrot.lane.b32.xlu0 %v6888_v25, %s9086_s22 }
 0x251   : > { %v3316_v40 = vsel %vm3249_vm15, %v2625_v51, -inf  ;;  %v3465_v52 = vadd.f32 %v7387_v62, %v3309_v2  ;;  %v3695_v16 = vrot.slane %v3528_v9, 6  ;;  %vm9170_vm7 = vcmask 1042434  }
 0x252   : > { %v2664_v4 = vrot.slane %v2663_v26, 2  ;;  %v2670_v27 = vmax.f32 %v2668_v47, %v2669_v19  ;;  %v2677_v50 = vmax.f32 %v2675_v0, %v2676_v32  ;;  %v2684_v11 = vmax.f32 %v2682_v34, %v2683_v21  ;;  %1129 = vrot.lane.b32.xlu1 %v6913_v43, %s9083_s24  ;;  %v1783_v17 = vpop.permute.xlu0 %1782  ;;  %v488_v0 = vld [vmem:[%s6030_s13 + $0xf8] sm:$0xff] }
 0x253   : > { %1135 = vrot.lane.b32.xlu2 %v7323_v24, %s9083_s24  ;;  %v3319_v34 = vsel %vm3249_vm15, %v2632_v36, -inf  ;;  %v943_v19 = vrot.slane %v7323_v24, 2  ;;  %522 = vst.msk [vmem:[#allocation2 + $0x189] sm:$0xff] %vm9167_vm1, %v488_v0  ;;  %v3526_v32 = vmax.f32 %v3462_v31, 0.0  ;;  %v3529_v2 = vmax.f32 %v3465_v52, 0.0 }
 0x254   : > { %v2665_v55 = vmax.f32 %v2663_v26, %v2664_v4  ;;  %v2671_v7 = vrot.slane %v2670_v27, 2  ;;  %v2678_v25 = vrot.slane %v2677_v50, 2  ;;  %v2685_v41 = vrot.slane %v2684_v11, 2  ;;  %v1649_v12 = vpop.permute.xlu1 %1648 }
 0x255   : > { %1728 = vst.msk [vmem:[#allocation3 + $0x88] sm:$0xff] %vm1710_vm11, %v1649_v12  ;;  %v7407_v49 = vpop.permute.xlu2 %1394  ;;  %v7417_v26 = vsel %vm657_vm2, %v733_v37, %v734_v45  ;;  %vm9171_vm12 = vcmask 588800   ;;  %vm9172_vm14 = vcmask 1043459   ;;  %vm9174_vm1 = vcmask 1045509  }
 0x256   : > { %v2666_v43 = vrot.slane %v2665_v55, 1  ;;  %v2672_v15 = vmax.f32 %v2670_v27, %v2671_v7  ;;  %v2679_v60 = vmax.f32 %v2677_v50, %v2678_v25  ;;  %v2686_v42 = vmax.f32 %v2684_v11, %v2685_v41  ;;  %1862 = vst.msk [vmem:[#allocation3 + $0x88] sm:$0xff] %vm9166_vm4, %v1783_v17 }
 0x257   : > { %v944_v50 = vrot.slane %v7334_v3, 2  ;;  %vm9173_vm4 = vcmask 1044484  }
 0x258   : > { %v2667_v39 = vmax.f32 %v2665_v55, %v2666_v43  ;;  %v2673_v29 = vrot.slane %v2672_v15, 1  ;;  %v2680_v47 = vrot.slane %v2679_v60, 1  ;;  %v2687_v18 = vrot.slane %v2686_v42, 1  ;;  %1388 = vrot.lane.b32.xlu0 %v6936_v28, %s9085_s12 }
 0x259   : > { %v3694_v28 = vsel %vm9168_vm13, %v3693_v30, %v3526_v32  ;;  %v7448_v9 = vsel %vm867_vm3, %v943_v19, %v944_v50  ;;  %vm9175_vm13 = vcmask 1046534  }
 0x25a   : > { %v2674_v57 = vmax.f32 %v2672_v15, %v2673_v29  ;;  %v2681_v51 = vmax.f32 %v2679_v60, %v2680_v47  ;;  %v3311_v21 = vsel %vm3249_vm15, %v2667_v39, -inf  ;;  %v2688_v36 = vmax.f32 %v2686_v42, %v2687_v18  ;;  %1264 = vrot.lane.b32.xlu1 %v7167_v48, %s9086_s22  ;;  %v785_v27 = vpop.permute.xlu0 %784 }
 0x25b   : > { %v3312_v4 = vmax.f32 %v3310_v44, %v3311_v21  ;;  %1270 = vrot.lane.b32.xlu2 %v7417_v26, %s9086_s22  ;;  %858 = vst.msk [vmem:[#allocation3 + $0xb8] sm:$0xff] %vm834_vm5, %v785_v27  ;;  %v3696_v37 = vsel %vm9170_vm7, %v3695_v16, %v3694_v28  ;;  %v3697_v15 = vrot.slane %v3529_v2, 5  ;;  %vm9177_vm7 = vcmask 1047559   ;;  %v7467_v21 = vld [vmem:[#allocation2 + $0x180] sm:$0xff] }
 0x25c   : > { %v3314_v5 = vsel %vm3249_vm15, %v2674_v57, -inf  ;;  %v3317_v11 = vsel %vm3249_vm15, %v2681_v51, -inf  ;;  %v3320_v56 = vsel %vm3249_vm15, %v2688_v36, -inf  ;;  %v1793_v7 = vpop.permute.xlu1 %1792  ;;  %1068 = vst.msk [vmem:[#allocation3 + $0xb8] sm:$0xff] %vm1044_vm6, %v7351_v38  ;;  %v567_v16 = vld [vmem:[#allocation2 + $0x160] sm:$0x3] }
 0x25d   : > { %v3315_v17 = vmax.f32 %v3313_v20, %v3314_v5  ;;  %v3318_v44 = vmax.f32 %v3316_v40, %v3317_v11  ;;  %v3466_v55 = vadd.f32 %v7387_v62, %v3312_v4  ;;  %v3321_v25 = vmax.f32 %v3319_v34, %v3320_v56  ;;  %1867 = vst.msk [vmem:[#allocation3 + $0xb0] sm:$0xff] %vm9169_vm0, %v1793_v7  ;;  %v7438_v41 = vpop.permute.xlu2 %1650  ;;  %v1894_v12 = vld [vmem:[#allocation3 + $0x88] sm:$0xff]  ;;  %vm9176_vm0 = vmmov %vm9171_vm12 }
 0x25e   : > { %5547 = vmatmul.msk.f32.gmra.mxu0 %vm9171_vm12, %v1894_v12  ;;  %v3698_v42 = vsel %vm9172_vm14, %v3697_v15, %v3696_v37  ;;  %vm9178_vm12 = vcmask 261312   ;;  %v731_v4 = vrot.slane %v567_v16, 1  ;;  %v9181_v37 = vrot.slane %v7224_v1, 2 }
 0x25f   : > { %v3467_v31 = vadd.f32 %v7387_v62, %v3315_v17  ;;  %v3468_v20 = vadd.f32 %v7387_v62, %v3318_v44  ;;  %v3530_v43 = vmax.f32 %v3466_v55, 0.0  ;;  %v3469_v60 = vadd.f32 %v7387_v62, %v3321_v25  ;;  %vm9179_vm14 = vmmov %vm9178_vm12 }
 0x260   : > { %1519 = vrot.lane.b32.xlu0 %v6824_v13, %s9090_s15 }
 0x261   : > { %v3531_v40 = vmax.f32 %v3467_v31, 0.0  ;;  %v3532_v38 = vmax.f32 %v3468_v20, 0.0  ;;  %v3699_v52 = vrot.slane %v3530_v43, 4  ;;  %v3533_v30 = vmax.f32 %v3469_v60, 0.0 }
 0x262   : > { %1398 = vrot.lane.b32.xlu1 %v7181_v59, %s9085_s12  ;;  %v1116_v0 = vpop.permute.xlu0 %1115  ;;  %v2068_v15 = vpop.f32.mrf.mxu0 }
 0x263   : > { %v3700_v39 = vsel %vm9173_vm4, %v3699_v52, %v3698_v42  ;;  %v3701_v29 = vrot.slane %v3531_v40, 3  ;;  %v3703_v47 = vrot.slane %v3532_v38, 2  ;;  %1404 = vrot.lane.b32.xlu2 %v7448_v9, %s9085_s12  ;;  %v3705_v18 = vrot.slane %v3533_v30, 1 }
 0x264   : > { %v985_v19 = vpop.permute.xlu1 %984  ;;  %v1899_v32 = vld [vmem:[#allocation3 + $0xb0] sm:$0xff]  ;;  %vm9182_vm4 = vcmask 589312   ;;  %v2196_v52 = vrot.slane %v2068_v15, 2  ;;  %v2197_v42 = vrot.slane %v2068_v15, 4  ;;  %v2198_v30 = vrot.slane %v2068_v15, 6 }
 0x265   : > { %v3702_v34 = vsel %vm9174_vm1, %v3701_v29, %v3700_v39  ;;  %1063 = vst.msk [vmem:[#allocation3 + $0x90] sm:$0xff] %vm1044_vm6, %v985_v19  ;;  %5552 = vmatmul.msk.f32.vlgmr.msra.gmra.mxu1 %vm9176_vm0, %v1899_v32  ;;  %v1795_v57 = vpop.permute.xlu2 %1794  ;;  %vm9183_vm1 = vcmask 254976  }
 0x266   : > { %v3704_v13 = vsel %vm9175_vm13, %v3703_v47, %v3702_v34  ;;  %1194 = vst.msk [vmem:[#allocation3 + $0x90] sm:$0xff] %vm9178_vm12, %v1116_v0  ;;  %v1343_v47 = vrot.slane %v7467_v21, 2  ;;  %vm9184_vm13 = vmmov %vm9183_vm1 }
 0x267   : > { %v3706_v51 = vsel %vm9177_vm7, %v3705_v18, %v3704_v13  ;;  %1329 = vst.msk [vmem:[#allocation3 + $0x90] sm:$0xff] %vm1310_vm8, %v7378_v8  ;;  %v2696_v18 = vsel %vm9184_vm13, %v2196_v52, -inf  ;;  %vm9185_vm0 = vmmov %vm9183_vm1 }
 0x268   : > { %3788 = vst.msk [vmem:[#allocation4 + $0x31] sm:$0xff] %vm3249_vm15, %v3706_v51  ;;  %1654 = vrot.lane.b32.xlu0 %v6944_v61, %s9087_s29  ;;  %v9180_v61 = vrot.slane %v7224_v1, 1  ;;  %vm9186_vm7 = vmmov %vm9182_vm4 }
 0x269   : > { %vm9187_vm12 = vmmov %vm9185_vm0 }
 0x26a   : > { %1529 = vrot.lane.b32.xlu1 %v7224_v1, %s9090_s15  ;;  %v1261_v36 = vpop.permute.xlu0 %1260  ;;  %v7484_v5 = vsel %vm657_vm2, %v9180_v61, %v731_v4  ;;  %v2710_v13 = vsel %vm9187_vm12, %v2198_v30, -inf  ;;  %vm9191_vm13 = vmmov %vm9185_vm0 }
 0x26b   : > { %1535 = vrot.lane.b32.xlu2 %v7467_v21, %s9090_s15  ;;  %vm9193_vm12 = vmmov %vm9185_vm0 }
 0x26c   : > { %v1126_v27 = vpop.permute.xlu1 %1125 }
 0x26d   : > { %1199 = vst.msk [vmem:[#allocation3 + $0xb8] sm:$0xff] %vm9179_vm14, %v1126_v27  ;;  %v987_v2 = vpop.permute.xlu2 %986  ;;  %vm9188_vm14 = vcmask 588800   ;;  %v2711_v27 = vrot.slane %v2710_v13, 4 }
 0x26e   : > { %1334 = vst.msk [vmem:[#allocation3 + $0xb8] sm:$0xff] %vm1310_vm8, %v1261_v36 }
 0x26f   : > { %v7477_v8 = vld [vmem:[#allocation4 + $0x30] sm:$0xff]  ;;  %v3801_v28 = vld [vmem:[#allocation4 + $0x38] sm:$0x3]  ;;  %1468 = vst.msk [vmem:[#allocation3 + $0xb8] sm:$0xff] %vm1444_vm9, %v7407_v49 }
 0x270   : > { %v3904_v11 = vrot.slane %v7477_v8, 2  ;;  %v3905_v17 = vrot.slane %v3801_v28, 2  ;;  %1788 = vrot.lane.b32.xlu0 %v6987_v35, %s9127_s30  ;;  %3817 = vst.msk [vmem:[#allocation5 + $0x48] sm:$0xff] %vm3249_vm15, %v7477_v8  ;;  %v3847_v44 = vrot.slane %v7477_v8, 1  ;;  %v3848_v56 = vrot.slane %v3801_v28, 1 }
 0x271   : > { %v941_v35 = vrot.slane %v567_v16, 2  ;;  %v2697_v16 = vrot.slane %v2696_v18, 4 }
 0x272   : > { %v7493_v55 = vsel %vm867_vm3, %v3904_v11, %v3905_v17  ;;  %1664 = vrot.lane.b32.xlu1 %v7484_v5, %s9087_s29  ;;  %v1516_v49 = vpop.permute.xlu0 %1515  ;;  %v7500_v7 = vsel %vm657_vm2, %v3847_v44, %v3848_v56 }
 0x273   : > { %4122 = vst.msk [vmem:[#allocation5 + $0x28] sm:$0xff] %vm3249_vm15, %v7493_v55  ;;  %780 = vrot.lane.b32.xlu2 %v7015_v53, %s9084_s14  ;;  %v7515_v31 = vsel %vm867_vm3, %v9181_v37, %v941_v35  ;;  %v7519_v53 = vld [vmem:[#allocation2 + $0x188] sm:$0xff]  ;;  %v2698_v61 = vmax.f32 %v2696_v18, %v2697_v16 }
 0x274   : > { %4000 = vst.msk [vmem:[#allocation5 + $0x38] sm:$0xff] %vm3249_vm15, %v7500_v7  ;;  %v1385_v25 = vpop.permute.xlu1 %1384  ;;  %v1210_v60 = vrot.slane %v7519_v53, 1  ;;  %v7544_v0 = vpop.f32.mrf.mxu0  ;;  %v1344_v34 = vrot.slane %v7519_v53, 2 }
 0x275   : > { %1463 = vst.msk [vmem:[#allocation3 + $0x90] sm:$0xff] %vm1444_vm9, %v1385_v25  ;;  %v7507_v12 = vpop.permute.xlu2 %1127  ;;  %v2717_v30 = vsel %vm9193_vm12, %v7544_v0, -inf  ;;  %v2699_v18 = vrot.slane %v2698_v61, 2 }
 0x276   : > { %1594 = vst.msk [vmem:[#allocation3 + $0x90] sm:$0xff] %vm1575_vm10, %v1516_v49  ;;  %v7560_v4 = vsel %vm867_vm3, %v1343_v47, %v1344_v34 }
 0x277   : > { %1729 = vst.msk [vmem:[#allocation3 + $0x90] sm:$0xff] %vm1710_vm11, %v7438_v41  ;;  %v1209_v41 = vrot.slane %v7467_v21, 1 }
 0x278   : > { %790 = vrot.lane.b32.xlu0 %v6992_v10, %s9084_s14 }
 0x279   : > { %v7536_v38 = vsel %vm657_vm2, %v1209_v41, %v1210_v60 }
 0x27a   : > { %v4134_v20 = vld [vmem:[#allocation5 + $0x28] sm:$0xff]  ;;  %1798 = vrot.lane.b32.xlu1 %v7515_v31, %s9127_s30  ;;  %v1661_v43 = vpop.permute.xlu0 %1660 }
 0x27b   : > { %5563 = vmatmul.msk.f32.gmra.mxu3 %vm3249_vm15, %v4134_v20  ;;  %990 = vrot.lane.b32.xlu2 %v7007_v63, %s9088_s16  ;;  %v2689_v63 = vsel %vm9183_vm1, %v2068_v15, -inf  ;;  %v2199_v20 = vrot.slane %v7544_v0, 2  ;;  %vm9190_vm1 = vmmov %vm9188_vm14 }
 0x27c   : > { %v1526_v40 = vpop.permute.xlu1 %1525  ;;  %v2690_v29 = vrot.slane %v2689_v63, 4 }
 0x27d   : > { %1599 = vst.msk [vmem:[#allocation3 + $0xb8] sm:$0xff] %vm1575_vm10, %v1526_v40  ;;  %v7529_v10 = vpop.permute.xlu2 %1386  ;;  %v2201_v40 = vrot.slane %v7544_v0, 6 }
 0x27e   : > { %1734 = vst.msk [vmem:[#allocation3 + $0xb8] sm:$0xff] %vm1710_vm11, %v1661_v43  ;;  %v2691_v51 = vmax.f32 %v2689_v63, %v2690_v29  ;;  %v2200_v43 = vrot.slane %v7544_v0, 4  ;;  %v2718_v0 = vrot.slane %v2717_v30, 4 }
 0x27f   : > { %1868 = vst.msk [vmem:[#allocation3 + $0xb8] sm:$0xff] %vm9182_vm4, %v1795_v57  ;;  %vm9189_vm4 = vmmov %vm9185_vm0 }
 0x280   : > { %1000 = vrot.lane.b32.xlu0 %v7033_v33, %s9088_s16  ;;  %v2703_v33 = vsel %vm9185_vm0, %v2197_v42, -inf  ;;  %v2692_v28 = vrot.slane %v2691_v51, 2 }
 0x281   : > { %v2704_v36 = vrot.slane %v2703_v33, 4 }
 0x282   : > { %1670 = vrot.lane.b32.xlu1 %v7536_v38, %s9087_s29  ;;  %v777_v39 = vpop.permute.xlu0 %776 }
 0x283   : > { %796 = vrot.lane.b32.xlu2 %v7484_v5, %s9084_s14  ;;  %854 = vst.msk [vmem:[#allocation3 + $0x98] sm:$0xff] %vm834_vm5, %v777_v39  ;;  %v2705_v11 = vmax.f32 %v2703_v33, %v2704_v36 }
 0x284   : > { %v1785_v19 = vpop.permute.xlu1 %1784  ;;  %1064 = vst.msk [vmem:[#allocation3 + $0x98] sm:$0xff] %vm1044_vm6, %v987_v2 }
 0x285   : > { %1863 = vst.msk [vmem:[#allocation3 + $0x90] sm:$0xff] %vm9186_vm7, %v1785_v19  ;;  %v7554_v32 = vpop.permute.xlu2 %1527  ;;  %vm9192_vm7 = vmmov %vm9185_vm0  ;;  %v2706_v33 = vrot.slane %v2705_v11, 2 }
 0x286   : > { %v1900_v57 = vld [vmem:[#allocation3 + $0xb8] sm:$0xff] }
 0x287   : > { %5553 = vmatmul.msk.f32.gmra.mxu1 %vm9188_vm14, %v1900_v57  ;;  %vm9194_vm14 = vcmask 261312  }
 0x288   : > { %1121 = vrot.lane.b32.xlu0 %v6761_v14, %s9083_s24  ;;  %v2712_v14 = vmax.f32 %v2710_v13, %v2711_v27  ;;  %v7587_v27 = vld [vmem:[#allocation2 + $0x178] sm:$0x3] }
 0x28a   : > { %1804 = vrot.lane.b32.xlu1 %v7560_v4, %s9127_s30  ;;  %v997_v2 = vpop.permute.xlu0 %996  ;;  %v2713_v13 = vrot.slane %v2712_v14, 2 }
 0x28b   : > { %v2074_v17 = vpop.f32.mrf.mxu0  ;;  %1006 = vrot.lane.b32.xlu2 %v7515_v31, %s9088_s16 }
 0x28c   : > { %v2202_v44 = vrot.slane %v2074_v17, 2  ;;  %v2203_v56 = vrot.slane %v2074_v17, 4  ;;  %v2204_v49 = vrot.slane %v2074_v17, 6  ;;  %v2745_v35 = vsel %vm9189_vm4, %v2074_v17, -inf  ;;  %v787_v25 = vpop.permute.xlu1 %786  ;;  %v1895_v37 = vld [vmem:[#allocation3 + $0x90] sm:$0xff]  ;;  %vm9195_vm4 = vmmov %vm9185_vm0 }
 0x28d   : > { %v2746_v15 = vrot.slane %v2745_v35, 4  ;;  %859 = vst.msk [vmem:[#allocation3 + $0xc0] sm:$0xff] %vm834_vm5, %v787_v25  ;;  %5548 = vmatmul.msk.f32.gmra.mxu0 %vm9190_vm1, %v1895_v37  ;;  %v7574_v41 = vpop.permute.xlu2 %1786  ;;  %v2724_v17 = vsel %vm9195_vm4, %v2199_v20, -inf  ;;  %vm9196_vm1 = vmmov %vm9185_vm0  ;;  %v2707_v20 = vmax.f32 %v2705_v11, %v2706_v33 }
 0x28e   : > { %v2752_v52 = vsel %vm9191_vm13, %v2202_v44, -inf  ;;  %v2759_v42 = vsel %vm9185_vm0, %v2203_v56, -inf  ;;  %v2766_v63 = vsel %vm9192_vm7, %v2204_v49, -inf  ;;  %1069 = vst.msk [vmem:[#allocation3 + $0xc0] sm:$0xff] %vm1044_vm6, %v997_v2  ;;  %v2693_v2 = vmax.f32 %v2691_v51, %v2692_v28  ;;  %vm9197_vm13 = vmmov %vm9185_vm0 }
 0x28f   : > { %v2753_v39 = vrot.slane %v2752_v52, 4  ;;  %v2760_v29 = vrot.slane %v2759_v42, 4  ;;  %v2767_v47 = vrot.slane %v2766_v63, 4  ;;  %1200 = vst.msk [vmem:[#allocation3 + $0xc0] sm:$0xff] %vm9194_vm14, %v7507_v12  ;;  %v2747_v19 = vmax.f32 %v2745_v35, %v2746_v15  ;;  %vm9198_vm0 = vmmov %vm9194_vm14 }
 0x290   : > { %1256 = vrot.lane.b32.xlu0 %v7050_v46, %s9086_s22  ;;  %v2731_v44 = vsel %vm9196_vm1, %v2200_v43, -inf  ;;  %v2738_v56 = vsel %vm9197_vm13, %v2201_v40, -inf  ;;  %v2700_v35 = vmax.f32 %v2698_v61, %v2699_v18  ;;  %v736_v28 = vrot.slane %v7587_v27, 1  ;;  %vm9200_vm7 = vmmov %vm9196_vm1 }
 0x291   : > { %v2754_v57 = vmax.f32 %v2752_v52, %v2753_v39  ;;  %v2761_v16 = vmax.f32 %v2759_v42, %v2760_v29  ;;  %v2768_v36 = vmax.f32 %v2766_v63, %v2767_v47  ;;  %v2748_v25 = vrot.slane %v2747_v19, 2  ;;  %vm9201_vm12 = vmmov %vm9196_vm1 }
 0x292   : > { %1131 = vrot.lane.b32.xlu1 %v7202_v22, %s9083_s24  ;;  %v1253_v12 = vpop.permute.xlu0 %1252  ;;  %v2714_v15 = vmax.f32 %v2712_v14, %v2713_v13  ;;  %v2725_v52 = vrot.slane %v2724_v17, 4  ;;  %v2732_v42 = vrot.slane %v2731_v44, 4  ;;  %v2739_v40 = vrot.slane %v2738_v56, 4  ;;  %vm9202_vm14 = vmmov %vm9196_vm1 }
 0x293   : > { %v2755_v49 = vrot.slane %v2754_v57, 2  ;;  %v2762_v46 = vrot.slane %v2761_v16, 2  ;;  %1137 = vrot.lane.b32.xlu2 %v7334_v3, %s9083_s24  ;;  %v2769_v37 = vrot.slane %v2768_v36, 2  ;;  %v2719_v39 = vmax.f32 %v2717_v30, %v2718_v0  ;;  %vm9203_vm4 = vmmov %vm9196_vm1 }
 0x294   : > { %v1118_v51 = vpop.permute.xlu1 %1117  ;;  %v2694_v61 = vrot.slane %v2693_v2, 1  ;;  %v2749_v47 = vmax.f32 %v2747_v19, %v2748_v25  ;;  %v7605_v11 = vsel %vm657_vm2, %v734_v45, %v736_v28  ;;  %v2701_v14 = vrot.slane %v2700_v35, 1  ;;  %vm9206_vm13 = vmmov %vm9198_vm0 }
 0x295   : > { %v2756_v22 = vmax.f32 %v2754_v57, %v2755_v49  ;;  %1195 = vst.msk [vmem:[#allocation3 + $0x98] sm:$0xff] %vm9198_vm0, %v1118_v51  ;;  %v789_v43 = vpop.permute.xlu2 %788  ;;  %v2763_v63 = vmax.f32 %v2761_v16, %v2762_v46  ;;  %v2770_v18 = vmax.f32 %v2768_v36, %v2769_v37  ;;  %v2708_v33 = vrot.slane %v2707_v20, 1 }
 0x296   : > { %860 = vst.msk [vmem:[#allocation3 + $0xc8] sm:$0xff] %vm834_vm5, %v789_v43  ;;  %v2715_v30 = vrot.slane %v2714_v15, 1  ;;  %v2726_v13 = vmax.f32 %v2724_v17, %v2725_v52  ;;  %v2733_v57 = vmax.f32 %v2731_v44, %v2732_v42  ;;  %v2740_v16 = vmax.f32 %v2738_v56, %v2739_v40 }
 0x297   : > { %v2757_v29 = vrot.slane %v2756_v22, 1  ;;  %1330 = vst.msk [vmem:[#allocation3 + $0x98] sm:$0xff] %vm1310_vm8, %v1253_v12  ;;  %v2764_v0 = vrot.slane %v2763_v63, 1  ;;  %v2695_v45 = vmax.f32 %v2693_v2, %v2694_v61  ;;  %v2750_v12 = vrot.slane %v2749_v47, 1 }
 0x298   : > { %1464 = vst.msk [vmem:[#allocation3 + $0x98] sm:$0xff] %vm1444_vm9, %v7529_v10  ;;  %1390 = vrot.lane.b32.xlu0 %v7058_v54, %s9085_s12  ;;  %v2720_v10 = vrot.slane %v2719_v39, 2  ;;  %v2771_v49 = vrot.slane %v2770_v18, 1  ;;  %v946_v46 = vrot.slane %v7587_v27, 2  ;;  %v2702_v25 = vmax.f32 %v2700_v35, %v2701_v14 }
 0x299   : > { %v2758_v36 = vmax.f32 %v2756_v22, %v2757_v29  ;;  %v2709_v17 = vmax.f32 %v2707_v20, %v2708_v33  ;;  %v2716_v44 = vmax.f32 %v2714_v15, %v2715_v30  ;;  %v2727_v56 = vrot.slane %v2726_v13, 2  ;;  %v9199_v15 = vld [vmem:[#allocation14_spill] sm:$0xff] }
 0x29a   : > { %1266 = vrot.lane.b32.xlu1 %v7314_v58, %s9086_s22  ;;  %v1397_v19 = vpop.permute.xlu0 %1396  ;;  %v2734_v58 = vrot.slane %v2733_v57, 2  ;;  %v2741_v51 = vrot.slane %v2740_v16, 2  ;;  %v2765_v28 = vmax.f32 %v2763_v63, %v2764_v0  ;;  %v2721_v52 = vmax.f32 %v2719_v39, %v2720_v10 }
 0x29b   : > { %1272 = vrot.lane.b32.xlu2 %v7605_v11, %s9086_s22  ;;  %v3326_v2 = vsel %vm3249_vm15, %v2758_v36, -inf  ;;  %v7619_v22 = vsel %vm3249_vm15, %v2695_v45, -inf  ;;  %v2751_v27 = vmax.f32 %v2749_v47, %v2750_v12  ;;  %v2772_v35 = vmax.f32 %v2770_v18, %v2771_v49 }
 0x29c   : > { %v1263_v54 = vpop.permute.xlu1 %1262  ;;  %v7626_v20 = vsel %vm867_vm3, %v944_v50, %v946_v46  ;;  %v3325_v43 = vsel %vm3249_vm15, %v2702_v25, -inf  ;;  %v3328_v42 = vsel %vm3249_vm15, %v2709_v17, -inf  ;;  %v7633_v40 = vsel %vm3249_vm15, %v2716_v44, -inf }
 0x29d   : > { %1335 = vst.msk [vmem:[#allocation3 + $0xc0] sm:$0xff] %vm1310_vm8, %v1263_v54  ;;  %v795_v37 = vpop.permute.xlu2 %794  ;;  %v2728_v63 = vmax.f32 %v2726_v13, %v2727_v56  ;;  %v2735_v39 = vmax.f32 %v2733_v57, %v2734_v58  ;;  %v2742_v29 = vmax.f32 %v2740_v16, %v2741_v51  ;;  %v3327_v61 = vmax.f32 %v3325_v43, %v3326_v2 }
 0x29e   : > { %863 = vst.msk [vmem:[#allocation3 + $0xe0] sm:$0xff] %vm834_vm5, %v795_v37  ;;  %v2722_v0 = vrot.slane %v2721_v52, 1  ;;  %v3323_v13 = vsel %vm3249_vm15, %v2751_v27, -inf  ;;  %v3332_v57 = vsel %vm3249_vm15, %v2772_v35, -inf  ;;  %vm9204_vm1 = vcmask 589312   ;;  %v9205_v27 = vld [vmem:[#allocation17_spill] sm:$0xff] }
 0x29f   : > { %1469 = vst.msk [vmem:[#allocation3 + $0xc0] sm:$0xff] %vm1444_vm9, %v1397_v19  ;;  %v3471_v49 = vadd.f32 %v7387_v62, %v3327_v61  ;;  %v2729_v17 = vrot.slane %v2728_v63, 1  ;;  %v2736_v44 = vrot.slane %v2735_v39, 1  ;;  %v2743_v56 = vrot.slane %v2742_v29, 1  ;;  %vm9207_vm0 = vmmov %vm9204_vm1 }
 0x2a0   : > { %1600 = vst.msk [vmem:[#allocation3 + $0xc0] sm:$0xff] %vm1575_vm10, %v7554_v32  ;;  %1521 = vrot.lane.b32.xlu0 %v9199_v15, %s9090_s15  ;;  %v3329_v32 = vsel %vm3249_vm15, %v2765_v28, -inf  ;;  %v3324_v58 = vmax.f32 %v7619_v22, %v3323_v13  ;;  %v2723_v35 = vmax.f32 %v2721_v52, %v2722_v0  ;;  %v3333_v15 = vmax.f32 %v7633_v40, %v3332_v57  ;;  %v573_v57 = vld [vmem:[#allocation2 + $0x190] sm:$0x3] }
 0x2a1   : > { %v3330_v10 = vmax.f32 %v3328_v42, %v3329_v32  ;;  %v3535_v61 = vmax.f32 %v3471_v49, 0.0 }
 0x2a2   : > { %1400 = vrot.lane.b32.xlu1 %v7301_v6, %s9085_s12  ;;  %v1653_v47 = vpop.permute.xlu0 %1652  ;;  %v3470_v52 = vadd.f32 %v7387_v62, %v3324_v58 }
 0x2a3   : > { %v2077_v50 = vpop.f32.mrf.mxu0  ;;  %1406 = vrot.lane.b32.xlu2 %v7626_v20, %s9085_s12  ;;  %v3472_v43 = vadd.f32 %v7387_v62, %v3330_v10 }
 0x2a4   : > { %v2205_v18 = vrot.slane %v2077_v50, 2  ;;  %v2206_v14 = vrot.slane %v2077_v50, 4  ;;  %v2207_v33 = vrot.slane %v2077_v50, 6  ;;  %v2773_v30 = vsel %vm9200_vm7, %v2077_v50, -inf  ;;  %v1518_v19 = vpop.permute.xlu1 %1517 }
 0x2a5   : > { %v2774_v16 = vrot.slane %v2773_v30, 4  ;;  %1595 = vst.msk [vmem:[#allocation3 + $0x98] sm:$0xff] %vm1575_vm10, %v1518_v19  ;;  %v1005_v12 = vpop.permute.xlu2 %1004  ;;  %v3473_v19 = vadd.f32 %v7387_v62, %v3333_v15  ;;  %vm9208_vm7 = vcmask 588800  }
 0x2a6   : > { %v2780_v6 = vsel %vm9201_vm12, %v2205_v18, -inf  ;;  %v2787_v36 = vsel %vm9202_vm14, %v2206_v14, -inf  ;;  %v2794_v45 = vsel %vm9203_vm4, %v2207_v33, -inf  ;;  %1073 = vst.msk [vmem:[#allocation3 + $0xe0] sm:$0xff] %vm1044_vm6, %v1005_v12  ;;  %v2730_v18 = vmax.f32 %v2728_v63, %v2729_v17  ;;  %vm9211_vm4 = vmmov %vm9208_vm7 }
 0x2a7   : > { %v2775_v54 = vmax.f32 %v2773_v30, %v2774_v16  ;;  %v2781_v46 = vrot.slane %v2780_v6, 4  ;;  %v2788_v25 = vrot.slane %v2787_v36, 4  ;;  %v2795_v37 = vrot.slane %v2794_v45, 4  ;;  %1730 = vst.msk [vmem:[#allocation3 + $0x98] sm:$0xff] %vm1710_vm11, %v1653_v47 }
 0x2a8   : > { %1864 = vst.msk [vmem:[#allocation3 + $0x98] sm:$0xff] %vm9204_vm1, %v7574_v41  ;;  %1656 = vrot.lane.b32.xlu0 %v9205_v27, %s9087_s29  ;;  %v2737_v14 = vmax.f32 %v2735_v39, %v2736_v44  ;;  %v2744_v41 = vmax.f32 %v2742_v29, %v2743_v56  ;;  %v3334_v16 = vsel %vm3249_vm15, %v2723_v35, -inf  ;;  %v3707_v39 = vrot.slane %v3535_v61, 7 }
 0x2a9   : > { %v2776_v51 = vrot.slane %v2775_v54, 2  ;;  %v2782_v28 = vmax.f32 %v2780_v6, %v2781_v46  ;;  %v2789_v2 = vmax.f32 %v2787_v36, %v2788_v25  ;;  %v2796_v42 = vmax.f32 %v2794_v45, %v2795_v37 }
 0x2aa   : > { %1531 = vrot.lane.b32.xlu1 %v7323_v24, %s9090_s15  ;;  %v1797_v22 = vpop.permute.xlu0 %1796  ;;  %v3536_v24 = vmax.f32 %v3472_v43, 0.0  ;;  %v3337_v45 = vsel %vm3249_vm15, %v2730_v18, -inf  ;;  %v3340_v12 = vsel %vm3249_vm15, %v2737_v14, -inf  ;;  %v1212_v46 = vrot.slane %v573_v57, 1 }
 0x2ab   : > { %v2777_v32 = vmax.f32 %v2775_v54, %v2776_v51  ;;  %v2783_v50 = vrot.slane %v2782_v28, 2  ;;  %v2790_v47 = vrot.slane %v2789_v2, 2  ;;  %v2797_v33 = vrot.slane %v2796_v42, 2  ;;  %1537 = vrot.lane.b32.xlu2 %v7519_v53, %s9090_s15 }
 0x2ac   : > { %v1663_v13 = vpop.permute.xlu1 %1662  ;;  %v3534_v25 = vmax.f32 %v3470_v52, 0.0  ;;  %v3343_v37 = vsel %vm3249_vm15, %v2744_v41, -inf  ;;  %v3709_v58 = vrot.slane %v3536_v24, 6  ;;  %vm9209_vm12 = vcmask 1041409  }
 0x2ad   : > { %v2778_v40 = vrot.slane %v2777_v32, 1  ;;  %v2784_v30 = vmax.f32 %v2782_v28, %v2783_v50  ;;  %v2791_v0 = vmax.f32 %v2789_v2, %v2790_v47  ;;  %v2798_v10 = vmax.f32 %v2796_v42, %v2797_v33  ;;  %1735 = vst.msk [vmem:[#allocation3 + $0xc0] sm:$0xff] %vm1710_vm11, %v1663_v13  ;;  %v1136_v63 = vpop.permute.xlu2 %1135 }
 0x2ae   : > { %1204 = vst.msk [vmem:[#allocation3 + $0xe0] sm:$0xff] %vm9206_vm13, %v1136_v63  ;;  %v3537_v2 = vmax.f32 %v3473_v19, 0.0  ;;  %v3708_v27 = vsel %vm9209_vm12, %v3707_v39, %v3534_v25  ;;  %v7686_v18 = vsel %vm657_vm2, %v1210_v60, %v1212_v46  ;;  %vm9210_vm14 = vcmask 1042434  }
 0x2af   : > { %v2779_v29 = vmax.f32 %v2777_v32, %v2778_v40  ;;  %v2785_v6 = vrot.slane %v2784_v30, 1  ;;  %v2792_v36 = vrot.slane %v2791_v0, 1  ;;  %v2799_v49 = vrot.slane %v2798_v10, 1  ;;  %1869 = vst.msk [vmem:[#allocation3 + $0xc0] sm:$0xff] %vm9207_vm0, %v1797_v22  ;;  %v1896_v54 = vld [vmem:[#allocation3 + $0x98] sm:$0xff] }
 0x2b0   : > { %5549 = vmatmul.msk.f32.gmra.mxu0 %vm9208_vm7, %v1896_v54  ;;  %1790 = vrot.lane.b32.xlu0 %v7112_v23, %s9127_s30  ;;  %v1346_v22 = vrot.slane %v573_v57, 2  ;;  %v3710_v14 = vsel %vm9210_vm14, %v3709_v58, %v3708_v27  ;;  %vm9212_vm1 = vcmask 1043459   ;;  %vm9213_vm13 = vcmask 1044484   ;;  %v574_v27 = vld [vmem:[#allocation2 + $0x198] sm:$0xff] }
 0x2b1   : > { %v2786_v17 = vmax.f32 %v2784_v30, %v2785_v6  ;;  %v2793_v44 = vmax.f32 %v2791_v0, %v2792_v36  ;;  %v3335_v56 = vsel %vm3249_vm15, %v2779_v29, -inf  ;;  %v2800_v51 = vmax.f32 %v2798_v10, %v2799_v49 }
 0x2b2   : > { %v3336_v28 = vmax.f32 %v3334_v16, %v3335_v56  ;;  %1666 = vrot.lane.b32.xlu1 %v7417_v26, %s9087_s29  ;;  %v989_v43 = vpop.permute.xlu0 %988  ;;  %v3711_v30 = vrot.slane %v3537_v2, 5  ;;  %v7700_v24 = vsel %vm867_vm3, %v1344_v34, %v1346_v22  ;;  %vm9214_vm0 = vcmask 1045509  }
 0x2b3   : > { %v3338_v35 = vsel %vm3249_vm15, %v2786_v17, -inf  ;;  %v3341_v15 = vsel %vm3249_vm15, %v2793_v44, -inf  ;;  %v3344_v23 = vsel %vm3249_vm15, %v2800_v51, -inf  ;;  %792 = vrot.lane.b32.xlu2 %v7167_v48, %s9084_s14  ;;  %vm9215_vm7 = vcmask 261312  }
 0x2b4   : > { %v3339_v42 = vmax.f32 %v3337_v45, %v3338_v35  ;;  %v3342_v61 = vmax.f32 %v3340_v12, %v3341_v15  ;;  %v3474_v32 = vadd.f32 %v7387_v62, %v3336_v28  ;;  %v3345_v50 = vmax.f32 %v3343_v37, %v3344_v23  ;;  %v779_v47 = vpop.permute.xlu1 %778 }
 0x2b5   : > { %855 = vst.msk [vmem:[#allocation3 + $0xa0] sm:$0xff] %vm834_vm5, %v779_v47  ;;  %v1271_v40 = vpop.permute.xlu2 %1270  ;;  %v3712_v16 = vsel %vm9212_vm1, %v3711_v30, %v3710_v14  ;;  %vm9216_vm12 = vcmask 1046534   ;;  %vm9217_vm14 = vcmask 1047559   ;;  %v1609_v35 = vrot.slane %v574_v27, 1  ;;  %v7777_v47 = vld [vmem:[#allocation4] sm:$0xff] }
 0x2b6   : > { %v3475_v41 = vadd.f32 %v7387_v62, %v3339_v42  ;;  %v3476_v33 = vadd.f32 %v7387_v62, %v3342_v61  ;;  %v3538_v52 = vmax.f32 %v3474_v32, 0.0  ;;  %v3477_v48 = vadd.f32 %v7387_v62, %v3345_v50  ;;  %1339 = vst.msk [vmem:[#allocation3 + $0xe0] sm:$0xff] %vm1310_vm8, %v1271_v40  ;;  %v1901_v0 = vld [vmem:[#allocation3 + $0xc0] sm:$0xff] }
 0x2b7   : > { %1065 = vst.msk [vmem:[#allocation3 + $0xa0] sm:$0xff] %vm1044_vm6, %v989_v43  ;;  %5554 = vmatmul.msk.f32.gmra.mxu1 %vm9211_vm4, %v1901_v0  ;;  %vm9218_vm4 = vmmov %vm9215_vm7  ;;  %vm9219_vm1 = vcmask 589312  }
 0x2b8   : > { %v3539_v13 = vmax.f32 %v3475_v41, 0.0  ;;  %v3540_v57 = vmax.f32 %v3476_v33, 0.0  ;;  %v3713_v60 = vrot.slane %v3538_v52, 4  ;;  %v3541_v19 = vmax.f32 %v3477_v48, 0.0  ;;  %1672 = vrot.lane.b32.xlu0 %v7686_v18, %s9087_s29  ;;  %3814 = vst.msk [vmem:[#allocation5] sm:$0xff] %vm3249_vm15, %v7777_v47 }
 0x2ba   : > { %v3714_v62 = vsel %vm9213_vm13, %v3713_v60, %v3712_v16  ;;  %v3715_v10 = vrot.slane %v3539_v13, 3  ;;  %v3717_v63 = vrot.slane %v3540_v57, 2  ;;  %1800 = vrot.lane.b32.xlu1 %v7448_v9, %s9127_s30  ;;  %v1120_v39 = vpop.permute.xlu0 %1119  ;;  %v3719_v6 = vrot.slane %v3541_v19, 1  ;;  %v3795_v60 = vld [vmem:[#allocation4 + $0x8] sm:$0x3] }
 0x2bb   : > { %1806 = vrot.lane.b32.xlu2 %v7700_v24, %s9127_s30  ;;  %1196 = vst.msk [vmem:[#allocation3 + $0xa0] sm:$0xff] %vm9215_vm7, %v1120_v39  ;;  %vm9220_vm13 = vcmask 588800   ;;  %vm9222_vm7 = vmmov %vm9218_vm4  ;;  %v9224_v19 = vld [vmem:[#allocation18_spill] sm:$0xff]  ;;  %v9227_v39 = vld [vmem:[#allocation15_spill] sm:$0xff] }
 0x2bc   : > { %v3716_v29 = vsel %vm9214_vm0, %v3715_v10, %v3714_v62  ;;  %v999_v36 = vpop.permute.xlu1 %998  ;;  %vm9221_vm0 = vmmov %vm9219_vm1  ;;  %v3895_v62 = vrot.slane %v7777_v47, 2  ;;  %v3896_v10 = vrot.slane %v3795_v60, 2 }
 0x2bd   : > { %v3718_v34 = vsel %vm9216_vm12, %v3717_v63, %v3716_v29  ;;  %1070 = vst.msk [vmem:[#allocation3 + $0xc8] sm:$0xff] %vm1044_vm6, %v999_v36  ;;  %v1405_v12 = vpop.permute.xlu2 %1404  ;;  %vm9223_vm12 = vmmov %vm9220_vm13  ;;  %v3898_v29 = vrot.slane %v9227_v39, 2 }
 0x2be   : > { %v3720_v45 = vsel %vm9217_vm14, %v3719_v6, %v3718_v34  ;;  %1473 = vst.msk [vmem:[#allocation3 + $0xe0] sm:$0xff] %vm1444_vm9, %v1405_v12  ;;  %vm9225_vm14 = vmmov %vm9218_vm4  ;;  %v5671_v6 = vld [vmem:[#allocation4 + $0x18] sm:$0x3]  ;;  %v3897_v36 = vsel %vm867_vm3, %v3895_v62, %v3896_v10 }
 0x2bf   : > { %3789 = vst.msk [vmem:[#allocation4 + $0x41] sm:$0xff] %vm3249_vm15, %v3720_v45  ;;  %v3899_v34 = vrot.slane %v5671_v6, 2  ;;  %v9228_v45 = vld [vmem:[#allocation20_spill] sm:$0xff] }
 0x2c0   : > { %798 = vrot.lane.b32.xlu0 %v7417_v26, %s9084_s14  ;;  %v9239_v10 = vld [vmem:[#allocation16_spill] sm:$0xff] }
 0x2c1   : > { %v3900_v12 = vsel %vm867_vm3, %v3898_v29, %v3899_v34 }
 0x2c2   : > { %1002 = vrot.lane.b32.xlu1 %v7181_v59, %s9088_s16  ;;  %v1255_v49 = vpop.permute.xlu0 %1254 }
 0x2c3   : > { %1008 = vrot.lane.b32.xlu2 %v7448_v9, %s9088_s16  ;;  %1331 = vst.msk [vmem:[#allocation3 + $0xa0] sm:$0xff] %vm1310_vm8, %v1255_v49 }
 0x2c4   : > { %v1130_v54 = vpop.permute.xlu1 %1129 }
 0x2c5   : > { %1201 = vst.msk [vmem:[#allocation3 + $0xc8] sm:$0xff] %vm9218_vm4, %v1130_v54  ;;  %v1536_v46 = vpop.permute.xlu2 %1535  ;;  %vm9226_vm4 = vmmov %vm9221_vm0 }
 0x2c6   : > { %v7724_v25 = vld [vmem:[#allocation4 + $0x40] sm:$0xff]  ;;  %v3803_v17 = vld [vmem:[#allocation4 + $0x48] sm:$0x3]  ;;  %1604 = vst.msk [vmem:[#allocation3 + $0xe0] sm:$0xff] %vm1575_vm10, %v1536_v46  ;;  %v3838_v46 = vrot.slane %v7777_v47, 1 }
 0x2c7   : > { %v3907_v26 = vrot.slane %v7724_v25, 2  ;;  %v3908_v44 = vrot.slane %v3803_v17, 2  ;;  %3818 = vst.msk [vmem:[#allocation5 + $0x60] sm:$0xff] %vm3249_vm15, %v7724_v25  ;;  %v3850_v59 = vrot.slane %v7724_v25, 1  ;;  %v3851_v9 = vrot.slane %v3803_v17, 1 }
 0x2c8   : > { %1268 = vrot.lane.b32.xlu0 %v7484_v5, %s9086_s22  ;;  %v3839_v17 = vrot.slane %v3795_v60, 1 }
 0x2c9   : > { %v7734_v56 = vsel %vm867_vm3, %v3907_v26, %v3908_v44  ;;  %v7737_v37 = vsel %vm657_vm2, %v3850_v59, %v3851_v9 }
 0x2ca   : > { %1133 = vrot.lane.b32.xlu1 %v7224_v1, %s9083_s24  ;;  %v1389_v58 = vpop.permute.xlu0 %1388  ;;  %4123 = vst.msk [vmem:[#allocation5 + $0x40] sm:$0xff] %vm3249_vm15, %v7734_v56  ;;  %v3840_v9 = vsel %vm657_vm2, %v3838_v46, %v3839_v17 }
 0x2cb   : > { %1402 = vrot.lane.b32.xlu2 %v7515_v31, %s9085_s12  ;;  %1465 = vst.msk [vmem:[#allocation3 + $0xa0] sm:$0xff] %vm1444_vm9, %v1389_v58 }
 0x2cc   : > { %v1265_v51 = vpop.permute.xlu1 %1264  ;;  %4001 = vst.msk [vmem:[#allocation5 + $0x50] sm:$0xff] %vm3249_vm15, %v7737_v37 }
 0x2cd   : > { %1336 = vst.msk [vmem:[#allocation3 + $0xc8] sm:$0xff] %vm1310_vm8, %v1265_v51  ;;  %v781_v5 = vpop.permute.xlu2 %780 }
 0x2ce   : > { %856 = vst.msk [vmem:[#allocation3 + $0xa8] sm:$0xff] %vm834_vm5, %v781_v5 }
 0x2d0   : > { %1274 = vrot.lane.b32.xlu0 %v7536_v38, %s9086_s22  ;;  %v575_v38 = vld [vmem:[#allocation2 + $0x1a0] sm:$0xff] }
 0x2d1   : > { %v4137_v1 = vld [vmem:[#allocation5 + $0x40] sm:$0xff]  ;;  %v1610_v15 = vrot.slane %v575_v38, 1  ;;  %v1744_v23 = vrot.slane %v575_v38, 2 }
 0x2d2   : > { %5564 = vmatmul.msk.f32.gmra.mxu3 %vm3249_vm15, %v4137_v1  ;;  %1139 = vrot.lane.b32.xlu1 %v7467_v21, %s9083_s24  ;;  %v1520_v31 = vpop.permute.xlu0 %1519 }
 0x2d3   : > { %1408 = vrot.lane.b32.xlu2 %v7560_v4, %s9085_s12  ;;  %1596 = vst.msk [vmem:[#allocation3 + $0xa0] sm:$0xff] %vm1575_vm10, %v1520_v31  ;;  %v1611_v42 = vsel %vm657_vm2, %v1609_v35, %v1610_v15 }
 0x2d4   : > { %v1399_v28 = vpop.permute.xlu1 %1398 }
 0x2d5   : > { %1470 = vst.msk [vmem:[#allocation3 + $0xc8] sm:$0xff] %vm1444_vm9, %v1399_v28  ;;  %v991_v2 = vpop.permute.xlu2 %990 }
 0x2d6   : > { %1066 = vst.msk [vmem:[#allocation3 + $0xa8] sm:$0xff] %vm1044_vm6, %v991_v2 }
 0x2d8   : > { %1668 = vrot.lane.b32.xlu0 %v7605_v11, %s9087_s29 }
 0x2da   : > { %1533 = vrot.lane.b32.xlu1 %v7334_v3, %s9090_s15  ;;  %v1655_v21 = vpop.permute.xlu0 %1654  ;;  %v1743_v3 = vrot.slane %v574_v27, 2 }
 0x2db   : > { %1802 = vrot.lane.b32.xlu2 %v7626_v20, %s9127_s30  ;;  %1731 = vst.msk [vmem:[#allocation3 + $0xa0] sm:$0xff] %vm1710_vm11, %v1655_v21 }
 0x2dc   : > { %v1530_v4 = vpop.permute.xlu1 %1529  ;;  %v1745_v22 = vsel %vm867_vm3, %v1743_v3, %v1744_v23 }
 0x2dd   : > { %1601 = vst.msk [vmem:[#allocation3 + $0xc8] sm:$0xff] %vm1575_vm10, %v1530_v4  ;;  %v797_v43 = vpop.permute.xlu2 %796 }
 0x2de   : > { %864 = vst.msk [vmem:[#allocation3 + $0xe8] sm:$0xff] %vm834_vm5, %v797_v43 }
 0x2e0   : > { %1674 = vrot.lane.b32.xlu0 %v1611_v42, %s9087_s29 }
 0x2e2   : > { %1539 = vrot.lane.b32.xlu1 %v574_v27, %s9090_s15  ;;  %v1789_v61 = vpop.permute.xlu0 %1788 }
 0x2e3   : > { %800 = vrot.lane.b32.xlu2 %v7605_v11, %s9084_s14  ;;  %1865 = vst.msk [vmem:[#allocation3 + $0xa0] sm:$0xff] %vm9219_vm1, %v1789_v61  ;;  %v576_v11 = vld [vmem:[#allocation2 + $0x1a8] sm:$0x3]  ;;  %vm9229_vm1 = vmmov %vm9222_vm7 }
 0x2e4   : > { %v1665_v32 = vpop.permute.xlu1 %1664  ;;  %v1612_v52 = vrot.slane %v576_v11, 1  ;;  %v1746_v30 = vrot.slane %v576_v11, 2 }
 0x2e5   : > { %1736 = vst.msk [vmem:[#allocation3 + $0xc8] sm:$0xff] %vm1710_vm11, %v1665_v32  ;;  %v1007_v50 = vpop.permute.xlu2 %1006  ;;  %v9237_v32 = vld [vmem:[#allocation19_spill] sm:$0xff] }
 0x2e6   : > { %1074 = vst.msk [vmem:[#allocation3 + $0xe8] sm:$0xff] %vm1044_vm6, %v1007_v50  ;;  %v1747_v57 = vsel %vm867_vm3, %v1744_v23, %v1746_v30 }
 0x2e8   : > { %1010 = vrot.lane.b32.xlu0 %v7626_v20, %s9088_s16  ;;  %v1613_v20 = vsel %vm657_vm2, %v1610_v15, %v1612_v52  ;;  %s5455_s16 = sshll.u32 %s5451_s1, 4  ;;  %s5456_s16 = int_to_ptr.hbm [resolvable:$true] %s5455_s16 }
 0x2e9   : > { %s5719_s25 = sshra.s32 %s5456_s16, 4  ;;  %s5720_s25 = int_to_ptr.hbm [resolvable:$true] %s5719_s25 }
 0x2ea   : > { %1808 = vrot.lane.b32.xlu1 %v1745_v22, %s9127_s30  ;;  %v791_v14 = vpop.permute.xlu0 %790  ;;  %v1897_v41 = vld [vmem:[#allocation3 + $0xa0] sm:$0xff]  ;;  %p5726_p3 = scmp.lt.s32.totalorder %s5720_s25, %s9028_s11 }
 0x2eb   : > { %1276 = vrot.lane.b32.xlu2 %v7686_v18, %s9086_s22  ;;  %861 = vst.msk [vmem:[#allocation3 + $0xd0] sm:$0xff] %vm834_vm5, %v791_v14  ;;  %5550 = vmatmul.msk.f32.gmra.mxu0 %vm9220_vm13, %v1897_v41  ;;  %vm9230_vm13 = vmmov %vm9223_vm12 }
 0x2ec   : > { %v1799_v33 = vpop.permute.xlu1 %1798 }
 0x2ed   : > { %1870 = vst.msk [vmem:[#allocation3 + $0xc8] sm:$0xff] %vm9221_vm0, %v1799_v33  ;;  %v1138_v40 = vpop.permute.xlu2 %1137  ;;  %vm9231_vm0 = vcmask 254976  }
 0x2ee   : > { %1205 = vst.msk [vmem:[#allocation3 + $0xe8] sm:$0xff] %vm9222_vm7, %v1138_v40  ;;  %vm9232_vm7 = vmmov %vm9231_vm0 }
 0x2f0   : > { %1410 = vrot.lane.b32.xlu0 %v7700_v24, %s9085_s12 }
 0x2f2   : > { %1141 = vrot.lane.b32.xlu1 %v7519_v53, %s9083_s24  ;;  %v1001_v18 = vpop.permute.xlu0 %1000  ;;  %v2080_v53 = vpop.f32.mrf.mxu0  ;;  %s5785_s24 = smov 96  }
 0x2f3   : > { %1676 = vrot.lane.b32.xlu2 %v1613_v20, %s9087_s29  ;;  %1071 = vst.msk [vmem:[#allocation3 + $0xd0] sm:$0xff] %vm1044_vm6, %v1001_v18  ;;  %v2208_v31 = vrot.slane %v2080_v53, 2  ;;  %v2209_v2 = vrot.slane %v2080_v53, 4  ;;  %v2210_v27 = vrot.slane %v2080_v53, 6 }
 0x2f4   : > { %v1671_v48 = vpop.permute.xlu1 %1670  ;;  %v1902_v0 = vld [vmem:[#allocation3 + $0xc8] sm:$0xff] }
 0x2f5   : > { %1739 = vst.msk [vmem:[#allocation3 + $0xe0] sm:$0xff] %vm1710_vm11, %v1671_v48  ;;  %5555 = vmatmul.msk.f32.gmra.mxu1 %vm9223_vm12, %v1902_v0  ;;  %v1273_v13 = vpop.permute.xlu2 %1272  ;;  %vm9233_vm12 = vmmov %vm9231_vm0 }
 0x2f6   : > { %1340 = vst.msk [vmem:[#allocation3 + $0xe8] sm:$0xff] %vm1310_vm8, %v1273_v13  ;;  %v2801_v21 = vsel %vm9233_vm12, %v2080_v53, -inf  ;;  %vm9241_vm12 = vmmov %vm9231_vm0 }
 0x2f7   : > { %v2802_v47 = vrot.slane %v2801_v21, 4 }
 0x2f8   : > { %1810 = vrot.lane.b32.xlu0 %v1747_v57, %s9127_s30 }
 0x2f9   : > { %v2803_v13 = vmax.f32 %v2801_v21, %v2802_v47 }
 0x2fa   : > { %1541 = vrot.lane.b32.xlu1 %v575_v38, %s9090_s15  ;;  %v1122_v16 = vpop.permute.xlu0 %1121  ;;  %v7815_v49 = vpop.f32.mrf.mxu0 }
 0x2fb   : > { %4042 = vrot.lane.b32.xlu2 %v9224_v19, %s9127_s30  ;;  %1197 = vst.msk [vmem:[#allocation3 + $0xa8] sm:$0xff] %vm9225_vm14, %v1122_v16  ;;  %vm9234_vm14 = vmmov %vm9231_vm0  ;;  %v2211_v16 = vrot.slane %v7815_v49, 2  ;;  %v2804_v34 = vrot.slane %v2803_v13, 2 }
 0x2fc   : > { %v1805_v24 = vpop.permute.xlu1 %1804  ;;  %v2808_v4 = vsel %vm9234_vm14, %v2208_v31, -inf  ;;  %vm9242_vm14 = vmmov %vm9231_vm0 }
 0x2fd   : > { %1873 = vst.msk [vmem:[#allocation3 + $0xe0] sm:$0xff] %vm9226_vm4, %v1805_v24  ;;  %v1407_v63 = vpop.permute.xlu2 %1406  ;;  %vm9235_vm4 = vmmov %vm9231_vm0  ;;  %v2809_v22 = vrot.slane %v2808_v4, 4  ;;  %v2212_v24 = vrot.slane %v7815_v49, 4 }
 0x2fe   : > { %1474 = vst.msk [vmem:[#allocation3 + $0xe8] sm:$0xff] %vm1444_vm9, %v1407_v63  ;;  %v2815_v42 = vsel %vm9235_vm4, %v2209_v2, -inf  ;;  %vm9243_vm4 = vmmov %vm9231_vm0 }
 0x2ff   : > { %v2816_v11 = vrot.slane %v2815_v42, 4  ;;  %v2810_v18 = vmax.f32 %v2808_v4, %v2809_v22 }
 0x300   : > { %4078 = vrot.lane.b32.xlu0 %v9228_v45, %s5785_s24 }
 0x301   : > { %v2817_v57 = vmax.f32 %v2815_v42, %v2816_v11 }
 0x302   : > { %4009 = vrot.lane.b32.xlu1 %v3900_v12, %s9086_s22  ;;  %v1257_v54 = vpop.permute.xlu0 %1256 }
 0x303   : > { %3919 = vrot.lane.b32.xlu2 %v3897_v36, %s9127_s30  ;;  %1332 = vst.msk [vmem:[#allocation3 + $0xa8] sm:$0xff] %vm1310_vm8, %v1257_v54 }
 0x304   : > { %v1132_v26 = vpop.permute.xlu1 %1131  ;;  %v1905_v44 = vld [vmem:[#allocation3 + $0xe0] sm:$0xff] }
 0x305   : > { %1202 = vst.msk [vmem:[#allocation3 + $0xd0] sm:$0xff] %vm9229_vm1, %v1132_v26  ;;  %5558 = vmatmul.msk.f32.vlgmr.msra.gmra.mxu2 %vm9230_vm13, %v1905_v44  ;;  %v1538_v59 = vpop.permute.xlu2 %1537  ;;  %vm9236_vm1 = vmmov %vm9231_vm0  ;;  %v2836_v44 = vsel %vm9241_vm12, %v2211_v16, -inf }
 0x306   : > { %1605 = vst.msk [vmem:[#allocation3 + $0xe8] sm:$0xff] %vm1575_vm10, %v1538_v59  ;;  %v2822_v61 = vsel %vm9236_vm1, %v2210_v27, -inf  ;;  %vm9238_vm13 = vmmov %vm9231_vm0  ;;  %v2843_v59 = vsel %vm9242_vm14, %v2212_v24, -inf  ;;  %vm9244_vm1 = vcmask 589312  }
 0x307   : > { %v2823_v14 = vrot.slane %v2822_v61, 4  ;;  %vm9248_vm12 = vmmov %vm9243_vm4 }
 0x308   : > { %3953 = vrot.lane.b32.xlu0 %v9227_v39, %s5785_s24  ;;  %v2811_v39 = vrot.slane %v2810_v18, 2  ;;  %vm9249_vm14 = vmmov %vm9243_vm4 }
 0x309   : > { %v2824_v60 = vmax.f32 %v2822_v61, %v2823_v14 }
 0x30a   : > { %3862 = vrot.lane.b32.xlu1 %v3840_v9, %s9086_s22  ;;  %v2086_v58 = vpop.f32.mrf.mxu0  ;;  %v1391_v51 = vpop.permute.xlu0 %1390 }
 0x30b   : > { %v2214_v5 = vrot.slane %v2086_v58, 2  ;;  %v2215_v1 = vrot.slane %v2086_v58, 4  ;;  %4044 = vrot.lane.b32.xlu2 %v7477_v8, %s9127_s30  ;;  %1466 = vst.msk [vmem:[#allocation3 + $0xa8] sm:$0xff] %vm1444_vm9, %v1391_v51  ;;  %v2216_v43 = vrot.slane %v2086_v58, 6  ;;  %v2857_v41 = vsel %vm9238_vm13, %v2086_v58, -inf }
 0x30c   : > { %v1267_v28 = vpop.permute.xlu1 %1266  ;;  %v2858_v48 = vrot.slane %v2857_v41, 4  ;;  %v2825_v36 = vrot.slane %v2824_v60, 2  ;;  %v2812_v58 = vmax.f32 %v2810_v18, %v2811_v39  ;;  %vm9245_vm13 = vcmask 588800  }
 0x30d   : > { %1337 = vst.msk [vmem:[#allocation3 + $0xd0] sm:$0xff] %vm1310_vm8, %v1267_v28  ;;  %v793_v38 = vpop.permute.xlu2 %792  ;;  %v2864_v35 = vsel %vm9231_vm0, %v2214_v5, -inf  ;;  %v2871_v15 = vsel %vm9232_vm7, %v2215_v1, -inf  ;;  %v2878_v33 = vsel %vm9231_vm0, %v2216_v43, -inf  ;;  %vm9240_vm7 = vmmov %vm9231_vm0  ;;  %v2805_v1 = vmax.f32 %v2803_v13, %v2804_v34 }
 0x30e   : > { %862 = vst.msk [vmem:[#allocation3 + $0xd8] sm:$0xff] %vm834_vm5, %v793_v38  ;;  %v2865_v3 = vrot.slane %v2864_v35, 4  ;;  %v2872_v23 = vrot.slane %v2871_v15, 4  ;;  %v2879_v0 = vrot.slane %v2878_v33, 4  ;;  %v2859_v29 = vmax.f32 %v2857_v41, %v2858_v48  ;;  %vm9246_vm0 = vmmov %vm9244_vm1 }
 0x30f   : > { %v2829_v26 = vsel %vm9240_vm7, %v7815_v49, -inf  ;;  %v2826_v28 = vmax.f32 %v2824_v60, %v2825_v36  ;;  %v2837_v38 = vrot.slane %v2836_v44, 4  ;;  %v2813_v4 = vrot.slane %v2812_v58, 1  ;;  %vm9247_vm7 = vmmov %vm9246_vm0 }
 0x310   : > { %4080 = vrot.lane.b32.xlu0 %v7500_v7, %s5785_s24  ;;  %v2866_v40 = vmax.f32 %v2864_v35, %v2865_v3  ;;  %v2873_v30 = vmax.f32 %v2871_v15, %v2872_v23  ;;  %v2880_v6 = vmax.f32 %v2878_v33, %v2879_v0  ;;  %v2860_v51 = vrot.slane %v2859_v29, 2 }
 0x311   : > { %v2830_v27 = vrot.slane %v2829_v26, 4  ;;  %v2844_v35 = vrot.slane %v2843_v59, 4  ;;  %v2806_v3 = vrot.slane %v2805_v1, 1  ;;  %v2838_v11 = vmax.f32 %v2836_v44, %v2837_v38 }
 0x312   : > { %4011 = vrot.lane.b32.xlu1 %v9237_v32, %s9086_s22  ;;  %v1522_v50 = vpop.permute.xlu0 %1521  ;;  %v2867_v53 = vrot.slane %v2866_v40, 2  ;;  %v2874_v62 = vrot.slane %v2873_v30, 2  ;;  %v2881_v5 = vrot.slane %v2880_v6, 2  ;;  %v2861_v42 = vmax.f32 %v2859_v29, %v2860_v51 }
 0x313   : > { %3921 = vrot.lane.b32.xlu2 %v3900_v12, %s9127_s30  ;;  %1597 = vst.msk [vmem:[#allocation3 + $0xa8] sm:$0xff] %vm1575_vm10, %v1522_v50  ;;  %v2213_v12 = vrot.slane %v7815_v49, 6  ;;  %v2827_v50 = vrot.slane %v2826_v28, 1  ;;  %v2831_v22 = vmax.f32 %v2829_v26, %v2830_v27  ;;  %v2845_v14 = vmax.f32 %v2843_v59, %v2844_v35 }
 0x314   : > { %v1401_v52 = vpop.permute.xlu1 %1400  ;;  %v2868_v46 = vmax.f32 %v2866_v40, %v2867_v53  ;;  %v2875_v9 = vmax.f32 %v2873_v30, %v2874_v62  ;;  %v2882_v61 = vmax.f32 %v2880_v6, %v2881_v5  ;;  %v2814_v40 = vmax.f32 %v2812_v58, %v2813_v4 }
 0x315   : > { %1471 = vst.msk [vmem:[#allocation3 + $0xd0] sm:$0xff] %vm1444_vm9, %v1401_v52  ;;  %v7848_v20 = vpop.permute.xlu2 %1806  ;;  %v2850_v2 = vsel %vm9243_vm4, %v2213_v12, -inf  ;;  %v2862_v18 = vrot.slane %v2861_v42, 1  ;;  %v2828_v13 = vmax.f32 %v2826_v28, %v2827_v50  ;;  %v2839_v60 = vrot.slane %v2838_v11, 2 }
 0x316   : > { %v2869_v49 = vrot.slane %v2868_v46, 1  ;;  %v2876_v15 = vrot.slane %v2875_v9, 1  ;;  %v2851_v43 = vrot.slane %v2850_v2, 4  ;;  %v2883_v48 = vrot.slane %v2882_v61, 1 }
 0x317   : > { %v2846_v53 = vrot.slane %v2845_v14, 2  ;;  %v2863_v29 = vmax.f32 %v2861_v42, %v2862_v18 }
 0x318   : > { %3955 = vrot.lane.b32.xlu0 %v9224_v19, %s5785_s24  ;;  %v2818_v19 = vrot.slane %v2817_v57, 2  ;;  %v2870_v41 = vmax.f32 %v2868_v46, %v2869_v49  ;;  %v2877_v52 = vmax.f32 %v2875_v9, %v2876_v15  ;;  %v2852_v30 = vmax.f32 %v2850_v2, %v2851_v43  ;;  %v7903_v2 = vld [vmem:[%s9019_s2] ss:$0 sm:$0xff] }
 0x319   : > { %v2884_v6 = vmax.f32 %v2882_v61, %v2883_v48  ;;  %v2847_v46 = vmax.f32 %v2845_v14, %v2846_v53 }
 0x31a   : > { %3864 = vrot.lane.b32.xlu1 %v9239_v10, %s9086_s22  ;;  %v1657_v63 = vpop.permute.xlu0 %1656  ;;  %v2819_v31 = vmax.f32 %v2817_v57, %v2818_v19  ;;  %v2832_v57 = vrot.slane %v2831_v22, 2  ;;  %v3350_v16 = vsel %vm3249_vm15, %v2870_v41, -inf  ;;  %v3353_v24 = vsel %vm3249_vm15, %v2877_v52, -inf }
 0x31b   : > { %4046 = vrot.lane.b32.xlu2 %v7724_v25, %s9127_s30  ;;  %1732 = vst.msk [vmem:[#allocation3 + $0xa8] sm:$0xff] %vm1710_vm11, %v1657_v63  ;;  %v3349_v63 = vsel %vm3249_vm15, %v2814_v40, -inf  ;;  %v2853_v39 = vrot.slane %v2852_v30, 2  ;;  %v7890_v19 = vsel %vm3249_vm15, %v2828_v13, -inf  ;;  %v3356_v28 = vsel %vm3249_vm15, %v2884_v6, -inf }
 0x31c   : > { %v1532_v54 = vpop.permute.xlu1 %1531  ;;  %v2820_v23 = vrot.slane %v2819_v31, 1  ;;  %v3351_v36 = vmax.f32 %v3349_v63, %v3350_v16  ;;  %v2833_v12 = vmax.f32 %v2831_v22, %v2832_v57  ;;  %v2848_v52 = vrot.slane %v2847_v46, 1 }
 0x31d   : > { %1602 = vst.msk [vmem:[#allocation3 + $0xd0] sm:$0xff] %vm1575_vm10, %v1532_v54  ;;  %v7861_v17 = vpop.permute.xlu2 %1008  ;;  %v2840_v54 = vmax.f32 %v2838_v11, %v2839_v60 }
 0x31e   : > { %v2821_v0 = vmax.f32 %v2819_v31, %v2820_v23  ;;  %v3347_v31 = vsel %vm3249_vm15, %v2863_v29, -inf  ;;  %v3479_v27 = vadd.f32 %v7903_v2, %v3351_v36  ;;  %v2834_v42 = vrot.slane %v2833_v12, 1 }
 0x31f   : > { %v2841_v61 = vrot.slane %v2840_v54, 1  ;;  %v2849_v6 = vmax.f32 %v2847_v46, %v2848_v52 }
 0x320   : > { %4082 = vrot.lane.b32.xlu0 %v7737_v37, %s5785_s24  ;;  %v3352_v34 = vsel %vm3249_vm15, %v2821_v0, -inf  ;;  %v3543_v18 = vmax.f32 %v3479_v27, 0.0  ;;  %v2835_v16 = vmax.f32 %v2833_v12, %v2834_v42 }
 0x321   : > { %v3354_v26 = vmax.f32 %v3352_v34, %v3353_v24  ;;  %v2842_v24 = vmax.f32 %v2840_v54, %v2841_v61 }
 0x322   : > { %4013 = vrot.lane.b32.xlu1 %v7493_v55, %s9086_s22  ;;  %v1791_v21 = vpop.permute.xlu0 %1790 }
 0x323   : > { %3923 = vrot.lane.b32.xlu2 %v9237_v32, %s9127_s30  ;;  %1866 = vst.msk [vmem:[#allocation3 + $0xa8] sm:$0xff] %vm9244_vm1, %v1791_v21  ;;  %v2807_v32 = vmax.f32 %v2805_v1, %v2806_v3  ;;  %v2854_v1 = vmax.f32 %v2852_v30, %v2853_v39  ;;  %vm9250_vm1 = vmmov %vm9243_vm4  ;;  %v3480_v23 = vadd.f32 %v7903_v2, %v3354_v26  ;;  %v3361_v12 = vsel %vm3249_vm15, %v2842_v24, -inf }
 0x324   : > { %v1667_v47 = vpop.permute.xlu1 %1666  ;;  %v3357_v30 = vmax.f32 %v7890_v19, %v3356_v28  ;;  %v3721_v19 = vrot.slane %v3543_v18, 7  ;;  %v3364_v28 = vsel %vm3249_vm15, %v2849_v6, -inf  ;;  %v4167_v6 = vld [vmem:[%s9020_s3 + $0x70] sm:$0xff] }
 0x325   : > { %1737 = vst.msk [vmem:[#allocation3 + $0xd0] sm:$0xff] %vm1710_vm11, %v1667_v47  ;;  %v7876_v33 = vpop.permute.xlu2 %1402  ;;  %v2855_v40 = vrot.slane %v2854_v1, 1 }
 0x326   : > { %v3481_v34 = vadd.f32 %v7903_v2, %v3357_v30 }
 0x328   : > { %3957 = vrot.lane.b32.xlu0 %v7477_v8, %s5785_s24  ;;  %v3346_v8 = vsel %vm3249_vm15, %v2807_v32, -inf }
 0x329   : > { %v3348_v3 = vmax.f32 %v3346_v8, %v3347_v31  ;;  %v2856_v8 = vmax.f32 %v2854_v1, %v2855_v40 }
 0x32a   : > { %3866 = vrot.lane.b32.xlu1 %v9228_v45, %s9086_s22  ;;  %v1673_v62 = vpop.permute.xlu0 %1672  ;;  %v1898_v10 = vld [vmem:[#allocation3 + $0xa8] sm:$0xff] }
 0x32b   : > { %1740 = vst.msk [vmem:[#allocation3 + $0xe8] sm:$0xff] %vm1710_vm11, %v1673_v62  ;;  %5551 = vmatmul.msk.f32.gmra.mxu0 %vm9245_vm13, %v1898_v10  ;;  %v3478_v62 = vadd.f32 %v7903_v2, %v3348_v3  ;;  %v3544_v10 = vmax.f32 %v3480_v23, 0.0 }
 0x32c   : > { %v1801_v45 = vpop.permute.xlu1 %1800  ;;  %1874 = vst.msk [vmem:[#allocation3 + $0xe8] sm:$0xff] %vm9246_vm0, %v7848_v20  ;;  %vm9251_vm0 = vmmov %vm9245_vm13 }
 0x32d   : > { %1871 = vst.msk [vmem:[#allocation3 + $0xd0] sm:$0xff] %vm9247_vm7, %v1801_v45  ;;  %v2089_v44 = vpop.f32.mrf.mxu0  ;;  %v7895_v59 = vpop.permute.xlu2 %1408  ;;  %v3542_v54 = vmax.f32 %v3478_v62, 0.0  ;;  %vm9252_vm7 = vcmask 1041409  }
 0x32e   : > { %v2217_v9 = vrot.slane %v2089_v44, 2  ;;  %v2218_v58 = vrot.slane %v2089_v44, 4  ;;  %v2219_v51 = vrot.slane %v2089_v44, 6  ;;  %v2885_v5 = vsel %vm9248_vm12, %v2089_v44, -inf }
 0x32f   : > { %v2886_v20 = vrot.slane %v2885_v5, 4  ;;  %v3722_v27 = vsel %vm9252_vm7, %v3721_v19, %v3542_v54  ;;  %vm9253_vm12 = vcmask 261312   ;;  %vm9260_vm7 = vcmask 1047559  }
 0x330   : > { %v2892_v38 = vsel %vm9249_vm14, %v2217_v9, -inf  ;;  %v2899_v35 = vsel %vm9243_vm4, %v2218_v58, -inf  ;;  %v2906_v49 = vsel %vm9250_vm1, %v2219_v51, -inf  ;;  %v3358_v9 = vsel %vm3249_vm15, %v2835_v16, -inf  ;;  %vm9257_vm1 = vmmov %vm9253_vm12 }
 0x331   : > { %v2887_v15 = vmax.f32 %v2885_v5, %v2886_v20  ;;  %v2893_v21 = vrot.slane %v2892_v38, 4  ;;  %v2900_v4 = vrot.slane %v2899_v35, 4  ;;  %v2907_v43 = vrot.slane %v2906_v49, 4 }
 0x332   : > { %4015 = vrot.lane.b32.xlu1 %v7734_v56, %s9086_s22  ;;  %v799_v50 = vpop.permute.xlu0 %798  ;;  %v3723_v58 = vrot.slane %v3544_v10, 6  ;;  %v3367_v20 = vsel %vm3249_vm15, %v2856_v8, -inf  ;;  %vm9254_vm14 = vcmask 1042434   ;;  %vm9256_vm4 = vcmask 1044484   ;;  %v4181_v10 = vld [vmem:[%s9020_s3 + $0xe0] sm:$0xff]  ;;  %v4179_v8 = vld [vmem:[%s9020_s3 + $0xd0] sm:$0xff] }
 0x333   : > { %v2888_v47 = vrot.slane %v2887_v15, 2  ;;  %v2894_v22 = vmax.f32 %v2892_v38, %v2893_v21  ;;  %v2901_v11 = vmax.f32 %v2899_v35, %v2900_v4  ;;  %v2908_v14 = vmax.f32 %v2906_v49, %v2907_v43  ;;  %865 = vst.msk [vmem:[#allocation3 + $0xf0] sm:$0xff] %vm834_vm5, %v799_v50  ;;  %v1906_v41 = vld [vmem:[#allocation3 + $0xe8] sm:$0xff]  ;;  %v4184_v43 = vld [vmem:[%s9020_s3 + $0xf8] sm:$0xff]  ;;  %v4183_v50 = vld [vmem:[%s9020_s3 + $0xf0] sm:$0xff] }
 0x334   : > { %v1003_v48 = vpop.permute.xlu1 %1002  ;;  %v1903_v32 = vld [vmem:[#allocation3 + $0xd0] sm:$0xff]  ;;  %1075 = vst.msk [vmem:[#allocation3 + $0xf0] sm:$0xff] %vm1044_vm6, %v7861_v17  ;;  %5559 = vmatmul.msk.f32.gmra.mxu2 %vm9245_vm13, %v1906_v41  ;;  %v3545_v49 = vmax.f32 %v3481_v34, 0.0  ;;  %vm9258_vm13 = vcmask 1045509  }
 0x335   : > { %v2889_v0 = vmax.f32 %v2887_v15, %v2888_v47  ;;  %v2895_v13 = vrot.slane %v2894_v22, 2  ;;  %v2902_v57 = vrot.slane %v2901_v11, 2  ;;  %v2909_v60 = vrot.slane %v2908_v14, 2  ;;  %1072 = vst.msk [vmem:[#allocation3 + $0xd8] sm:$0xff] %vm1044_vm6, %v1003_v48  ;;  %5556 = vmatmul.msk.f32.gmra.mxu1 %vm9251_vm0, %v1903_v32  ;;  %v7919_v53 = vpop.permute.xlu2 %1802  ;;  %4254 = vmatpush.msrb.mxu2 %v4184_v43  ;;  %v4173_v43 = vld [vmem:[%s9020_s3 + $0xa0] sm:$0xff] }
 0x336   : > { %v3724_v47 = vsel %vm9254_vm14, %v3723_v58, %v3722_v27  ;;  %v3725_v52 = vrot.slane %v3545_v49, 5  ;;  %vm9259_vm0 = vcmask 1046534   ;;  %v4165_v58 = vld [vmem:[%s9020_s3 + $0x60] sm:$0xff]  ;;  %v4163_v27 = vld [vmem:[%s9020_s3 + $0x50] sm:$0xff]  ;;  %vm9262_vm14 = vcmask 588800   ;;  %v4162_v49 = vld [vmem:[%s9020_s3 + $0x48] sm:$0xff] }
 0x337   : > { %v2890_v63 = vrot.slane %v2889_v0, 1  ;;  %v2896_v39 = vmax.f32 %v2894_v22, %v2895_v13  ;;  %v2903_v17 = vmax.f32 %v2901_v11, %v2902_v57  ;;  %v2910_v29 = vmax.f32 %v2908_v14, %v2909_v60  ;;  %4255 = vmatpush.msrb.mxu2 %v4183_v50  ;;  %v4170_v50 = vld [vmem:[%s9020_s3 + $0x88] sm:$0xff] }
 0x339   : > { %v2891_v36 = vmax.f32 %v2889_v0, %v2890_v63  ;;  %v2897_v45 = vrot.slane %v2896_v39, 1  ;;  %v2904_v26 = vrot.slane %v2903_v17, 1  ;;  %v2911_v44 = vrot.slane %v2910_v29, 1 }
 0x33a   : > { %3868 = vrot.lane.b32.xlu1 %v7500_v7, %s9086_s22  ;;  %v1269_v51 = vpop.permute.xlu0 %1268 }
 0x33b   : > { %v2898_v5 = vmax.f32 %v2896_v39, %v2897_v45  ;;  %v2905_v46 = vmax.f32 %v2903_v17, %v2904_v26  ;;  %v2912_v1 = vmax.f32 %v2910_v29, %v2911_v44  ;;  %v3359_v31 = vsel %vm3249_vm15, %v2891_v36, -inf  ;;  %v4168_v39 = vld [vmem:[%s9020_s3 + $0x78] sm:$0xff]  ;;  %v4166_v45 = vld [vmem:[%s9020_s3 + $0x68] sm:$0xff] }
 0x33c   : > { %v3360_v38 = vmax.f32 %v3358_v9, %v3359_v31  ;;  %v1134_v35 = vpop.permute.xlu1 %1133  ;;  %4213 = vmatpush.msrb.mxu1 %v4168_v39  ;;  %v4180_v29 = vld [vmem:[%s9020_s3 + $0xd8] sm:$0xff] }
 0x33d   : > { %v3362_v15 = vsel %vm3249_vm15, %v2898_v5, -inf  ;;  %v3365_v21 = vsel %vm3249_vm15, %v2905_v46, -inf  ;;  %v3368_v7 = vsel %vm3249_vm15, %v2912_v1, -inf  ;;  %1203 = vst.msk [vmem:[#allocation3 + $0xd8] sm:$0xff] %vm9253_vm12, %v1134_v35  ;;  %v801_v4 = vpop.permute.xlu2 %800  ;;  %vm9261_vm12 = vcmask 589312   ;;  %v4164_v31 = vld [vmem:[%s9020_s3 + $0x58] sm:$0xff] }
 0x33e   : > { %v3363_v42 = vmax.f32 %v3361_v12, %v3362_v15  ;;  %v3366_v61 = vmax.f32 %v3364_v28, %v3365_v21  ;;  %v3369_v3 = vmax.f32 %v3367_v20, %v3368_v7  ;;  %v3482_v23 = vadd.f32 %v7903_v2, %v3360_v38  ;;  %866 = vst.msk [vmem:[#allocation3 + $0xf8] sm:$0xff] %vm834_vm5, %v801_v4  ;;  %v4176_v28 = vld [vmem:[%s9020_s3 + $0xb8] sm:$0xff]  ;;  %v4175_v38 = vld [vmem:[%s9020_s3 + $0xb0] sm:$0xff]  ;;  %v4174_v15 = vld [vmem:[%s9020_s3 + $0xa8] sm:$0xff] }
 0x33f   : > { %1338 = vst.msk [vmem:[#allocation3 + $0xd8] sm:$0xff] %vm1310_vm8, %v1269_v51  ;;  %vm9255_vm5 = vcmask 1043459   ;;  %4214 = vmatpush.msrb.mxu1 %v4167_v6  ;;  %v4177_v51 = vld [vmem:[%s9020_s3 + $0xc0] sm:$0xff] }
 0x340   : > { %v3483_v22 = vadd.f32 %v7903_v2, %v3363_v42  ;;  %v3484_v11 = vadd.f32 %v7903_v2, %v3366_v61  ;;  %v3485_v14 = vadd.f32 %v7903_v2, %v3369_v3  ;;  %v3546_v41 = vmax.f32 %v3482_v23, 0.0  ;;  %1472 = vst.msk [vmem:[#allocation3 + $0xd8] sm:$0xff] %vm1444_vm9, %v7876_v33  ;;  %v4182_v33 = vld [vmem:[%s9020_s3 + $0xe8] sm:$0xff]  ;;  %v4161_v7 = vld [vmem:[%s9020_s3 + $0x40] sm:$0xff]  ;;  %v4172_v61 = vld [vmem:[%s9020_s3 + $0x98] sm:$0xff] }
 0x341   : > { %v3726_v0 = vsel %vm9255_vm5, %v3725_v52, %v3724_v47  ;;  %4256 = vmatpush.msrb.mxu2 %v4182_v33  ;;  %4215 = vmatpush.msrb.mxu1 %v4166_v45  ;;  %vm9263_vm5 = vmmov %vm9261_vm12  ;;  %v4171_v3 = vld [vmem:[%s9020_s3 + $0x90] sm:$0xff]  ;;  %v4156_v52 = vld [vmem:[%s9020_s3 + $0x18] sm:$0xff] }
 0x342   : > { %v3547_v40 = vmax.f32 %v3483_v22, 0.0  ;;  %v3548_v30 = vmax.f32 %v3484_v11, 0.0  ;;  %v3549_v18 = vmax.f32 %v3485_v14, 0.0  ;;  %v3727_v48 = vrot.slane %v3546_v41, 4  ;;  %v1275_v32 = vpop.permute.xlu0 %1274  ;;  %v4157_v22 = vld [vmem:[%s9020_s3 + $0x20] sm:$0xff] }
 0x343   : > { %4257 = vmatpush.msrb.mxu2 %v4181_v10  ;;  %4216 = vmatpush.msrb.mxu1 %v4165_v58  ;;  %v4169_v11 = vld [vmem:[%s9020_s3 + $0x80] sm:$0xff] }
 0x344   : > { %v3728_v13 = vsel %vm9256_vm4, %v3727_v48, %v3726_v0  ;;  %v3729_v57 = vrot.slane %v3547_v40, 3  ;;  %v3731_v60 = vrot.slane %v3548_v30, 2  ;;  %v1140_v16 = vpop.permute.xlu1 %1139  ;;  %v3733_v62 = vrot.slane %v3549_v18, 1  ;;  %vm9265_vm4 = vmmov %vm9262_vm14  ;;  %v4155_v40 = vld [vmem:[%s9020_s3 + $0x10] sm:$0xff]  ;;  %v4154_v30 = vld [vmem:[%s9020_s3 + $0x8] sm:$0xff] }
 0x345   : > { %1206 = vst.msk [vmem:[#allocation3 + $0xf0] sm:$0xff] %vm9257_vm1, %v1140_v16  ;;  %4258 = vmatpush.msrb.mxu2 %v4180_v29  ;;  %4217 = vmatpush.msrb.mxu1 %v4164_v31  ;;  %v1277_v35 = vpop.permute.xlu2 %1276  ;;  %v4153_v48 = vld [vmem:[%s9020_s3] sm:$0xff] }
 0x346   : > { %v3730_v24 = vsel %vm9258_vm13, %v3729_v57, %v3728_v13  ;;  %1341 = vst.msk [vmem:[#allocation3 + $0xf0] sm:$0xff] %vm1310_vm8, %v1275_v32  ;;  %vm3977_vm13 = vcmask 1048320  }
 0x347   : > { %v3732_v63 = vsel %vm9259_vm0, %v3731_v60, %v3730_v24  ;;  %1475 = vst.msk [vmem:[#allocation3 + $0xf0] sm:$0xff] %vm1444_vm9, %v7895_v59  ;;  %4259 = vmatpush.msrb.mxu2 %v4179_v8  ;;  %4218 = vmatpush.msrb.mxu1 %v4163_v27  ;;  %vm9267_vm0 = vmmov %vm9265_vm4  ;;  %v2098_v24 = vpop.f32.mrf.mxu1 }
 0x348   : > { %v3734_v17 = vsel %vm9260_vm7, %v3733_v62, %v3732_v63  ;;  %v2226_v39 = vrot.slane %v2098_v24, 2  ;;  %v2227_v29 = vrot.slane %v2098_v24, 4  ;;  %v2228_v6 = vrot.slane %v2098_v24, 6 }
 0x349   : > { %3790 = vst.msk [vmem:[#allocation4 + $0x51] sm:$0xff] %vm3249_vm15, %v3734_v17  ;;  %4219 = vmatpush.msrb.mxu1 %v4162_v49 }
 0x34a   : > { %v1669_v59 = vpop.permute.xlu0 %1668 }
 0x34b   : > { %4220 = vmatpush.msrb.mxu1 %v4161_v7 }
 0x34c   : > { %v1534_v34 = vpop.permute.xlu1 %1533 }
 0x34d   : > { %1603 = vst.msk [vmem:[#allocation3 + $0xd8] sm:$0xff] %vm1575_vm10, %v1534_v34  ;;  %v1677_v23 = vpop.permute.xlu2 %1676 }
 0x34e   : > { %1738 = vst.msk [vmem:[#allocation3 + $0xd8] sm:$0xff] %vm1710_vm11, %v1669_v59 }
 0x34f   : > { %1872 = vst.msk [vmem:[#allocation3 + $0xd8] sm:$0xff] %vm9261_vm12, %v7919_v53  ;;  %v4178_v53 = vld [vmem:[%s9020_s3 + $0xc8] sm:$0xff]  ;;  %v2101_v17 = vpop.f32.mrf.mxu1 }
 0x350   : > { %v7982_v19 = vld [vmem:[#allocation4 + $0x50] sm:$0xff]  ;;  %v3805_v36 = vld [vmem:[#allocation4 + $0x58] sm:$0x3]  ;;  %4260 = vmatpush.msrb.mxu2 %v4178_v53  ;;  %v2229_v34 = vrot.slane %v2101_v17, 2 }
 0x351   : > { %4048 = vrot.lane.b32.xlu2 %v7982_v19, %s9127_s30  ;;  %3819 = vst.msk [vmem:[#allocation5 + $0x78] sm:$0xff] %vm3249_vm15, %v7982_v19  ;;  %v3910_v26 = vrot.slane %v7982_v19, 2  ;;  %v3911_v44 = vrot.slane %v3805_v36, 2  ;;  %v3853_v9 = vrot.slane %v7982_v19, 1  ;;  %v3854_v12 = vrot.slane %v3805_v36, 1 }
 0x352   : > { %v1675_v54 = vpop.permute.xlu0 %1674  ;;  %4261 = vmatpush.msrb.mxu2 %v4177_v51 }
 0x353   : > { %v8003_v5 = vsel %vm867_vm3, %v3910_v26, %v3911_v44  ;;  %v8006_v46 = vsel %vm657_vm2, %v3853_v9, %v3854_v12  ;;  %v2230_v44 = vrot.slane %v2101_v17, 4 }
 0x354   : > { %v1540_v1 = vpop.permute.xlu1 %1539  ;;  %4017 = vrot.lane.b32.xlu1 %v8003_v5, %s9086_s22  ;;  %4124 = vst.msk [vmem:[#allocation5 + $0x58] sm:$0xff] %vm3249_vm15, %v8003_v5  ;;  %4084 = vrot.lane.b32.xlu0 %v8006_v46, %s5785_s24 }
 0x355   : > { %1606 = vst.msk [vmem:[#allocation3 + $0xf0] sm:$0xff] %vm1575_vm10, %v1540_v1  ;;  %4262 = vmatpush.msrb.mxu2 %v4176_v28  ;;  %v4043_v32 = vpop.permute.xlu2 %4042 }
 0x356   : > { %4002 = vst.msk [vmem:[#allocation5 + $0x68] sm:$0xff] %vm3249_vm15, %v8006_v46  ;;  %v1904_v20 = vld [vmem:[#allocation3 + $0xd8] sm:$0xff] }
 0x357   : > { %1741 = vst.msk [vmem:[#allocation3 + $0xf0] sm:$0xff] %vm1710_vm11, %v1675_v54  ;;  %5557 = vmatmul.msk.f32.gmra.mxu1 %vm9262_vm14, %v1904_v20  ;;  %4263 = vmatpush.msrb.mxu2 %v4175_v38  ;;  %v2231_v54 = vrot.slane %v2101_v17, 6 }
 0x359   : > { %3925 = vrot.lane.b32.xlu2 %v7493_v55, %s9127_s30  ;;  %4264 = vmatpush.msrb.mxu2 %v4174_v15  ;;  %v4160_v55 = vld [vmem:[%s9020_s3 + $0x38] sm:$0xff] }
 0x35a   : > { %v1011_v21 = vpop.permute.xlu0 %1010  ;;  %4221 = vmatpush.msrb.mxu1 %v4160_v55 }
 0x35b   : > { %v4140_v4 = vld [vmem:[#allocation5 + $0x58] sm:$0xff]  ;;  %1076 = vst.msk [vmem:[#allocation3 + $0xf8] sm:$0xff] %vm1044_vm6, %v1011_v21  ;;  %4265 = vmatpush.msrb.mxu2 %v4173_v43  ;;  %vm9264_vm6 = vmmov %vm9257_vm1  ;;  %vm3943_vm1 = vcmask 785920  }
 0x35c   : > { %v1809_v42 = vpop.permute.xlu1 %1808  ;;  %3870 = vrot.lane.b32.xlu1 %v7737_v37, %s9086_s22  ;;  %5565 = vmatmul.msk.f32.gmra.mxu3 %vm3249_vm15, %v4140_v4  ;;  %v4159_v37 = vld [vmem:[%s9020_s3 + $0x30] sm:$0xff] }
 0x35d   : > { %1875 = vst.msk [vmem:[#allocation3 + $0xf0] sm:$0xff] %vm9263_vm5, %v1809_v42  ;;  %3959 = vrot.lane.b32.xlu0 %v7724_v25, %s5785_s24  ;;  %4266 = vmatpush.msrb.mxu2 %v4172_v61  ;;  %v4158_v25 = vld [vmem:[%s9020_s3 + $0x28] sm:$0xff]  ;;  %v3920_v60 = vpop.permute.xlu2 %3919 }
 0x35e   : > { %4222 = vmatpush.msrb.mxu1 %v4159_v37 }
 0x35f   : > { %4267 = vmatpush.msrb.mxu2 %v4171_v3 }
 0x360   : > { %4223 = vmatpush.msrb.mxu1 %v4158_v25 }
 0x361   : > { %4268 = vmatpush.msrb.mxu2 %v4170_v50 }
 0x362   : > { %v1411_v47 = vpop.permute.xlu0 %1410  ;;  %4224 = vmatpush.msrb.mxu1 %v4157_v22 }
 0x363   : > { %4269 = vmatpush.msrb.mxu2 %v4169_v11 }
 0x364   : > { %v1142_v14 = vpop.permute.xlu1 %1141  ;;  %v1907_v41 = vld [vmem:[#allocation3 + $0xf0] sm:$0xff]  ;;  %4225 = vmatpush.msrb.mxu1 %v4156_v52 }
 0x365   : > { %1207 = vst.msk [vmem:[#allocation3 + $0xf8] sm:$0xff] %vm9264_vm6, %v1142_v14  ;;  %5560 = vmatmul.msk.f32.gmra.mxu2 %vm9265_vm4, %v1907_v41  ;;  %v4045_v63 = vpop.permute.xlu2 %4044 }
 0x366   : > { %1342 = vst.msk [vmem:[#allocation3 + $0xf8] sm:$0xff] %vm1310_vm8, %v1277_v35  ;;  %4226 = vmatpush.msrb.mxu1 %v4155_v40  ;;  %vm9266_vm8 = vmmov %vm9263_vm5 }
 0x367   : > { %1476 = vst.msk [vmem:[#allocation3 + $0xf8] sm:$0xff] %vm1444_vm9, %v1411_v47  ;;  %vm3886_vm9 = vcmask 523520  }
 0x368   : > { %4227 = vmatpush.msrb.mxu1 %v4154_v30  ;;  %v2092_v59 = vpop.f32.mrf.mxu0 }
 0x369   : > { %v2220_v9 = vrot.slane %v2092_v59, 2  ;;  %v2221_v58 = vrot.slane %v2092_v59, 4  ;;  %v2222_v27 = vrot.slane %v2092_v59, 6 }
 0x36a   : > { %v1811_v18 = vpop.permute.xlu0 %1810  ;;  %4228 = vmatpush.msrb.mxu1 %v4153_v48 }
 0x36c   : > { %v1542_v0 = vpop.permute.xlu1 %1541 }
 0x36d   : > { %1607 = vst.msk [vmem:[#allocation3 + $0xf8] sm:$0xff] %vm1575_vm10, %v1542_v0  ;;  %vm9268_vm10 = vcmask 254976   ;;  %v3922_v21 = vpop.permute.xlu2 %3921  ;;  %v2104_v0 = vpop.f32.mrf.mxu1 }
 0x36e   : > { %1742 = vst.msk [vmem:[#allocation3 + $0xf8] sm:$0xff] %vm1710_vm11, %v1677_v23  ;;  %v2969_v45 = vsel %vm9268_vm10, %v2098_v24, -inf  ;;  %vm9269_vm11 = vmmov %vm9268_vm10 }
 0x36f   : > { %1876 = vst.msk [vmem:[#allocation3 + $0xf8] sm:$0xff] %vm9266_vm8, %v1811_v18  ;;  %v2976_v26 = vsel %vm9269_vm11, %v2226_v39, -inf  ;;  %vm9270_vm7 = vmmov %vm9268_vm10  ;;  %v2970_v31 = vrot.slane %v2969_v45, 4 }
 0x370   : > { %v2983_v12 = vsel %vm9270_vm7, %v2227_v29, -inf  ;;  %vm9271_vm12 = vmmov %vm9270_vm7  ;;  %v2977_v28 = vrot.slane %v2976_v26, 4  ;;  %v2232_v29 = vrot.slane %v2104_v0, 2 }
 0x371   : > { %v2990_v53 = vsel %vm9271_vm12, %v2228_v6, -inf  ;;  %vm9272_vm14 = vmmov %vm9270_vm7  ;;  %v2984_v38 = vrot.slane %v2983_v12, 4  ;;  %v2971_v50 = vmax.f32 %v2969_v45, %v2970_v31  ;;  %v2234_v45 = vrot.slane %v2104_v0, 6 }
 0x372   : > { %v4079_v13 = vpop.permute.xlu0 %4078  ;;  %v2997_v1 = vsel %vm9272_vm14, %v2101_v17, -inf  ;;  %vm9273_vm5 = vmmov %vm9270_vm7  ;;  %v2991_v35 = vrot.slane %v2990_v53, 4  ;;  %v2978_v14 = vmax.f32 %v2976_v26, %v2977_v28 }
 0x373   : > { %v3004_v20 = vsel %vm9273_vm5, %v2229_v34, -inf  ;;  %vm9274_vm6 = vmmov %vm9273_vm5  ;;  %v2998_v7 = vrot.slane %v2997_v1, 4  ;;  %v2985_v41 = vmax.f32 %v2983_v12, %v2984_v38 }
 0x374   : > { %v4010_v57 = vpop.permute.xlu1 %4009  ;;  %v3011_v49 = vsel %vm9274_vm6, %v2230_v44, -inf  ;;  %vm9275_vm4 = vmmov %vm9273_vm5  ;;  %v3005_v61 = vrot.slane %v3004_v20, 4  ;;  %v2992_v52 = vmax.f32 %v2990_v53, %v2991_v35 }
 0x375   : > { %4033 = vst.msk [vmem:[#allocation5 + $0x8] sm:$0xff] %vm3886_vm9, %v4010_v57  ;;  %v2920_v15 = vsel %vm9275_vm4, %v2220_v9, -inf  ;;  %vm9276_vm8 = vmmov %vm9275_vm4  ;;  %v3012_v37 = vrot.slane %v3011_v49, 4  ;;  %v2999_v40 = vmax.f32 %v2997_v1, %v2998_v7  ;;  %v2972_v57 = vrot.slane %v2971_v50, 2 }
 0x376   : > { %4066 = vst.msk [vmem:[#allocation5 + $0x8] sm:$0xff] %vm3943_vm1, %v4043_v32  ;;  %v1908_v16 = vld [vmem:[#allocation3 + $0xf8] sm:$0xff]  ;;  %v3018_v4 = vsel %vm9276_vm8, %v2231_v54, -inf  ;;  %v2921_v3 = vrot.slane %v2920_v15, 4  ;;  %v3006_v18 = vmax.f32 %v3004_v20, %v3005_v61 }
 0x377   : > { %4102 = vst.msk [vmem:[#allocation5 + $0x8] sm:$0xff] %vm3977_vm13, %v4079_v13  ;;  %5561 = vmatmul.msk.f32.gmra.mxu2 %vm9267_vm0, %v1908_v16  ;;  %vm9277_vm0 = vmmov %vm9275_vm4  ;;  %v3019_v47 = vrot.slane %v3018_v4, 4  ;;  %v3013_v32 = vmax.f32 %v3011_v49, %v3012_v37  ;;  %v2973_v9 = vmax.f32 %v2971_v50, %v2972_v57 }
 0x378   : > { %v2913_v43 = vsel %vm9277_vm0, %v2092_v59, -inf  ;;  %vm9278_vm10 = vmmov %vm9277_vm0  ;;  %v2922_v13 = vmax.f32 %v2920_v15, %v2921_v3  ;;  %v3007_v17 = vrot.slane %v3006_v18, 2 }
 0x379   : > { %v2927_v42 = vsel %vm9278_vm10, %v2221_v58, -inf  ;;  %vm9279_vm11 = vmmov %vm9277_vm0  ;;  %v2914_v22 = vrot.slane %v2913_v43, 4  ;;  %v3014_v34 = vrot.slane %v3013_v32, 2 }
 0x37a   : > { %v3954_v62 = vpop.permute.xlu0 %3953  ;;  %v2934_v25 = vsel %vm9279_vm11, %v2222_v27, -inf  ;;  %v2928_v11 = vrot.slane %v2927_v42, 4  ;;  %vm9280_vm7 = vmmov %vm9277_vm0  ;;  %v2923_v26 = vrot.slane %v2922_v13, 2  ;;  %v3008_v27 = vmax.f32 %v3006_v18, %v3007_v17 }
 0x37b   : > { %v2935_v48 = vrot.slane %v2934_v25, 4  ;;  %v2915_v16 = vmax.f32 %v2913_v43, %v2914_v22  ;;  %v3025_v6 = vsel %vm9280_vm7, %v2104_v0, -inf  ;;  %vm9281_vm12 = vmmov %vm9277_vm0  ;;  %v3015_v49 = vmax.f32 %v3013_v32, %v3014_v34 }
 0x37c   : > { %v3863_v33 = vpop.permute.xlu1 %3862  ;;  %v2929_v24 = vmax.f32 %v2927_v42, %v2928_v11  ;;  %v3026_v31 = vrot.slane %v3025_v6, 4  ;;  %v3032_v38 = vsel %vm9281_vm12, %v2232_v29, -inf  ;;  %vm9282_vm14 = vmmov %vm9277_vm0  ;;  %v2924_v7 = vmax.f32 %v2922_v13, %v2923_v26 }
 0x37d   : > { %3887 = vst.msk [vmem:[#allocation5] sm:$0xff] %vm3886_vm9, %v3863_v33  ;;  %v2986_v33 = vrot.slane %v2985_v41, 2  ;;  %v2936_v59 = vmax.f32 %v2934_v25, %v2935_v48  ;;  %v2916_v53 = vrot.slane %v2915_v16, 2  ;;  %vm9283_vm5 = vmmov %vm9277_vm0  ;;  %v3033_v25 = vrot.slane %v3032_v38, 4 }
 0x37e   : > { %3944 = vst.msk [vmem:[#allocation5] sm:$0xff] %vm3943_vm1, %v3920_v60  ;;  %v4130_v10 = vld [vmem:[#allocation5 + $0x8] sm:$0xff]  ;;  %v3020_v60 = vmax.f32 %v3018_v4, %v3019_v47  ;;  %v2930_v54 = vrot.slane %v2929_v24, 2  ;;  %v2974_v4 = vrot.slane %v2973_v9, 1  ;;  %v3027_v3 = vmax.f32 %v3025_v6, %v3026_v31  ;;  %vm9284_vm6 = vmmov %vm9277_vm0 }
 0x37f   : > { %3978 = vst.msk [vmem:[#allocation5] sm:$0xff] %vm3977_vm13, %v3954_v62  ;;  %4270 = vmatmul.f32.vlgmr.msrb.gmra.mxu2 %v4130_v10  ;;  %v2979_v62 = vrot.slane %v2978_v14, 2  ;;  %v2993_v10 = vrot.slane %v2992_v52, 2  ;;  %v2937_v35 = vrot.slane %v2936_v59, 2  ;;  %v2917_v42 = vmax.f32 %v2915_v16, %v2916_v53  ;;  %v2107_v53 = vpop.f32.mrf.mxu1  ;;  %vm9285_vm4 = vmmov %vm9277_vm0 }
 0x380   : > { %v3021_v12 = vrot.slane %v3020_v60, 2  ;;  %v2975_v18 = vmax.f32 %v2973_v9, %v2974_v4  ;;  %v3028_v16 = vrot.slane %v3027_v3, 2  ;;  %vm9286_vm8 = vmmov %vm9277_vm0 }
 0x381   : > { %v2980_v58 = vmax.f32 %v2978_v14, %v2979_v62  ;;  %v2994_v1 = vmax.f32 %v2992_v52, %v2993_v10  ;;  %v2938_v22 = vmax.f32 %v2936_v59, %v2937_v35  ;;  %v3009_v14 = vrot.slane %v3008_v27, 1  ;;  %vm9287_vm10 = vmmov %vm9277_vm0 }
 0x382   : > { %v4081_v8 = vpop.permute.xlu0 %4080  ;;  %v3022_v43 = vmax.f32 %v3020_v60, %v3021_v12  ;;  %v2925_v52 = vrot.slane %v2924_v7, 1  ;;  %v2918_v32 = vrot.slane %v2917_v42, 1  ;;  %v8133_v9 = vmax.f32 %v3027_v3, %v3028_v16  ;;  %vm9288_vm11 = vmmov %vm9277_vm0 }
 0x383   : > { %v2981_v61 = vrot.slane %v2980_v58, 1  ;;  %v3010_v29 = vmax.f32 %v3008_v27, %v3009_v14  ;;  %vm9289_vm7 = vmmov %vm9277_vm0 }
 0x384   : > { %v4012_v36 = vpop.permute.xlu1 %4011  ;;  %v3023_v48 = vrot.slane %v3022_v43, 1  ;;  %v2926_v59 = vmax.f32 %v2924_v7, %v2925_v52  ;;  %v3030_v7 = vrot.slane %v8133_v9, 1  ;;  %vm9290_vm12 = vmmov %vm9277_vm0 }
 0x385   : > { %4034 = vst.msk [vmem:[#allocation5 + $0x20] sm:$0xff] %vm3886_vm9, %v4012_v36  ;;  %v2233_v36 = vrot.slane %v2104_v0, 4  ;;  %v2982_v57 = vmax.f32 %v2980_v58, %v2981_v61  ;;  %v8141_v27 = vsel %vm3249_vm15, %v3010_v29, -inf }
 0x386   : > { %4067 = vst.msk [vmem:[#allocation5 + $0x20] sm:$0xff] %vm3943_vm1, %v4045_v63  ;;  %v4129_v51 = vld [vmem:[#allocation5] sm:$0xff]  ;;  %v3000_v63 = vrot.slane %v2999_v40, 2  ;;  %v3024_v34 = vmax.f32 %v3022_v43, %v3023_v48  ;;  %v3373_v31 = vsel %vm3249_vm15, %v2926_v59, -inf  ;;  %v2235_v43 = vrot.slane %v2107_v53, 2 }
 0x387   : > { %4103 = vst.msk [vmem:[#allocation5 + $0x20] sm:$0xff] %vm3977_vm13, %v4081_v8  ;;  %4229 = vmatmul.f32.vlgmr.msrb.gmra.mxu1 %v4129_v51  ;;  %v4047_v8 = vpop.permute.xlu2 %4046  ;;  %v2987_v51 = vmax.f32 %v2985_v41, %v2986_v33  ;;  %v3039_v15 = vsel %vm9282_vm14, %v2233_v36, -inf  ;;  %v3016_v41 = vrot.slane %v3015_v49, 1  ;;  %v2919_v36 = vmax.f32 %v2917_v42, %v2918_v32  ;;  %vm9291_vm14 = vmmov %vm9277_vm0 }
 0x388   : > { %v3001_v20 = vmax.f32 %v2999_v40, %v3000_v63  ;;  %v3040_v50 = vrot.slane %v3039_v15, 4  ;;  %v3374_v26 = vsel %vm3249_vm15, %v2982_v57, -inf  ;;  %v2236_v42 = vrot.slane %v2107_v53, 4 }
 0x389   : > { %v2988_v37 = vrot.slane %v2987_v51, 1  ;;  %v3017_v6 = vmax.f32 %v3015_v49, %v3016_v41  ;;  %v3370_v35 = vsel %vm3249_vm15, %v2919_v36, -inf  ;;  %v3375_v3 = vmax.f32 %v3373_v31, %v3374_v26 }
 0x38a   : > { %v3956_v55 = vpop.permute.xlu0 %3955  ;;  %v3002_v11 = vrot.slane %v3001_v20, 1  ;;  %v3041_v10 = vmax.f32 %v3039_v15, %v3040_v50  ;;  %v3053_v15 = vsel %vm9284_vm6, %v2107_v53, -inf  ;;  %v8166_v48 = vsel %vm9277_vm0, %v2236_v42, -inf }
 0x38b   : > { %v2989_v60 = vmax.f32 %v2987_v51, %v2988_v37  ;;  %vm9293_vm6 = vcmask 1041409  }
 0x38c   : > { %v3865_v23 = vpop.permute.xlu1 %3864  ;;  %v3003_v17 = vmax.f32 %v3001_v20, %v3002_v11  ;;  %v3042_v58 = vrot.slane %v3041_v10, 2 }
 0x38d   : > { %3888 = vst.msk [vmem:[#allocation5 + $0x18] sm:$0xff] %vm3886_vm9, %v3865_v23  ;;  %v2995_v23 = vrot.slane %v2994_v1, 1 }
 0x38e   : > { %3945 = vst.msk [vmem:[#allocation5 + $0x18] sm:$0xff] %vm3943_vm1, %v3922_v21  ;;  %v4133_v30 = vld [vmem:[#allocation5 + $0x20] sm:$0xff]  ;;  %v3046_v21 = vsel %vm9283_vm5, %v2234_v45, -inf  ;;  %v8138_v20 = vsel %vm3249_vm15, %v3003_v17, -inf  ;;  %v8156_v61 = vmax.f32 %v3041_v10, %v3042_v58  ;;  %vm9292_vm5 = vmmov %vm9277_vm0 }
 0x38f   : > { %3979 = vst.msk [vmem:[#allocation5 + $0x18] sm:$0xff] %vm3977_vm13, %v3956_v55  ;;  %4273 = vmatmul.f32.gmra.mxu2 %v4133_v30  ;;  %v2931_v55 = vmax.f32 %v2929_v24, %v2930_v54  ;;  %v3047_v47 = vrot.slane %v3046_v21, 4  ;;  %v3924_v13 = vpop.permute.xlu2 %3923  ;;  %v3034_v24 = vmax.f32 %v3032_v38, %v3033_v25  ;;  %v2996_v33 = vmax.f32 %v2994_v1, %v2995_v23 }
 0x390   : > { %v8144_v38 = vsel %vm3249_vm15, %v3017_v6, -inf }
 0x391   : > { %v2932_v0 = vrot.slane %v2931_v55, 1  ;;  %v3048_v63 = vmax.f32 %v3046_v21, %v3047_v47  ;;  %v3035_v12 = vrot.slane %v3034_v24, 2  ;;  %v3380_v54 = vsel %vm3249_vm15, %v2996_v33, -inf }
 0x392   : > { %v4083_v39 = vpop.permute.xlu0 %4082  ;;  %v8151_v21 = vsel %vm3249_vm15, %v3024_v34, -inf  ;;  %v2237_v47 = vrot.slane %v2107_v53, 6 }
 0x393   : > { %v2933_v45 = vmax.f32 %v2931_v55, %v2932_v0  ;;  %v3049_v51 = vrot.slane %v3048_v63, 2  ;;  %v8154_v4 = vmax.f32 %v3034_v24, %v3035_v12  ;;  %v3487_v0 = vadd.f32 %v7903_v2, %v3375_v3 }
 0x394   : > { %v4014_v44 = vpop.permute.xlu1 %4013  ;;  %v8178_v6 = vsel %vm9290_vm12, %v2237_v47, -inf  ;;  %v3068_v12 = vrot.slane %v8166_v48, 4  ;;  %vm9299_vm12 = vcmask 1045509  }
 0x395   : > { %4035 = vst.msk [vmem:[#allocation5 + $0x38] sm:$0xff] %vm3886_vm9, %v4014_v44  ;;  %v3377_v44 = vsel %vm3249_vm15, %v2989_v60, -inf  ;;  %v3376_v49 = vsel %vm3249_vm15, %v2933_v45, -inf  ;;  %v8158_v37 = vmax.f32 %v3048_v63, %v3049_v51  ;;  %v3551_v26 = vmax.f32 %v3487_v0, 0.0 }
 0x396   : > { %4068 = vst.msk [vmem:[#allocation5 + $0x38] sm:$0xff] %vm3943_vm1, %v4047_v8  ;;  %v4132_v28 = vld [vmem:[#allocation5 + $0x18] sm:$0xff]  ;;  %v3371_v8 = vsel %vm3249_vm15, %v2975_v18, -inf  ;;  %v3378_v50 = vmax.f32 %v3376_v49, %v3377_v44  ;;  %v8163_v18 = vsel %vm9286_vm8, %v2235_v43, -inf  ;;  %vm9295_vm8 = vcmask 1042434  }
 0x397   : > { %4104 = vst.msk [vmem:[#allocation5 + $0x38] sm:$0xff] %vm3977_vm13, %v4083_v39  ;;  %4232 = vmatmul.f32.gmra.mxu1 %v4132_v28  ;;  %v2939_v39 = vrot.slane %v2938_v22, 1  ;;  %v3372_v23 = vmax.f32 %v3370_v35, %v3371_v8  ;;  %v3061_v44 = vrot.slane %v8163_v18, 4  ;;  %v3075_v35 = vrot.slane %v8178_v6, 4 }
 0x398   : > { %v3488_v17 = vadd.f32 %v7903_v2, %v3378_v50 }
 0x399   : > { %v2940_v1 = vmax.f32 %v2938_v22, %v2939_v39  ;;  %v3054_v22 = vrot.slane %v3053_v15, 4  ;;  %v3486_v39 = vadd.f32 %v7903_v2, %v3372_v23 }
 0x39a   : > { %v3958_v30 = vpop.permute.xlu0 %3957  ;;  %v3552_v31 = vmax.f32 %v3488_v17, 0.0 }
 0x39b   : > { %v3379_v25 = vsel %vm3249_vm15, %v2940_v1, -inf  ;;  %v8175_v29 = vmax.f32 %v3053_v15, %v3054_v22  ;;  %v3550_v1 = vmax.f32 %v3486_v39, 0.0 }
 0x39c   : > { %v3867_v40 = vpop.permute.xlu1 %3866 }
 0x39d   : > { %3889 = vst.msk [vmem:[#allocation5 + $0x30] sm:$0xff] %vm3886_vm9, %v3867_v40 }
 0x39e   : > { %3946 = vst.msk [vmem:[#allocation5 + $0x30] sm:$0xff] %vm3943_vm1, %v3924_v13  ;;  %v4136_v62 = vld [vmem:[#allocation5 + $0x38] sm:$0xff] }
 0x39f   : > { %3980 = vst.msk [vmem:[#allocation5 + $0x30] sm:$0xff] %vm3977_vm13, %v3958_v30  ;;  %4276 = vmatmul.f32.gmra.mxu2 %v4136_v62  ;;  %v3381_v30 = vmax.f32 %v3379_v25, %v3380_v54  ;;  %v3735_v25 = vrot.slane %v3551_v26, 7 }
 0x3a1   : > { %v3489_v45 = vadd.f32 %v7903_v2, %v3381_v30 }
 0x3a3   : > { %v3553_v3 = vmax.f32 %v3489_v45, 0.0 }
 0x3a4   : > { %v4016_v28 = vpop.permute.xlu1 %4015 }
 0x3a5   : > { %4036 = vst.msk [vmem:[#allocation5 + $0x50] sm:$0xff] %vm3886_vm9, %v4016_v28  ;;  %v3056_v28 = vrot.slane %v8175_v29, 2 }
 0x3a6   : > { %v4135_v55 = vld [vmem:[#allocation5 + $0x30] sm:$0xff] }
 0x3a7   : > { %4235 = vmatmul.f32.gmra.mxu1 %v4135_v55 }
 0x3a8   : > { %v2095_v11 = vpop.f32.mrf.mxu0 }
 0x3a9   : > { %v2223_v14 = vrot.slane %v2095_v11, 2  ;;  %v2224_v41 = vrot.slane %v2095_v11, 4  ;;  %v2225_v52 = vrot.slane %v2095_v11, 6  ;;  %v2941_v40 = vsel %vm9285_vm4, %v2095_v11, -inf  ;;  %vm9294_vm4 = vmmov %vm9277_vm0 }
 0x3aa   : > { %v2942_v32 = vrot.slane %v2941_v40, 4 }
 0x3ab   : > { %v4049_v13 = vpop.permute.xlu2 %4048  ;;  %v2948_v57 = vsel %vm9287_vm10, %v2223_v14, -inf  ;;  %v2955_v60 = vsel %vm9288_vm11, %v2224_v41, -inf  ;;  %v2962_v16 = vsel %vm9289_vm7, %v2225_v52, -inf  ;;  %v3737_v52 = vrot.slane %v3552_v31, 6  ;;  %vm9298_vm7 = vmmov %vm9277_vm0 }
 0x3ac   : > { %v3869_v24 = vpop.permute.xlu1 %3868  ;;  %4069 = vst.msk [vmem:[#allocation5 + $0x50] sm:$0xff] %vm3943_vm1, %v4049_v13  ;;  %v2943_v62 = vmax.f32 %v2941_v40, %v2942_v32  ;;  %v2949_v33 = vrot.slane %v2948_v57, 4  ;;  %v2956_v10 = vrot.slane %v2955_v60, 4  ;;  %v2963_v63 = vrot.slane %v2962_v16, 4 }
 0x3ad   : > { %3890 = vst.msk [vmem:[#allocation5 + $0x48] sm:$0xff] %vm3886_vm9, %v3869_v24  ;;  %vm9296_vm10 = vcmask 1043459   ;;  %vm9297_vm11 = vcmask 1044484  }
 0x3ae   : > { %v2944_v59 = vrot.slane %v2943_v62, 2  ;;  %v2950_v8 = vmax.f32 %v2948_v57, %v2949_v33  ;;  %v2957_v34 = vmax.f32 %v2955_v60, %v2956_v10  ;;  %v2964_v36 = vmax.f32 %v2962_v16, %v2963_v63 }
 0x3af   : > { %v3736_v16 = vsel %vm9293_vm6, %v3735_v25, %v3550_v1  ;;  %v3069_v25 = vmax.f32 %v8166_v48, %v3068_v12  ;;  %vm9302_vm6 = vmmov %vm9277_vm0 }
 0x3b0   : > { %v2945_v53 = vmax.f32 %v2943_v62, %v2944_v59  ;;  %v2951_v54 = vrot.slane %v2950_v8, 2  ;;  %v2958_v58 = vrot.slane %v2957_v34, 2  ;;  %v2965_v51 = vrot.slane %v2964_v36, 2 }
 0x3b2   : > { %v2946_v49 = vrot.slane %v2945_v53, 1  ;;  %v2952_v15 = vmax.f32 %v2950_v8, %v2951_v54  ;;  %v2959_v43 = vmax.f32 %v2957_v34, %v2958_v58  ;;  %v2966_v42 = vmax.f32 %v2964_v36, %v2965_v51  ;;  %v2110_v55 = vpop.f32.mrf.mxu1 }
 0x3b3   : > { %v2238_v23 = vrot.slane %v2110_v55, 2  ;;  %v2239_v50 = vrot.slane %v2110_v55, 4  ;;  %v3926_v47 = vpop.permute.xlu2 %3925  ;;  %v2240_v40 = vrot.slane %v2110_v55, 6  ;;  %v3081_v62 = vsel %vm9294_vm4, %v2110_v55, -inf  ;;  %vm9303_vm4 = vmmov %vm9277_vm0 }
 0x3b4   : > { %v2947_v22 = vmax.f32 %v2945_v53, %v2946_v49  ;;  %v2953_v11 = vrot.slane %v2952_v15, 1  ;;  %v2960_v14 = vrot.slane %v2959_v43, 1  ;;  %v2967_v41 = vrot.slane %v2966_v42, 1  ;;  %3947 = vst.msk [vmem:[#allocation5 + $0x48] sm:$0xff] %vm3943_vm1, %v3926_v47  ;;  %v2116_v49 = vpop.f32.mrf.mxu2 }
 0x3b5   : > { %v3088_v30 = vsel %vm9291_vm14, %v2238_v23, -inf  ;;  %v3095_v32 = vsel %vm9292_vm5, %v2239_v50, -inf  ;;  %v3082_v45 = vrot.slane %v3081_v62, 4  ;;  %v3102_v53 = vsel %vm9277_vm0, %v2240_v40, -inf }
 0x3b6   : > { %v2954_v0 = vmax.f32 %v2952_v15, %v2953_v11  ;;  %v2961_v13 = vmax.f32 %v2959_v43, %v2960_v14  ;;  %v2968_v57 = vmax.f32 %v2966_v42, %v2967_v41  ;;  %v3382_v60 = vsel %vm3249_vm15, %v2947_v22, -inf }
 0x3b7   : > { %v3384_v24 = vmax.f32 %v3382_v60, %v8138_v20  ;;  %v3089_v33 = vrot.slane %v3088_v30, 4  ;;  %v3096_v17 = vrot.slane %v3095_v32, 4  ;;  %v3738_v20 = vsel %vm9295_vm8, %v3737_v52, %v3736_v16  ;;  %vm9304_vm8 = vmmov %vm9277_vm0 }
 0x3b8   : > { %v3385_v10 = vsel %vm3249_vm15, %v2954_v0, -inf  ;;  %v3388_v63 = vsel %vm3249_vm15, %v2961_v13, -inf  ;;  %v3391_v39 = vsel %vm3249_vm15, %v2968_v57, -inf  ;;  %v3076_v23 = vmax.f32 %v8178_v6, %v3075_v35 }
 0x3b9   : > { %v3387_v59 = vmax.f32 %v3385_v10, %v8141_v27  ;;  %v3390_v8 = vmax.f32 %v3388_v63, %v8144_v38  ;;  %v3393_v34 = vmax.f32 %v3391_v39, %v8151_v21  ;;  %v3490_v36 = vadd.f32 %v7903_v2, %v3384_v24 }
 0x3ba   : > { %v3090_v26 = vmax.f32 %v3088_v30, %v3089_v33  ;;  %v3739_v27 = vrot.slane %v3553_v3, 5  ;;  %v3062_v38 = vmax.f32 %v8163_v18, %v3061_v44  ;;  %v3097_v21 = vmax.f32 %v3095_v32, %v3096_v17 }
 0x3bb   : > { %v3491_v54 = vadd.f32 %v7903_v2, %v3387_v59  ;;  %v3492_v58 = vadd.f32 %v7903_v2, %v3390_v8  ;;  %v3493_v51 = vadd.f32 %v7903_v2, %v3393_v34  ;;  %v3554_v1 = vmax.f32 %v3490_v36, 0.0 }
 0x3bc   : > { %v3091_v31 = vrot.slane %v3090_v26, 2  ;;  %v3740_v50 = vsel %vm9296_vm10, %v3739_v27, %v3738_v20  ;;  %v3103_v47 = vrot.slane %v3102_v53, 4  ;;  %v3083_v11 = vmax.f32 %v3081_v62, %v3082_v45  ;;  %vm9305_vm10 = vmmov %vm9277_vm0 }
 0x3bd   : > { %v3555_v15 = vmax.f32 %v3491_v54, 0.0  ;;  %v3556_v43 = vmax.f32 %v3492_v58, 0.0  ;;  %v3557_v42 = vmax.f32 %v3493_v51, 0.0  ;;  %v3741_v55 = vrot.slane %v3554_v1, 4 }
 0x3be   : > { %v3037_v18 = vrot.slane %v8154_v4, 1  ;;  %v3063_v44 = vrot.slane %v3062_v38, 2  ;;  %v2244_v14 = vrot.slane %v2116_v49, 2  ;;  %v3098_v41 = vrot.slane %v3097_v21, 2 }
 0x3bf   : > { %v3742_v2 = vsel %vm9297_vm11, %v3741_v55, %v3740_v50  ;;  %v3743_v22 = vrot.slane %v3555_v15, 3  ;;  %v3745_v3 = vrot.slane %v3556_v43, 2  ;;  %v3137_v52 = vsel %vm9298_vm7, %v2116_v49, -inf  ;;  %vm9306_vm11 = vmmov %vm9277_vm0 }
 0x3c0   : > { %v3747_v48 = vrot.slane %v3557_v42, 1  ;;  %v3092_v12 = vmax.f32 %v3090_v26, %v3091_v31  ;;  %v3070_v6 = vrot.slane %v3069_v25, 2  ;;  %v3077_v35 = vrot.slane %v3076_v23, 2  ;;  %vm9307_vm7 = vmmov %vm9277_vm0 }
 0x3c1   : > { %v3744_v40 = vsel %vm9299_vm12, %v3743_v22, %v3742_v2  ;;  %vm9300_vm14 = vcmask 1046534   ;;  %v3104_v32 = vmax.f32 %v3102_v53, %v3103_v47  ;;  %v3057_v0 = vmax.f32 %v8175_v29, %v3056_v28  ;;  %vm9308_vm12 = vmmov %vm9277_vm0 }
 0x3c2   : > { %v3746_v30 = vsel %vm9300_vm14, %v3745_v3, %v3744_v40  ;;  %v2245_v13 = vrot.slane %v2116_v49, 4  ;;  %vm9301_vm5 = vcmask 1047559   ;;  %v3084_v60 = vrot.slane %v3083_v11, 2  ;;  %vm9309_vm14 = vmmov %vm9277_vm0 }
 0x3c3   : > { %v3748_v57 = vsel %vm9301_vm5, %v3747_v48, %v3746_v30  ;;  %v3044_v16 = vrot.slane %v8156_v61, 1  ;;  %v2246_v24 = vrot.slane %v2116_v49, 6  ;;  %v3138_v62 = vrot.slane %v3137_v52, 4 }
 0x3c4   : > { %3791 = vst.msk [vmem:[#allocation4 + $0x61] sm:$0xff] %vm3249_vm15, %v3748_v57  ;;  %v3099_v33 = vmax.f32 %v3097_v21, %v3098_v41  ;;  %v3051_v10 = vrot.slane %v8158_v37, 1  ;;  %v3064_v63 = vmax.f32 %v3062_v38, %v3063_v44  ;;  %v3144_v39 = vsel %vm9302_vm6, %v2244_v14, -inf  ;;  %vm9311_vm6 = vmmov %vm9277_vm0 }
 0x3c5   : > { %v3093_v17 = vrot.slane %v3092_v12, 1  ;;  %v3031_v29 = vmax.f32 %v8133_v9, %v3030_v7  ;;  %v3071_v28 = vmax.f32 %v3069_v25, %v3070_v6  ;;  %v3078_v59 = vmax.f32 %v3076_v23, %v3077_v35 }
 0x3c6   : > { %v3105_v8 = vrot.slane %v3104_v32, 2  ;;  %v4018_v34 = vpop.permute.xlu1 %4017  ;;  %v4085_v36 = vpop.permute.xlu0 %4084  ;;  %v3038_v20 = vmax.f32 %v8154_v4, %v3037_v18  ;;  %v3058_v45 = vrot.slane %v3057_v0, 1  ;;  %v3151_v26 = vsel %vm9303_vm4, %v2245_v13, -inf  ;;  %vm9312_vm4 = vmmov %vm9277_vm0 }
 0x3c7   : > { %v3085_v53 = vmax.f32 %v3083_v11, %v3084_v60  ;;  %4037 = vst.msk [vmem:[#allocation5 + $0x68] sm:$0xff] %vm3886_vm9, %v4018_v34  ;;  %v3139_v54 = vmax.f32 %v3137_v52, %v3138_v62  ;;  %v3145_v58 = vrot.slane %v3144_v39, 4  ;;  %v3158_v51 = vsel %vm9304_vm8, %v2246_v24, -inf }
 0x3c8   : > { %v3100_v1 = vrot.slane %v3099_v33, 1  ;;  %4105 = vst.msk [vmem:[#allocation5 + $0x50] sm:$0xff] %vm3977_vm13, %v4085_v36  ;;  %v3045_v9 = vmax.f32 %v8156_v61, %v3044_v16  ;;  %v3052_v7 = vmax.f32 %v8158_v37, %v3051_v10  ;;  %v3065_v27 = vrot.slane %v3064_v63, 1 }
 0x3c9   : > { %v3094_v38 = vmax.f32 %v3092_v12, %v3093_v17  ;;  %v3072_v4 = vrot.slane %v3071_v28, 1  ;;  %v3079_v31 = vrot.slane %v3078_v59, 1  ;;  %v3152_v21 = vrot.slane %v3151_v26, 4 }
 0x3ca   : > { %v3106_v49 = vmax.f32 %v3104_v32, %v3105_v8  ;;  %v3397_v15 = vsel %vm3249_vm15, %v3038_v20, -inf  ;;  %v3059_v43 = vmax.f32 %v3057_v0, %v3058_v45  ;;  %v3159_v42 = vrot.slane %v3158_v51, 4  ;;  %v8277_v8 = vpop.f32.mrf.mxu2  ;;  %v8285_v45 = vld [vmem:[%s9019_s2] ss:$0 sm:$0xff] }
 0x3cb   : > { %v3086_v55 = vrot.slane %v3085_v53, 1  ;;  %v8233_v25 = vld [vmem:[#allocation4 + $0x60] sm:$0xff]  ;;  %v3807_v23 = vld [vmem:[#allocation4 + $0x68] sm:$0x3]  ;;  %v3140_v50 = vrot.slane %v3139_v54, 2  ;;  %v3146_v47 = vmax.f32 %v3144_v39, %v3145_v58  ;;  %v3101_v2 = vmax.f32 %v3099_v33, %v3100_v1 }
 0x3cc   : > { %4050 = vrot.lane.b32.xlu2 %v8233_v25, %s9127_s30  ;;  %3820 = vst.msk [vmem:[#allocation5 + $0x90] sm:$0xff] %vm3249_vm15, %v8233_v25  ;;  %v3913_v61 = vrot.slane %v8233_v25, 2  ;;  %v3066_v37 = vmax.f32 %v3064_v63, %v3065_v27  ;;  %v3398_v22 = vsel %vm3249_vm15, %v3094_v38, -inf  ;;  %v3914_v3 = vrot.slane %v3807_v23, 2 }
 0x3cd   : > { %v3856_v11 = vrot.slane %v8233_v25, 1  ;;  %v3073_v18 = vmax.f32 %v3071_v28, %v3072_v4  ;;  %v3080_v44 = vmax.f32 %v3078_v59, %v3079_v31  ;;  %v3153_v14 = vmax.f32 %v3151_v26, %v3152_v21 }
 0x3ce   : > { %v3107_v41 = vrot.slane %v3106_v49, 1  ;;  %v3871_v52 = vpop.permute.xlu1 %3870  ;;  %v3160_v40 = vmax.f32 %v3158_v51, %v3159_v42  ;;  %v3087_v48 = vmax.f32 %v3085_v53, %v3086_v55  ;;  %v8244_v35 = vsel %vm867_vm3, %v3913_v61, %v3914_v3 }
 0x3cf   : > { %3891 = vst.msk [vmem:[#allocation5 + $0x60] sm:$0xff] %vm3886_vm9, %v3871_v52  ;;  %v3960_v12 = vpop.permute.xlu0 %3959  ;;  %v4139_v6 = vld [vmem:[#allocation5 + $0x50] sm:$0xff]  ;;  %v3857_v30 = vrot.slane %v3807_v23, 1  ;;  %v8246_v32 = vmax.f32 %v3139_v54, %v3140_v50  ;;  %v3147_v0 = vrot.slane %v3146_v47, 2  ;;  %v3399_v13 = vmax.f32 %v3397_v15, %v3398_v22  ;;  %4019 = vrot.lane.b32.xlu1 %v8244_v35, %s9086_s22 }
 0x3d0   : > { %v3401_v57 = vsel %vm3249_vm15, %v3101_v2, -inf  ;;  %3981 = vst.msk [vmem:[#allocation5 + $0x48] sm:$0xff] %vm3977_vm13, %v3960_v12  ;;  %4279 = vmatmul.f32.gmra.mxu2 %v4139_v6  ;;  %v3394_v60 = vsel %vm3249_vm15, %v3031_v29, -inf  ;;  %v3400_v16 = vsel %vm3249_vm15, %v3045_v9, -inf  ;;  %v3403_v24 = vsel %vm3249_vm15, %v3052_v7, -inf }
 0x3d1   : > { %4125 = vst.msk [vmem:[#allocation5 + $0x70] sm:$0xff] %vm3249_vm15, %v8244_v35  ;;  %v8258_v62 = vsel %vm657_vm2, %v3856_v11, %v3857_v30  ;;  %v8261_v33 = vsel %vm3249_vm15, %v3059_v43, -inf  ;;  %v8264_v10 = vsel %vm3249_vm15, %v3066_v37, -inf  ;;  %v8267_v63 = vsel %vm3249_vm15, %v3073_v18, -inf }
 0x3d2   : > { %v3108_v39 = vmax.f32 %v3106_v49, %v3107_v41  ;;  %4086 = vrot.lane.b32.xlu0 %v8258_v62, %s5785_s24  ;;  %4003 = vst.msk [vmem:[#allocation5 + $0x80] sm:$0xff] %vm3249_vm15, %v8258_v62  ;;  %v8274_v17 = vsel %vm3249_vm15, %v3080_v44, -inf  ;;  %v3154_v29 = vrot.slane %v3153_v14, 2  ;;  %v3395_v28 = vsel %vm3249_vm15, %v3087_v48, -inf }
 0x3d3   : > { %v3402_v59 = vmax.f32 %v3400_v16, %v3401_v57  ;;  %v3142_v34 = vrot.slane %v8246_v32, 1  ;;  %v8280_v36 = vmax.f32 %v3146_v47, %v3147_v0  ;;  %v3161_v20 = vrot.slane %v3160_v40, 2 }
 0x3d4   : > { %v3495_v26 = vadd.f32 %v8285_v45, %v3399_v13  ;;  %v2113_v53 = vpop.f32.mrf.mxu1  ;;  %3927 = vrot.lane.b32.xlu2 %v7734_v56, %s9127_s30  ;;  %v3396_v9 = vmax.f32 %v3394_v60, %v3395_v28  ;;  %v3404_v7 = vsel %vm3249_vm15, %v3108_v39, -inf  ;;  %v2247_v27 = vrot.slane %v8277_v8, 2 }
 0x3d5   : > { %v2241_v54 = vrot.slane %v2113_v53, 2  ;;  %v2242_v58 = vrot.slane %v2113_v53, 4  ;;  %v2243_v51 = vrot.slane %v2113_v53, 6  ;;  %v3109_v1 = vsel %vm9277_vm0, %v2113_v53, -inf }
 0x3d6   : > { %v3110_v38 = vrot.slane %v3109_v1, 4  ;;  %v3496_v4 = vadd.f32 %v8285_v45, %v3402_v59  ;;  %v8299_v50 = vmax.f32 %v3153_v14, %v3154_v29  ;;  %v8301_v47 = vmax.f32 %v3160_v40, %v3161_v20 }
 0x3d7   : > { %v3116_v31 = vsel %vm9305_vm10, %v2241_v54, -inf  ;;  %v3123_v21 = vsel %vm9306_vm11, %v2242_v58, -inf  ;;  %v3130_v49 = vsel %vm9307_vm7, %v2243_v51, -inf  ;;  %v4138_v56 = vld [vmem:[#allocation5 + $0x48] sm:$0xff]  ;;  %3872 = vrot.lane.b32.xlu1 %v8006_v46, %s9086_s22  ;;  %v3405_v2 = vmax.f32 %v3403_v24, %v3404_v7  ;;  %vm9315_vm10 = vmmov %vm9312_vm4 }
 0x3d8   : > { %v3111_v15 = vmax.f32 %v3109_v1, %v3110_v38  ;;  %v3117_v43 = vrot.slane %v3116_v31, 4  ;;  %v3124_v42 = vrot.slane %v3123_v21, 4  ;;  %v3131_v55 = vrot.slane %v3130_v49, 4  ;;  %4238 = vmatmul.f32.gmra.mxu1 %v4138_v56  ;;  %v4143_v23 = vld [vmem:[#allocation5 + $0x70] sm:$0xff]  ;;  %vm9317_vm7 = vmmov %vm9312_vm4 }
 0x3d9   : > { %v3559_v61 = vmax.f32 %v3495_v26, 0.0  ;;  %5566 = vmatmul.msk.f32.gmra.mxu3 %vm3249_vm15, %v4143_v23  ;;  %v3494_v18 = vadd.f32 %v8285_v45, %v3396_v9  ;;  %v3560_v44 = vmax.f32 %v3496_v4, 0.0  ;;  %v3165_v46 = vsel %vm9308_vm12, %v8277_v8, -inf  ;;  %vm9318_vm12 = vmmov %vm9312_vm4 }
 0x3da   : > { %v3112_v37 = vrot.slane %v3111_v15, 2  ;;  %v3118_v22 = vmax.f32 %v3116_v31, %v3117_v43  ;;  %v3125_v3 = vmax.f32 %v3123_v21, %v3124_v42  ;;  %v3132_v11 = vmax.f32 %v3130_v49, %v3131_v55  ;;  %3961 = vrot.lane.b32.xlu0 %v7982_v19, %s5785_s24 }
 0x3db   : > { %v3172_v14 = vsel %vm9309_vm14, %v2247_v27, -inf  ;;  %v3497_v12 = vadd.f32 %v8285_v45, %v3405_v2  ;;  %v3749_v6 = vrot.slane %v3559_v61, 7  ;;  %v2248_v30 = vrot.slane %v8277_v8, 4  ;;  %vm9319_vm14 = vmmov %vm9312_vm4 }
 0x3dc   : > { %v3113_v41 = vmax.f32 %v3111_v15, %v3112_v37  ;;  %v3119_v52 = vrot.slane %v3118_v22, 2  ;;  %v3126_v40 = vrot.slane %v3125_v3, 2  ;;  %v3133_v48 = vrot.slane %v3132_v11, 2 }
 0x3dd   : > { %v2249_v0 = vrot.slane %v8277_v8, 6  ;;  %v3558_v16 = vmax.f32 %v3494_v18, 0.0  ;;  %v3751_v24 = vrot.slane %v3560_v44, 6  ;;  %v3166_v39 = vrot.slane %v3165_v46, 4 }
 0x3de   : > { %v3114_v19 = vrot.slane %v3113_v41, 1  ;;  %v3120_v13 = vmax.f32 %v3118_v22, %v3119_v52  ;;  %v3127_v57 = vmax.f32 %v3125_v3, %v3126_v40  ;;  %v3134_v60 = vmax.f32 %v3132_v11, %v3133_v48 }
 0x3df   : > { %v3173_v29 = vrot.slane %v3172_v14, 4  ;;  %v3149_v53 = vrot.slane %v8280_v36, 1  ;;  %v3561_v54 = vmax.f32 %v3497_v12, 0.0  ;;  %vm9310_vm5 = vcmask 1041409  }
 0x3e0   : > { %v3115_v28 = vmax.f32 %v3113_v41, %v3114_v19  ;;  %v3121_v59 = vrot.slane %v3120_v13, 1  ;;  %v3128_v20 = vrot.slane %v3127_v57, 1  ;;  %v3135_v26 = vrot.slane %v3134_v60, 1 }
 0x3e1   : > { %v3750_v58 = vsel %vm9310_vm5, %v3749_v6, %v3558_v16  ;;  %v3179_v51 = vsel %vm9311_vm6, %v2248_v30, -inf  ;;  %v3167_v27 = vmax.f32 %v3165_v46, %v3166_v39  ;;  %v3174_v38 = vmax.f32 %v3172_v14, %v3173_v29 }
 0x3e2   : > { %v3122_v8 = vmax.f32 %v3120_v13, %v3121_v59  ;;  %v3129_v1 = vmax.f32 %v3127_v57, %v3128_v20  ;;  %v3136_v9 = vmax.f32 %v3134_v60, %v3135_v26  ;;  %v3407_v7 = vsel %vm3249_vm15, %v3115_v28, -inf }
 0x3e3   : > { %v3186_v4 = vsel %vm9312_vm4, %v2249_v0, -inf  ;;  %v3408_v31 = vmax.f32 %v8261_v33, %v3407_v7  ;;  %vm9313_vm8 = vcmask 1042434   ;;  %v3156_v2 = vrot.slane %v8299_v50, 1 }
 0x3e4   : > { %v3752_v21 = vsel %vm9313_vm8, %v3751_v24, %v3750_v58  ;;  %v3410_v49 = vsel %vm3249_vm15, %v3122_v8, -inf  ;;  %v3413_v56 = vsel %vm3249_vm15, %v3129_v1, -inf  ;;  %v3416_v15 = vsel %vm3249_vm15, %v3136_v9, -inf  ;;  %vm9323_vm8 = vmmov %vm9317_vm7 }
 0x3e5   : > { %v3411_v43 = vmax.f32 %v8264_v10, %v3410_v49  ;;  %v3414_v42 = vmax.f32 %v8267_v63, %v3413_v56  ;;  %v3417_v55 = vmax.f32 %v8274_v17, %v3416_v15  ;;  %v3498_v23 = vadd.f32 %v8285_v45, %v3408_v31 }
 0x3e6   : > { %v3163_v33 = vrot.slane %v8301_v47, 1  ;;  %v3753_v61 = vrot.slane %v3561_v54, 5  ;;  %v3180_v37 = vrot.slane %v3179_v51, 4  ;;  %vm9314_vm0 = vcmask 1043459  }
 0x3e7   : > { %v3499_v22 = vadd.f32 %v8285_v45, %v3411_v43  ;;  %v3500_v3 = vadd.f32 %v8285_v45, %v3414_v42  ;;  %v3501_v11 = vadd.f32 %v8285_v45, %v3417_v55  ;;  %v3562_v18 = vmax.f32 %v3498_v23, 0.0 }
 0x3e8   : > { %v3754_v10 = vsel %vm9314_vm0, %v3753_v61, %v3752_v21  ;;  %v3168_v63 = vrot.slane %v3167_v27, 2  ;;  %v3175_v44 = vrot.slane %v3174_v38, 2  ;;  %v3187_v17 = vrot.slane %v3186_v4, 4  ;;  %v2122_v46 = vpop.f32.mrf.mxu2  ;;  %vm9324_vm0 = vmmov %vm9317_vm7 }
 0x3e9   : > { %v3563_v14 = vmax.f32 %v3499_v22, 0.0  ;;  %v3564_v41 = vmax.f32 %v3500_v3, 0.0  ;;  %v3565_v52 = vmax.f32 %v3501_v11, 0.0  ;;  %v3755_v40 = vrot.slane %v3562_v18, 4 }
 0x3ea   : > { %v2250_v48 = vrot.slane %v2122_v46, 2  ;;  %v2251_v12 = vrot.slane %v2122_v46, 4  ;;  %v2252_v6 = vrot.slane %v2122_v46, 6  ;;  %v3193_v30 = vsel %vm9315_vm10, %v2122_v46, -inf  ;;  %vm9325_vm10 = vmmov %vm9324_vm0 }
 0x3eb   : > { %vm9316_vm11 = vcmask 1044484   ;;  %v3757_v19 = vrot.slane %v3563_v14, 3  ;;  %v3759_v13 = vrot.slane %v3564_v41, 2  ;;  %v3761_v57 = vrot.slane %v3565_v52, 1 }
 0x3ec   : > { %v3756_v0 = vsel %vm9316_vm11, %v3755_v40, %v3754_v10  ;;  %v3194_v60 = vrot.slane %v3193_v30, 4  ;;  %v3200_v16 = vsel %vm9317_vm7, %v2250_v48, -inf  ;;  %v3207_v24 = vsel %vm9318_vm12, %v2251_v12, -inf  ;;  %vm9326_vm11 = vmmov %vm9324_vm0 }
 0x3ed   : > { %v3214_v39 = vsel %vm9319_vm14, %v2252_v6, -inf  ;;  %vm9320_vm5 = vcmask 1045509   ;;  %v3201_v28 = vrot.slane %v3200_v16, 4  ;;  %v3208_v59 = vrot.slane %v3207_v24, 4 }
 0x3ee   : > { %v3758_v29 = vsel %vm9320_vm5, %v3757_v19, %v3756_v0  ;;  %v3215_v20 = vrot.slane %v3214_v39, 4  ;;  %v3181_v26 = vmax.f32 %v3179_v51, %v3180_v37  ;;  %v3188_v54 = vmax.f32 %v3186_v4, %v3187_v17 }
 0x3ef   : > { %vm9321_vm6 = vcmask 1046534   ;;  %v3195_v8 = vmax.f32 %v3193_v30, %v3194_v60  ;;  %vm9322_vm4 = vcmask 1047559   ;;  %v3202_v9 = vmax.f32 %v3200_v16, %v3201_v28 }
 0x3f0   : > { %v3760_v58 = vsel %vm9321_vm6, %v3759_v13, %v3758_v29  ;;  %v3209_v7 = vmax.f32 %v3207_v24, %v3208_v59  ;;  %v3216_v31 = vmax.f32 %v3214_v39, %v3215_v20  ;;  %v3143_v21 = vmax.f32 %v8246_v32, %v3142_v34 }
 0x3f1   : > { %v3762_v1 = vsel %vm9322_vm4, %v3761_v57, %v3760_v58  ;;  %v3150_v49 = vmax.f32 %v8280_v36, %v3149_v53  ;;  %v3169_v56 = vmax.f32 %v3167_v27, %v3168_v63  ;;  %v3196_v15 = vrot.slane %v3195_v8, 2 }
 0x3f2   : > { %3792 = vst.msk [vmem:[#allocation4 + $0x71] sm:$0xff] %vm3249_vm15, %v3762_v1  ;;  %v3176_v51 = vmax.f32 %v3174_v38, %v3175_v44  ;;  %v3203_v4 = vrot.slane %v3202_v9, 2  ;;  %v3210_v43 = vrot.slane %v3209_v7, 2  ;;  %v3217_v42 = vrot.slane %v3216_v31, 2 }
 0x3f3   : > { %v3157_v55 = vmax.f32 %v8299_v50, %v3156_v2  ;;  %v3164_v23 = vmax.f32 %v8301_v47, %v3163_v33  ;;  %v3182_v61 = vrot.slane %v3181_v26, 2  ;;  %v3197_v37 = vmax.f32 %v3195_v8, %v3196_v15 }
 0x3f4   : > { %v3189_v22 = vrot.slane %v3188_v54, 2  ;;  %v3204_v3 = vmax.f32 %v3202_v9, %v3203_v4  ;;  %v3211_v11 = vmax.f32 %v3209_v7, %v3210_v43  ;;  %v3218_v32 = vmax.f32 %v3216_v31, %v3217_v42 }
 0x3f5   : > { %v3418_v34 = vsel %vm3249_vm15, %v3143_v21, -inf  ;;  %v3170_v36 = vrot.slane %v3169_v56, 1  ;;  %v3198_v53 = vrot.slane %v3197_v37, 1  ;;  %v3177_v27 = vrot.slane %v3176_v51, 1 }
 0x3f6   : > { %v3205_v18 = vrot.slane %v3204_v3, 1  ;;  %v3212_v38 = vrot.slane %v3211_v11, 1  ;;  %v3219_v10 = vrot.slane %v3218_v32, 1  ;;  %v3421_v63 = vsel %vm3249_vm15, %v3150_v49, -inf }
 0x3f7   : > { %v3424_v50 = vsel %vm3249_vm15, %v3157_v55, -inf  ;;  %v8352_v47 = vsel %vm3249_vm15, %v3164_v23, -inf  ;;  %v3199_v2 = vmax.f32 %v3197_v37, %v3198_v53  ;;  %v3183_v33 = vmax.f32 %v3181_v26, %v3182_v61 }
 0x3f8   : > { %v3190_v44 = vmax.f32 %v3188_v54, %v3189_v22  ;;  %v3206_v17 = vmax.f32 %v3204_v3, %v3205_v18  ;;  %v3213_v46 = vmax.f32 %v3211_v11, %v3212_v38  ;;  %v3171_v52 = vmax.f32 %v3169_v56, %v3170_v36 }
 0x3f9   : > { %v8354_v14 = vld [vmem:[#allocation4 + $0x70] sm:$0xff]  ;;  %v3809_v41 = vld [vmem:[#allocation4 + $0x78] sm:$0x3]  ;;  %v3419_v40 = vsel %vm3249_vm15, %v3199_v2, -inf  ;;  %v8362_v6 = vmax.f32 %v3176_v51, %v3177_v27  ;;  %v3220_v30 = vmax.f32 %v3218_v32, %v3219_v10  ;;  %v3184_v39 = vrot.slane %v3183_v33, 1 }
 0x3fa   : > { %4052 = vrot.lane.b32.xlu2 %v8354_v14, %s9127_s30  ;;  %3821 = vst.msk [vmem:[#allocation5 + $0xa8] sm:$0xff] %vm3249_vm15, %v8354_v14  ;;  %v3916_v48 = vrot.slane %v8354_v14, 2  ;;  %v3917_v12 = vrot.slane %v3809_v41, 2  ;;  %v3422_v0 = vsel %vm3249_vm15, %v3206_v17, -inf  ;;  %v3425_v19 = vsel %vm3249_vm15, %v3213_v46, -inf  ;;  %v2125_v16 = vpop.f32.mrf.mxu2 }
 0x3fb   : > { %v3420_v13 = vmax.f32 %v3418_v34, %v3419_v40  ;;  %v3423_v57 = vmax.f32 %v3421_v63, %v3422_v0  ;;  %v3426_v60 = vmax.f32 %v3424_v50, %v3425_v19  ;;  %v2253_v29 = vrot.slane %v2125_v16, 2  ;;  %v4312_v40 = vpop.f32.mrf.mxu3 }
 0x3fc   : > { %v8367_v24 = vsel %vm867_vm3, %v3916_v48, %v3917_v12  ;;  %v2254_v28 = vrot.slane %v2125_v16, 4  ;;  %v2255_v59 = vrot.slane %v2125_v16, 6  ;;  %v3221_v54 = vsel %vm9323_vm8, %v2125_v16, -inf }
 0x3fd   : > { %4126 = vst.msk [vmem:[#allocation5 + $0x88] sm:$0xff] %vm3249_vm15, %v8367_v24  ;;  %4021 = vrot.lane.b32.xlu1 %v8367_v24, %s9086_s22  ;;  %v3503_v20 = vadd.f32 %v8285_v45, %v3423_v57  ;;  %v3504_v26 = vadd.f32 %v8285_v45, %v3426_v60  ;;  %v3859_v58 = vrot.slane %v8354_v14, 1  ;;  %v3428_v8 = vsel %vm3249_vm15, %v3220_v30, -inf }
 0x3fe   : > { %v3222_v1 = vrot.slane %v3221_v54, 4  ;;  %v3228_v9 = vsel %vm9324_vm0, %v2253_v29, -inf  ;;  %v3235_v7 = vsel %vm9325_vm10, %v2254_v28, -inf  ;;  %v3191_v31 = vrot.slane %v3190_v44, 1 }
 0x3ff   : > { %v3502_v21 = vadd.f32 %v8285_v45, %v3420_v13  ;;  %v3567_v49 = vmax.f32 %v3503_v20, 0.0  ;;  %v3229_v56 = vrot.slane %v3228_v9, 4  ;;  %v3236_v51 = vrot.slane %v3235_v7, 4 }
 0x400   : > { %v3223_v15 = vmax.f32 %v3221_v54, %v3222_v1  ;;  %v3242_v4 = vsel %vm9326_vm11, %v2255_v59, -inf  ;;  %v3860_v43 = vrot.slane %v3809_v41, 1  ;;  %v3429_v42 = vmax.f32 %v8352_v47, %v3428_v8 }
 0x401   : > { %v3568_v55 = vmax.f32 %v3504_v26, 0.0  ;;  %v3763_v23 = vrot.slane %v3567_v49, 7  ;;  %v3230_v61 = vmax.f32 %v3228_v9, %v3229_v56  ;;  %v3237_v22 = vmax.f32 %v3235_v7, %v3236_v51 }
 0x402   : > { %3929 = vrot.lane.b32.xlu2 %v8003_v5, %s9127_s30  ;;  %v3224_v37 = vrot.slane %v3223_v15, 2  ;;  %v3243_v3 = vrot.slane %v3242_v4, 4  ;;  %v8386_v11 = vsel %vm657_vm2, %v3859_v58, %v3860_v43  ;;  %v3185_v32 = vmax.f32 %v3183_v33, %v3184_v39  ;;  %v4271_v33 = vpop.f32.mrf.mxu2 }
 0x403   : > { %v3192_v34 = vmax.f32 %v3190_v44, %v3191_v31  ;;  %v3566_v36 = vmax.f32 %v3502_v21, 0.0  ;;  %v3231_v53 = vrot.slane %v3230_v61, 2  ;;  %4004 = vst.msk [vmem:[#allocation5 + $0x98] sm:$0xff] %vm3249_vm15, %v8386_v11  ;;  %4088 = vrot.lane.b32.xlu0 %v8386_v11, %s5785_s24  ;;  %v3430_v18 = vsel %vm3249_vm15, %v3171_v52, -inf }
 0x404   : > { %v4146_v27 = vld [vmem:[#allocation5 + $0x88] sm:$0xff]  ;;  %v3225_v5 = vmax.f32 %v3223_v15, %v3224_v37  ;;  %v3238_v38 = vrot.slane %v3237_v22, 2  ;;  %v3244_v10 = vmax.f32 %v3242_v4, %v3243_v3  ;;  %v3505_v63 = vadd.f32 %v8285_v45, %v3429_v42  ;;  %v4230_v44 = vpop.f32.mrf.mxu1 }
 0x405   : > { %5567 = vmatmul.msk.f32.gmra.mxu3 %vm3249_vm15, %v4146_v27  ;;  %3874 = vrot.lane.b32.xlu1 %v8258_v62, %s9086_s22  ;;  %vm9327_vm7 = vcmask 1041409   ;;  %v3765_v47 = vrot.slane %v3568_v55, 6  ;;  %v3232_v2 = vmax.f32 %v3230_v61, %v3231_v53  ;;  %v4272_v52 = vadd.f32 %v4271_v33, %v4230_v44 }
 0x406   : > { %v3764_v50 = vsel %vm9327_vm7, %v3763_v23, %v3566_v36  ;;  %v3226_v17 = vrot.slane %v3225_v5, 1  ;;  %v3239_v46 = vmax.f32 %v3237_v22, %v3238_v38  ;;  %v3245_v41 = vrot.slane %v3244_v10, 2 }
 0x407   : > { %v3433_v48 = vsel %vm3249_vm15, %v8362_v6, -inf  ;;  %v3436_v12 = vsel %vm3249_vm15, %v3185_v32, -inf  ;;  %v3439_v62 = vsel %vm3249_vm15, %v3192_v34, -inf  ;;  %v3233_v30 = vrot.slane %v3232_v2, 1 }
 0x408   : > { %v3227_v0 = vmax.f32 %v3225_v5, %v3226_v17  ;;  %v3240_v19 = vrot.slane %v3239_v46, 1  ;;  %v3246_v13 = vmax.f32 %v3244_v10, %v3245_v41  ;;  %v4313_v57 = vadd.f32 %v4312_v40, %v4272_v52 }
 0x409   : > { %v3569_v60 = vmax.f32 %v3505_v63, 0.0  ;;  %vm9328_vm12 = vcmask 1042434   ;;  %v3234_v39 = vmax.f32 %v3232_v2, %v3233_v30  ;;  %vm4392_vm14 = vcmask 517120  }
 0x40a   : > { %v3766_v16 = vsel %vm9328_vm12, %v3765_v47, %v3764_v50  ;;  %v3241_v29 = vmax.f32 %v3239_v46, %v3240_v19  ;;  %v3247_v28 = vrot.slane %v3246_v13, 1  ;;  %v3431_v59 = vsel %vm3249_vm15, %v3227_v0, -inf }
 0x40b   : > { %v4344_v20 = vrot.slane %v4313_v57, 2  ;;  %v3432_v6 = vmax.f32 %v3430_v18, %v3431_v59  ;;  %v3434_v26 = vsel %vm3249_vm15, %v3234_v39, -inf  ;;  %v4345_v54 = vrot.slane %v4313_v57, 4  ;;  %3963 = vrot.lane.b32.xlu0 %v8233_v25, %s5785_s24 }
 0x40c   : > { %v4346_v58 = vrot.slane %v4313_v57, 6  ;;  %v3248_v8 = vmax.f32 %v3246_v13, %v3247_v28  ;;  %v3435_v1 = vmax.f32 %v3433_v48, %v3434_v26  ;;  %v3437_v9 = vsel %vm3249_vm15, %v3241_v29, -inf  ;;  %v4315_v48 = vpop.f32.mrf.mxu3 }
 0x40d   : > { %v4393_v7 = vsel %vm4392_vm14, %v4313_v57, -inf  ;;  %v3438_v31 = vmax.f32 %v3436_v12, %v3437_v9  ;;  %v3506_v21 = vadd.f32 %v8285_v45, %v3432_v6  ;;  %v4400_v56 = vsel %vm4392_vm14, %v4344_v20, -inf }
 0x40e   : > { %v4394_v49 = vrot.slane %v4393_v7, 4  ;;  %v3440_v15 = vsel %vm3249_vm15, %v3248_v8, -inf  ;;  %v3507_v51 = vadd.f32 %v8285_v45, %v3435_v1  ;;  %v4401_v4 = vrot.slane %v4400_v56, 4 }
 0x40f   : > { %v4407_v43 = vsel %vm4392_vm14, %v4345_v54, -inf  ;;  %v3767_v25 = vrot.slane %v3569_v60, 5  ;;  %v3441_v42 = vmax.f32 %v3439_v62, %v3440_v15  ;;  %v3508_v55 = vadd.f32 %v8285_v45, %v3438_v31 }
 0x410   : > { %v3570_v23 = vmax.f32 %v3506_v21, 0.0  ;;  %v3571_v61 = vmax.f32 %v3507_v51, 0.0  ;;  %v4408_v37 = vrot.slane %v4407_v43, 4  ;;  %v4414_v22 = vsel %vm4392_vm14, %v4346_v58, -inf }
 0x411   : > { %vm9329_vm5 = vcmask 1043459   ;;  %v3509_v32 = vadd.f32 %v8285_v45, %v3441_v42  ;;  %v3572_v34 = vmax.f32 %v3508_v55, 0.0  ;;  %v4395_v27 = vmax.f32 %v4393_v7, %v4394_v49 }
 0x412   : > { %v3768_v3 = vsel %vm9329_vm5, %v3767_v25, %v3766_v16  ;;  %v3769_v36 = vrot.slane %v3570_v23, 4  ;;  %v3771_v53 = vrot.slane %v3571_v61, 3  ;;  %v4402_v18 = vmax.f32 %v4400_v56, %v4401_v4  ;;  %v4274_v44 = vpop.f32.mrf.mxu2 }
 0x413   : > { %v4415_v5 = vrot.slane %v4414_v22, 4  ;;  %v3573_v38 = vmax.f32 %v3509_v32, 0.0  ;;  %vm9330_vm6 = vcmask 1044484   ;;  %v3773_v63 = vrot.slane %v3572_v34, 2 }
 0x414   : > { %v3770_v10 = vsel %vm9330_vm6, %v3769_v36, %v3768_v3  ;;  %v4409_v50 = vmax.f32 %v4407_v43, %v4408_v37  ;;  %vm9331_vm4 = vcmask 1045509   ;;  %vm9332_vm8 = vcmask 1046534   ;;  %v4233_v17 = vpop.f32.mrf.mxu1 }
 0x415   : > { %v3772_v47 = vsel %vm9331_vm4, %v3771_v53, %v3770_v10  ;;  %v3775_v33 = vrot.slane %v3573_v38, 1  ;;  %vm4702_vm0 = vcmask 521216   ;;  %v4396_v45 = vrot.slane %v4395_v27, 2 }
 0x416   : > { %v3774_v2 = vsel %vm9332_vm8, %v3773_v63, %v3772_v47  ;;  %v4403_v46 = vrot.slane %v4402_v18, 2  ;;  %v4416_v41 = vmax.f32 %v4414_v22, %v4415_v5  ;;  %v4275_v52 = vadd.f32 %v4274_v44, %v4233_v17 }
 0x417   : > { %v9333_v40 = vmov 0.0   ;;  %vm9334_vm10 = vcmask 1047559   ;;  %v4410_v62 = vrot.slane %v4409_v50, 2  ;;  %v4397_v0 = vmax.f32 %v4395_v27, %v4396_v45 }
 0x418   : > { %4703 = vst.msk [vmem:[#allocation6] sm:$0x3f] %vm4702_vm0, %v9333_v40  ;;  %v3776_v12 = vsel %vm9334_vm10, %v3775_v33, %v3774_v2  ;;  %v4316_v30 = vadd.f32 %v4315_v48, %v4275_v52  ;;  %v4404_v19 = vmax.f32 %v4402_v18, %v4403_v46  ;;  %v4417_v13 = vrot.slane %v4416_v41, 2  ;;  %v8459_v48 = vld [vmem:[%s9021_s4] ss:$0 sm:$0xff] }
 0x419   : > { %4704 = vst.msk [vmem:[#allocation6 + $0x8] sm:$0x3f] %vm4702_vm0, %v9333_v40  ;;  %v4411_v60 = vmax.f32 %v4409_v50, %v4410_v62  ;;  %v4398_v7 = vrot.slane %v4397_v0, 1  ;;  %vm4617_vm11 = vcmask 523264   ;;  %vm4754_vm12 = vcmask 519168  }
 0x41a   : > { %3793 = vst.msk [vmem:[#allocation4 + $0x81] sm:$0xff] %vm3249_vm15, %v3776_v12  ;;  %v4347_v57 = vrot.slane %v4316_v30, 2  ;;  %v4348_v16 = vrot.slane %v4316_v30, 4  ;;  %v4349_v39 = vrot.slane %v4316_v30, 6  ;;  %v4421_v29 = vsel %vm4392_vm14, %v4316_v30, -inf }
 0x41b   : > { %4708 = vst.msk [vmem:[#allocation6 + $0x28] sm:$0x3f] %vm4702_vm0, %v9333_v40  ;;  %v4422_v28 = vrot.slane %v4421_v29, 4  ;;  %v4418_v58 = vmax.f32 %v4416_v41, %v4417_v13  ;;  %v4405_v31 = vrot.slane %v4404_v19, 1  ;;  %v4412_v21 = vrot.slane %v4411_v60, 1 }
 0x41c   : > { %4705 = vst.msk [vmem:[#allocation6 + $0x10] sm:$0x3f] %vm4702_vm0, %v9333_v40  ;;  %v4428_v59 = vsel %vm4392_vm14, %v4347_v57, -inf  ;;  %v4435_v6 = vsel %vm4392_vm14, %v4348_v16, -inf  ;;  %v4442_v26 = vsel %vm4392_vm14, %v4349_v39, -inf  ;;  %v4399_v34 = vmax.f32 %v4397_v0, %v4398_v7 }
 0x41d   : > { %4706 = vst.msk [vmem:[#allocation6 + $0x18] sm:$0x3f] %vm4702_vm0, %v9333_v40  ;;  %v4429_v20 = vrot.slane %v4428_v59, 4  ;;  %v4423_v8 = vmax.f32 %v4421_v29, %v4422_v28  ;;  %v4436_v1 = vrot.slane %v4435_v6, 4  ;;  %v4443_v9 = vrot.slane %v4442_v26, 4 }
 0x41e   : > { %4707 = vst.msk [vmem:[#allocation6 + $0x20] sm:$0x3f] %vm4702_vm0, %v9333_v40  ;;  %v4419_v37 = vrot.slane %v4418_v58, 1  ;;  %v4406_v10 = vmax.f32 %v4404_v19, %v4405_v31  ;;  %v4413_v63 = vmax.f32 %v4411_v60, %v4412_v21  ;;  %v4618_v46 = vsel %vm4617_vm11, %v4399_v34, -inf  ;;  %v3813_v28 = vld [vmem:[#allocation4 + $0x98] sm:$0x3] }
 0x41f   : > { %v8439_v54 = vld [vmem:[#allocation6] sm:$0x3f]  ;;  %v4430_v49 = vmax.f32 %v4428_v59, %v4429_v20  ;;  %v4424_v51 = vrot.slane %v4423_v8, 2  ;;  %v4437_v4 = vmax.f32 %v4435_v6, %v4436_v1  ;;  %v4444_v43 = vmax.f32 %v4442_v26, %v4443_v9  ;;  %v5033_v34 = vld [vmem:[%s9022_s5 + $0x1d0] sm:$0xff] }
 0x420   : > { %4769 = vst [vmem:[#allocation1] ss:$2 sm:$0xff] %v8439_v54  ;;  %v4420_v47 = vmax.f32 %v4418_v58, %v4419_v37  ;;  %v4621_v12 = vsel %vm4617_vm11, %v4406_v10, -inf  ;;  %v4624_v62 = vsel %vm4617_vm11, %v4413_v63, -inf  ;;  %v4111_v26 = vrot.slane %v3813_v28, 2 }
 0x421   : > { %v8442_v56 = vld [vmem:[#allocation4 + $0x80] sm:$0xff]  ;;  %v3811_v15 = vld [vmem:[#allocation4 + $0x88] sm:$0x3]  ;;  %v4431_v42 = vrot.slane %v4430_v49, 2  ;;  %v4425_v22 = vmax.f32 %v4423_v8, %v4424_v51  ;;  %v4438_v3 = vrot.slane %v4437_v4, 2  ;;  %v4445_v32 = vrot.slane %v4444_v43, 2 }
 0x422   : > { %v3987_v25 = vrot.slane %v8442_v56, 1  ;;  %4054 = vrot.lane.b32.xlu2 %v8442_v56, %s9127_s30  ;;  %v4006_v55 = vrot.slane %v8442_v56, 2  ;;  %v4007_v23 = vrot.slane %v3811_v15, 2  ;;  %v3988_v61 = vrot.slane %v3811_v15, 1 }
 0x423   : > { %v4432_v36 = vmax.f32 %v4430_v49, %v4431_v42  ;;  %v4426_v18 = vrot.slane %v4425_v22, 1  ;;  %v4439_v5 = vmax.f32 %v4437_v4, %v4438_v3  ;;  %v4446_v38 = vmax.f32 %v4444_v43, %v4445_v32  ;;  %v4277_v32 = vpop.f32.mrf.mxu2 }
 0x424   : > { %v4008_v53 = vsel %vm867_vm3, %v4006_v55, %v4007_v23  ;;  %v3989_v27 = vsel %vm657_vm2, %v3987_v25, %v3988_v61  ;;  %v4627_v19 = vsel %vm4617_vm11, %v4420_v47, -inf  ;;  %v4076_v7 = vrot.slane %v3813_v28, 1 }
 0x425   : > { %4127 = vst.msk [vmem:[#allocation5 + $0xa0] sm:$0xff] %vm3249_vm15, %v4008_v53  ;;  %4023 = vrot.lane.b32.xlu1 %v4008_v53, %s9086_s22  ;;  %4090 = vrot.lane.b32.xlu0 %v3989_v27, %s5785_s24  ;;  %v4433_v50 = vrot.slane %v4432_v36, 1  ;;  %v4427_v2 = vmax.f32 %v4425_v22, %v4426_v18  ;;  %v4440_v33 = vrot.slane %v4439_v5, 1  ;;  %v4447_v44 = vrot.slane %v4446_v38, 1  ;;  %v4236_v22 = vpop.f32.mrf.mxu1 }
 0x426   : > { %4005 = vst.msk [vmem:[#allocation5 + $0xb0] sm:$0xff] %vm3249_vm15, %v3989_v27  ;;  %v4051_v45 = vpop.permute.xlu2 %4050  ;;  %vm9335_vm5 = vcmask 1042434   ;;  %vm9336_vm6 = vcmask 1043459   ;;  %v4782_v61 = vrot.slane %v8439_v54, 4  ;;  %v4278_v53 = vadd.f32 %v4277_v32, %v4236_v22 }
 0x427   : > { %v4434_v17 = vmax.f32 %v4432_v36, %v4433_v50  ;;  %v4441_v41 = vmax.f32 %v4439_v5, %v4440_v33  ;;  %v4448_v52 = vmax.f32 %v4446_v38, %v4447_v44  ;;  %v4619_v40 = vsel %vm4617_vm11, %v4427_v2, -inf  ;;  %4070 = vst.msk [vmem:[#allocation5 + $0x68] sm:$0xff] %vm3943_vm1, %v4051_v45  ;;  %v4318_v5 = vpop.f32.mrf.mxu3 }
 0x428   : > { %v4620_v30 = vmax.f32 %v4618_v46, %v4619_v40  ;;  %v4791_v36 = vrot.slane %v4782_v61, 5  ;;  %v4319_v10 = vadd.f32 %v4318_v5, %v4278_v53  ;;  %vm4823_vm8 = vcmask 1041408  }
 0x429   : > { %v4622_v0 = vsel %vm4617_vm11, %v4434_v17, -inf  ;;  %v4625_v57 = vsel %vm4617_vm11, %v4441_v41, -inf  ;;  %v4628_v60 = vsel %vm4617_vm11, %v4448_v52, -inf  ;;  %vm4824_vm0 = vcmask 1045508   ;;  %v5028_v52 = vld [vmem:[%s9022_s5 + $0x1a8] sm:$0xff] }
 0x42a   : > { %3931 = vrot.lane.b32.xlu2 %v8244_v35, %s9127_s30  ;;  %v4623_v13 = vmax.f32 %v4621_v12, %v4622_v0  ;;  %v4626_v16 = vmax.f32 %v4624_v62, %v4625_v57  ;;  %v4629_v39 = vmax.f32 %v4627_v19, %v4628_v60  ;;  %v3812_v35 = vld [vmem:[#allocation4 + $0x90] sm:$0xff]  ;;  %v4670_v59 = vadd.f32 %v8459_v48, %v4620_v30  ;;  %vm8517_vm10 = vmor %vm4823_vm8, %vm4824_vm0 }
 0x42b   : > { %v4110_v6 = vrot.slane %v3812_v35, 2  ;;  %v4075_v9 = vrot.slane %v3812_v35, 1  ;;  %v4350_v47 = vrot.slane %v4319_v10, 2  ;;  %v4351_v2 = vrot.slane %v4319_v10, 4 }
 0x42c   : > { %v4149_v29 = vld [vmem:[#allocation5 + $0xa0] sm:$0xff]  ;;  %v4671_v20 = vadd.f32 %v8459_v48, %v4623_v13  ;;  %v4672_v58 = vadd.f32 %v8459_v48, %v4626_v16  ;;  %v4673_v8 = vadd.f32 %v8459_v48, %v4629_v39  ;;  %v4686_v15 = vmax.f32 %v4670_v59, 0.0 }
 0x42d   : > { %5568 = vmatmul.msk.f32.gmra.mxu3 %vm3249_vm15, %v4149_v29  ;;  %3876 = vrot.lane.b32.xlu1 %v8386_v11, %s9086_s22  ;;  %v4112_v11 = vsel %vm867_vm3, %v4110_v6, %v4111_v26  ;;  %v4077_v25 = vsel %vm657_vm2, %v4075_v9, %v4076_v7  ;;  %vm4786_vm2 = vcmask 1042432   ;;  %vm4787_vm3 = vcmask 1046532   ;;  %s5721_s22 = scalar_lea.hbm %s5720_s25, 1 }
 0x42e   : > { %3965 = vrot.lane.b32.xlu0 %v8354_v14, %s5785_s24  ;;  %v4687_v1 = vmax.f32 %v4671_v20, 0.0  ;;  %v4688_v31 = vmax.f32 %v4672_v58, 0.0  ;;  %v4689_v21 = vmax.f32 %v4673_v8, 0.0  ;;  %v3928_v49 = vpop.permute.xlu2 %3927  ;;  %4128 = vst.msk [vmem:[#allocation5 + $0xb8] sm:$0xff] %vm3249_vm15, %v4112_v11  ;;  %vm8498_vm4 = vmor %vm4786_vm2, %vm4787_vm3  ;;  %v4352_v33 = vrot.slane %v4319_v10, 6  ;;  %p5722_p0 = scmp.ne.s32.totalorder %s5720_s25, %s5721_s22  ;;  %p5727_p4 = scmp.lt.s32.totalorder %s5725_s0, %s5721_s22 }
 0x42f   : > { %3948 = vst.msk [vmem:[#allocation5 + $0x60] sm:$0xff] %vm3943_vm1, %v3928_v49  ;;  %v5574_v44 = vrot.slane %v8439_v54, 10  ;;  %v4828_v17 = vrot.slane %v4782_v61, 6  ;;  %v4449_v46 = vsel %vm4392_vm14, %v4319_v10, -inf  ;;  %v4456_v12 = vsel %vm4392_vm14, %v4350_v47, -inf  ;;  %v4321_v7 = vpop.f32.mrf.mxu3  ;;  %vm9346_vm3 = vmmov %vm9336_vm6 }
 0x430   : > { %v4725_v51 = vrot.slane %v4687_v1, 7  ;;  %v4727_v4 = vrot.slane %v4688_v31, 6  ;;  %v4729_v14 = vrot.slane %v4689_v21, 5  ;;  %v4463_v62 = vsel %vm4392_vm14, %v4351_v2, -inf  ;;  %p5723_p1 = pnand %p5722_p0, %p5884_p5  ;;  %p5728_p7 = por %p5727_p4, %p5726_p3 }
 0x431   : > { %v4470_v0 = vsel %vm4392_vm14, %v4352_v33, -inf  ;;  %v4829_v13 = vsel %vm8517_vm10, %v5574_v44, %v4828_v17  ;;  %v4457_v16 = vrot.slane %v4456_v12, 4  ;;  %v4464_v39 = vrot.slane %v4463_v62, 4 }
 0x432   : > { %4056 = vrot.lane.b32.xlu2 %v3812_v35, %s9127_s30  ;;  %v4726_v43 = vsel %vm9327_vm7, %v4725_v51, %v4686_v15  ;;  %v4471_v29 = vrot.slane %v4470_v0, 4  ;;  %p5724_p2 = pneg %p5723_p1 }
 0x433   : > { %v4728_v42 = vsel %vm9335_vm5, %v4727_v4, %v4726_v43  ;;  %v4458_v59 = vmax.f32 %v4456_v12, %v4457_v16  ;;  %v4465_v20 = vmax.f32 %v4463_v62, %v4464_v39 }
 0x434   : > { %v4730_v55 = vsel %vm9336_vm6, %v4729_v14, %v4728_v42  ;;  %v4472_v6 = vmax.f32 %v4470_v0, %v4471_v29  ;;  %p5729_p8 = pnand %p5728_p7, %p5724_p2 }
 0x435   : > { %4755 = vst.msk [vmem:[#allocation6 + $0x9] sm:$0xf] %vm4754_vm12, %v4730_v55  ;;  %v4459_v31 = vrot.slane %v4458_v59, 2  ;;  %v4466_v21 = vrot.slane %v4465_v20, 2 }
 0x436   : > { %4092 = vrot.lane.b32.xlu0 %v4077_v25, %s5785_s24  ;;  %v4473_v15 = vrot.slane %v4472_v6, 2 }
 0x437   : > { %v4460_v55 = vmax.f32 %v4458_v59, %v4459_v31  ;;  %v4467_v61 = vmax.f32 %v4465_v20, %v4466_v21 }
 0x438   : > { %v4474_v22 = vmax.f32 %v4472_v6, %v4473_v15 }
 0x439   : > { %v4468_v47 = vrot.slane %v4467_v61, 1 }
 0x43a   : > { %3933 = vrot.lane.b32.xlu2 %v8367_v24, %s9127_s30  ;;  %v5570_v24 = vrot.slane %v8439_v54, 9  ;;  %v4450_v54 = vrot.slane %v4449_v46, 4  ;;  %v4475_v2 = vrot.slane %v4474_v22, 1 }
 0x43c   : > { %v8491_v23 = vld [vmem:[#allocation6 + $0x8] sm:$0x3f]  ;;  %v4792_v50 = vsel %vm8498_vm4, %v5570_v24, %v4791_v36  ;;  %v4451_v35 = vmax.f32 %v4449_v46, %v4450_v54  ;;  %v4469_v54 = vmax.f32 %v4467_v61, %v4468_v47  ;;  %v4476_v0 = vmax.f32 %v4474_v22, %v4475_v2 }
 0x43d   : > { %4771 = vst [vmem:[#allocation1 + $0x1] ss:$2 sm:$0xff] %v8491_v23  ;;  %v4783_v37 = vrot.slane %v8491_v23, 4  ;;  %v5571_v27 = vrot.slane %v8491_v23, 9  ;;  %v5575_v40 = vrot.slane %v8491_v23, 10 }
 0x43e   : > { %3967 = vrot.lane.b32.xlu0 %v8442_v56, %s5785_s24  ;;  %v4452_v58 = vrot.slane %v4451_v35, 2  ;;  %v4636_v6 = vsel %vm4617_vm11, %v4469_v54, -inf  ;;  %s394_s24 = sand.u32 1, %s5763_s18  }
 0x43f   : > { %v4795_v3 = vrot.slane %v4783_v37, 5  ;;  %v4832_v45 = vrot.slane %v4783_v37, 6  ;;  %s395_s12 = scalar_lea.vmem [#allocation11], %s394_s24  ;;  %s5443_s15 = scalar_lea.sflag [#allocation10], %s394_s24 }
 0x440   : > { %v4453_v11 = vmax.f32 %v4451_v35, %v4452_v58  ;;  %v4639_v58 = vsel %vm4617_vm11, %v4476_v0, -inf  ;;  %s5453_s29 = sshll.u32 %s395_s12, 4  ;;  %s5454_s29 = int_to_ptr.vmem [resolvable:$true] %s5453_s29 }
 0x441   : > { %v4020_v18 = vpop.permute.xlu1 %4019  ;;  %v8506_v56 = vsel %vm8498_vm4, %v5571_v27, %v4795_v3  ;;  %v8531_v57 = vsel %vm8517_vm10, %v5575_v40, %v4832_v45 }
 0x442   : > { %4038 = vst.msk [vmem:[#allocation5 + $0x80] sm:$0xff] %vm3886_vm9, %v4020_v18  ;;  %v4454_v18 = vrot.slane %v4453_v11, 1 }
 0x444   : > { %v4776_v38 = vld.sshfl [vmem:[#allocation1] sm:$0xff pattern:$0x75316420]  ;;  %v4087_v63 = vpop.permute.xlu0 %4086  ;;  %v4455_v46 = vmax.f32 %v4453_v11, %v4454_v18 }
 0x445   : > { %4807 = vst [vmem:[#allocation1 + $0x1] ss:$2 sm:$0xff] %v8506_v56 }
 0x446   : > { %4780 = vst.msk [vmem:[#allocation7] sm:$0xff] %vm4617_vm11, %v4776_v38  ;;  %v4630_v39 = vsel %vm4617_vm11, %v4455_v46, -inf }
 0x447   : > { %4106 = vst.msk [vmem:[#allocation5 + $0x68] sm:$0xff] %vm3977_vm13, %v4087_v63 }
 0x448   : > { %4805 = vst [vmem:[#allocation1] ss:$2 sm:$0xff] %v4792_v50  ;;  %v4461_v50 = vrot.slane %v4460_v55, 1 }
 0x449   : > { %v3873_v41 = vpop.permute.xlu1 %3872 }
 0x44a   : > { %3892 = vst.msk [vmem:[#allocation5 + $0x78] sm:$0xff] %vm3886_vm9, %v3873_v41 }
 0x44c   : > { %v3962_v30 = vpop.permute.xlu0 %3961 }
 0x44d   : > { %3982 = vst.msk [vmem:[#allocation5 + $0x60] sm:$0xff] %vm3977_vm13, %v3962_v30  ;;  %v4462_v30 = vmax.f32 %v4460_v55, %v4461_v50 }
 0x44e   : > { %v4142_v19 = vld [vmem:[#allocation5 + $0x68] sm:$0xff] }
 0x44f   : > { %v4812_v60 = vld.sshfl [vmem:[#allocation1] sm:$0xff pattern:$0x75316420]  ;;  %4282 = vmatmul.f32.gmra.mxu2 %v4142_v19  ;;  %v4633_v20 = vsel %vm4617_vm11, %v4462_v30, -inf  ;;  %v4985_v30 = vld [vmem:[%s9022_s5 + $0x50] sm:$0xff] }
 0x450   : > { %4814 = vrot.lane.b32.xlu1 %v4812_v60, %s9127_s30  ;;  %4844 = vst [vmem:[#allocation1 + $0x1] ss:$2 sm:$0xff] %v8531_v57 }
 0x451   : > { %4842 = vst [vmem:[#allocation1] ss:$2 sm:$0xff] %v4829_v13 }
 0x453   : > { %v4280_v8 = vpop.f32.mrf.mxu2 }
 0x454   : > { %v4053_v28 = vpop.permute.xlu2 %4052  ;;  %v4141_v26 = vld [vmem:[#allocation5 + $0x60] sm:$0xff] }
 0x455   : > { %4071 = vst.msk [vmem:[#allocation5 + $0x80] sm:$0xff] %vm3943_vm1, %v4053_v28  ;;  %v4239_v1 = vpop.f32.mrf.mxu1  ;;  %4241 = vmatmul.f32.gmra.mxu1 %v4141_v26 }
 0x456   : > { %v4281_v9 = vadd.f32 %v4280_v8, %v4239_v1 }
 0x458   : > { %v4849_v49 = vld.sshfl [vmem:[#allocation1] sm:$0xff pattern:$0x75316420]  ;;  %v4322_v51 = vadd.f32 %v4321_v7, %v4281_v9 }
 0x459   : > { %4856 = vst [vmem:[#allocation1] ss:$2 sm:$0xff] %v8491_v23 }
 0x45a   : > { %4853 = vst.msk [vmem:[#allocation7 + $0x8] sm:$0xff] %vm4617_vm11, %v4849_v49  ;;  %v4353_v4 = vrot.slane %v4322_v51, 2  ;;  %v4354_v43 = vrot.slane %v4322_v51, 4  ;;  %v4355_v14 = vrot.slane %v4322_v51, 6  ;;  %v4477_v25 = vsel %vm4392_vm14, %v4322_v51, -inf }
 0x45b   : > { %v4478_v37 = vrot.slane %v4477_v25, 4 }
 0x45c   : > { %v3930_v42 = vpop.permute.xlu2 %3929  ;;  %v4484_v3 = vsel %vm4392_vm14, %v4353_v4, -inf  ;;  %v4491_v32 = vsel %vm4392_vm14, %v4354_v43, -inf  ;;  %v4498_v23 = vsel %vm4392_vm14, %v4355_v14, -inf }
 0x45d   : > { %3949 = vst.msk [vmem:[#allocation5 + $0x78] sm:$0xff] %vm3943_vm1, %v3930_v42  ;;  %v4479_v24 = vmax.f32 %v4477_v25, %v4478_v37  ;;  %v4485_v36 = vrot.slane %v4484_v3, 4  ;;  %v4492_v53 = vrot.slane %v4491_v32, 4  ;;  %v4499_v27 = vrot.slane %v4498_v23, 4 }
 0x45f   : > { %v4480_v5 = vrot.slane %v4479_v24, 2  ;;  %v4486_v38 = vmax.f32 %v4484_v3, %v4485_v36  ;;  %v4493_v10 = vmax.f32 %v4491_v32, %v4492_v53  ;;  %v4500_v63 = vmax.f32 %v4498_v23, %v4499_v27 }
 0x461   : > { %v4481_v33 = vmax.f32 %v4479_v24, %v4480_v5  ;;  %v4487_v44 = vrot.slane %v4486_v38, 2  ;;  %v4494_v17 = vrot.slane %v4493_v10, 2  ;;  %v4501_v45 = vrot.slane %v4500_v63, 2 }
 0x463   : > { %v4482_v41 = vrot.slane %v4481_v33, 1  ;;  %v4488_v40 = vmax.f32 %v4486_v38, %v4487_v44  ;;  %v4495_v12 = vmax.f32 %v4493_v10, %v4494_v17  ;;  %v4502_v62 = vmax.f32 %v4500_v63, %v4501_v45  ;;  %v4989_v44 = vld [vmem:[%s9022_s5 + $0x70] sm:$0xff] }
 0x465   : > { %v4483_v19 = vmax.f32 %v4481_v33, %v4482_v41  ;;  %v4489_v13 = vrot.slane %v4488_v40, 1  ;;  %v4496_v60 = vrot.slane %v4495_v12, 1  ;;  %v4503_v16 = vrot.slane %v4502_v62, 1  ;;  %v4990_v33 = vld [vmem:[%s9022_s5 + $0x78] sm:$0xff]  ;;  %v4987_v41 = vld [vmem:[%s9022_s5 + $0x60] sm:$0xff] }
 0x466   : > { %5053 = vmatpush.msrb.mxu3 %v4990_v33  ;;  %v5014_v33 = vld [vmem:[%s9022_s5 + $0x138] sm:$0xff] }
 0x467   : > { %v4490_v29 = vmax.f32 %v4488_v40, %v4489_v13  ;;  %v4497_v35 = vmax.f32 %v4495_v12, %v4496_v60  ;;  %v4504_v28 = vmax.f32 %v4502_v62, %v4503_v16  ;;  %v4631_v59 = vsel %vm4617_vm11, %v4483_v19, -inf  ;;  %v4152_v12 = vld [vmem:[#allocation5 + $0xb8] sm:$0xff]  ;;  %v4986_v62 = vld [vmem:[%s9022_s5 + $0x58] sm:$0xff]  ;;  %v4984_v19 = vld [vmem:[%s9022_s5 + $0x48] sm:$0xff] }
 0x468   : > { %v4632_v26 = vmax.f32 %v4630_v39, %v4631_v59  ;;  %5054 = vmatpush.msrb.mxu3 %v4989_v44  ;;  %v4983_v13 = vld [vmem:[%s9022_s5 + $0x40] sm:$0xff]  ;;  %v4982_v16 = vld [vmem:[%s9022_s5 + $0x38] sm:$0xff]  ;;  %v4981_v39 = vld [vmem:[%s9022_s5 + $0x30] sm:$0xff] }
 0x469   : > { %v4634_v8 = vsel %vm4617_vm11, %v4490_v29, -inf  ;;  %v4637_v1 = vsel %vm4617_vm11, %v4497_v35, -inf  ;;  %v4640_v9 = vsel %vm4617_vm11, %v4504_v28, -inf  ;;  %5569 = vmatmul.msk.f32.gmra.mxu3 %vm3249_vm15, %v4152_v12  ;;  %v4980_v35 = vld [vmem:[%s9022_s5 + $0x28] sm:$0xff]  ;;  %vm4820_vm15 = vcmask 1048064   ;;  %v5013_v44 = vld [vmem:[%s9022_s5 + $0x130] sm:$0xff] }
 0x46a   : > { %v4635_v7 = vmax.f32 %v4633_v20, %v4634_v8  ;;  %v4638_v31 = vmax.f32 %v4636_v6, %v4637_v1  ;;  %v4641_v21 = vmax.f32 %v4639_v58, %v4640_v9  ;;  %v4674_v49 = vadd.f32 %v8459_v48, %v4632_v26  ;;  %v4979_v6 = vld [vmem:[%s9022_s5 + $0x20] sm:$0xff]  ;;  %v4978_v26 = vld [vmem:[%s9022_s5 + $0x18] sm:$0xff]  ;;  %v4977_v58 = vld [vmem:[%s9022_s5 + $0x10] sm:$0xff] }
 0x46b   : > { %v4976_v8 = vld [vmem:[%s9022_s5 + $0x8] sm:$0xff]  ;;  %v5010_v12 = vld [vmem:[%s9022_s5 + $0x118] sm:$0xff] }
 0x46c   : > { %v4675_v15 = vadd.f32 %v8459_v48, %v4635_v7  ;;  %v4676_v51 = vadd.f32 %v8459_v48, %v4638_v31  ;;  %v4677_v11 = vadd.f32 %v8459_v48, %v4641_v21  ;;  %v4690_v42 = vmax.f32 %v4674_v49, 0.0  ;;  %v4975_v7 = vld [vmem:[%s9022_s5] sm:$0xff] }
 0x46e   : > { %v4691_v43 = vmax.f32 %v4675_v15, 0.0  ;;  %v4692_v14 = vmax.f32 %v4676_v51, 0.0  ;;  %v4693_v25 = vmax.f32 %v4677_v11, 0.0  ;;  %v5006_v51 = vld [vmem:[%s9022_s5 + $0xf8] sm:$0xff]  ;;  %v5005_v11 = vld [vmem:[%s9022_s5 + $0xf0] sm:$0xff] }
 0x46f   : > { %v4022_v4 = vpop.permute.xlu1 %4021  ;;  %5076 = vmatpush.msra.mxu1 %v5006_v51 }
 0x470   : > { %4039 = vst.msk [vmem:[#allocation5 + $0x98] sm:$0xff] %vm3886_vm9, %v4022_v4  ;;  %v4731_v55 = vrot.slane %v4691_v43, 7  ;;  %v4733_v61 = vrot.slane %v4692_v14, 6  ;;  %v4735_v22 = vrot.slane %v4693_v25, 5  ;;  %v5004_v4 = vld [vmem:[%s9022_s5 + $0xe8] sm:$0xff]  ;;  %v5022_v14 = vld [vmem:[%s9022_s5 + $0x178] sm:$0xff] }
 0x471   : > { %5077 = vmatpush.msra.mxu1 %v5005_v11  ;;  %v5003_v25 = vld [vmem:[%s9022_s5 + $0xe0] sm:$0xff]  ;;  %5099 = vmatpush.msra.mxu2 %v5022_v14 }
 0x472   : > { %v4732_v37 = vsel %vm9327_vm7, %v4731_v55, %v4690_v42  ;;  %v5021_v42 = vld [vmem:[%s9022_s5 + $0x170] sm:$0xff]  ;;  %v5020_v55 = vld [vmem:[%s9022_s5 + $0x168] sm:$0xff] }
 0x473   : > { %v4734_v3 = vsel %vm9335_vm5, %v4733_v61, %v4732_v37  ;;  %5078 = vmatpush.msra.mxu1 %v5004_v4  ;;  %v5002_v61 = vld [vmem:[%s9022_s5 + $0xd8] sm:$0xff]  ;;  %5100 = vmatpush.msra.mxu2 %v5021_v42  ;;  %v5019_v37 = vld [vmem:[%s9022_s5 + $0x160] sm:$0xff] }
 0x474   : > { %v4736_v32 = vsel %vm9336_vm6, %v4735_v22, %v4734_v3  ;;  %v5001_v22 = vld [vmem:[%s9022_s5 + $0xd0] sm:$0xff]  ;;  %v5000_v3 = vld [vmem:[%s9022_s5 + $0xc8] sm:$0xff] }
 0x475   : > { %v4089_v23 = vpop.permute.xlu0 %4088  ;;  %4756 = vst.msk [vmem:[#allocation6 + $0x11] sm:$0xf] %vm4754_vm12, %v4736_v32  ;;  %5079 = vmatpush.msra.mxu1 %v5003_v25  ;;  %5101 = vmatpush.msra.mxu2 %v5020_v55  ;;  %v4999_v32 = vld [vmem:[%s9022_s5 + $0xc0] sm:$0xff] }
 0x476   : > { %4107 = vst.msk [vmem:[#allocation5 + $0x80] sm:$0xff] %vm3977_vm13, %v4089_v23  ;;  %v4998_v23 = vld [vmem:[%s9022_s5 + $0xb8] sm:$0xff] }
 0x477   : > { %v3875_v24 = vpop.permute.xlu1 %3874  ;;  %5080 = vmatpush.msra.mxu1 %v5002_v61  ;;  %5102 = vmatpush.msra.mxu2 %v5019_v37 }
 0x478   : > { %3893 = vst.msk [vmem:[#allocation5 + $0x90] sm:$0xff] %vm3886_vm9, %v3875_v24  ;;  %v4997_v24 = vld [vmem:[%s9022_s5 + $0xb0] sm:$0xff] }
 0x479   : > { %5081 = vmatpush.msra.mxu1 %v5001_v22 }
 0x47b   : > { %5082 = vmatpush.msra.mxu1 %v5000_v3 }
 0x47c   : > { %v4055_v36 = vpop.permute.xlu2 %4054  ;;  %v4761_v53 = vld [vmem:[#allocation6 + $0x10] sm:$0x3f] }
 0x47d   : > { %4072 = vst.msk [vmem:[#allocation5 + $0x98] sm:$0xff] %vm3943_vm1, %v4055_v36  ;;  %v3964_v27 = vpop.permute.xlu0 %3963  ;;  %v4145_v18 = vld [vmem:[#allocation5 + $0x80] sm:$0xff]  ;;  %v4784_v5 = vrot.slane %v4761_v53, 4  ;;  %v5572_v63 = vrot.slane %v4761_v53, 9  ;;  %v5576_v45 = vrot.slane %v4761_v53, 10  ;;  %5083 = vmatpush.msra.mxu1 %v4999_v32  ;;  %v4996_v36 = vld [vmem:[%s9022_s5 + $0xa8] sm:$0xff] }
 0x47e   : > { %4773 = vst [vmem:[#allocation1 + $0x10] ss:$2 sm:$0xff] %v4761_v53  ;;  %4285 = vmatmul.f32.gmra.mxu2 %v4145_v18  ;;  %v4994_v18 = vld [vmem:[%s9022_s5 + $0x98] sm:$0xff] }
 0x47f   : > { %3983 = vst.msk [vmem:[#allocation5 + $0x78] sm:$0xff] %vm3977_vm13, %v3964_v27  ;;  %v4799_v10 = vrot.slane %v4784_v5, 5  ;;  %v4836_v17 = vrot.slane %v4784_v5, 6  ;;  %5084 = vmatpush.msra.mxu1 %v4998_v23  ;;  %v5018_v27 = vld [vmem:[%s9022_s5 + $0x158] sm:$0xff]  ;;  %v4993_v5 = vld [vmem:[%s9022_s5 + $0x90] sm:$0xff] }
 0x480   : > { %4858 = vst [vmem:[#allocation1 + $0x1] ss:$2 sm:$0xff] %v4761_v53  ;;  %5103 = vmatpush.msra.mxu2 %v5018_v27 }
 0x481   : > { %v8569_v2 = vsel %vm8498_vm4, %v5572_v63, %v4799_v10  ;;  %v8586_v40 = vsel %vm8517_vm10, %v5576_v45, %v4836_v17  ;;  %5085 = vmatpush.msra.mxu1 %v4997_v24  ;;  %v4992_v10 = vld [vmem:[%s9022_s5 + $0x88] sm:$0xff] }
 0x482   : > { %v5016_v63 = vld [vmem:[%s9022_s5 + $0x148] sm:$0xff] }
 0x483   : > { %5086 = vmatpush.msra.mxu1 %v4996_v36  ;;  %v5012_v45 = vld [vmem:[%s9022_s5 + $0x128] sm:$0xff] }
 0x484   : > { %v3932_v38 = vpop.permute.xlu2 %3931 }
 0x485   : > { %3950 = vst.msk [vmem:[#allocation5 + $0x90] sm:$0xff] %vm3943_vm1, %v3932_v38  ;;  %v5017_v38 = vld [vmem:[%s9022_s5 + $0x150] sm:$0xff] }
 0x486   : > { %v4144_v50 = vld [vmem:[#allocation5 + $0x78] sm:$0xff]  ;;  %5104 = vmatpush.msra.mxu2 %v5017_v38 }
 0x487   : > { %4244 = vmatmul.f32.gmra.mxu1 %v4144_v50  ;;  %v4863_v47 = vld.sshfl [vmem:[#allocation1] sm:$0xff pattern:$0x75316420] }
 0x488   : > { %4865 = vrot.lane.b32.xlu0 %v4863_v47, %s9127_s30  ;;  %4878 = vst [vmem:[#allocation1] ss:$2 sm:$0xff] %v8506_v56  ;;  %v4988_v56 = vld [vmem:[%s9022_s5 + $0x68] sm:$0xff]  ;;  %5105 = vmatpush.msra.mxu2 %v5016_v63  ;;  %v4991_v50 = vld [vmem:[%s9022_s5 + $0x80] sm:$0xff] }
 0x489   : > { %4880 = vst [vmem:[#allocation1 + $0x1] ss:$2 sm:$0xff] %v8569_v2  ;;  %5055 = vmatpush.msrb.mxu3 %v4988_v56  ;;  %v5015_v47 = vld [vmem:[%s9022_s5 + $0x140] sm:$0xff] }
 0x48a   : > { %5106 = vmatpush.msra.mxu2 %v5015_v47 }
 0x48b   : > { %5056 = vmatpush.msrb.mxu3 %v4987_v41  ;;  %v5011_v41 = vld [vmem:[%s9022_s5 + $0x120] sm:$0xff] }
 0x48c   : > { %v4057_v54 = vpop.permute.xlu2 %4056  ;;  %5107 = vmatpush.msra.mxu2 %v5014_v33 }
 0x48d   : > { %5057 = vmatpush.msrb.mxu3 %v4986_v62  ;;  %v4324_v62 = vpop.f32.mrf.mxu3 }
 0x48e   : > { %5108 = vmatpush.msra.mxu2 %v5013_v44 }
 0x48f   : > { %5058 = vmatpush.msrb.mxu3 %v4985_v30 }
 0x490   : > { %v4885_v46 = vld.sshfl [vmem:[#allocation1] sm:$0xff pattern:$0x75316420]  ;;  %5109 = vmatpush.msra.mxu2 %v5012_v45 }
 0x491   : > { %4895 = vst [vmem:[#allocation1] ss:$2 sm:$0xff] %v8531_v57  ;;  %5059 = vmatpush.msrb.mxu3 %v4984_v19 }
 0x492   : > { %4897 = vst [vmem:[#allocation1 + $0x1] ss:$2 sm:$0xff] %v8586_v40  ;;  %5110 = vmatpush.msra.mxu2 %v5011_v41 }
 0x493   : > { %4889 = vst.msk [vmem:[#allocation7 + $0x10] sm:$0xff] %vm4617_vm11, %v4885_v46  ;;  %5060 = vmatpush.msrb.mxu3 %v4983_v13  ;;  %v5007_v13 = vld [vmem:[%s9022_s5 + $0x100] sm:$0xff] }
 0x494   : > { %v3934_v28 = vpop.permute.xlu2 %3933  ;;  %5111 = vmatpush.msra.mxu2 %v5010_v12 }
 0x495   : > { %5061 = vmatpush.msrb.mxu3 %v4982_v16  ;;  %v4327_v51 = vpop.f32.mrf.mxu3 }
 0x497   : > { %v4024_v57 = vpop.permute.xlu1 %4023  ;;  %v4091_v0 = vpop.permute.xlu0 %4090  ;;  %5062 = vmatpush.msrb.mxu3 %v4981_v39 }
 0x498   : > { %4040 = vst.msk [vmem:[#allocation5 + $0xb0] sm:$0xff] %vm3886_vm9, %v4024_v57  ;;  %v5008_v57 = vld [vmem:[%s9022_s5 + $0x108] sm:$0xff] }
 0x499   : > { %4073 = vst.msk [vmem:[#allocation5 + $0xb0] sm:$0xff] %vm3943_vm1, %v4057_v54  ;;  %v4902_v60 = vld.sshfl [vmem:[#allocation1] sm:$0xff pattern:$0x75316420]  ;;  %5063 = vmatpush.msrb.mxu3 %v4980_v35  ;;  %v5009_v54 = vld [vmem:[%s9022_s5 + $0x110] sm:$0xff] }
 0x49a   : > { %4108 = vst.msk [vmem:[#allocation5 + $0x98] sm:$0xff] %vm3977_vm13, %v4091_v0  ;;  %4904 = vrot.lane.b32.xlu1 %v4902_v60, %s9127_s30  ;;  %5112 = vmatpush.msra.mxu2 %v5009_v54 }
 0x49b   : > { %4913 = vst [vmem:[#allocation1] ss:$2 sm:$0xff] %v4761_v53  ;;  %5064 = vmatpush.msrb.mxu3 %v4979_v6  ;;  %v4995_v53 = vld [vmem:[%s9022_s5 + $0xa0] sm:$0xff] }
 0x49c   : > { %5087 = vmatpush.msra.mxu1 %v4995_v53  ;;  %5113 = vmatpush.msra.mxu2 %v5008_v57 }
 0x49d   : > { %5065 = vmatpush.msrb.mxu3 %v4978_v26 }
 0x49e   : > { %5088 = vmatpush.msra.mxu1 %v4994_v18  ;;  %5114 = vmatpush.msra.mxu2 %v5007_v13 }
 0x49f   : > { %v3877_v29 = vpop.permute.xlu1 %3876  ;;  %5066 = vmatpush.msrb.mxu3 %v4977_v58 }
 0x4a0   : > { %3894 = vst.msk [vmem:[#allocation5 + $0xa8] sm:$0xff] %vm3886_vm9, %v3877_v29  ;;  %v3966_v59 = vpop.permute.xlu0 %3965  ;;  %5089 = vmatpush.msra.mxu1 %v4993_v5  ;;  %vm9341_vm9 = vmmov %vm9327_vm7 }
 0x4a1   : > { %3951 = vst.msk [vmem:[#allocation5 + $0xa8] sm:$0xff] %vm3943_vm1, %v3934_v28  ;;  %v4148_v20 = vld [vmem:[#allocation5 + $0x98] sm:$0xff]  ;;  %5067 = vmatpush.msrb.mxu3 %v4976_v8  ;;  %vm9342_vm1 = vmmov %vm9335_vm5 }
 0x4a2   : > { %3984 = vst.msk [vmem:[#allocation5 + $0x90] sm:$0xff] %vm3977_vm13, %v3966_v59  ;;  %4288 = vmatmul.f32.gmra.mxu2 %v4148_v20  ;;  %5090 = vmatpush.msra.mxu1 %v4992_v10  ;;  %vm9345_vm2 = vmmov %vm9342_vm1 }
 0x4a3   : > { %5068 = vmatpush.msrb.mxu3 %v4975_v7 }
 0x4a4   : > { %5091 = vmatpush.msra.mxu1 %v4991_v50 }
 0x4a8   : > { %v4093_v1 = vpop.permute.xlu0 %4092 }
 0x4a9   : > { %4109 = vst.msk [vmem:[#allocation5 + $0xb0] sm:$0xff] %vm3977_vm13, %v4093_v1  ;;  %v4147_v9 = vld [vmem:[#allocation5 + $0x90] sm:$0xff] }
 0x4aa   : > { %4247 = vmatmul.f32.gmra.mxu1 %v4147_v9 }
 0x4b0   : > { %v3968_v31 = vpop.permute.xlu0 %3967  ;;  %v4151_v21 = vld [vmem:[#allocation5 + $0xb0] sm:$0xff] }
 0x4b1   : > { %3985 = vst.msk [vmem:[#allocation5 + $0xa8] sm:$0xff] %vm3977_vm13, %v3968_v31  ;;  %4291 = vmatmul.f32.gmra.mxu2 %v4151_v21  ;;  %vm9343_vm13 = vmmov %vm9336_vm6 }
 0x4b8   : > { %v4150_v49 = vld [vmem:[#allocation5 + $0xa8] sm:$0xff] }
 0x4b9   : > { %4250 = vmatmul.f32.gmra.mxu1 %v4150_v49 }
 0x4c2   : > { %v4815_v15 = vpop.permute.xlu1 %4814 }
 0x4c3   : > { %4821 = vst.msk [vmem:[#allocation7] sm:$0xff] %vm4820_vm15, %v4815_v15 }
 0x4ca   : > { %v4965_v43 = vld [vmem:[#allocation7] sm:$0xff] }
 0x4cb   : > { %5069 = vmatmul.f32.vlgmr.msrb.gmra.mxu3 %v4965_v43 }
 0x4d2   : > { %v4242_v17 = vpop.f32.mrf.mxu1  ;;  %v4283_v46 = vpop.f32.mrf.mxu2 }
 0x4d3   : > { %v4284_v56 = vadd.f32 %v4283_v46, %v4242_v17 }
 0x4d5   : > { %v4325_v30 = vadd.f32 %v4324_v62, %v4284_v56 }
 0x4d7   : > { %v4356_v0 = vrot.slane %v4325_v30, 2  ;;  %v4357_v19 = vrot.slane %v4325_v30, 4  ;;  %v4358_v60 = vrot.slane %v4325_v30, 6  ;;  %v4505_v16 = vsel %vm4392_vm14, %v4325_v30, -inf }
 0x4d8   : > { %v4506_v28 = vrot.slane %v4505_v16, 4 }
 0x4d9   : > { %v4512_v29 = vsel %vm4392_vm14, %v4356_v0, -inf  ;;  %v4519_v35 = vsel %vm4392_vm14, %v4357_v19, -inf  ;;  %v4526_v59 = vsel %vm4392_vm14, %v4358_v60, -inf }
 0x4da   : > { %v4513_v20 = vrot.slane %v4512_v29, 4  ;;  %v4520_v6 = vrot.slane %v4519_v35, 4  ;;  %v4527_v26 = vrot.slane %v4526_v59, 4  ;;  %v4507_v58 = vmax.f32 %v4505_v16, %v4506_v28 }
 0x4dc   : > { %v4514_v8 = vmax.f32 %v4512_v29, %v4513_v20  ;;  %v4521_v1 = vmax.f32 %v4519_v35, %v4520_v6  ;;  %v4528_v7 = vmax.f32 %v4526_v59, %v4527_v26  ;;  %v4508_v31 = vrot.slane %v4507_v58, 2 }
 0x4de   : > { %v4515_v11 = vrot.slane %v4514_v8, 2  ;;  %v4522_v4 = vrot.slane %v4521_v1, 2  ;;  %v4529_v43 = vrot.slane %v4528_v7, 2  ;;  %v4509_v25 = vmax.f32 %v4507_v58, %v4508_v31 }
 0x4e0   : > { %v4516_v22 = vmax.f32 %v4514_v8, %v4515_v11  ;;  %v4523_v3 = vmax.f32 %v4521_v1, %v4522_v4  ;;  %v4530_v23 = vmax.f32 %v4528_v7, %v4529_v43  ;;  %v4510_v63 = vrot.slane %v4509_v25, 1 }
 0x4e2   : > { %v4517_v17 = vrot.slane %v4516_v22, 1  ;;  %v4524_v45 = vrot.slane %v4523_v3, 1  ;;  %v4531_v46 = vrot.slane %v4530_v23, 1  ;;  %v4511_v30 = vmax.f32 %v4509_v25, %v4510_v63 }
 0x4e4   : > { %v4518_v13 = vmax.f32 %v4516_v22, %v4517_v17  ;;  %v4525_v60 = vmax.f32 %v4523_v3, %v4524_v45  ;;  %v4532_v16 = vmax.f32 %v4530_v23, %v4531_v46  ;;  %v4642_v20 = vsel %vm4617_vm11, %v4511_v30, -inf }
 0x4e6   : > { %v4645_v1 = vsel %vm4617_vm11, %v4518_v13, -inf  ;;  %v4651_v31 = vsel %vm4617_vm11, %v4532_v16, -inf }
 0x4fa   : > { %v4866_v39 = vpop.permute.xlu0 %4865 }
 0x4fb   : > { %4871 = vst.msk [vmem:[#allocation7 + $0x8] sm:$0xff] %vm4820_vm15, %v4866_v39 }
 0x501   : > { %v4286_v21 = vpop.f32.mrf.mxu2 }
 0x502   : > { %v4966_v9 = vld [vmem:[#allocation7 + $0x8] sm:$0xff] }
 0x503   : > { %5092 = vmatmul.f32.vlgmr.msra.gmra.mxu1 %v4966_v9  ;;  %v4648_v9 = vsel %vm4617_vm11, %v4525_v60, -inf }
 0x504   : > { %v4245_v49 = vpop.f32.mrf.mxu1 }
 0x505   : > { %v4287_v15 = vadd.f32 %v4286_v21, %v4245_v49 }
 0x507   : > { %v4328_v14 = vadd.f32 %v4327_v51, %v4287_v15 }
 0x509   : > { %v4359_v42 = vrot.slane %v4328_v14, 2  ;;  %v4360_v55 = vrot.slane %v4328_v14, 4  ;;  %v4361_v61 = vrot.slane %v4328_v14, 6  ;;  %v4533_v37 = vsel %vm4392_vm14, %v4328_v14, -inf }
 0x50a   : > { %v4534_v32 = vrot.slane %v4533_v37, 4 }
 0x50b   : > { %v4540_v24 = vsel %vm4392_vm14, %v4359_v42, -inf  ;;  %v4547_v36 = vsel %vm4392_vm14, %v4360_v55, -inf  ;;  %v4554_v53 = vsel %vm4392_vm14, %v4361_v61, -inf }
 0x50c   : > { %v4535_v27 = vmax.f32 %v4533_v37, %v4534_v32  ;;  %v4541_v18 = vrot.slane %v4540_v24, 4  ;;  %v4548_v5 = vrot.slane %v4547_v36, 4  ;;  %v4555_v38 = vrot.slane %v4554_v53, 4  ;;  %v4905_v10 = vpop.permute.xlu1 %4904 }
 0x50d   : > { %4910 = vst.msk [vmem:[#allocation7 + $0x10] sm:$0xff] %vm4820_vm15, %v4905_v10 }
 0x50e   : > { %v4536_v50 = vrot.slane %v4535_v27, 2  ;;  %v4542_v47 = vmax.f32 %v4540_v24, %v4541_v18  ;;  %v4549_v33 = vmax.f32 %v4547_v36, %v4548_v5  ;;  %v4556_v44 = vmax.f32 %v4554_v53, %v4555_v38  ;;  %v4330_v38 = vpop.f32.mrf.mxu3 }
 0x510   : > { %v4537_v56 = vmax.f32 %v4535_v27, %v4536_v50  ;;  %v4543_v41 = vrot.slane %v4542_v47, 2  ;;  %v4550_v12 = vrot.slane %v4549_v33, 2  ;;  %v4557_v62 = vrot.slane %v4556_v44, 2 }
 0x512   : > { %v4538_v54 = vrot.slane %v4537_v56, 1  ;;  %v4544_v57 = vmax.f32 %v4542_v47, %v4543_v41  ;;  %v4551_v0 = vmax.f32 %v4549_v33, %v4550_v12  ;;  %v4558_v19 = vmax.f32 %v4556_v44, %v4557_v62 }
 0x514   : > { %v4539_v39 = vmax.f32 %v4537_v56, %v4538_v54  ;;  %v4545_v29 = vrot.slane %v4544_v57, 1  ;;  %v4552_v35 = vrot.slane %v4551_v0, 1  ;;  %v4559_v28 = vrot.slane %v4558_v19, 1  ;;  %v4967_v59 = vld [vmem:[#allocation7 + $0x10] sm:$0xff] }
 0x515   : > { %5115 = vmatmul.f32.vlgmr.msra.gmra.mxu2 %v4967_v59 }
 0x516   : > { %v4546_v6 = vmax.f32 %v4544_v57, %v4545_v29  ;;  %v4553_v26 = vmax.f32 %v4551_v0, %v4552_v35  ;;  %v4560_v58 = vmax.f32 %v4558_v19, %v4559_v28  ;;  %v4643_v8 = vsel %vm4617_vm11, %v4539_v39, -inf  ;;  %v4333_v59 = vpop.f32.mrf.mxu3 }
 0x517   : > { %v4644_v7 = vmax.f32 %v4642_v20, %v4643_v8 }
 0x518   : > { %v4646_v21 = vsel %vm4617_vm11, %v4546_v6, -inf  ;;  %v4649_v49 = vsel %vm4617_vm11, %v4553_v26, -inf  ;;  %v4652_v15 = vsel %vm4617_vm11, %v4560_v58, -inf }
 0x519   : > { %v4647_v51 = vmax.f32 %v4645_v1, %v4646_v21  ;;  %v4650_v11 = vmax.f32 %v4648_v9, %v4649_v49  ;;  %v4653_v4 = vmax.f32 %v4651_v31, %v4652_v15  ;;  %v4678_v43 = vadd.f32 %v8459_v48, %v4644_v7 }
 0x51b   : > { %v4679_v14 = vadd.f32 %v8459_v48, %v4647_v51  ;;  %v4680_v25 = vadd.f32 %v8459_v48, %v4650_v11  ;;  %v4681_v42 = vadd.f32 %v8459_v48, %v4653_v4  ;;  %v4694_v22 = vmax.f32 %v4678_v43, 0.0 }
 0x51d   : > { %v4695_v55 = vmax.f32 %v4679_v14, 0.0  ;;  %v4696_v61 = vmax.f32 %v4680_v25, 0.0  ;;  %v4697_v37 = vmax.f32 %v4681_v42, 0.0 }
 0x51f   : > { %v4737_v3 = vrot.slane %v4695_v55, 7  ;;  %v4739_v32 = vrot.slane %v4696_v61, 6  ;;  %v4741_v24 = vrot.slane %v4697_v37, 5 }
 0x521   : > { %v4738_v23 = vsel %vm9341_vm9, %v4737_v3, %v4694_v22 }
 0x522   : > { %v4740_v36 = vsel %vm9342_vm1, %v4739_v32, %v4738_v23 }
 0x523   : > { %v4742_v53 = vsel %vm9343_vm13, %v4741_v24, %v4740_v36 }
 0x524   : > { %4757 = vst.msk [vmem:[#allocation6 + $0x19] sm:$0xf] %vm4754_vm12, %v4742_v53 }
 0x525   : > { %v4289_v27 = vpop.f32.mrf.mxu2 }
 0x527   : > { %v4248_v18 = vpop.f32.mrf.mxu1 }
 0x528   : > { %v4290_v5 = vadd.f32 %v4289_v27, %v4248_v18 }
 0x52a   : > { %v4331_v48 = vadd.f32 %v4330_v38, %v4290_v5 }
 0x52b   : > { %v8760_v10 = vld [vmem:[#allocation6 + $0x18] sm:$0x3f] }
 0x52c   : > { %v4362_v63 = vrot.slane %v4331_v48, 2  ;;  %v4363_v50 = vrot.slane %v4331_v48, 4  ;;  %v4364_v47 = vrot.slane %v4331_v48, 6  ;;  %v4561_v33 = vsel %vm4392_vm14, %v4331_v48, -inf  ;;  %4775 = vst [vmem:[#allocation1 + $0x11] ss:$2 sm:$0xff] %v8760_v10 }
 0x52d   : > { %v4785_v44 = vrot.slane %v8760_v10, 4  ;;  %4915 = vst [vmem:[#allocation1 + $0x1] ss:$2 sm:$0xff] %v8760_v10  ;;  %v4562_v46 = vrot.slane %v4561_v33, 4  ;;  %v5573_v54 = vrot.slane %v8760_v10, 9  ;;  %v5577_v7 = vrot.slane %v8760_v10, 10 }
 0x52e   : > { %v4568_v17 = vsel %vm4392_vm14, %v4362_v63, -inf  ;;  %v4575_v45 = vsel %vm4392_vm14, %v4363_v50, -inf  ;;  %v4582_v56 = vsel %vm4392_vm14, %v4364_v47, -inf }
 0x52f   : > { %v4803_v41 = vrot.slane %v4785_v44, 5  ;;  %v4569_v12 = vrot.slane %v4568_v17, 4  ;;  %v4576_v62 = vrot.slane %v4575_v45, 4  ;;  %v4583_v30 = vrot.slane %v4582_v56, 4 }
 0x530   : > { %v4563_v57 = vmax.f32 %v4561_v33, %v4562_v46  ;;  %v4840_v58 = vrot.slane %v4785_v44, 6 }
 0x531   : > { %v8772_v0 = vsel %vm8498_vm4, %v5573_v54, %v4803_v41  ;;  %v4570_v13 = vmax.f32 %v4568_v17, %v4569_v12  ;;  %v4577_v60 = vmax.f32 %v4575_v45, %v4576_v62  ;;  %v4584_v39 = vmax.f32 %v4582_v56, %v4583_v30 }
 0x532   : > { %v4564_v35 = vrot.slane %v4563_v57, 2  ;;  %v8784_v43 = vsel %vm8517_vm10, %v5577_v7, %v4840_v58  ;;  %v5674_v7 = vld [vmem:[%s9021_s4] ss:$0 sm:$0xff] }
 0x533   : > { %v4777_v19 = vld.sshfl [vmem:[#allocation1 + $0x10] sm:$0xff pattern:$0x75316420]  ;;  %v4571_v6 = vrot.slane %v4570_v13, 2  ;;  %v4578_v26 = vrot.slane %v4577_v60, 2  ;;  %v4585_v8 = vrot.slane %v4584_v39, 2 }
 0x534   : > { %v4920_v16 = vld.sshfl [vmem:[#allocation1] sm:$0xff pattern:$0x75316420]  ;;  %4811 = vst [vmem:[#allocation1 + $0x11] ss:$2 sm:$0xff] %v8772_v0  ;;  %v4292_v28 = vpop.f32.mrf.mxu2  ;;  %v4565_v9 = vmax.f32 %v4563_v57, %v4564_v35 }
 0x535   : > { %4931 = vst [vmem:[#allocation1] ss:$2 sm:$0xff] %v8569_v2  ;;  %v4572_v51 = vmax.f32 %v4570_v13, %v4571_v6  ;;  %v4579_v11 = vmax.f32 %v4577_v60, %v4578_v26 }
 0x536   : > { %v4251_v29 = vpop.f32.mrf.mxu1  ;;  %4933 = vst [vmem:[#allocation1 + $0x1] ss:$2 sm:$0xff] %v8772_v0  ;;  %v4566_v32 = vrot.slane %v4565_v9, 1 }
 0x537   : > { %v4293_v20 = vadd.f32 %v4292_v28, %v4251_v29  ;;  %4781 = vst.msk [vmem:[#allocation7 + $0x28] sm:$0xff] %vm4617_vm11, %v4777_v19  ;;  %v4573_v18 = vrot.slane %v4572_v51, 1  ;;  %v4580_v5 = vrot.slane %v4579_v11, 1 }
 0x538   : > { %4809 = vst [vmem:[#allocation1 + $0x10] ss:$2 sm:$0xff] %v8569_v2  ;;  %v4586_v2 = vmax.f32 %v4584_v39, %v4585_v8  ;;  %v4567_v33 = vmax.f32 %v4565_v9, %v4566_v32 }
 0x539   : > { %v4334_v1 = vadd.f32 %v4333_v59, %v4293_v20  ;;  %4924 = vst.msk [vmem:[#allocation7 + $0x18] sm:$0xff] %vm4617_vm11, %v4920_v16  ;;  %v4574_v56 = vmax.f32 %v4572_v51, %v4573_v18  ;;  %v4581_v41 = vmax.f32 %v4579_v11, %v4580_v5  ;;  %v4764_v5 = vld [vmem:[#allocation6 + $0x28] sm:$0x3f] }
 0x53a   : > { %v4587_v38 = vrot.slane %v4586_v2, 1  ;;  %v4654_v57 = vsel %vm4617_vm11, %v4567_v33, -inf }
 0x53b   : > { %v4365_v31 = vrot.slane %v4334_v1, 2  ;;  %v4366_v21 = vrot.slane %v4334_v1, 4  ;;  %v4367_v49 = vrot.slane %v4334_v1, 6  ;;  %v4589_v15 = vsel %vm4392_vm14, %v4334_v1, -inf }
 0x53c   : > { %v4590_v4 = vrot.slane %v4589_v15, 4  ;;  %v4588_v12 = vmax.f32 %v4586_v2, %v4587_v38  ;;  %v4657_v28 = vsel %vm4617_vm11, %v4574_v56, -inf  ;;  %v4660_v59 = vsel %vm4617_vm11, %v4581_v41, -inf  ;;  %v5032_v41 = vld [vmem:[%s9022_s5 + $0x1c8] sm:$0xff] }
 0x53d   : > { %v4596_v14 = vsel %vm4392_vm14, %v4365_v31, -inf  ;;  %v4603_v25 = vsel %vm4392_vm14, %v4366_v21, -inf  ;;  %v4610_v42 = vsel %vm4392_vm14, %v4367_v49, -inf  ;;  %v4938_v55 = vld.sshfl [vmem:[#allocation1] sm:$0xff pattern:$0x75316420]  ;;  %vm9344_vm14 = vmmov %vm9327_vm7 }
 0x53e   : > { %v4591_v61 = vmax.f32 %v4589_v15, %v4590_v4  ;;  %v4597_v37 = vrot.slane %v4596_v14, 4  ;;  %v4604_v22 = vrot.slane %v4603_v25, 4  ;;  %v4611_v3 = vrot.slane %v4610_v42, 4  ;;  %4940 = vrot.lane.b32.xlu0 %v4938_v55, %s9127_s30  ;;  %4952 = vst [vmem:[#allocation1] ss:$2 sm:$0xff] %v8586_v40 }
 0x53f   : > { %4954 = vst [vmem:[#allocation1 + $0x1] ss:$2 sm:$0xff] %v8784_v43  ;;  %v4813_v23 = vld.sshfl [vmem:[#allocation1 + $0x10] sm:$0xff pattern:$0x75316420]  ;;  %v4663_v26 = vsel %vm4617_vm11, %v4588_v12, -inf }
 0x540   : > { %v4592_v24 = vrot.slane %v4591_v61, 2  ;;  %v4598_v36 = vmax.f32 %v4596_v14, %v4597_v37  ;;  %v4605_v53 = vmax.f32 %v4603_v25, %v4604_v22  ;;  %v4612_v27 = vmax.f32 %v4610_v42, %v4611_v3  ;;  %4816 = vrot.lane.b32.xlu2 %v4813_v23, %s9127_s30  ;;  %4846 = vst [vmem:[#allocation1 + $0x10] ss:$2 sm:$0xff] %v8586_v40  ;;  %v5031_v12 = vld [vmem:[%s9022_s5 + $0x1c0] sm:$0xff] }
 0x541   : > { %4848 = vst [vmem:[#allocation1 + $0x11] ss:$2 sm:$0xff] %v8784_v43 }
 0x542   : > { %v4593_v48 = vmax.f32 %v4591_v61, %v4592_v24  ;;  %v4599_v63 = vrot.slane %v4598_v36, 2  ;;  %v4606_v50 = vrot.slane %v4605_v53, 2  ;;  %v4613_v47 = vrot.slane %v4612_v27, 2 }
 0x544   : > { %v4594_v44 = vrot.slane %v4593_v48, 1  ;;  %v4600_v17 = vmax.f32 %v4598_v36, %v4599_v63  ;;  %v4607_v45 = vmax.f32 %v4605_v53, %v4606_v50  ;;  %v4614_v46 = vmax.f32 %v4612_v27, %v4613_v47  ;;  %v5038_v50 = vld [vmem:[%s9022_s5 + $0x1f8] sm:$0xff]  ;;  %v5036_v47 = vld [vmem:[%s9022_s5 + $0x1e8] sm:$0xff] }
 0x545   : > { %5122 = vmatpush.msra.mxu3 %v5038_v50  ;;  %v5260_v50 = vld [vmem:[#allocation8 + $0x30] sm:$0xff] }
 0x546   : > { %v4595_v62 = vmax.f32 %v4593_v48, %v4594_v44  ;;  %v4601_v30 = vrot.slane %v4600_v17, 1  ;;  %v4608_v40 = vrot.slane %v4607_v45, 1  ;;  %v4615_v54 = vrot.slane %v4614_v46, 1  ;;  %v4959_v19 = vld.sshfl [vmem:[#allocation1] sm:$0xff pattern:$0x75316420] }
 0x547   : > { %4963 = vst.msk [vmem:[#allocation7 + $0x20] sm:$0xff] %vm4617_vm11, %v4959_v19  ;;  %v4926_v48 = vrot.slane %v4764_v5, 4  ;;  %v5035_v44 = vld [vmem:[%s9022_s5 + $0x1e0] sm:$0xff]  ;;  %v5026_v19 = vld [vmem:[%s9022_s5 + $0x198] sm:$0xff] }
 0x548   : > { %v4602_v13 = vmax.f32 %v4600_v17, %v4601_v30  ;;  %v4609_v60 = vmax.f32 %v4607_v45, %v4608_v40  ;;  %v4616_v16 = vmax.f32 %v4614_v46, %v4615_v54  ;;  %v4655_v39 = vsel %vm4617_vm11, %v4595_v62, -inf  ;;  %v4850_v29 = vld.sshfl [vmem:[#allocation1 + $0x10] sm:$0xff pattern:$0x75316420]  ;;  %v5034_v45 = vld [vmem:[%s9022_s5 + $0x1d8] sm:$0xff] }
 0x549   : > { %v4656_v35 = vmax.f32 %v4654_v57, %v4655_v39  ;;  %4860 = vst [vmem:[#allocation1 + $0x10] ss:$2 sm:$0xff] %v8760_v10  ;;  %v4929_v63 = vrot.slane %v4926_v48, 5  ;;  %v5581_v46 = vrot.slane %v4764_v5, 10  ;;  %v4950_v56 = vrot.slane %v4926_v48, 6  ;;  %v5030_v40 = vld [vmem:[%s9022_s5 + $0x1b8] sm:$0xff] }
 0x54a   : > { %v4658_v20 = vsel %vm4617_vm11, %v4602_v13, -inf  ;;  %v4661_v6 = vsel %vm4617_vm11, %v4609_v60, -inf  ;;  %v4664_v58 = vsel %vm4617_vm11, %v4616_v16, -inf  ;;  %4854 = vst.msk [vmem:[#allocation7 + $0x30] sm:$0xff] %vm4617_vm11, %v4850_v29  ;;  %v5029_v54 = vld [vmem:[%s9022_s5 + $0x1b0] sm:$0xff]  ;;  %v5027_v57 = vld [vmem:[%s9022_s5 + $0x1a0] sm:$0xff] }
 0x54b   : > { %v4659_v8 = vmax.f32 %v4657_v28, %v4658_v20  ;;  %v4662_v1 = vmax.f32 %v4660_v59, %v4661_v6  ;;  %v4665_v9 = vmax.f32 %v4663_v26, %v4664_v58  ;;  %v4682_v31 = vadd.f32 %v5674_v7, %v4656_v35  ;;  %v5025_v60 = vld [vmem:[%s9022_s5 + $0x190] sm:$0xff]  ;;  %v5024_v16 = vld [vmem:[%s9022_s5 + $0x188] sm:$0xff]  ;;  %v5023_v39 = vld [vmem:[%s9022_s5 + $0x180] sm:$0xff] }
 0x54c   : > { %v4951_v62 = vsel %vm8517_vm10, %v5581_v46, %v4950_v56  ;;  %v5046_v35 = vld [vmem:[%s9022_s5 + $0x238] sm:$0xff]  ;;  %v5045_v28 = vld [vmem:[%s9022_s5 + $0x230] sm:$0xff]  ;;  %v5044_v20 = vld [vmem:[%s9022_s5 + $0x228] sm:$0xff] }
 0x54d   : > { %v4683_v21 = vadd.f32 %v5674_v7, %v4659_v8  ;;  %v4684_v10 = vadd.f32 %v5674_v7, %v4662_v1  ;;  %v4685_v49 = vadd.f32 %v5674_v7, %v4665_v9  ;;  %v4698_v4 = vmax.f32 %v4682_v31, 0.0  ;;  %5153 = vmatpush.msrb.mxu1 %v5046_v35  ;;  %v5043_v6 = vld [vmem:[%s9022_s5 + $0x220] sm:$0xff]  ;;  %v5042_v26 = vld [vmem:[%s9022_s5 + $0x218] sm:$0xff]  ;;  %v5041_v58 = vld [vmem:[%s9022_s5 + $0x210] sm:$0xff] }
 0x54e   : > { %v5040_v8 = vld [vmem:[%s9022_s5 + $0x208] sm:$0xff]  ;;  %v5039_v1 = vld [vmem:[%s9022_s5 + $0x200] sm:$0xff]  ;;  %v5261_v48 = vld [vmem:[#allocation8 + $0x38] sm:$0xff] }
 0x54f   : > { %v4699_v15 = vmax.f32 %v4683_v21, 0.0  ;;  %v4700_v51 = vmax.f32 %v4684_v10, 0.0  ;;  %v4701_v11 = vmax.f32 %v4685_v49, 0.0  ;;  %5154 = vmatpush.msrb.mxu1 %v5045_v28  ;;  %v4969_v10 = vld [vmem:[#allocation7 + $0x20] sm:$0xff] }
 0x550   : > { %v5272_v56 = vld [vmem:[#allocation8 + $0x90] sm:$0xff] }
 0x551   : > { %v4743_v2 = vrot.slane %v4699_v15, 7  ;;  %v4745_v14 = vrot.slane %v4700_v51, 6  ;;  %v4747_v42 = vrot.slane %v4701_v11, 5  ;;  %5155 = vmatpush.msrb.mxu1 %v5044_v20  ;;  %v5340_v35 = vld [vmem:[#allocation8 + $0x170] sm:$0xff] }
 0x553   : > { %v4744_v25 = vsel %vm9344_vm14, %v4743_v2, %v4698_v4  ;;  %5156 = vmatpush.msrb.mxu1 %v5043_v6  ;;  %v5285_v2 = vld [vmem:[#allocation8 + $0xf8] sm:$0xff] }
 0x554   : > { %v4746_v55 = vsel %vm9345_vm2, %v4745_v14, %v4744_v25  ;;  %v5269_v14 = vld [vmem:[#allocation8 + $0x78] sm:$0xff]  ;;  %v5284_v25 = vld [vmem:[#allocation8 + $0xf0] sm:$0xff]  ;;  %5286 = vmatpush.msrb.mxu2 %v5285_v2 }
 0x555   : > { %v4748_v61 = vsel %vm9346_vm3, %v4747_v42, %v4746_v55  ;;  %5157 = vmatpush.msrb.mxu1 %v5042_v26  ;;  %v5268_v42 = vld [vmem:[#allocation8 + $0x70] sm:$0xff]  ;;  %v5283_v55 = vld [vmem:[#allocation8 + $0xe8] sm:$0xff] }
 0x556   : > { %4758 = vst.msk [vmem:[#allocation6 + $0x21] sm:$0xf] %vm4754_vm12, %v4748_v61  ;;  %v5267_v61 = vld [vmem:[#allocation8 + $0x68] sm:$0xff]  ;;  %5287 = vmatpush.msrb.mxu2 %v5284_v25  ;;  %v5377_v26 = vld [vmem:[#allocation8 + $0x1f0] sm:$0xff] }
 0x557   : > { %5158 = vmatpush.msrb.mxu1 %v5041_v58 }
 0x558   : > { %5288 = vmatpush.msrb.mxu2 %v5283_v55 }
 0x559   : > { %5159 = vmatpush.msrb.mxu1 %v5040_v8 }
 0x55b   : > { %5160 = vmatpush.msrb.mxu1 %v5039_v1 }
 0x55d   : > { %v4763_v37 = vld [vmem:[#allocation6 + $0x20] sm:$0x3f] }
 0x55e   : > { %4862 = vst [vmem:[#allocation1 + $0x11] ss:$2 sm:$0xff] %v4763_v37  ;;  %v4873_v22 = vrot.slane %v4763_v37, 4  ;;  %v5578_v32 = vrot.slane %v4763_v37, 9  ;;  %v5579_v53 = vrot.slane %v4763_v37, 10 }
 0x560   : > { %v4876_v3 = vrot.slane %v4873_v22, 5  ;;  %v4893_v36 = vrot.slane %v4873_v22, 6  ;;  %v5266_v22 = vld [vmem:[#allocation8 + $0x60] sm:$0xff] }
 0x562   : > { %v4877_v24 = vsel %vm8498_vm4, %v5578_v32, %v4876_v3  ;;  %v4894_v18 = vsel %vm8517_vm10, %v5579_v53, %v4893_v36  ;;  %v5281_v3 = vld [vmem:[#allocation8 + $0xd8] sm:$0xff]  ;;  %v5070_v36 = vpop.f32.mrf.mxu3  ;;  %v5279_v53 = vld [vmem:[#allocation8 + $0xc8] sm:$0xff] }
 0x563   : > { %v5265_v32 = vld [vmem:[#allocation8 + $0x58] sm:$0xff] }
 0x565   : > { %v4864_v23 = vld.sshfl [vmem:[#allocation1 + $0x10] sm:$0xff pattern:$0x75316420] }
 0x566   : > { %4867 = vrot.lane.b32.xlu2 %v4864_v23, %s9127_s30  ;;  %4882 = vst [vmem:[#allocation1 + $0x10] ss:$2 sm:$0xff] %v8772_v0  ;;  %v5580_v0 = vrot.slane %v4764_v5, 9  ;;  %v5280_v23 = vld [vmem:[#allocation8 + $0xd0] sm:$0xff] }
 0x567   : > { %4884 = vst [vmem:[#allocation1 + $0x11] ss:$2 sm:$0xff] %v4877_v24 }
 0x568   : > { %v4930_v33 = vsel %vm8498_vm4, %v5580_v0, %v4929_v63  ;;  %v5276_v63 = vld [vmem:[#allocation8 + $0xb0] sm:$0xff] }
 0x56e   : > { %v4886_v27 = vld.sshfl [vmem:[#allocation1 + $0x10] sm:$0xff pattern:$0x75316420] }
 0x56f   : > { %4899 = vst [vmem:[#allocation1 + $0x10] ss:$2 sm:$0xff] %v8784_v43  ;;  %v5037_v43 = vld [vmem:[%s9022_s5 + $0x1f0] sm:$0xff] }
 0x570   : > { %4901 = vst [vmem:[#allocation1 + $0x11] ss:$2 sm:$0xff] %v4894_v18  ;;  %5123 = vmatpush.msra.mxu3 %v5037_v43  ;;  %v5275_v43 = vld [vmem:[#allocation8 + $0xa8] sm:$0xff] }
 0x571   : > { %4890 = vst.msk [vmem:[#allocation7 + $0x38] sm:$0xff] %vm4617_vm11, %v4886_v27  ;;  %v5263_v27 = vld [vmem:[#allocation8 + $0x48] sm:$0xff] }
 0x572   : > { %5124 = vmatpush.msra.mxu3 %v5036_v47  ;;  %v5259_v47 = vld [vmem:[#allocation8 + $0x28] sm:$0xff] }
 0x574   : > { %5125 = vmatpush.msra.mxu3 %v5035_v44  ;;  %v5274_v44 = vld [vmem:[#allocation8 + $0xa0] sm:$0xff] }
 0x576   : > { %5126 = vmatpush.msra.mxu3 %v5034_v45  ;;  %v5273_v45 = vld [vmem:[#allocation8 + $0x98] sm:$0xff] }
 0x577   : > { %v4903_v38 = vld.sshfl [vmem:[#allocation1 + $0x10] sm:$0xff pattern:$0x75316420] }
 0x578   : > { %4906 = vrot.lane.b32.xlu1 %v4903_v38, %s9127_s30  ;;  %4917 = vst [vmem:[#allocation1 + $0x10] ss:$2 sm:$0xff] %v4763_v37  ;;  %5127 = vmatpush.msra.mxu3 %v5033_v34  ;;  %v5282_v37 = vld [vmem:[#allocation8 + $0xe0] sm:$0xff]  ;;  %v5277_v38 = vld [vmem:[#allocation8 + $0xb8] sm:$0xff] }
 0x579   : > { %4919 = vst [vmem:[#allocation1 + $0x11] ss:$2 sm:$0xff] %v4764_v5  ;;  %5289 = vmatpush.msrb.mxu2 %v5282_v37  ;;  %v5262_v5 = vld [vmem:[#allocation8 + $0x40] sm:$0xff]  ;;  %v5257_v34 = vld [vmem:[#allocation8 + $0x18] sm:$0xff] }
 0x57a   : > { %5128 = vmatpush.msra.mxu3 %v5032_v41  ;;  %v5256_v41 = vld [vmem:[#allocation8 + $0x10] sm:$0xff] }
 0x57b   : > { %5290 = vmatpush.msrb.mxu2 %v5281_v3 }
 0x57c   : > { %5129 = vmatpush.msra.mxu3 %v5031_v12 }
 0x57d   : > { %5291 = vmatpush.msrb.mxu2 %v5280_v23 }
 0x57e   : > { %5130 = vmatpush.msra.mxu3 %v5030_v40  ;;  %v5255_v40 = vld [vmem:[#allocation8 + $0x8] sm:$0xff] }
 0x57f   : > { %5292 = vmatpush.msrb.mxu2 %v5279_v53 }
 0x580   : > { %v4921_v17 = vld.sshfl [vmem:[#allocation1 + $0x10] sm:$0xff pattern:$0x75316420]  ;;  %5131 = vmatpush.msra.mxu3 %v5029_v54  ;;  %v5093_v0 = vpop.f32.mrf.mxu1 }
 0x581   : > { %4935 = vst [vmem:[#allocation1 + $0x10] ss:$2 sm:$0xff] %v4877_v24  ;;  %v5264_v24 = vld [vmem:[#allocation8 + $0x50] sm:$0xff] }
 0x582   : > { %4937 = vst [vmem:[#allocation1 + $0x11] ss:$2 sm:$0xff] %v4930_v33  ;;  %5132 = vmatpush.msra.mxu3 %v5028_v52 }
 0x583   : > { %4925 = vst.msk [vmem:[#allocation7 + $0x40] sm:$0xff] %vm4617_vm11, %v4921_v17  ;;  %v5258_v17 = vld [vmem:[#allocation8 + $0x20] sm:$0xff] }
 0x584   : > { %5133 = vmatpush.msra.mxu3 %v5027_v57  ;;  %v5270_v57 = vld [vmem:[#allocation8 + $0x80] sm:$0xff] }
 0x586   : > { %5134 = vmatpush.msra.mxu3 %v5026_v19  ;;  %v5254_v19 = vld [vmem:[#allocation8] sm:$0xff] }
 0x588   : > { %5135 = vmatpush.msra.mxu3 %v5025_v60 }
 0x589   : > { %v4939_v30 = vld.sshfl [vmem:[#allocation1 + $0x10] sm:$0xff pattern:$0x75316420] }
 0x58a   : > { %4942 = vrot.lane.b32.xlu2 %v4939_v30, %s9127_s30  ;;  %4956 = vst [vmem:[#allocation1 + $0x10] ss:$2 sm:$0xff] %v4894_v18  ;;  %5136 = vmatpush.msra.mxu3 %v5024_v16  ;;  %v5278_v18 = vld [vmem:[#allocation8 + $0xc0] sm:$0xff]  ;;  %v5271_v30 = vld [vmem:[#allocation8 + $0x88] sm:$0xff] }
 0x58b   : > { %4958 = vst [vmem:[#allocation1 + $0x11] ss:$2 sm:$0xff] %v4951_v62  ;;  %5293 = vmatpush.msrb.mxu2 %v5278_v18  ;;  %v5094_v62 = vadd.f32 %v5093_v0, %v5070_v36  ;;  %v5376_v36 = vld [vmem:[#allocation8 + $0x1e8] sm:$0xff] }
 0x58c   : > { %5137 = vmatpush.msra.mxu3 %v5023_v39  ;;  %v5341_v39 = vld [vmem:[#allocation8 + $0x178] sm:$0xff]  ;;  %v8919_v18 = vld [vmem:[%s9023_s6] ss:$0 sm:$0xff] }
 0x58d   : > { %5294 = vmatpush.msrb.mxu2 %v5277_v38  ;;  %5342 = vmatpush.msra.mxu1 %v5341_v39  ;;  %v5338_v38 = vld [vmem:[#allocation8 + $0x160] sm:$0xff]  ;;  %v5329_v39 = vld [vmem:[#allocation8 + $0x118] sm:$0xff] }
 0x58e   : > { %5306 = vmatpush.msrb.mxu3 %v5269_v14 }
 0x58f   : > { %5295 = vmatpush.msrb.mxu2 %v5276_v63  ;;  %5343 = vmatpush.msra.mxu1 %v5340_v35  ;;  %v5328_v35 = vld [vmem:[#allocation8 + $0x110] sm:$0xff] }
 0x590   : > { %5307 = vmatpush.msrb.mxu3 %v5268_v42 }
 0x591   : > { %5296 = vmatpush.msrb.mxu2 %v5275_v43  ;;  %v5374_v43 = vld [vmem:[#allocation8 + $0x1d8] sm:$0xff] }
 0x592   : > { %v4960_v13 = vld.sshfl [vmem:[#allocation1 + $0x10] sm:$0xff pattern:$0x75316420]  ;;  %5308 = vmatpush.msrb.mxu3 %v5267_v61 }
 0x593   : > { %4964 = vst.msk [vmem:[#allocation7 + $0x48] sm:$0xff] %vm4617_vm11, %v4960_v13  ;;  %5297 = vmatpush.msrb.mxu2 %v5274_v44 }
 0x594   : > { %5309 = vmatpush.msrb.mxu3 %v5266_v22 }
 0x595   : > { %5298 = vmatpush.msrb.mxu2 %v5273_v45  ;;  %v5373_v45 = vld [vmem:[#allocation8 + $0x1d0] sm:$0xff] }
 0x596   : > { %5310 = vmatpush.msrb.mxu3 %v5265_v32 }
 0x597   : > { %5299 = vmatpush.msrb.mxu2 %v5272_v56 }
 0x598   : > { %5311 = vmatpush.msrb.mxu3 %v5264_v24  ;;  %v5116_v12 = vpop.f32.mrf.mxu2  ;;  %v5339_v24 = vld [vmem:[#allocation8 + $0x168] sm:$0xff] }
 0x599   : > { %v5117_v52 = vadd.f32 %v5116_v12, %v5094_v62  ;;  %5300 = vmatpush.msrb.mxu2 %v5271_v30  ;;  %5344 = vmatpush.msra.mxu1 %v5339_v24  ;;  %v5372_v12 = vld [vmem:[#allocation8 + $0x1c8] sm:$0xff]  ;;  %v5334_v62 = vld [vmem:[#allocation8 + $0x140] sm:$0xff] }
 0x59a   : > { %v4817_v29 = vpop.permute.xlu2 %4816  ;;  %v4974_v49 = vld [vmem:[#allocation7 + $0x48] sm:$0xff]  ;;  %5312 = vmatpush.msrb.mxu3 %v5263_v27  ;;  %v5371_v30 = vld [vmem:[#allocation8 + $0x1c0] sm:$0xff] }
 0x59b   : > { %4822 = vst.msk [vmem:[#allocation7 + $0x28] sm:$0xff] %vm4820_vm15, %v4817_v29  ;;  %5301 = vmatpush.msrb.mxu2 %v5270_v57  ;;  %v5378_v29 = vld [vmem:[#allocation8 + $0x1f8] sm:$0xff]  ;;  %5345 = vmatpush.msra.mxu1 %v5338_v38  ;;  %v5369_v57 = vld [vmem:[#allocation8 + $0x1b0] sm:$0xff] }
 0x59c   : > { %5313 = vmatpush.msrb.mxu3 %v5262_v5 }
 0x59d   : > { %5379 = vmatpush.msra.mxu2 %v5378_v29  ;;  %v5366_v29 = vld [vmem:[#allocation8 + $0x198] sm:$0xff] }
 0x59e   : > { %5314 = vmatpush.msrb.mxu3 %v5261_v48  ;;  %v5375_v48 = vld [vmem:[#allocation8 + $0x1e0] sm:$0xff] }
 0x59f   : > { %5380 = vmatpush.msra.mxu2 %v5377_v26 }
 0x5a0   : > { %5315 = vmatpush.msrb.mxu3 %v5260_v50  ;;  %v5337_v50 = vld [vmem:[#allocation8 + $0x158] sm:$0xff] }
 0x5a1   : > { %5381 = vmatpush.msra.mxu2 %v5376_v36  ;;  %5346 = vmatpush.msra.mxu1 %v5337_v50 }
 0x5a2   : > { %v4970_v59 = vld [vmem:[#allocation7 + $0x28] sm:$0xff]  ;;  %5316 = vmatpush.msrb.mxu3 %v5259_v47 }
 0x5a3   : > { %5072 = vmatmul.f32.gmra.mxu3 %v4970_v59  ;;  %5382 = vmatpush.msra.mxu2 %v5375_v48 }
 0x5a4   : > { %5317 = vmatpush.msrb.mxu3 %v5258_v17  ;;  %v5336_v17 = vld [vmem:[#allocation8 + $0x150] sm:$0xff] }
 0x5a5   : > { %5383 = vmatpush.msra.mxu2 %v5374_v43  ;;  %5347 = vmatpush.msra.mxu1 %v5336_v17 }
 0x5a6   : > { %5318 = vmatpush.msrb.mxu3 %v5257_v34 }
 0x5a7   : > { %5384 = vmatpush.msra.mxu2 %v5373_v45 }
 0x5a8   : > { %5319 = vmatpush.msrb.mxu3 %v5256_v41  ;;  %v5335_v41 = vld [vmem:[#allocation8 + $0x148] sm:$0xff] }
 0x5a9   : > { %5348 = vmatpush.msra.mxu1 %v5335_v41  ;;  %5385 = vmatpush.msra.mxu2 %v5372_v12  ;;  %v5418_v12 = vld [vmem:[%s9026_s9 + $0x78] sm:$0xff] }
 0x5aa   : > { %5320 = vmatpush.msrb.mxu3 %v5255_v40  ;;  %v5333_v40 = vld [vmem:[#allocation8 + $0x138] sm:$0xff] }
 0x5ab   : > { %5349 = vmatpush.msra.mxu1 %v5334_v62  ;;  %5386 = vmatpush.msra.mxu2 %v5371_v30  ;;  %v5417_v62 = vld [vmem:[%s9026_s9 + $0x70] sm:$0xff]  ;;  %v5416_v30 = vld [vmem:[%s9026_s9 + $0x68] sm:$0xff] }
 0x5ac   : > { %5321 = vmatpush.msrb.mxu3 %v5254_v19  ;;  %v5331_v19 = vld [vmem:[#allocation8 + $0x128] sm:$0xff] }
 0x5ad   : > { %5350 = vmatpush.msra.mxu1 %v5333_v40  ;;  %v5414_v40 = vld [vmem:[%s9026_s9 + $0x58] sm:$0xff] }
 0x5b0   : > { %v4941_v9 = vpop.permute.xlu0 %4940 }
 0x5b1   : > { %4946 = vst.msk [vmem:[#allocation7 + $0x18] sm:$0xff] %vm4820_vm15, %v4941_v9 }
 0x5b8   : > { %v4968_v7 = vld [vmem:[#allocation7 + $0x18] sm:$0xff] }
 0x5b9   : > { %5138 = vmatmul.f32.vlgmr.msra.gmra.mxu3 %v4968_v7 }
 0x5ba   : > { %5420 = vmatpush.msra.mxu3 %v5418_v12 }
 0x5bc   : > { %5421 = vmatpush.msra.mxu3 %v5417_v62 }
 0x5be   : > { %5422 = vmatpush.msra.mxu3 %v5416_v30 }
 0x5c0   : > { %v4868_v31 = vpop.permute.xlu2 %4867 }
 0x5c1   : > { %4872 = vst.msk [vmem:[#allocation7 + $0x30] sm:$0xff] %vm4820_vm15, %v4868_v31 }
 0x5c8   : > { %v4971_v21 = vld [vmem:[#allocation7 + $0x30] sm:$0xff] }
 0x5c9   : > { %5095 = vmatmul.f32.gmra.mxu1 %v4971_v21 }
 0x5d1   : > { %5582 = vmatmul.msk.f32.vlgmr.msrb.gmra.mxu1 %vm4617_vm11, %v4969_v10 }
 0x5d9   : > { %5583 = vmatmul.msk.f32.gmra.mxu1 %vm4617_vm11, %v4974_v49  ;;  %vm5440_vm11 = vcmask 8192  }
 0x5e4   : > { %v4943_v15 = vpop.permute.xlu2 %4942 }
 0x5e5   : > { %4947 = vst.msk [vmem:[#allocation7 + $0x40] sm:$0xff] %vm4820_vm15, %v4943_v15 }
 0x5ea   : > { %v4907_v51 = vpop.permute.xlu1 %4906 }
 0x5eb   : > { %4911 = vst.msk [vmem:[#allocation7 + $0x38] sm:$0xff] %vm4820_vm15, %v4907_v51 }
 0x5ec   : > { %v4973_v11 = vld [vmem:[#allocation7 + $0x40] sm:$0xff] }
 0x5ed   : > { %5141 = vmatmul.f32.gmra.mxu3 %v4973_v11 }
 0x5f2   : > { %v4972_v4 = vld [vmem:[#allocation7 + $0x38] sm:$0xff] }
 0x5f3   : > { %5118 = vmatmul.f32.gmra.mxu2 %v4972_v4 }
 0x626   : > { %v8908_v33 = vpop.f32.mrf.mxu3 }
 0x63c   : > { %v5139_v54 = vpop.f32.mrf.mxu3 }
 0x63d   : > { %v5140_v13 = vadd.f32 %v5139_v54, %v5117_v52  ;;  %v5370_v54 = vld [vmem:[#allocation8 + $0x1b8] sm:$0xff]  ;;  %v5332_v52 = vld [vmem:[#allocation8 + $0x130] sm:$0xff] }
 0x63e   : > { %5387 = vmatpush.msra.mxu2 %v5370_v54  ;;  %5351 = vmatpush.msra.mxu1 %v5332_v52  ;;  %v5413_v54 = vld [vmem:[%s9026_s9 + $0x50] sm:$0xff]  ;;  %v5412_v52 = vld [vmem:[%s9026_s9 + $0x48] sm:$0xff] }
 0x640   : > { %5388 = vmatpush.msra.mxu2 %v5369_v57  ;;  %5352 = vmatpush.msra.mxu1 %v5331_v19  ;;  %v5411_v57 = vld [vmem:[%s9026_s9 + $0x40] sm:$0xff]  ;;  %v5410_v19 = vld [vmem:[%s9026_s9 + $0x38] sm:$0xff] }
 0x646   : > { %v8910_v46 = vpop.f32.mrf.mxu1 }
 0x64e   : > { %v5162_v60 = vpop.f32.mrf.mxu1 }
 0x64f   : > { %v5163_v16 = vadd.f32 %v5162_v60, %v5140_v13  ;;  %v5368_v13 = vld [vmem:[#allocation8 + $0x1a8] sm:$0xff]  ;;  %v5330_v60 = vld [vmem:[#allocation8 + $0x120] sm:$0xff] }
 0x650   : > { %5389 = vmatpush.msra.mxu2 %v5368_v13  ;;  %5353 = vmatpush.msra.mxu1 %v5330_v60  ;;  %v5409_v13 = vld [vmem:[%s9026_s9 + $0x30] sm:$0xff]  ;;  %v5408_v60 = vld [vmem:[%s9026_s9 + $0x28] sm:$0xff] }
 0x651   : > { %v5170_v28 = vrot.slane %v5163_v16, 2  ;;  %v5171_v59 = vrot.slane %v5163_v16, 4  ;;  %v5172_v20 = vrot.slane %v5163_v16, 6  ;;  %v5182_v6 = vsel %vm4823_vm8, %v5163_v16, -inf  ;;  %v5367_v16 = vld [vmem:[#allocation8 + $0x1a0] sm:$0xff] }
 0x652   : > { %v5183_v58 = vrot.slane %v5182_v6, 4  ;;  %5390 = vmatpush.msra.mxu2 %v5367_v16  ;;  %5354 = vmatpush.msra.mxu1 %v5329_v39  ;;  %v5407_v16 = vld [vmem:[%s9026_s9 + $0x20] sm:$0xff]  ;;  %v5406_v39 = vld [vmem:[%s9026_s9 + $0x18] sm:$0xff] }
 0x653   : > { %v5189_v8 = vsel %vm4823_vm8, %v5170_v28, -inf  ;;  %v5196_v1 = vsel %vm4823_vm8, %v5171_v59, -inf  ;;  %v5203_v9 = vsel %vm4823_vm8, %v5172_v20, -inf  ;;  %v5365_v28 = vld [vmem:[#allocation8 + $0x190] sm:$0xff]  ;;  %v5327_v59 = vld [vmem:[#allocation8 + $0x108] sm:$0xff] }
 0x654   : > { %v5184_v7 = vmax.f32 %v5182_v6, %v5183_v58  ;;  %v5190_v31 = vrot.slane %v5189_v8, 4  ;;  %v5197_v21 = vrot.slane %v5196_v1, 4  ;;  %v5204_v10 = vrot.slane %v5203_v9, 4  ;;  %5391 = vmatpush.msra.mxu2 %v5366_v29  ;;  %v5364_v20 = vld [vmem:[#allocation8 + $0x188] sm:$0xff]  ;;  %5355 = vmatpush.msra.mxu1 %v5328_v35  ;;  %v5326_v58 = vld [vmem:[#allocation8 + $0x100] sm:$0xff]  ;;  %v5405_v29 = vld [vmem:[%s9026_s9 + $0x10] sm:$0xff] }
 0x655   : > { %v5097_v6 = vadd.f32 %v8910_v46, %v8908_v33  ;;  %v5404_v35 = vld [vmem:[%s9026_s9 + $0x8] sm:$0xff] }
 0x656   : > { %v5185_v49 = vrot.slane %v5184_v7, 2  ;;  %v5191_v15 = vmax.f32 %v5189_v8, %v5190_v31  ;;  %v5198_v51 = vmax.f32 %v5196_v1, %v5197_v21  ;;  %v5205_v11 = vmax.f32 %v5203_v9, %v5204_v10  ;;  %5392 = vmatpush.msra.mxu2 %v5365_v28  ;;  %v5363_v8 = vld [vmem:[#allocation8 + $0x180] sm:$0xff]  ;;  %5356 = vmatpush.msra.mxu1 %v5327_v59  ;;  %v5165_v31 = vpop.f32.mrf.mxu1  ;;  %v5403_v28 = vld [vmem:[%s9026_s9] sm:$0xff] }
 0x658   : > { %v5186_v4 = vmax.f32 %v5184_v7, %v5185_v49  ;;  %v5192_v2 = vrot.slane %v5191_v15, 2  ;;  %v5199_v14 = vrot.slane %v5198_v51, 2  ;;  %v5206_v25 = vrot.slane %v5205_v11, 2  ;;  %5393 = vmatpush.msra.mxu2 %v5364_v20  ;;  %5357 = vmatpush.msra.mxu1 %v5326_v58 }
 0x65a   : > { %v5187_v42 = vrot.slane %v5186_v4, 1  ;;  %v5193_v55 = vmax.f32 %v5191_v15, %v5192_v2  ;;  %v5200_v61 = vmax.f32 %v5198_v51, %v5199_v14  ;;  %v5207_v37 = vmax.f32 %v5205_v11, %v5206_v25  ;;  %5394 = vmatpush.msra.mxu2 %v5363_v8 }
 0x65c   : > { %v5194_v22 = vrot.slane %v5193_v55, 1  ;;  %v5208_v3 = vrot.slane %v5207_v37, 1  ;;  %v5201_v32 = vrot.slane %v5200_v61, 1  ;;  %v5188_v23 = vmax.f32 %v5186_v4, %v5187_v42 }
 0x65e   : > { %v5195_v53 = vmax.f32 %v5193_v55, %v5194_v22  ;;  %v5209_v27 = vmax.f32 %v5207_v37, %v5208_v3  ;;  %v5202_v5 = vmax.f32 %v5200_v61, %v5201_v32 }
 0x660   : > { %v5239_v0 = vmax.f32 %v5195_v53, %v5209_v27  ;;  %v5238_v63 = vmax.f32 %v5188_v23, %v5202_v5 }
 0x662   : > { %v5247_v47 = vadd.f32 %v8919_v18, %v5239_v0  ;;  %v5246_v44 = vadd.f32 %v8919_v18, %v5238_v63 }
 0x664   : > { %v5251_v34 = vmax.f32 %v5247_v47, 0.0  ;;  %v5250_v56 = vmax.f32 %v5246_v44, 0.0 }
 0x666   : > { %5302 = vmatmul.f32.vlgmr.msrb.gmra.mxu2 %v5251_v34  ;;  %5322 = vmatmul.f32.vlgmr.msrb.gmra.mxu3 %v5250_v56 }
 0x670   : > { %v5142_v9 = vpop.f32.mrf.mxu3 }
 0x676   : > { %v5119_v26 = vpop.f32.mrf.mxu2 }
 0x677   : > { %v5120_v1 = vadd.f32 %v5119_v26, %v5097_v6 }
 0x679   : > { %v5143_v7 = vadd.f32 %v5142_v9, %v5120_v1  ;;  %v5400_v1 = vld [vmem:[%s9025_s8] sm:$0x1] }
 0x67b   : > { %v5166_v21 = vadd.f32 %v5165_v31, %v5143_v7 }
 0x67d   : > { %v5173_v10 = vrot.slane %v5166_v21, 2  ;;  %v5174_v49 = vrot.slane %v5166_v21, 4  ;;  %v5175_v15 = vrot.slane %v5166_v21, 6  ;;  %v5210_v51 = vsel %vm4823_vm8, %v5166_v21, -inf  ;;  %v5419_v21 = vld [vmem:[%s9027_s10] sm:$0x1] }
 0x67e   : > { %v5211_v33 = vrot.slane %v5210_v51, 4 }
 0x67f   : > { %v5217_v46 = vsel %vm4823_vm8, %v5173_v10, -inf  ;;  %v5224_v11 = vsel %vm4823_vm8, %v5174_v49, -inf  ;;  %v5231_v4 = vsel %vm4823_vm8, %v5175_v15, -inf }
 0x680   : > { %v5212_v2 = vmax.f32 %v5210_v51, %v5211_v33  ;;  %v5218_v14 = vrot.slane %v5217_v46, 4  ;;  %v5225_v25 = vrot.slane %v5224_v11, 4  ;;  %v5232_v42 = vrot.slane %v5231_v4, 4 }
 0x682   : > { %v5213_v55 = vrot.slane %v5212_v2, 2  ;;  %v5219_v61 = vmax.f32 %v5217_v46, %v5218_v14  ;;  %v5226_v37 = vmax.f32 %v5224_v11, %v5225_v25  ;;  %v5233_v22 = vmax.f32 %v5231_v4, %v5232_v42 }
 0x684   : > { %v5214_v3 = vmax.f32 %v5212_v2, %v5213_v55  ;;  %v5227_v32 = vrot.slane %v5226_v37, 2  ;;  %v5220_v23 = vrot.slane %v5219_v61, 2  ;;  %v5234_v24 = vrot.slane %v5233_v22, 2 }
 0x686   : > { %v5215_v36 = vrot.slane %v5214_v3, 1  ;;  %v5228_v53 = vmax.f32 %v5226_v37, %v5227_v32  ;;  %v5221_v27 = vmax.f32 %v5219_v61, %v5220_v23  ;;  %v5235_v5 = vmax.f32 %v5233_v22, %v5234_v24 }
 0x688   : > { %v5229_v38 = vrot.slane %v5228_v53, 1  ;;  %v5222_v48 = vrot.slane %v5221_v27, 1  ;;  %v5236_v0 = vrot.slane %v5235_v5, 1  ;;  %v5216_v63 = vmax.f32 %v5214_v3, %v5215_v36 }
 0x68a   : > { %v5230_v50 = vmax.f32 %v5228_v53, %v5229_v38  ;;  %v5223_v43 = vmax.f32 %v5221_v27, %v5222_v48  ;;  %v5237_v47 = vmax.f32 %v5235_v5, %v5236_v0 }
 0x68c   : > { %v5240_v44 = vmax.f32 %v5216_v63, %v5230_v50  ;;  %v5241_v17 = vmax.f32 %v5223_v43, %v5237_v47 }
 0x68e   : > { %v5248_v45 = vadd.f32 %v8919_v18, %v5240_v44  ;;  %v5249_v34 = vadd.f32 %v8919_v18, %v5241_v17  ;;  %v5415_v18 = vld [vmem:[%s9026_s9 + $0x60] sm:$0xff] }
 0x68f   : > { %5423 = vmatpush.msra.mxu3 %v5415_v18 }
 0x690   : > { %v5252_v56 = vmax.f32 %v5248_v45, 0.0  ;;  %v5253_v41 = vmax.f32 %v5249_v34, 0.0 }
 0x691   : > { %5424 = vmatpush.msra.mxu3 %v5414_v40 }
 0x692   : > { %5358 = vmatmul.f32.vlgmr.msra.gmra.mxu1 %v5252_v56  ;;  %5395 = vmatmul.f32.vlgmr.msra.gmra.mxu2 %v5253_v41 }
 0x693   : > { %5425 = vmatpush.msra.mxu3 %v5413_v54 }
 0x695   : > { %5426 = vmatpush.msra.mxu3 %v5412_v52 }
 0x697   : > { %5427 = vmatpush.msra.mxu3 %v5411_v57 }
 0x699   : > { %5428 = vmatpush.msra.mxu3 %v5410_v19 }
 0x69b   : > { %5429 = vmatpush.msra.mxu3 %v5409_v13 }
 0x69d   : > { %5430 = vmatpush.msra.mxu3 %v5408_v60 }
 0x69f   : > { %5431 = vmatpush.msra.mxu3 %v5407_v16 }
 0x6a1   : > { %5432 = vmatpush.msra.mxu3 %v5406_v39 }
 0x6a3   : > { %5433 = vmatpush.msra.mxu3 %v5405_v29 }
 0x6a5   : > { %5434 = vmatpush.msra.mxu3 %v5404_v35 }
 0x6a7   : > { %5435 = vmatpush.msra.mxu3 %v5403_v28 }
 0x6e9   : > { %v5303_v59 = vpop.f32.mrf.mxu2  ;;  %v5323_v20 = vpop.f32.mrf.mxu3 }
 0x6ea   : > { %v5324_v26 = vadd.f32 %v5323_v20, %v5303_v59 }
 0x70f   : > { %v5359_v6 = vpop.f32.mrf.mxu1 }
 0x710   : > { %v5362_v58 = vadd.f32 %v5359_v6, %v5324_v26 }
 0x715   : > { %v5396_v8 = vpop.f32.mrf.mxu2 }
 0x716   : > { %v5399_v9 = vadd.f32 %v5396_v8, %v5362_v58 }
 0x718   : > { %v5401_v7 = vadd.f32 %v5400_v1, %v5399_v9 }
 0x71a   : > { %v5402_v31 = vmax.f32 %v5401_v7, 0.0 }
 0x71c   : > { %5436 = vmatmul.f32.vlgmr.msra.gmra.mxu3 %v5402_v31 }
 0x79f   : > { %v5437_v10 = vpop.f32.mrf.mxu3 }
 0x7a0   : > { %v5438_v49 = vadd.f32 %v5437_v10, %v5419_v21 }
 0x7a2   : > { %5441 = vst.msk [vmem:[%s395_s12] sm:$0x1] %vm5440_vm11, %v5438_v49 }
 0x7a3   : > { %5732 = shalt.err (!%p5729_p8)
}
 0x7a4   : > { %5609 = dma.vmem_to_hbm [thread:$0]  (%p5884_p5), %s5454_s29, 16, %s5456_s16, %s5443_s15  }
 0x7a5 PF: > { %p5621_p9 = scmp.ge.s32.totalorder %s5771_s20, 2  ;;  %s5467_s24 = sand.u32 1, %s5759_s17  }
 0x7a6   : > { %s5468_s14 = scalar_lea.sflag [#allocation10], %s5467_s24 }
 0x7a7   : > { %p5616_p10 = pnand %p5621_p9, %p5888_p6 }
 0x7a9   : > { %p5617_p11 = pneg %p5616_p10 }
 0x7ab   : > { %5754 = dma.done.wait (%p5617_p11), %s5468_s14, 16  }
 0x7ac   : > { %5756 = vsyncadd (%p5617_p11), %s5468_s14, 4294967280  ;;  %p22_p12 = scmp.ge.s32.totalorder %s5871_s23, 4   ;;  %s9347_s17 = smov %s5763_s18 }
 0x7ad   : > { %s9348_s18 = smov %s5767_s19  ;;  %s9349_s19 = smov %s5882_s26 }
 0x7ae   : > { %s9350_s20 = smov %s5871_s23  ;;  %24 = sbr.rel (!%p22_p12) target bundleno = 7 (0x7), region = 134 }
 0x7b3   :  { %5473 = vsyncpa [#allocation9], 1 }
 0x7b4   :  { %5475 = vsyncpa [#allocation9 + $0x1], 1 }
 0x7b5   :  { %5476 = vsyncpa [#allocation10], 1 }
 0x7b6   :  { %5478 = vsyncpa [#allocation10 + $0x1], 1 }

</bundles_post_ra>
